<compile_context>
chip_gen: v5e
topology: v5e:2x2
jax: 0.10.0
libtpu: 0.0.40
codegen_flags: <defaults>
</compile_context>

<pallas_src>
import math

import jax
import jax.numpy as jnp
from jax.experimental import pallas as pl
from jax.experimental.pallas import tpu as pltpu

# ----- module hyper-parameters (small but faithful to the reference MLP) ------------
INPUT_DIM = 32
OUTPUT_DIM = 16
NET_DEPTH = 8
NET_WIDTH = 32
SKIP_LAYER = 4
SKIP_DST_LAYER = SKIP_LAYER + 1      # layer whose input is concat([x, inputs])  (== 5)

# ----- lane packing: 8 independent rows side-by-side along the 128-lane axis --------
GROUPS = 8                           # rows packed per packed-row
PK_IN = GROUPS * INPUT_DIM           # 256  (packed x width)
PK_OUT = GROUPS * OUTPUT_DIM         # 128  (packed output width -> lane-dense store)
GROUPS_NARROW = 4                    # groups per 128-lane MXU tile (v5e path)
PK_WIDE = GROUPS * NET_WIDTH         # 256  (hidden slab width, v6e/v7x path)
PK_NARROW = GROUPS_NARROW * NET_WIDTH  # 128 (hidden slab width, v5e path)

# Parameter-slab slots (hidden layers + the `inputs` branch of the skip layer).
W_SKIP_SLOT = NET_DEPTH              # slot 8
NSLOT = NET_DEPTH + 1                # 9

# Packed-row tile cap: ~12-24 MiB working set incl. double buffers -> fits every
# generation's scoped VMEM with the 48 MiB limit below (v7x physical = 64 MiB).
TM_PACKED_MAX = 2048


# ----- generation detection (best-effort; wide/256 path is correct everywhere) -------
def _device_kind():
    try:
        return jax.devices()[0].device_kind.lower()
    except Exception:
        return ""


def _use_narrow_mxu():
    """v5e has 128x128 MXUs -> use the 128-wide block-diag packing there."""
    k = _device_kind()
    return ("v5 lite" in k) or ("v5e" in k) or ("v5litepod" in k)


def _num_tensorcores():
    """v5e/v6e expose one TensorCore per chip; v7x (and megacore v4/v5p) two."""
    k = _device_kind()
    single_tc = ("v5 lite" in k or "v5e" in k or "v5litepod" in k
                 or "v6 lite" in k or "v6e" in k)
    return 1 if single_tc else 2


def _tile_plan(n_packed):
    """Packed-row tile + grid length.  The grid is a serial loop on 1-TC chips, so use
    as few steps as possible: 1 on v5e/v6e, 2 (even) on 2-TC chips, growing only when
    the VMEM cap forces it."""
    tcs = _num_tensorcores()
    steps = max(tcs, pl.cdiv(n_packed, TM_PACKED_MAX))
    if tcs > 1 and steps > 1:
        steps += steps % 2                     # even step count: no idle TC on the tail
    if steps <= 1 or n_packed <= 2 * 8:
        return n_packed, 1                     # single full-array block (any row count)
    tm = min(TM_PACKED_MAX, ((pl.cdiv(n_packed, steps) + 7) // 8) * 8)
    grid = pl.cdiv(n_packed, tm)               # last block may be ragged: OOB reads only
    if grid <= 1:                              # touch rows that are cropped anyway, OOB
        return n_packed, 1                     # writes are dropped by Pallas
    return tm, grid


# ----- kernels ------------------------------------------------------------------------
def _mlp_kernel_wide(x_ref, w_ref, b_ref, wout_ref, bout_ref, out_ref):
    """256x256 block-diagonal path (v6e / v7x).

    x_ref   : (tm, 256)     f32    8 row-groups x 32 input features (cast here)
    w_ref   : (9, 256, 256) bf16   block-diagonal hidden + skip weights (resident)
    b_ref   : (9, 1, 256)   f32    packed biases (resident)
    wout_ref: (256, 128)    bf16   pre-sliced output projection
    bout_ref: (1, 128)      f32
    out_ref : (tm, 128)     f32    lane-dense, unmasked vst
    """
    # bf16 cast in-kernel (VPU has slack) instead of a separate XLA op over HBM.
    inputs = x_ref[...].astype(jnp.bfloat16)
    x = inputs
    for i in range(NET_DEPTH):
        acc = jnp.dot(x, w_ref[i], preferred_element_type=jnp.float32)
        if i == SKIP_DST_LAYER:
            # skip connection without a lane concat:
            #   concat([x, inputs]) @ W == x @ W_hidden_part + inputs @ W_input_part
            # written as accumulation into `acc` so Mosaic can fold it into the MXU
            # result buffer (in-place accumulate on v7x's MRB).
            acc = acc + jnp.dot(inputs, w_ref[W_SKIP_SLOT],
                                preferred_element_type=jnp.float32)
        acc = jnp.maximum(acc + b_ref[i], 0.0)            # bias add + ReLU in f32
        x = acc.astype(jnp.bfloat16)                      # bf16 operand for next MXU op
    y = jnp.dot(x, wout_ref[...], preferred_element_type=jnp.float32) + bout_ref[...]
    # TODO(synk): could store bf16 to halve writeback if the consumer accepts it.
    out_ref[...] = y                                      # output_activation = Identity


def _mlp_kernel_narrow(x_ref, w_ref, b_ref, wout_ref, bout_ref, out_ref):
    """128x128 block-diagonal path (v5e).  Its MXUs are 128x128, so a 256-wide
    block-diag matmul would grind through two all-zero off-diagonal quadrants.
    Process the two 128-lane halves (row groups 0-3 and 4-7) independently against a
    shared kron(eye(4), W) (128,128) RHS -> half the issued MXU cycles, same math."""
    xin = x_ref[...].astype(jnp.bfloat16)                 # (tm, 256)
    halves = (xin[:, :PK_NARROW], xin[:, PK_NARROW:])     # lane-tile aligned views
    finals = []
    for inp in halves:
        x = inp
        for i in range(NET_DEPTH):
            acc = jnp.dot(x, w_ref[i], preferred_element_type=jnp.float32)
            if i == SKIP_DST_LAYER:
                acc = acc + jnp.dot(inp, w_ref[W_SKIP_SLOT],
                                    preferred_element_type=jnp.float32)
            acc = jnp.maximum(acc + b_ref[i], 0.0)
            x = acc.astype(jnp.bfloat16)
        finals.append(x)
    # One lane-dense (tm, 128) store.  wout rows [0:128] only feed cols [0:64] and
    # rows [128:256] only cols [64:128], so the two partial products simply add.
    y = (jnp.dot(finals[0], wout_ref[:PK_NARROW, :], preferred_element_type=jnp.float32)
         + jnp.dot(finals[1], wout_ref[PK_NARROW:, :], preferred_element_type=jnp.float32)
         + bout_ref[...])
    out_ref[...] = y


# ----- parameter construction (replicates MLP.__init__ / MLP.initialize) ------------
def xavier_uniform(key, out_features, in_features):
    """torch.nn.init.xavier_uniform_ on an nn.Linear weight of shape (out, in)."""
    a = math.sqrt(6.0 / (in_features + out_features))
    return jax.random.uniform(key, (out_features, in_features),
                              minval=-a, maxval=a, dtype=jnp.float32)


def _layer_in_features():
    dims = []
    in_features = INPUT_DIM
    for i in range(NET_DEPTH):
        dims.append(in_features)
        if SKIP_LAYER is not None and i % SKIP_LAYER == 0 and i > 0:
            in_features = NET_WIDTH + INPUT_DIM
        else:
            in_features = NET_WIDTH
    return dims, in_features


def init_params(key):
    """xavier_uniform_ weights, zeros_ biases; weights stored as (in, out) = W.T."""
    hidden_in, out_in = _layer_in_features()
    weights, biases = [], []
    keys = jax.random.split(key, NET_DEPTH + 1)
    for i in range(NET_DEPTH):
        weights.append(jnp.transpose(xavier_uniform(keys[i], NET_WIDTH, hidden_in[i])))
        biases.append(jnp.zeros((NET_WIDTH,), jnp.float32))
    weights.append(jnp.transpose(xavier_uniform(keys[NET_DEPTH], OUTPUT_DIM, out_in)))
    biases.append(jnp.zeros((OUTPUT_DIM,), jnp.float32))
    return weights, biases


def _block_diag(w, groups):
    """(in, out) -> (groups*in, groups*out) block-diagonal; numerically exact."""
    return jnp.kron(jnp.eye(groups, dtype=w.dtype), w)


def pack_params(weights, biases, groups_per_tile=None):
    """Collapse the 19 per-layer tensors into resident slabs.

    groups_per_tile: 8 -> (9,256,256) slabs for the 256x256-MXU chips (v6e/v7x);
                     4 -> (9,128,128) slabs shared by both lane halves (v5e).
    The output projection is stored pre-sliced as its own (256,128)/(1,128) slabs.
    """
    if groups_per_tile is None:
        groups_per_tile = GROUPS_NARROW if _use_narrow_mxu() else GROUPS
    g = groups_per_tile
    pk = g * NET_WIDTH
    w_slab = jnp.zeros((NSLOT, pk, pk), jnp.float32)
    b_slab = jnp.zeros((NSLOT, 1, pk), jnp.float32)
    for i in range(NET_DEPTH):
        w = weights[i]
        if i == SKIP_DST_LAYER:                            # in_features = width + input
            w_slab = w_slab.at[i].set(_block_diag(w[:NET_WIDTH], g))        # hidden part
            w_slab = w_slab.at[W_SKIP_SLOT].set(_block_diag(w[NET_WIDTH:], g))  # inputs
        else:
            w_slab = w_slab.at[i].set(_block_diag(w, g))
        b_slab = b_slab.at[i, 0].set(jnp.tile(biases[i], g))
    w_out = _block_diag(weights[NET_DEPTH], GROUPS)        # (256, 128), row-pack wide
    b_out = jnp.tile(biases[NET_DEPTH], GROUPS)[None, :]   # (1, 128)
    return (w_slab.astype(jnp.bfloat16), b_slab,
            w_out.astype(jnp.bfloat16), b_out)


# ----- wrapper -----------------------------------------------------------------------
def nerf_mlp_forward(x, params, *, force_tm=None):
    w_slab, b_slab, w_out, b_out = params
    nslot, pk, _ = w_slab.shape
    kernel = _mlp_kernel_narrow if pk == PK_NARROW else _mlp_kernel_wide

    n = x.shape[0]
    n8 = pl.cdiv(n, GROUPS) * GROUPS
    if n8 != n:
        # Only the <=7 rows needed so the 8-way lane packing is a legal reshape.
        # TODO(synk): still one full-array XLA pad pass when n % 8 != 0.
        x = jnp.pad(x, ((0, n8 - n), (0, 0)))
    n_packed = n8 // GROUPS
    # Contiguous reshape: free in HBM.  x stays f32; the bf16 cast happens in-kernel.
    x_packed = x.reshape(n_packed, PK_IN)

    if force_tm is None:
        tm, grid = _tile_plan(n_packed)
    else:
        tm, grid = force_tm, pl.cdiv(n_packed, force_tm)

    halves = PK_IN // pk                                   # 1 (wide) or 2 (narrow)
    flops = 2 * n_packed * (halves * (NET_DEPTH + 1) * pk * pk + PK_IN * PK_OUT)
    bytes_accessed = (x_packed.size * 4 + n_packed * PK_OUT * 4 + w_slab.size * 2
                      + b_slab.size * 4 + w_out.size * 2 + b_out.size * 4)

    out_packed = pl.pallas_call(
        kernel,
        out_shape=jax.ShapeDtypeStruct((n_packed, PK_OUT), jnp.float32),
        grid=(grid,),
        in_specs=[
            pl.BlockSpec((tm, PK_IN), lambda i: (i, 0)),          # activation tile (f32)
            # Weight/bias slabs: constant index maps => fetched once and resident
            # (Pallas skips the re-DMA when the block index does not change between
            # steps; the second pipeline buffer only costs ~1.3 MiB of VMEM headroom).
            pl.BlockSpec((nslot, pk, pk), lambda i: (0, 0, 0)),
            pl.BlockSpec((nslot, 1, pk), lambda i: (0, 0, 0)),
            pl.BlockSpec((PK_IN, PK_OUT), lambda i: (0, 0)),      # pre-sliced out proj
            pl.BlockSpec((1, PK_OUT), lambda i: (0, 0)),
        ],
        out_specs=pl.BlockSpec((tm, PK_OUT), lambda i: (i, 0)),   # lane-dense 128 vst
        compiler_params=pltpu.CompilerParams(
            dimension_semantics=("parallel",),
            vmem_limit_bytes=48 * 1024 * 1024),
        cost_estimate=pl.CostEstimate(flops=int(flops), transcendentals=0,
                                      bytes_accessed=int(bytes_accessed)),
    )(x_packed, w_slab, b_slab, w_out, b_out)

    return out_packed.reshape(n8, OUTPUT_DIM)[:n]          # contiguous => free, then crop


# ----- pure-JAX references (mirror MLP.forward) --------------------------------------
def mlp_reference_f32(x, weights, biases):
    inputs = x
    for i in range(NET_DEPTH):
        x = jnp.maximum(x @ weights[i] + biases[i], 0.0)
        if SKIP_LAYER is not None and i % SKIP_LAYER == 0 and i > 0:
            x = jnp.concatenate([x, inputs], axis=-1)
    return x @ weights[NET_DEPTH] + biases[NET_DEPTH]


def mlp_reference_bf16(x, weights, biases):
    """Same math at the kernel's precision (bf16 operands, f32 accumulation)."""
    inputs = x.astype(jnp.bfloat16)
    x = inputs
    for i in range(NET_DEPTH):
        y = jnp.dot(x, weights[i].astype(jnp.bfloat16),
                    preferred_element_type=jnp.float32) + biases[i]
        x = jnp.maximum(y, 0.0).astype(jnp.bfloat16)
        if SKIP_LAYER is not None and i % SKIP_LAYER == 0 and i > 0:
            x = jnp.concatenate([x, inputs], axis=-1)
    return jnp.dot(x, weights[NET_DEPTH].astype(jnp.bfloat16),
                   preferred_element_type=jnp.float32) + biases[NET_DEPTH]


if __name__ == "__main__":
    key = jax.random.PRNGKey(0)
    k_x, k_w, k_b = jax.random.split(key, 3)

    N = 5001   # deliberately ragged (not a multiple of 8 or any tile): exercises padding
    x = jax.random.normal(k_x, (N, INPUT_DIM), dtype=jnp.float32)
    weights, biases = init_params(k_w)
    # The module inits biases to zero, which would mask a bias-tiling bug; use small
    # random nonzero biases so the bias packing / skip-slot handling is exercised.
    bkeys = jax.random.split(k_b, NET_DEPTH + 1)
    biases = [0.1 * jax.random.normal(bkeys[i], b.shape, dtype=jnp.float32)
              for i, b in enumerate(biases)]

    ref_bf16 = mlp_reference_bf16(x, weights, biases)   # kernel-precision reference
    ref_f32 = mlp_reference_f32(x, weights, biases)     # PyTorch-faithful f32 reference

    # Validate BOTH packing paths regardless of the local chip (the auto path picks one
    # by generation): wide 256x256 tiles (v6e/v7x) and narrow 128x128 tiles (v5e).
    for groups in (GROUPS, GROUPS_NARROW):
        params = pack_params(weights, biases, groups)
        out = jax.block_until_ready(nerf_mlp_forward(x, params))
        assert out.shape == (N, OUTPUT_DIM)
        assert jnp.allclose(out, ref_bf16, rtol=1e-3, atol=1e-3), "mismatch vs bf16 ref"
        assert jnp.allclose(out, ref_f32, rtol=5e-2, atol=5e-2), "mismatch vs f32 ref"

    # Extra coverage: force a multi-step grid with a ragged last tile (the shape a
    # 2-TensorCore chip / large N would take), independent of the local chip.
    params_wide = pack_params(weights, biases, GROUPS)
    out_ragged = jax.block_until_ready(nerf_mlp_forward(x, params_wide, force_tm=128))
    assert jnp.allclose(out_ragged, ref_bf16, rtol=1e-3, atol=1e-3), "ragged-tile mismatch"

    print("KERNEL_OK")
</pallas_src>

<mosaic_0001>
module attributes {stable_mosaic.version = 11 : i64} {
  func.func @_mlp_kernel_wide(%arg0: i32, %arg1: memref<320x256xf32, #tpu.memory_space<vmem>>, %arg2: memref<9x256x256xbf16, #tpu.memory_space<vmem>>, %arg3: memref<9x1x256xf32, #tpu.memory_space<vmem>>, %arg4: memref<256x128xbf16, #tpu.memory_space<vmem>>, %arg5: memref<1x128xf32, #tpu.memory_space<vmem>>, %arg6: memref<320x128xf32, #tpu.memory_space<vmem>>) attributes {dimension_semantics = [#tpu.dimension_semantics<parallel>], iteration_bounds = array<i64: 2>, scalar_prefetch = 0 : i64, scratch_operands = 0 : i64, tpu.core_type = #tpu.core_type<tc>, window_params = [{transform_indices = @transform_0, window_bounds = array<i64: 320, 256>}, {pipeline_mode = #tpu.pipeline_mode<synchronous>, transform_indices = @transform_1, window_bounds = array<i64: 9, 256, 256>}, {pipeline_mode = #tpu.pipeline_mode<synchronous>, transform_indices = @transform_2, window_bounds = array<i64: 9, 1, 256>}, {pipeline_mode = #tpu.pipeline_mode<synchronous>, transform_indices = @transform_3, window_bounds = array<i64: 256, 128>}, {pipeline_mode = #tpu.pipeline_mode<synchronous>, transform_indices = @transform_4, window_bounds = array<i64: 1, 128>}, {transform_indices = @transform_5, window_bounds = array<i64: 320, 128>}]} {
    %c0 = arith.constant 0 : index
    %c0_0 = arith.constant 0 : index
    %0 = vector.load %arg1[%c0, %c0_0] : memref<320x256xf32, #tpu.memory_space<vmem>>, vector<320x256xf32>
    %1 = arith.truncf %0 : vector<320x256xf32> to vector<320x256xbf16>
    %c0_1 = arith.constant 0 : index
    %c0_2 = arith.constant 0 : index
    %c0_3 = arith.constant 0 : index
    %2 = vector.load %arg2[%c0_1, %c0_2, %c0_3] : memref<9x256x256xbf16, #tpu.memory_space<vmem>>, vector<1x256x256xbf16>
    %3 = vector.shape_cast %2 : vector<1x256x256xbf16> to vector<256x256xbf16>
    %cst = arith.constant dense<0.000000e+00> : vector<320x256xf32>
    %4 = tpu.matmul %1, %3, %cst {dimension_numbers = #tpu.dot_dimension_numbers<[1], [0], [0], [1], [0, 0, 1, 1], [], []>} : vector<320x256xbf16>, vector<256x256xbf16>, vector<320x256xf32> -> vector<320x256xf32>
    %c0_4 = arith.constant 0 : index
    %c0_5 = arith.constant 0 : index
    %c0_6 = arith.constant 0 : index
    %5 = vector.load %arg3[%c0_4, %c0_5, %c0_6] : memref<9x1x256xf32, #tpu.memory_space<vmem>>, vector<1x1x256xf32>
    %6 = vector.shape_cast %5 : vector<1x1x256xf32> to vector<1x256xf32>
    %7 = vector.broadcast %6 : vector<1x256xf32> to vector<320x256xf32>
    %8 = arith.addf %4, %7 : vector<320x256xf32>
    %cst_7 = arith.constant 0.000000e+00 : f32
    %9 = vector.broadcast %cst_7 : f32 to vector<320x256xf32>
    %10 = arith.maximumf %8, %9 : vector<320x256xf32>
    %11 = arith.truncf %10 : vector<320x256xf32> to vector<320x256xbf16>
    %c1 = arith.constant 1 : index
    %c0_8 = arith.constant 0 : index
    %c0_9 = arith.constant 0 : index
    %12 = vector.load %arg2[%c1, %c0_8, %c0_9] : memref<9x256x256xbf16, #tpu.memory_space<vmem>>, vector<1x256x256xbf16>
    %13 = vector.shape_cast %12 : vector<1x256x256xbf16> to vector<256x256xbf16>
    %cst_10 = arith.constant dense<0.000000e+00> : vector<320x256xf32>
    %14 = tpu.matmul %11, %13, %cst_10 {dimension_numbers = #tpu.dot_dimension_numbers<[1], [0], [0], [1], [0, 0, 1, 1], [], []>} : vector<320x256xbf16>, vector<256x256xbf16>, vector<320x256xf32> -> vector<320x256xf32>
    %c1_11 = arith.constant 1 : index
    %c0_12 = arith.constant 0 : index
    %c0_13 = arith.constant 0 : index
    %15 = vector.load %arg3[%c1_11, %c0_12, %c0_13] : memref<9x1x256xf32, #tpu.memory_space<vmem>>, vector<1x1x256xf32>
    %16 = vector.shape_cast %15 : vector<1x1x256xf32> to vector<1x256xf32>
    %17 = vector.broadcast %16 : vector<1x256xf32> to vector<320x256xf32>
    %18 = arith.addf %14, %17 : vector<320x256xf32>
    %cst_14 = arith.constant 0.000000e+00 : f32
    %19 = vector.broadcast %cst_14 : f32 to vector<320x256xf32>
    %20 = arith.maximumf %18, %19 : vector<320x256xf32>
    %21 = arith.truncf %20 : vector<320x256xf32> to vector<320x256xbf16>
    %c2 = arith.constant 2 : index
    %c0_15 = arith.constant 0 : index
    %c0_16 = arith.constant 0 : index
    %22 = vector.load %arg2[%c2, %c0_15, %c0_16] : memref<9x256x256xbf16, #tpu.memory_space<vmem>>, vector<1x256x256xbf16>
    %23 = vector.shape_cast %22 : vector<1x256x256xbf16> to vector<256x256xbf16>
    %cst_17 = arith.constant dense<0.000000e+00> : vector<320x256xf32>
    %24 = tpu.matmul %21, %23, %cst_17 {dimension_numbers = #tpu.dot_dimension_numbers<[1], [0], [0], [1], [0, 0, 1, 1], [], []>} : vector<320x256xbf16>, vector<256x256xbf16>, vector<320x256xf32> -> vector<320x256xf32>
    %c2_18 = arith.constant 2 : index
    %c0_19 = arith.constant 0 : index
    %c0_20 = arith.constant 0 : index
    %25 = vector.load %arg3[%c2_18, %c0_19, %c0_20] : memref<9x1x256xf32, #tpu.memory_space<vmem>>, vector<1x1x256xf32>
    %26 = vector.shape_cast %25 : vector<1x1x256xf32> to vector<1x256xf32>
    %27 = vector.broadcast %26 : vector<1x256xf32> to vector<320x256xf32>
    %28 = arith.addf %24, %27 : vector<320x256xf32>
    %cst_21 = arith.constant 0.000000e+00 : f32
    %29 = vector.broadcast %cst_21 : f32 to vector<320x256xf32>
    %30 = arith.maximumf %28, %29 : vector<320x256xf32>
    %31 = arith.truncf %30 : vector<320x256xf32> to vector<320x256xbf16>
    %c3 = arith.constant 3 : index
    %c0_22 = arith.constant 0 : index
    %c0_23 = arith.constant 0 : index
    %32 = vector.load %arg2[%c3, %c0_22, %c0_23] : memref<9x256x256xbf16, #tpu.memory_space<vmem>>, vector<1x256x256xbf16>
    %33 = vector.shape_cast %32 : vector<1x256x256xbf16> to vector<256x256xbf16>
    %cst_24 = arith.constant dense<0.000000e+00> : vector<320x256xf32>
    %34 = tpu.matmul %31, %33, %cst_24 {dimension_numbers = #tpu.dot_dimension_numbers<[1], [0], [0], [1], [0, 0, 1, 1], [], []>} : vector<320x256xbf16>, vector<256x256xbf16>, vector<320x256xf32> -> vector<320x256xf32>
    %c3_25 = arith.constant 3 : index
    %c0_26 = arith.constant 0 : index
    %c0_27 = arith.constant 0 : index
    %35 = vector.load %arg3[%c3_25, %c0_26, %c0_27] : memref<9x1x256xf32, #tpu.memory_space<vmem>>, vector<1x1x256xf32>
    %36 = vector.shape_cast %35 : vector<1x1x256xf32> to vector<1x256xf32>
    %37 = vector.broadcast %36 : vector<1x256xf32> to vector<320x256xf32>
    %38 = arith.addf %34, %37 : vector<320x256xf32>
    %cst_28 = arith.constant 0.000000e+00 : f32
    %39 = vector.broadcast %cst_28 : f32 to vector<320x256xf32>
    %40 = arith.maximumf %38, %39 : vector<320x256xf32>
    %41 = arith.truncf %40 : vector<320x256xf32> to vector<320x256xbf16>
    %c4 = arith.constant 4 : index
    %c0_29 = arith.constant 0 : index
    %c0_30 = arith.constant 0 : index
    %42 = vector.load %arg2[%c4, %c0_29, %c0_30] : memref<9x256x256xbf16, #tpu.memory_space<vmem>>, vector<1x256x256xbf16>
    %43 = vector.shape_cast %42 : vector<1x256x256xbf16> to vector<256x256xbf16>
    %cst_31 = arith.constant dense<0.000000e+00> : vector<320x256xf32>
    %44 = tpu.matmul %41, %43, %cst_31 {dimension_numbers = #tpu.dot_dimension_numbers<[1], [0], [0], [1], [0, 0, 1, 1], [], []>} : vector<320x256xbf16>, vector<256x256xbf16>, vector<320x256xf32> -> vector<320x256xf32>
    %c4_32 = arith.constant 4 : index
    %c0_33 = arith.constant 0 : index
    %c0_34 = arith.constant 0 : index
    %45 = vector.load %arg3[%c4_32, %c0_33, %c0_34] : memref<9x1x256xf32, #tpu.memory_space<vmem>>, vector<1x1x256xf32>
    %46 = vector.shape_cast %45 : vector<1x1x256xf32> to vector<1x256xf32>
    %47 = vector.broadcast %46 : vector<1x256xf32> to vector<320x256xf32>
    %48 = arith.addf %44, %47 : vector<320x256xf32>
    %cst_35 = arith.constant 0.000000e+00 : f32
    %49 = vector.broadcast %cst_35 : f32 to vector<320x256xf32>
    %50 = arith.maximumf %48, %49 : vector<320x256xf32>
    %51 = arith.truncf %50 : vector<320x256xf32> to vector<320x256xbf16>
    %c5 = arith.constant 5 : index
    %c0_36 = arith.constant 0 : index
    %c0_37 = arith.constant 0 : index
    %52 = vector.load %arg2[%c5, %c0_36, %c0_37] : memref<9x256x256xbf16, #tpu.memory_space<vmem>>, vector<1x256x256xbf16>
    %53 = vector.shape_cast %52 : vector<1x256x256xbf16> to vector<256x256xbf16>
    %cst_38 = arith.constant dense<0.000000e+00> : vector<320x256xf32>
    %54 = tpu.matmul %51, %53, %cst_38 {dimension_numbers = #tpu.dot_dimension_numbers<[1], [0], [0], [1], [0, 0, 1, 1], [], []>} : vector<320x256xbf16>, vector<256x256xbf16>, vector<320x256xf32> -> vector<320x256xf32>
    %c8 = arith.constant 8 : index
    %c0_39 = arith.constant 0 : index
    %c0_40 = arith.constant 0 : index
    %55 = vector.load %arg2[%c8, %c0_39, %c0_40] : memref<9x256x256xbf16, #tpu.memory_space<vmem>>, vector<1x256x256xbf16>
    %56 = vector.shape_cast %55 : vector<1x256x256xbf16> to vector<256x256xbf16>
    %cst_41 = arith.constant dense<0.000000e+00> : vector<320x256xf32>
    %57 = tpu.matmul %1, %56, %cst_41 {dimension_numbers = #tpu.dot_dimension_numbers<[1], [0], [0], [1], [0, 0, 1, 1], [], []>} : vector<320x256xbf16>, vector<256x256xbf16>, vector<320x256xf32> -> vector<320x256xf32>
    %58 = arith.addf %54, %57 : vector<320x256xf32>
    %c5_42 = arith.constant 5 : index
    %c0_43 = arith.constant 0 : index
    %c0_44 = arith.constant 0 : index
    %59 = vector.load %arg3[%c5_42, %c0_43, %c0_44] : memref<9x1x256xf32, #tpu.memory_space<vmem>>, vector<1x1x256xf32>
    %60 = vector.shape_cast %59 : vector<1x1x256xf32> to vector<1x256xf32>
    %61 = vector.broadcast %60 : vector<1x256xf32> to vector<320x256xf32>
    %62 = arith.addf %58, %61 : vector<320x256xf32>
    %cst_45 = arith.constant 0.000000e+00 : f32
    %63 = vector.broadcast %cst_45 : f32 to vector<320x256xf32>
    %64 = arith.maximumf %62, %63 : vector<320x256xf32>
    %65 = arith.truncf %64 : vector<320x256xf32> to vector<320x256xbf16>
    %c6 = arith.constant 6 : index
    %c0_46 = arith.constant 0 : index
    %c0_47 = arith.constant 0 : index
    %66 = vector.load %arg2[%c6, %c0_46, %c0_47] : memref<9x256x256xbf16, #tpu.memory_space<vmem>>, vector<1x256x256xbf16>
    %67 = vector.shape_cast %66 : vector<1x256x256xbf16> to vector<256x256xbf16>
    %cst_48 = arith.constant dense<0.000000e+00> : vector<320x256xf32>
    %68 = tpu.matmul %65, %67, %cst_48 {dimension_numbers = #tpu.dot_dimension_numbers<[1], [0], [0], [1], [0, 0, 1, 1], [], []>} : vector<320x256xbf16>, vector<256x256xbf16>, vector<320x256xf32> -> vector<320x256xf32>
    %c6_49 = arith.constant 6 : index
    %c0_50 = arith.constant 0 : index
    %c0_51 = arith.constant 0 : index
    %69 = vector.load %arg3[%c6_49, %c0_50, %c0_51] : memref<9x1x256xf32, #tpu.memory_space<vmem>>, vector<1x1x256xf32>
    %70 = vector.shape_cast %69 : vector<1x1x256xf32> to vector<1x256xf32>
    %71 = vector.broadcast %70 : vector<1x256xf32> to vector<320x256xf32>
    %72 = arith.addf %68, %71 : vector<320x256xf32>
    %cst_52 = arith.constant 0.000000e+00 : f32
    %73 = vector.broadcast %cst_52 : f32 to vector<320x256xf32>
    %74 = arith.maximumf %72, %73 : vector<320x256xf32>
    %75 = arith.truncf %74 : vector<320x256xf32> to vector<320x256xbf16>
    %c7 = arith.constant 7 : index
    %c0_53 = arith.constant 0 : index
    %c0_54 = arith.constant 0 : index
    %76 = vector.load %arg2[%c7, %c0_53, %c0_54] : memref<9x256x256xbf16, #tpu.memory_space<vmem>>, vector<1x256x256xbf16>
    %77 = vector.shape_cast %76 : vector<1x256x256xbf16> to vector<256x256xbf16>
    %cst_55 = arith.constant dense<0.000000e+00> : vector<320x256xf32>
    %78 = tpu.matmul %75, %77, %cst_55 {dimension_numbers = #tpu.dot_dimension_numbers<[1], [0], [0], [1], [0, 0, 1, 1], [], []>} : vector<320x256xbf16>, vector<256x256xbf16>, vector<320x256xf32> -> vector<320x256xf32>
    %c7_56 = arith.constant 7 : index
    %c0_57 = arith.constant 0 : index
    %c0_58 = arith.constant 0 : index
    %79 = vector.load %arg3[%c7_56, %c0_57, %c0_58] : memref<9x1x256xf32, #tpu.memory_space<vmem>>, vector<1x1x256xf32>
    %80 = vector.shape_cast %79 : vector<1x1x256xf32> to vector<1x256xf32>
    %81 = vector.broadcast %80 : vector<1x256xf32> to vector<320x256xf32>
    %82 = arith.addf %78, %81 : vector<320x256xf32>
    %cst_59 = arith.constant 0.000000e+00 : f32
    %83 = vector.broadcast %cst_59 : f32 to vector<320x256xf32>
    %84 = arith.maximumf %82, %83 : vector<320x256xf32>
    %85 = arith.truncf %84 : vector<320x256xf32> to vector<320x256xbf16>
    %c0_60 = arith.constant 0 : index
    %c0_61 = arith.constant 0 : index
    %86 = vector.load %arg4[%c0_60, %c0_61] : memref<256x128xbf16, #tpu.memory_space<vmem>>, vector<256x128xbf16>
    %cst_62 = arith.constant dense<0.000000e+00> : vector<320x128xf32>
    %87 = tpu.matmul %85, %86, %cst_62 {dimension_numbers = #tpu.dot_dimension_numbers<[1], [0], [0], [1], [0, 0, 1, 1], [], []>} : vector<320x256xbf16>, vector<256x128xbf16>, vector<320x128xf32> -> vector<320x128xf32>
    %c0_63 = arith.constant 0 : index
    %c0_64 = arith.constant 0 : index
    %88 = vector.load %arg5[%c0_63, %c0_64] : memref<1x128xf32, #tpu.memory_space<vmem>>, vector<1x128xf32>
    %89 = vector.broadcast %88 : vector<1x128xf32> to vector<320x128xf32>
    %90 = arith.addf %87, %89 : vector<320x128xf32>
    %c0_65 = arith.constant 0 : index
    %c0_66 = arith.constant 0 : index
    %91 = vector.load %arg6[%c0_65, %c0_66] : memref<320x128xf32, #tpu.memory_space<vmem>>, vector<320x128xf32>
    tpu.vector_store %arg6[%c0_65, %c0_66], %90 {strides = array<i32>} : memref<320x128xf32, #tpu.memory_space<vmem>>, vector<320x128xf32>,
    return
  }
  func.func @transform_0(%arg0: i32) -> (i32, i32) {
    %c0_i32 = arith.constant 0 : i32
    %c0_i32_0 = arith.constant 0 : i32
    return %arg0, %c0_i32 : i32, i32
  }
  func.func @transform_1(%arg0: i32) -> (i32, i32, i32) {
    %c0_i32 = arith.constant 0 : i32
    %c0_i32_0 = arith.constant 0 : i32
    %c0_i32_1 = arith.constant 0 : i32
    %c0_i32_2 = arith.constant 0 : i32
    return %c0_i32, %c0_i32_0, %c0_i32_1 : i32, i32, i32
  }
  func.func @transform_2(%arg0: i32) -> (i32, i32, i32) {
    %c0_i32 = arith.constant 0 : i32
    %c0_i32_0 = arith.constant 0 : i32
    %c0_i32_1 = arith.constant 0 : i32
    %c0_i32_2 = arith.constant 0 : i32
    return %c0_i32, %c0_i32_0, %c0_i32_1 : i32, i32, i32
  }
  func.func @transform_3(%arg0: i32) -> (i32, i32) {
    %c0_i32 = arith.constant 0 : i32
    %c0_i32_0 = arith.constant 0 : i32
    %c0_i32_1 = arith.constant 0 : i32
    return %c0_i32, %c0_i32_0 : i32, i32
  }
  func.func @transform_4(%arg0: i32) -> (i32, i32) {
    %c0_i32 = arith.constant 0 : i32
    %c0_i32_0 = arith.constant 0 : i32
    %c0_i32_1 = arith.constant 0 : i32
    return %c0_i32, %c0_i32_0 : i32, i32
  }
  func.func @transform_5(%arg0: i32) -> (i32, i32) {
    %c0_i32 = arith.constant 0 : i32
    %c0_i32_0 = arith.constant 0 : i32
    return %arg0, %c0_i32 : i32, i32
  }
}

</mosaic_0001>

<bundles_post_ra>
// kernel: tpu_custom_call.1
= control target key start
LH: loop header
LB: loop body
LE: loop exit
PB: predicated region body
PF: predicated region fallthrough
CT: control target
= control target key end

     0   :  { %s13390_s0 = inlined_call_operand.hbm [shape: f32[626,256], index: 0, kind: input, shape index: {}]   ;;  %s13391_s1 = inlined_call_operand.hbm [shape: bf16[9,256,256], index: 1, kind: input, shape index: {}]   ;;  %s13392_s2 = inlined_call_operand.hbm [shape: f32[9,1,256], index: 2, kind: input, shape index: {}]   ;;  %s13393_s3 = inlined_call_operand.hbm [shape: bf16[256,128], index: 3, kind: input, shape index: {}]   ;;  %s13394_s4 = inlined_call_operand.hbm [shape: f32[1,128], index: 4, kind: input, shape index: {}]   ;;  %s13395_s5 = inlined_call_operand.hbm [shape: f32[626,128], index: 5, kind: output, shape index: {}]  }
   0x1   :  { %13598 = sst [smem:[#allocation99_spill]] %s13391_s1 }
   0x2   :  { %13599 = sst [smem:[#allocation100_spill]] %s13393_s3 }
   0x3   :  { %10 = vsyncpa [#allocation3], 0 }
   0x4   :  { %12 = vsyncpa [#allocation3 + $0x1], 0 }
   0x5   :  { %13 = vsyncpa [#allocation6], 0 }
   0x6   :  { %14 = vsyncpa [#allocation9], 0 }
   0x7   :  { %15 = vsyncpa [#allocation4], 0 }
   0x8   :  { %17 = vsyncpa [#allocation4 + $0x1], 0  ;;  %s9681_s18 = smov 0   ;;  %s9683_s19 = smov 0  }
   0x9   :  { %s9685_s20 = smov 0   ;;  %s9687_s21 = smov 0  }
   0xa LB: > { %s9702_s22 = sadd.s32 4294967295, %s9633_s21   ;;  %s7728_s23 = sadd.s32 4294967294, %s9633_s21   ;;  %s9633_s21 = sphi %s9687_s21, %s14101_s21   ;;  %s9629_s20 = sphi %s9685_s20, %s14105_s20   ;;  %s9625_s19 = sphi %s9683_s19, %s14104_s19   ;;  %s9621_s18 = sphi %s9681_s18, %s14103_s18  }
   0xb   : > { %s9706_s24 = sadd.s32 1, %s9633_s21   ;;  %s30_s25 = sadd.s32 1, %s9629_s20 }
   0xc   : > { %13600 = sst [smem:[#allocation16_spill]] %s9706_s24  ;;  %s27_s26 = ssub.s32 %s9633_s21, %s9706_s24 }
   0xd   : > { %p37_p0 = scmp.ne.s32.totalorder %s9629_s20, %s9625_s19  ;;  %p28_p1 = scmp.eq.s32.totalorder %s27_s26, 0 }
   0xe   : > { %p38_p2 = scmp.eq.s32.totalorder %s9633_s21, 0  ;;  %p43_p3 = scmp.ne.s32.totalorder %s9625_s19, %s9621_s18 }
   0xf   : > { %p13399_p4 = scmp.eq.s32.totalorder %s9702_s22, 0  ;;  %p151_p7 = scmp.eq.s32.totalorder %s9702_s22, 1 }
  0x10   : > { %s9718_s27 = scalar_select %p28_p1, %s9629_s20, %s30_s25  }
  0x11   : > { %p9720_p5 = por %p38_p2, %p37_p0  ;;  %p9726_p6 = por %p13399_p4, %p43_p3 }
  0x12   : > { %13601 = sst [smem:[#allocation17_spill]] %s9718_s27  ;;  %p157_p8 = scmp.eq.s32.totalorder %s7728_s23, 1 }
  0x13   : > { %p7729_p9 = scmp.ge.s32.totalorder %s9633_s21, 1  ;;  %p164_p10 = scmp.lt.s32.totalorder %s9633_s21, 3 }
  0x14   : > { %p9733_p11 = por %p151_p7, %p37_p0  ;;  %p9737_p12 = por %p157_p8, %p43_p3 }
  0x15   : > { %p9741_p13 = pnand %p7729_p9, %p164_p10  ;;  %s13607_s1 = sld [smem:[#allocation99_spill]] }
  0x16   : > { %s13605_s6 = scalar_select %p9737_p12, 1, 0 }
  0x17   : > { %p9316_p1 = pneg %p9741_p13  ;;  %s9635_s11 = smov [#allocation5]  }
  0x18   : > { %s177_s12 = sshll.u32 %s9635_s11, 4  ;;  %s13609_s3 = sld [smem:[#allocation100_spill]]  ;;  %s178_s12 = int_to_ptr.vmem [resolvable:$true] %s177_s12 }
  0x19   : > { %p9752_p0 = pnand %p9316_p1, %p13399_p4  ;;  %s9636_s17 = smov 128  }
  0x1a   : > { %s9637_s23 = smov 8   ;;  %s9638_s25 = smov [#allocation8]  }
  0x1b   : > { %s175_s10 = sshll.u32 %s13607_s1, 4  ;;  %s205_s26 = sshll.u32 %s9638_s25, 4  ;;  %s176_s10 = int_to_ptr.hbm [resolvable:$true] %s175_s10  ;;  %s206_s26 = int_to_ptr.vmem [resolvable:$true] %s205_s26 }
  0x1c   : > { %9319 = dma.hbm_to_vmem [thread:$0]  (!%p9752_p0), %s176_s10, 36864, %s178_s12, [#allocation6], %s9636_s17, %s9636_s17, %s9637_s23  }
  0x1d   : > { %s189_s11 = sshll.u32 %s13392_s2, 4  ;;  %s9639_s1 = smov 64   ;;  %s190_s11 = int_to_ptr.hbm [resolvable:$true] %s189_s11 }
  0x1e   : > { %s203_s16 = sshll.u32 %s13609_s3, 4  ;;  %s9640_s27 = smov 4   ;;  %s204_s16 = int_to_ptr.hbm [resolvable:$true] %s203_s16 }
  0x1f   : > { %9325 = dma.hbm_to_vmem [thread:$0]  (!%p9752_p0), %s204_s16, 2048, %s206_s26, [#allocation9], %s9639_s1, %s9639_s1, %s9640_s27  }
  0x20   : > { %s9641_s14 = smov [#allocation7]   ;;  %s9642_s3 = smov 32  }
  0x21   : > { %s191_s15 = sshll.u32 %s9641_s14, 4  ;;  %s9643_s24 = smov 2   ;;  %s192_s15 = int_to_ptr.vmem [resolvable:$true] %s191_s15 }
  0x22   : > { %9322 = dma.hbm_to_vmem [thread:$0]  (!%p9752_p0), %s190_s11, 288, %s192_s15, [#allocation6], %s9642_s3, %s9642_s3, %s9643_s24  }
  0x23   : > { %s218_s17 = sshll.u32 %s13394_s4, 4  ;;  %s9644_s23 = smov [#allocation10]   ;;  %s219_s17 = int_to_ptr.hbm [resolvable:$true] %s218_s17 }
  0x24   : > { %s220_s25 = sshll.u32 %s9644_s23, 4  ;;  %p13398_p2 = scmp.ge.s32.totalorder %s9633_s21, 2  ;;  %s221_s25 = int_to_ptr.vmem [resolvable:$true] %s220_s25 }
  0x25   : > { %9328 = dma.hbm_to_vmem [thread:$0]  (!%p9752_p0), %s219_s17, 16, %s221_s25, [#allocation9]  }
  0x26   : > { %227 = sbr.rel (%p13398_p2) target bundleno = 81 (0x51), region = 32 }
  0x2b   : > { %230 = sbr.rel (!%p9720_p5) target bundleno = 81 (0x51), region = 36  ;;  %s231_s1 = sand.u32 (%p9720_p5), 1, %s9629_s20  }
  0x2c   : > { %s236_s3 = smul.u32 (%p9720_p5), 40, %s9633_s21  ;;  %s9783_s8 = scalar_lea.sflag (%p9720_p5), [#allocation3], %s231_s1 }
  0x2d   : > { %s9295_s24 = smul.u32 (%p9720_p5), 640, %s231_s1 }
  0x2e   : > { %s237_s27 = ssub.s32 (%p9720_p5), 79, %s236_s3 }
  0x2f   : > { %p238_p3 = scmp.lt.s32.totalorder (%p9720_p5), %s237_s27, 40  ;;  %s235_s9 = scalar_lea.vmem (%p9720_p5), [#allocation2], %s9295_s24 }
  0x31   : > { %s14107_s27 = smov (!%p238_p3, %s237_s27), 40 }
  0x32   : > { %s8970_s13 = sshll.u32 %s14107_s27, 4 }
  0x33   : > { %s242_s16 = ssub.s32 640, %s8970_s13 }
  0x34   : > { %s243_s26 = sshll.u32 %s242_s16, 4 }
  0x35   : > { %244 = vsyncadd %s9783_s8, %s243_s26  ;;  %p9786_p5 = scmp.ne.s32.totalorder %s8970_s13, 0  ;;  %s9278_s11 = smul.u32 640, %s9633_s21 }
  0x36   : > { %s9791_s14 = sshll.u32 %s235_s9, 4  ;;  %s7741_s15 = sshll.u32 %s14107_s27, 8  ;;  %s253_s14 = int_to_ptr.vmem [resolvable:$true] %s9791_s14 }
  0x37   : > { %s248_s17 = scalar_lea.hbm %s13390_s0, %s9278_s11  ;;  %s9511_s1 = sshrl.u32 %s7741_s15, 4 }
  0x38   : > { %s250_s23 = sshll.u32 %s248_s17, 4  ;;  %s9520_s16 = scalar_lea.hbm %s13390_s0, 1264  ;;  %s9798_s23 = int_to_ptr.hbm [resolvable:$true] %s250_s23 }
  0x39   : > { %s9509_s25 = sshra.s32 %s9798_s23, 4  ;;  %s9510_s25 = int_to_ptr.hbm [resolvable:$true] %s9509_s25 }
  0x3a   : > { %s9516_s3 = scalar_lea.hbm %s9510_s25, %s9511_s1  ;;  %p9521_p10 = scmp.lt.s32.totalorder %s9510_s25, %s13390_s0 }
  0x3b   : > { %p9517_p7 = scmp.ne.s32.totalorder %s9510_s25, %s9516_s3  ;;  %p9522_p1 = scmp.lt.s32.totalorder %s9520_s16, %s9516_s3 }
  0x3d   : > { %p9518_p8 = pnand %p9517_p7, %p9786_p5  ;;  %p9523_p0 = por %p9522_p1, %p9521_p10 }
  0x3f   : > { %p9519_p9 = pneg %p9518_p8 }
  0x41   : > { %p9524_p3 = pnand %p9523_p0, %p9519_p9 }
  0x43   : > { %9527 = shalt.err (!%p9524_p3)
}
  0x44   : > { %s9528_s11 = sshra.s32 %s253_s14, 4  ;;  %s9645_s12 = smov [#allocation2]   ;;  %s9529_s11 = int_to_ptr.vmem [resolvable:$true] %s9528_s11 }
  0x45   : > { %s9535_s10 = scalar_lea.vmem %s9529_s11, %s9511_s1  ;;  %s9539_s17 = scalar_lea.vmem %s9645_s12, 1280 }
  0x46   : > { %p9536_p7 = scmp.ne.s32.totalorder %s9529_s11, %s9535_s10  ;;  %p9541_p4 = scmp.lt.s32.totalorder %s9539_s17, %s9535_s10 }
  0x48   : > { %p9537_p8 = pnand %p9536_p7, %p9786_p5 }
  0x4a   : > { %p9538_p2 = pneg %p9537_p8 }
  0x4c   : > { %p9543_p12 = pnand %p9541_p4, %p9538_p2 }
  0x4e   : > { %9546 = shalt.err (!%p9543_p12)
}
  0x4f   : > { %s9646_s25 = smov 256   ;;  %s9647_s3 = smov 16  }
  0x50   : > { %258 = dma.hbm_to_vmem [thread:$0]  (%p9786_p5), %s9798_s23, %s7741_s15, %s253_s14, %s9783_s8, %s9646_s25, %s9646_s25, %s9647_s3  }
  0x51 PF: > { %264 = sbr.rel (%p9741_p13) target bundleno = 3473 (0xd91), region = 40 }
  0x56   : > { %s9826_s1 = sand.u32 1, %s9625_s19  }
  0x57   : > { %s9296_s24 = smul.u32 640, %s9826_s1  ;;  %s267_s13 = scalar_lea.sflag [#allocation3], %s9826_s1 }
  0x59   : > { %s9830_s16 = scalar_lea.vmem [#allocation2], %s9296_s24 }
  0x5a   : > { %9604 = dma.done.wait (%p9726_p6), %s267_s13, 10240  }
  0x5b   : > { %9606 = vsyncadd (%p9726_p6), %s267_s13, 4294957056  ;;  %p13611_p4 = scmp.eq.s32.totalorder %s9702_s22, 0 }
  0x5d   : > { %9608 = dma.done.wait (%p13611_p4), [#allocation6], 37152   ;;  %p13612_p12 = pmov %p13611_p4 }
  0x5e   : > { %p13613_p13 = pmov %p13611_p4 }
  0x5f   : > { %9610 = vsyncadd (%p13612_p12), [#allocation6], 4294930144 }
  0x60   : > { %9612 = dma.done.wait (%p13613_p13), [#allocation9], 2064   ;;  %p13614_p2 = pmov %p13611_p4 }
  0x61   : > { %v7805_v0 = vld [vmem:[#allocation5 + $0x70] sm:$0xf]  ;;  %v8988_v1 = vld [vmem:[#allocation5 + $0x74] sm:$0xf0]  ;;  %v7797_v5 = vld [vmem:[#allocation5 + $0x60] sm:$0xf] }
  0x62   : > { %9614 = vsyncadd (%p13614_p2), [#allocation9], 4294965232  ;;  %v7869_v2 = vld [vmem:[#allocation5 + $0xf0] sm:$0xf]  ;;  %v7806_v3 = vor.u32 %v8988_v1, %v7805_v0  ;;  %v9004_v4 = vld [vmem:[#allocation5 + $0xf4] sm:$0xf0] }
  0x63   : > { %v8986_v6 = vld [vmem:[#allocation5 + $0x64] sm:$0xf0]  ;;  %v7870_v7 = vor.u32 %v9004_v4, %v7869_v2  ;;  %v7861_v8 = vld [vmem:[#allocation5 + $0xe0] sm:$0xf]  ;;  %v7789_v12 = vld [vmem:[#allocation5 + $0x50] sm:$0xf] }
  0x64   : > { %v9002_v9 = vld [vmem:[#allocation5 + $0xe4] sm:$0xf0]  ;;  %647 = vmatpush.bf16.msra.mxu0 %v7806_v3  ;;  %9279 = vmatpush.bf16.msra.mxu2 %v7806_v3  ;;  %v7798_v10 = vor.u32 %v8986_v6, %v7797_v5  ;;  %v8984_v13 = vld [vmem:[#allocation5 + $0x54] sm:$0xf0]  ;;  %v7853_v14 = vld [vmem:[#allocation5 + $0xd0] sm:$0xf] }
  0x65   : > { %9287 = vmatpush.bf16.msra.mxu3 %v7870_v7  ;;  %v7862_v11 = vor.u32 %v9002_v9, %v7861_v8  ;;  %756 = vmatpush.bf16.msra.mxu1 %v7870_v7  ;;  %v9000_v15 = vld [vmem:[#allocation5 + $0xd4] sm:$0xf0]  ;;  %v7790_v16 = vor.u32 %v8984_v13, %v7789_v12  ;;  %v7781_v18 = vld [vmem:[#allocation5 + $0x40] sm:$0xf]  ;;  %v8982_v19 = vld [vmem:[#allocation5 + $0x44] sm:$0xf0] }
  0x66   : > { %v7854_v17 = vor.u32 %v9000_v15, %v7853_v14  ;;  %v7845_v20 = vld [vmem:[#allocation5 + $0xc0] sm:$0xf]  ;;  %v8998_v21 = vld [vmem:[#allocation5 + $0xc4] sm:$0xf0]  ;;  %v7782_v22 = vor.u32 %v8982_v19, %v7781_v18  ;;  %v7773_v24 = vld [vmem:[#allocation5 + $0x30] sm:$0xf] }
  0x67   : > { %v7846_v23 = vor.u32 %v8998_v21, %v7845_v20  ;;  %v8980_v25 = vld [vmem:[#allocation5 + $0x34] sm:$0xf0]  ;;  %v7837_v26 = vld [vmem:[#allocation5 + $0xb0] sm:$0xf]  ;;  %v7765_v30 = vld [vmem:[#allocation5 + $0x20] sm:$0xf] }
  0x68   : > { %648 = vmatpush.bf16.msra.mxu0 %v7798_v10  ;;  %9280 = vmatpush.bf16.msra.mxu2 %v7798_v10  ;;  %v8996_v27 = vld [vmem:[#allocation5 + $0xb4] sm:$0xf0]  ;;  %v7774_v28 = vor.u32 %v8980_v25, %v7773_v24  ;;  %v8978_v31 = vld [vmem:[#allocation5 + $0x24] sm:$0xf0]  ;;  %v7829_v32 = vld [vmem:[#allocation5 + $0xa0] sm:$0xf] }
  0x69   : > { %9288 = vmatpush.bf16.msra.mxu3 %v7862_v11  ;;  %757 = vmatpush.bf16.msra.mxu1 %v7862_v11  ;;  %v7838_v29 = vor.u32 %v8996_v27, %v7837_v26  ;;  %v8994_v33 = vld [vmem:[#allocation5 + $0xa4] sm:$0xf0]  ;;  %v7766_v34 = vor.u32 %v8978_v31, %v7765_v30  ;;  %v7757_v36 = vld [vmem:[#allocation5 + $0x10] sm:$0xf]  ;;  %v8976_v37 = vld [vmem:[#allocation5 + $0x14] sm:$0xf0] }
  0x6a   : > { %v7830_v35 = vor.u32 %v8994_v33, %v7829_v32  ;;  %v7821_v38 = vld [vmem:[#allocation5 + $0x90] sm:$0xf]  ;;  %v8992_v39 = vld [vmem:[#allocation5 + $0x94] sm:$0xf0]  ;;  %v7758_v40 = vor.u32 %v8976_v37, %v7757_v36  ;;  %v7749_v42 = vld [vmem:[#allocation5] sm:$0xf] }
  0x6b   : > { %v7822_v41 = vor.u32 %v8992_v39, %v7821_v38  ;;  %v8974_v43 = vld [vmem:[#allocation5 + $0x4] sm:$0xf0]  ;;  %v7813_v44 = vld [vmem:[#allocation5 + $0x80] sm:$0xf]  ;;  %v8987_v46 = vld [vmem:[#allocation5 + $0x74] sm:$0xf] }
  0x6c   : > { %649 = vmatpush.bf16.msra.mxu0 %v7790_v16  ;;  %9281 = vmatpush.bf16.msra.mxu2 %v7790_v16  ;;  %v8990_v45 = vld [vmem:[#allocation5 + $0x84] sm:$0xf0]  ;;  %v7807_v47 = vld [vmem:[#allocation5 + $0x78] sm:$0xf0]  ;;  %v329_v48 = vld [vmem:[%s9830_s16] sm:$0xff]  ;;  %v7750_v51 = vor.u32 %v8974_v43, %v7749_v42  ;;  %s9297_s29 = smul.u32 320, %s9826_s1 }
  0x6d   : > { %9289 = vmatpush.bf16.msra.mxu3 %v7854_v17  ;;  %758 = vmatpush.bf16.msra.mxu1 %v7854_v17  ;;  %v9003_v49 = vld [vmem:[#allocation5 + $0xf4] sm:$0xf]  ;;  %v7871_v50 = vld [vmem:[#allocation5 + $0xf8] sm:$0xf0]  ;;  %v369_v53 = vld [vmem:[%s9830_s16 + $0x140] sm:$0xff]  ;;  %v7814_v55 = vor.u32 %v8990_v45, %v7813_v44  ;;  %v7810_v58 = vor.u32 %v8987_v46, %v7807_v47  ;;  %s7595_s27 = scalar_lea.sflag [#allocation4], %s9826_s1 }
  0x6e   : > { %v331_v52 = vld [vmem:[%s9830_s16 + $0x10] sm:$0xff]  ;;  %v370_v56 = vld [vmem:[%s9830_s16 + $0x148] sm:$0xff]  ;;  %v372_v57 = vld [vmem:[%s9830_s16 + $0x158] sm:$0xff]  ;;  %v7874_v60 = vor.u32 %v9003_v49, %v7871_v50  ;;  %s13193_s7 = scalar_lea.vmem [#allocation11], %s9297_s29  ;;  %s7602_s8 = smul.u32 (%p9733_p11), 40, %s9702_s22 }
  0x6f   : > { %v371_v54 = vld [vmem:[%s9830_s16 + $0x150] sm:$0xff]  ;;  %v330_v59 = vld [vmem:[%s9830_s16 + $0x8] sm:$0xff]  ;;  %v332_v61 = vld [vmem:[%s9830_s16 + $0x18] sm:$0xff]  ;;  %v9852_v0 = vpack.c.bf16 %v331_v52, %v329_v48  ;;  %v9856_v4 = vpack.c.bf16 %v372_v57, %v370_v56 }
  0x70   : > { %650 = vmatpush.bf16.msra.mxu0 %v7782_v22  ;;  %9282 = vmatpush.bf16.msra.mxu2 %v7782_v22  ;;  %v8985_v62 = vld [vmem:[#allocation5 + $0x64] sm:$0xf]  ;;  %v7799_v63 = vld [vmem:[#allocation5 + $0x68] sm:$0xf0]  ;;  %v9854_v1 = vpack.c.bf16 %v371_v54, %v369_v53  ;;  %v9858_v5 = vpack.c.bf16 %v332_v61, %v330_v59  ;;  %v8983_v8 = vld [vmem:[#allocation5 + $0x54] sm:$0xf] }
  0x71   : > { %9290 = vmatpush.bf16.msra.mxu3 %v7846_v23  ;;  %759 = vmatpush.bf16.msra.mxu1 %v7846_v23  ;;  %13615 = vst [vmem:[#allocation18_spill] sm:$0xff] %v9852_v0  ;;  %v9001_v2 = vld [vmem:[#allocation5 + $0xe4] sm:$0xf]  ;;  %v7863_v3 = vld [vmem:[#allocation5 + $0xe8] sm:$0xf0]  ;;  %v7802_v6 = vor.u32 %v8985_v62, %v7799_v63  ;;  %v335_v15 = vld [vmem:[%s9830_s16 + $0x30] sm:$0xff] }
  0x72   : > { %13616 = vst [vmem:[#allocation19_spill] sm:$0xff] %v9854_v1  ;;  %v7866_v7 = vor.u32 %v9001_v2, %v7863_v3  ;;  %v7791_v9 = vld [vmem:[#allocation5 + $0x58] sm:$0xf0]  ;;  %v8999_v10 = vld [vmem:[#allocation5 + $0xd4] sm:$0xf]  ;;  %v333_v14 = vld [vmem:[%s9830_s16 + $0x20] sm:$0xff] }
  0x73   : > { %13617 = vst [vmem:[#allocation20_spill] sm:$0xff] %v9856_v4  ;;  %v7855_v11 = vld [vmem:[#allocation5 + $0xd8] sm:$0xf0]  ;;  %v7794_v12 = vor.u32 %v8983_v8, %v7791_v9  ;;  %v373_v16 = vld [vmem:[%s9830_s16 + $0x160] sm:$0xff]  ;;  %v375_v17 = vld [vmem:[%s9830_s16 + $0x170] sm:$0xff]  ;;  %v9872_v22 = vpack.c.bf16 %v335_v15, %v333_v14  ;;  %s7603_s28 = ssub.s32 (%p9733_p11), 79, %s7602_s8 }
  0x74   : > { %651 = vmatpush.bf16.msra.mxu0 %v7774_v28  ;;  %9283 = vmatpush.bf16.msra.mxu2 %v7774_v28  ;;  %13618 = vst [vmem:[#allocation21_spill] sm:$0xff] %v9858_v5  ;;  %v7858_v13 = vor.u32 %v8999_v10, %v7855_v11  ;;  %v374_v18 = vld [vmem:[%s9830_s16 + $0x168] sm:$0xff]  ;;  %v376_v19 = vld [vmem:[%s9830_s16 + $0x178] sm:$0xff]  ;;  %v9874_v23 = vpack.c.bf16 %v375_v17, %v373_v16  ;;  %v8981_v26 = vld [vmem:[#allocation5 + $0x44] sm:$0xf]  ;;  %p7604_p6 = scmp.lt.s32.totalorder (%p9733_p11), %s7603_s28, 40 }
  0x75   : > { %9291 = vmatpush.bf16.msra.mxu3 %v7838_v29  ;;  %760 = vmatpush.bf16.msra.mxu1 %v7838_v29  ;;  %v334_v20 = vld [vmem:[%s9830_s16 + $0x28] sm:$0xff]  ;;  %v336_v21 = vld [vmem:[%s9830_s16 + $0x38] sm:$0xff]  ;;  %13619 = vst [vmem:[#allocation22_spill] sm:$0xff] %v9872_v22  ;;  %v9876_v24 = vpack.c.bf16 %v376_v19, %v374_v18  ;;  %v8997_v28 = vld [vmem:[#allocation5 + $0xc4] sm:$0xf] }
  0x76   : > { %13620 = vst [vmem:[#allocation23_spill] sm:$0xff] %v9874_v23  ;;  %v9878_v25 = vpack.c.bf16 %v336_v21, %v334_v20  ;;  %v7783_v27 = vld [vmem:[#allocation5 + $0x48] sm:$0xf0]  ;;  %v337_v32 = vld [vmem:[%s9830_s16 + $0x40] sm:$0xff]  ;;  %v339_v33 = vld [vmem:[%s9830_s16 + $0x50] sm:$0xff] }
  0x77   : > { %13621 = vst [vmem:[#allocation24_spill] sm:$0xff] %v9876_v24  ;;  %v7847_v29 = vld [vmem:[#allocation5 + $0xc8] sm:$0xf0]  ;;  %v7786_v30 = vor.u32 %v8981_v26, %v7783_v27  ;;  %v380_v37 = vld [vmem:[%s9830_s16 + $0x198] sm:$0xff]  ;;  %v341_v44 = vld [vmem:[%s9830_s16 + $0x60] sm:$0xff] }
  0x78   : > { %652 = vmatpush.bf16.msra.mxu0 %v7766_v34  ;;  %9284 = vmatpush.bf16.msra.mxu2 %v7766_v34  ;;  %13622 = vst [vmem:[#allocation25_spill] sm:$0xff] %v9878_v25  ;;  %v7850_v31 = vor.u32 %v8997_v28, %v7847_v29  ;;  %v377_v34 = vld [vmem:[%s9830_s16 + $0x180] sm:$0xff]  ;;  %v378_v36 = vld [vmem:[%s9830_s16 + $0x188] sm:$0xff]  ;;  %v340_v39 = vld [vmem:[%s9830_s16 + $0x58] sm:$0xff] }
  0x79   : > { %9292 = vmatpush.bf16.msra.mxu3 %v7830_v35  ;;  %761 = vmatpush.bf16.msra.mxu1 %v7830_v35  ;;  %v379_v35 = vld [vmem:[%s9830_s16 + $0x190] sm:$0xff]  ;;  %v338_v38 = vld [vmem:[%s9830_s16 + $0x48] sm:$0xff]  ;;  %v9896_v42 = vpack.c.bf16 %v380_v37, %v378_v36  ;;  %v381_v46 = vld [vmem:[%s9830_s16 + $0x1a0] sm:$0xff] }
  0x7a   : > { %v9898_v43 = vpack.c.bf16 %v340_v39, %v338_v38  ;;  %v343_v45 = vld [vmem:[%s9830_s16 + $0x70] sm:$0xff]  ;;  %v382_v48 = vld [vmem:[%s9830_s16 + $0x1a8] sm:$0xff]  ;;  %v384_v49 = vld [vmem:[%s9830_s16 + $0x1b8] sm:$0xff] }
  0x7b   : > { %13625 = vst [vmem:[#allocation28_spill] sm:$0xff] %v9896_v42  ;;  %v383_v47 = vld [vmem:[%s9830_s16 + $0x1b0] sm:$0xff]  ;;  %v342_v50 = vld [vmem:[%s9830_s16 + $0x68] sm:$0xff]  ;;  %v9912_v52 = vpack.c.bf16 %v343_v45, %v341_v44  ;;  %v9916_v54 = vpack.c.bf16 %v384_v49, %v382_v48  ;;  %v7775_v57 = vld [vmem:[#allocation5 + $0x38] sm:$0xf0] }
  0x7c   : > { %653 = vmatpush.bf16.msra.mxu0 %v7758_v40  ;;  %9285 = vmatpush.bf16.msra.mxu2 %v7758_v40  ;;  %v9892_v40 = vpack.c.bf16 %v339_v33, %v337_v32  ;;  %13626 = vst [vmem:[#allocation29_spill] sm:$0xff] %v9898_v43  ;;  %v9914_v53 = vpack.c.bf16 %v383_v47, %v381_v46  ;;  %v8979_v56 = vld [vmem:[#allocation5 + $0x34] sm:$0xf]  ;;  %v345_v62 = vld [vmem:[%s9830_s16 + $0x80] sm:$0xff]  ;;  %v346_v8 = vld [vmem:[%s9830_s16 + $0x88] sm:$0xff] }
  0x7d   : > { %9293 = vmatpush.bf16.msra.mxu3 %v7822_v41  ;;  %762 = vmatpush.bf16.msra.mxu1 %v7822_v41  ;;  %v9894_v41 = vpack.c.bf16 %v379_v35, %v377_v34  ;;  %13627 = vst [vmem:[#allocation30_spill] sm:$0xff] %v9912_v52  ;;  %v7778_v59 = vor.u32 %v8979_v56, %v7775_v57  ;;  %v347_v63 = vld [vmem:[%s9830_s16 + $0x90] sm:$0xff]  ;;  %v385_v2 = vld [vmem:[%s9830_s16 + $0x1c0] sm:$0xff]  ;;  %v348_v9 = vld [vmem:[%s9830_s16 + $0x98] sm:$0xff] }
  0x7e   : > { %13623 = vst [vmem:[#allocation26_spill] sm:$0xff] %v9892_v40  ;;  %v387_v3 = vld [vmem:[%s9830_s16 + $0x1d0] sm:$0xff]  ;;  %v9932_v10 = vpack.c.bf16 %v347_v63, %v345_v62  ;;  %v8977_v14 = vld [vmem:[#allocation5 + $0x24] sm:$0xf]  ;;  %v7767_v15 = vld [vmem:[#allocation5 + $0x28] sm:$0xf0] }
  0x7f   : > { %13624 = vst [vmem:[#allocation27_spill] sm:$0xff] %v9894_v41  ;;  %v9934_v11 = vpack.c.bf16 %v387_v3, %v385_v2  ;;  %v8993_v16 = vld [vmem:[#allocation5 + $0xa4] sm:$0xf]  ;;  %v7831_v17 = vld [vmem:[#allocation5 + $0xa8] sm:$0xf0]  ;;  %v7770_v18 = vor.u32 %v8977_v14, %v7767_v15  ;;  %v351_v21 = vld [vmem:[%s9830_s16 + $0xb0] sm:$0xff] }
  0x80   : > { %654 = vmatpush.bf16.msra.mxu0 %v7750_v51  ;;  %9286 = vmatpush.bf16.msra.mxu2 %v7750_v51  ;;  %v344_v51 = vld [vmem:[%s9830_s16 + $0x78] sm:$0xff]  ;;  %13628 = vst [vmem:[#allocation31_spill] sm:$0xff] %v9914_v53  ;;  %v7834_v19 = vor.u32 %v8993_v16, %v7831_v17  ;;  %v349_v20 = vld [vmem:[%s9830_s16 + $0xa0] sm:$0xff]  ;;  %v391_v27 = vld [vmem:[%s9830_s16 + $0x1f0] sm:$0xff] }
  0x81   : > { %9294 = vmatpush.bf16.msra.mxu3 %v7814_v55  ;;  %763 = vmatpush.bf16.msra.mxu1 %v7814_v55  ;;  %13629 = vst [vmem:[#allocation32_spill] sm:$0xff] %v9916_v54  ;;  %v9918_v55 = vpack.c.bf16 %v344_v51, %v342_v50  ;;  %v389_v26 = vld [vmem:[%s9830_s16 + $0x1e0] sm:$0xff]  ;;  %v390_v28 = vld [vmem:[%s9830_s16 + $0x1e8] sm:$0xff]  ;;  %v392_v29 = vld [vmem:[%s9830_s16 + $0x1f8] sm:$0xff]  ;;  %v9952_v32 = vpack.c.bf16 %v351_v21, %v349_v20 }
  0x82   : > { %13631 = vst [vmem:[#allocation34_spill] sm:$0xff] %v9932_v10  ;;  %v9954_v33 = vpack.c.bf16 %v391_v27, %v389_v26  ;;  %v9956_v34 = vpack.c.bf16 %v392_v29, %v390_v28  ;;  %v8975_v36 = vld [vmem:[#allocation5 + $0x14] sm:$0xf]  ;;  %v7759_v37 = vld [vmem:[#allocation5 + $0x18] sm:$0xf0]  ;;  %v353_v46 = vld [vmem:[%s9830_s16 + $0xc0] sm:$0xff] }
  0x83   : > { %655 = vmatmul.bf16.vlgmr.msra.gmra.mxu0 %v9852_v0  ;;  %705 = vmatmul.bf16.vlgmr.msra.gmra.mxu2 %v9854_v1  ;;  %13630 = vst [vmem:[#allocation33_spill] sm:$0xff] %v9918_v55  ;;  %v8991_v38 = vld [vmem:[#allocation5 + $0x94] sm:$0xf]  ;;  %v7823_v39 = vld [vmem:[#allocation5 + $0x98] sm:$0xf0]  ;;  %v7762_v44 = vor.u32 %v8975_v36, %v7759_v37  ;;  %v393_v48 = vld [vmem:[%s9830_s16 + $0x200] sm:$0xff] }
  0x84   : > { %865 = vmatpush.bf16.msrb.mxu2 %v7810_v58  ;;  %814 = vmatmul.bf16.vlgmr.msra.gmra.mxu3 %v9856_v4  ;;  %v8995_v58 = vld [vmem:[#allocation5 + $0xb4] sm:$0xf]  ;;  %13632 = vst [vmem:[#allocation35_spill] sm:$0xff] %v9934_v11  ;;  %v7826_v45 = vor.u32 %v8991_v38, %v7823_v39  ;;  %v394_v50 = vld [vmem:[%s9830_s16 + $0x208] sm:$0xff]  ;;  %v396_v51 = vld [vmem:[%s9830_s16 + $0x218] sm:$0xff] }
  0x85   : > { %974 = vmatpush.bf16.msrb.mxu3 %v7874_v60  ;;  %764 = vmatmul.bf16.vlgmr.msra.gmra.mxu1 %v9858_v5  ;;  %v7839_v60 = vld [vmem:[#allocation5 + $0xb8] sm:$0xf0]  ;;  %13635 = vst [vmem:[#allocation38_spill] sm:$0xff] %v9952_v32  ;;  %v355_v47 = vld [vmem:[%s9830_s16 + $0xd0] sm:$0xff]  ;;  %v354_v56 = vld [vmem:[%s9830_s16 + $0xc8] sm:$0xff] }
  0x86   : > { %v7842_v61 = vor.u32 %v8995_v58, %v7839_v60  ;;  %13636 = vst [vmem:[#allocation39_spill] sm:$0xff] %v9954_v33  ;;  %v395_v49 = vld [vmem:[%s9830_s16 + $0x210] sm:$0xff]  ;;  %v356_v57 = vld [vmem:[%s9830_s16 + $0xd8] sm:$0xff]  ;;  %v9972_v58 = vpack.c.bf16 %v355_v47, %v353_v46  ;;  %v9976_v60 = vpack.c.bf16 %v396_v51, %v394_v50  ;;  %v7925_v3 = vld [vmem:[#allocation5 + $0x160] sm:$0xf] }
  0x87   : > { %13637 = vst [vmem:[#allocation40_spill] sm:$0xff] %v9956_v34  ;;  %v7933_v62 = vld [vmem:[#allocation5 + $0x170] sm:$0xf]  ;;  %v9020_v63 = vld [vmem:[#allocation5 + $0x174] sm:$0xf0]  ;;  %v357_v14 = vld [vmem:[%s9830_s16 + $0xe0] sm:$0xff] }
  0x88   : > { %866 = vmatpush.bf16.msrb.mxu2 %v7802_v6  ;;  %v386_v6 = vld [vmem:[%s9830_s16 + $0x1c8] sm:$0xff]  ;;  %13639 = vst [vmem:[#allocation42_spill] sm:$0xff] %v9972_v58  ;;  %v7934_v2 = vor.u32 %v9020_v63, %v7933_v62  ;;  %v359_v16 = vld [vmem:[%s9830_s16 + $0xf0] sm:$0xff]  ;;  %v397_v17 = vld [vmem:[%s9830_s16 + $0x220] sm:$0xff] }
  0x89   : > { %975 = vmatpush.bf16.msrb.mxu3 %v7866_v7  ;;  %v388_v7 = vld [vmem:[%s9830_s16 + $0x1d8] sm:$0xff]  ;;  %13641 = vst [vmem:[#allocation44_spill] sm:$0xff] %v9976_v60  ;;  %v358_v21 = vld [vmem:[%s9830_s16 + $0xe8] sm:$0xff]  ;;  %v7909_v27 = vld [vmem:[#allocation5 + $0x140] sm:$0xf]  ;;  %v9992_v29 = vpack.c.bf16 %v359_v16, %v357_v14 }
  0x8a   : > { %1403 = vmatpush.bf16.msrb.mxu0 %v7934_v2  ;;  %v400_v20 = vld [vmem:[%s9830_s16 + $0x238] sm:$0xff]  ;;  %v9014_v28 = vld [vmem:[#allocation5 + $0x144] sm:$0xf0]  ;;  %v8973_v38 = vld [vmem:[#allocation5 + $0x4] sm:$0xf] }
  0x8b   : > { %v360_v26 = vld [vmem:[%s9830_s16 + $0xf8] sm:$0xff]  ;;  %13643 = vst [vmem:[#allocation46_spill] sm:$0xff] %v9992_v29  ;;  %v7751_v39 = vld [vmem:[#allocation5 + $0x8] sm:$0xf0]  ;;  %v7901_v47 = vld [vmem:[#allocation5 + $0x130] sm:$0xf] }
  0x8c   : > { %867 = vmatpush.bf16.msrb.mxu2 %v7794_v12  ;;  %v9936_v12 = vpack.c.bf16 %v388_v7, %v386_v6  ;;  %v9018_v6 = vld [vmem:[#allocation5 + $0x164] sm:$0xf0]  ;;  %v9998_v37 = vpack.c.bf16 %v360_v26, %v358_v21  ;;  %v7815_v46 = vld [vmem:[#allocation5 + $0x88] sm:$0xf0]  ;;  %v7893_v51 = vld [vmem:[#allocation5 + $0x120] sm:$0xf] }
  0x8d   : > { %976 = vmatpush.bf16.msrb.mxu3 %v7858_v13  ;;  %v9938_v13 = vpack.c.bf16 %v348_v9, %v346_v8  ;;  %v7926_v7 = vor.u32 %v9018_v6, %v7925_v3  ;;  %v7917_v8 = vld [vmem:[#allocation5 + $0x150] sm:$0xf]  ;;  %v9016_v9 = vld [vmem:[#allocation5 + $0x154] sm:$0xf0]  ;;  %v361_v2 = vld [vmem:[%s9830_s16 + $0x100] sm:$0xff] }
  0x8e   : > { %13633 = vst [vmem:[#allocation36_spill] sm:$0xff] %v9936_v12  ;;  %v7918_v15 = vor.u32 %v9016_v9, %v7917_v8  ;;  %v7885_v62 = vld [vmem:[#allocation5 + $0x110] sm:$0xf]  ;;  %v9008_v63 = vld [vmem:[#allocation5 + $0x114] sm:$0xf0]  ;;  %v401_v9 = vld [vmem:[%s9830_s16 + $0x240] sm:$0xff] }
  0x8f   : > { %13634 = vst [vmem:[#allocation37_spill] sm:$0xff] %v9938_v13  ;;  %1404 = vmatpush.bf16.msrb.mxu0 %v7926_v7  ;;  %v7997_v3 = vld [vmem:[#allocation5 + $0x1f0] sm:$0xf]  ;;  %v9036_v6 = vld [vmem:[#allocation5 + $0x1f4] sm:$0xf0]  ;;  %v7886_v7 = vor.u32 %v9008_v63, %v7885_v62  ;;  %v402_v16 = vld [vmem:[%s9830_s16 + $0x248] sm:$0xff] }
  0x90   : > { %868 = vmatpush.bf16.msrb.mxu2 %v7786_v30  ;;  %v350_v30 = vld [vmem:[%s9830_s16 + $0xa8] sm:$0xff]  ;;  %13646 = vst [vmem:[#allocation49_spill] sm:$0xff] %v9998_v37  ;;  %v363_v8 = vld [vmem:[%s9830_s16 + $0x110] sm:$0xff] }
  0x91   : > { %977 = vmatpush.bf16.msrb.mxu3 %v7850_v31  ;;  %v352_v31 = vld [vmem:[%s9830_s16 + $0xb8] sm:$0xff]  ;;  %v403_v14 = vld [vmem:[%s9830_s16 + $0x250] sm:$0xff]  ;;  %v9006_v21 = vld [vmem:[#allocation5 + $0x104] sm:$0xf0]  ;;  %v10012_v26 = vpack.c.bf16 %v363_v8, %v361_v2 }
  0x92   : > { %v9958_v35 = vpack.c.bf16 %v352_v31, %v350_v30  ;;  %v7910_v31 = vor.u32 %v9014_v28, %v7909_v27  ;;  %v10014_v27 = vpack.c.bf16 %v403_v14, %v401_v9  ;;  %v10016_v28 = vld [vmem:[#allocation7] sm:$0x3]  ;;  %v9034_v9 = vld [vmem:[#allocation5 + $0x1e4] sm:$0xf0]  ;;  %v367_v14 = vld [vmem:[%s9830_s16 + $0x130] sm:$0xff] }
  0x93   : > { %660 = vmatmul.bf16.gmra.mxu0 %v9872_v22  ;;  %710 = vmatmul.bf16.gmra.mxu2 %v9874_v23  ;;  %13647 = vst [vmem:[#allocation50_spill] sm:$0xff] %v10012_v26  ;;  %v7989_v8 = vld [vmem:[#allocation5 + $0x1e0] sm:$0xf] }
  0x94   : > { %819 = vmatmul.bf16.gmra.mxu3 %v9876_v24  ;;  %869 = vmatpush.bf16.msrb.mxu2 %v7778_v59  ;;  %13638 = vst [vmem:[#allocation41_spill] sm:$0xff] %v9958_v35  ;;  %v9974_v59 = vpack.c.bf16 %v395_v49, %v393_v48  ;;  %v9012_v48 = vld [vmem:[#allocation5 + $0x134] sm:$0xf0] }
  0x95   : > { %769 = vmatmul.bf16.gmra.mxu1 %v9878_v25  ;;  %978 = vmatpush.bf16.msrb.mxu3 %v7842_v61  ;;  %v9978_v61 = vpack.c.bf16 %v356_v57, %v354_v56  ;;  %v7902_v50 = vor.u32 %v9012_v48, %v7901_v47  ;;  %v9010_v56 = vld [vmem:[#allocation5 + $0x124] sm:$0xf0]  ;;  %13648 = vst [vmem:[#allocation51_spill] sm:$0xff] %v10014_v27  ;;  %v9019_v47 = vld [vmem:[#allocation5 + $0x174] sm:$0xf] }
  0x96   : > { %13640 = vst [vmem:[#allocation43_spill] sm:$0xff] %v9974_v59  ;;  %1405 = vmatpush.bf16.msrb.mxu0 %v7918_v15  ;;  %v7894_v57 = vor.u32 %v9010_v56, %v7893_v51  ;;  %v7998_v15 = vor.u32 %v9036_v6, %v7997_v3  ;;  %v7935_v48 = vld [vmem:[#allocation5 + $0x178] sm:$0xf0] }
  0x97   : > { %13642 = vst [vmem:[#allocation45_spill] sm:$0xff] %v9978_v61  ;;  %v7999_v51 = vld [vmem:[#allocation5 + $0x1f8] sm:$0xf0] }
  0x98   : > { %870 = vmatpush.bf16.msrb.mxu2 %v7770_v18  ;;  %v399_v18 = vld [vmem:[%s9830_s16 + $0x230] sm:$0xff]  ;;  %1512 = vmatpush.bf16.msrb.mxu1 %v7998_v15  ;;  %v405_v15 = vld [vmem:[%s9830_s16 + $0x260] sm:$0xff] }
  0x99   : > { %979 = vmatpush.bf16.msrb.mxu3 %v7834_v19  ;;  %v398_v19 = vld [vmem:[%s9830_s16 + $0x228] sm:$0xff]  ;;  %v9994_v30 = vpack.c.bf16 %v399_v18, %v397_v17  ;;  %v404_v17 = vld [vmem:[%s9830_s16 + $0x258] sm:$0xff] }
  0x9a   : > { %v9996_v36 = vpack.c.bf16 %v400_v20, %v398_v19  ;;  %1406 = vmatpush.bf16.msrb.mxu0 %v7910_v31  ;;  %v362_v18 = vld [vmem:[%s9830_s16 + $0x108] sm:$0xff]  ;;  %v364_v19 = vld [vmem:[%s9830_s16 + $0x118] sm:$0xff]  ;;  %v7877_v20 = vld [vmem:[#allocation5 + $0x100] sm:$0xf] }
  0x9b   : > { %13644 = vst [vmem:[#allocation47_spill] sm:$0xff] %v9994_v30 }
  0x9c   : > { %871 = vmatpush.bf16.msrb.mxu2 %v7762_v44  ;;  %13645 = vst [vmem:[#allocation48_spill] sm:$0xff] %v9996_v36  ;;  %v8989_v44 = vld [vmem:[#allocation5 + $0x84] sm:$0xf] }
  0x9d   : > { %980 = vmatpush.bf16.msrb.mxu3 %v7826_v45  ;;  %v7754_v45 = vor.u32 %v8973_v38, %v7751_v39  ;;  %v7818_v49 = vor.u32 %v8989_v44, %v7815_v46  ;;  %v10018_v38 = vpack.c.bf16 %v404_v17, %v402_v16  ;;  %v7878_v39 = vor.u32 %v9006_v21, %v7877_v20  ;;  %v407_v16 = vld [vmem:[%s9830_s16 + $0x270] sm:$0xff]  ;;  %v366_v21 = vld [vmem:[%s9830_s16 + $0x128] sm:$0xff] }
  0x9e   : > { %1407 = vmatpush.bf16.msrb.mxu0 %v7902_v50  ;;  %v10020_v44 = vpack.c.bf16 %v364_v19, %v362_v18  ;;  %v10023_v46 = vperm.slane %v10016_v28, 0  ;;  %v7938_v50 = vor.u32 %v9019_v47, %v7935_v48  ;;  %v7990_v17 = vor.u32 %v9034_v9, %v7989_v8  ;;  %v406_v18 = vld [vmem:[%s9830_s16 + $0x268] sm:$0xff]  ;;  %v408_v19 = vld [vmem:[%s9830_s16 + $0x278] sm:$0xff] }
  0x9f   : > { %13649 = vst [vmem:[#allocation52_spill] sm:$0xff] %v10018_v38 }
  0xa0   : > { %872 = vmatpush.bf16.msrb.mxu2 %v7754_v45  ;;  %13650 = vst [vmem:[#allocation53_spill] sm:$0xff] %v10020_v44  ;;  %1513 = vmatpush.bf16.msrb.mxu1 %v7990_v17 }
  0xa1   : > { %981 = vmatpush.bf16.msrb.mxu3 %v7818_v49  ;;  %v9035_v49 = vld [vmem:[#allocation5 + $0x1f4] sm:$0xf] }
  0xa2   : > { %1408 = vmatpush.bf16.msrb.mxu0 %v7894_v57  ;;  %v8002_v57 = vor.u32 %v9035_v49, %v7999_v51 }
  0xa3   : > { %665 = vmatmul.bf16.gmra.mxu0 %v9892_v40  ;;  %715 = vmatmul.bf16.gmra.mxu2 %v9894_v41 }
  0xa4   : > { %824 = vmatmul.bf16.gmra.mxu3 %v9896_v42  ;;  %1621 = vmatpush.bf16.msra.mxu2 %v7938_v50  ;;  %v10041_v50 = vpack.c.bf16 %v407_v16, %v405_v15 }
  0xa5   : > { %774 = vmatmul.bf16.gmra.mxu1 %v9898_v43  ;;  %1730 = vmatpush.bf16.msra.mxu3 %v8002_v57 }
  0xa6   : > { %1409 = vmatpush.bf16.msrb.mxu0 %v7886_v7  ;;  %v365_v7 = vld [vmem:[%s9830_s16 + $0x120] sm:$0xff]  ;;  %13652 = vst [vmem:[#allocation55_spill] sm:$0xff] %v10041_v50 }
  0xa7   : > { %v10039_v49 = vpack.c.bf16 %v367_v14, %v365_v7 }
  0xa9   : > { %13651 = vst [vmem:[#allocation54_spill] sm:$0xff] %v10039_v49 }
  0xaa   : > { %1410 = vmatpush.bf16.msrb.mxu0 %v7878_v39  ;;  %v368_v39 = vld [vmem:[%s9830_s16 + $0x138] sm:$0xff] }
  0xb3   : > { %670 = vmatmul.bf16.gmra.mxu0 %v9912_v52  ;;  %720 = vmatmul.bf16.gmra.mxu2 %v9914_v53 }
  0xb4   : > { %829 = vmatmul.bf16.gmra.mxu3 %v9916_v54 }
  0xb5   : > { %779 = vmatmul.bf16.gmra.mxu1 %v9918_v55 }
  0xc3   : > { %675 = vmatmul.bf16.gmra.mxu0 %v9932_v10  ;;  %725 = vmatmul.bf16.gmra.mxu2 %v9934_v11 }
  0xc4   : > { %834 = vmatmul.bf16.gmra.mxu3 %v9936_v12 }
  0xc5   : > { %784 = vmatmul.bf16.gmra.mxu1 %v9938_v13 }
  0xd3   : > { %680 = vmatmul.bf16.gmra.mxu0 %v9952_v32  ;;  %730 = vmatmul.bf16.gmra.mxu2 %v9954_v33 }
  0xd4   : > { %839 = vmatmul.bf16.gmra.mxu3 %v9956_v34 }
  0xd5   : > { %789 = vmatmul.bf16.gmra.mxu1 %v9958_v35 }
  0xe3   : > { %685 = vmatmul.bf16.gmra.mxu0 %v9972_v58  ;;  %735 = vmatmul.bf16.gmra.mxu2 %v9974_v59 }
  0xe4   : > { %844 = vmatmul.bf16.gmra.mxu3 %v9976_v60 }
  0xe5   : > { %794 = vmatmul.bf16.gmra.mxu1 %v9978_v61 }
  0xf3   : > { %690 = vmatmul.bf16.gmra.mxu0 %v9992_v29  ;;  %740 = vmatmul.bf16.gmra.mxu2 %v9994_v30 }
  0xf4   : > { %849 = vmatmul.bf16.gmra.mxu3 %v9996_v36 }
  0xf5   : > { %799 = vmatmul.bf16.gmra.mxu1 %v9998_v37 }
 0x100   : > { %v656_v31 = vpop.f32.mrf.mxu0 }
 0x101   : > { %v657_v8 = vadd.f32 %v656_v31, %v10023_v46 }
 0x102   : > { %v765_v45 = vpop.f32.mrf.mxu1 }
 0x103   : > { %695 = vmatmul.bf16.gmra.mxu0 %v10012_v26  ;;  %745 = vmatmul.bf16.gmra.mxu2 %v10014_v27  ;;  %v766_v15 = vadd.f32 %v765_v45, %v657_v8  ;;  %v9033_v27 = vld [vmem:[#allocation5 + $0x1e4] sm:$0xf] }
 0x104   : > { %854 = vmatmul.bf16.gmra.mxu3 %v10018_v38 }
 0x105   : > { %804 = vmatmul.bf16.gmra.mxu1 %v10020_v44 }
 0x106   : > { %v706_v56 = vpop.f32.mrf.mxu2 }
 0x107   : > { %v707_v62 = vadd.f32 %v706_v56, %v10023_v46  ;;  %v815_v63 = vpop.f32.mrf.mxu3  ;;  %v10043_v56 = vpack.c.bf16 %v408_v19, %v406_v18 }
 0x108   : > { %v658_v2 = vpop.f32.mrf.mxu0 }
 0x109   : > { %v816_v3 = vadd.f32 %v815_v63, %v707_v62  ;;  %13653 = vst [vmem:[#allocation56_spill] sm:$0xff] %v10043_v56  ;;  %v10045_v62 = vpack.c.bf16 %v368_v39, %v366_v21  ;;  %v659_v38 = vadd.f32 %v658_v2, %v10023_v46 }
 0x10a   : > { %v767_v6 = vpop.f32.mrf.mxu1 }
 0x10b   : > { %13654 = vst [vmem:[#allocation57_spill] sm:$0xff] %v10045_v62  ;;  %v1123_v9 = vmax.f32 %v816_v3, 0.0  ;;  %v768_v31 = vadd.f32 %v767_v6, %v659_v38  ;;  %v7981_v6 = vld [vmem:[#allocation5 + $0x1d0] sm:$0xf] }
 0x10d   : > { %v1085_v21 = vmax.f32 %v768_v31, 0.0 }
 0x10e   : > { %v708_v20 = vpop.f32.mrf.mxu2 }
 0x10f   : > { %v709_v47 = vadd.f32 %v708_v20, %v10023_v46  ;;  %v817_v48 = vpop.f32.mrf.mxu3  ;;  %v1083_v20 = vmax.f32 %v766_v15, 0.0  ;;  %v9032_v15 = vld [vmem:[#allocation5 + $0x1d4] sm:$0xf0] }
 0x110   : > { %v661_v51 = vpop.f32.mrf.mxu0 }
 0x111   : > { %v818_v57 = vadd.f32 %v817_v48, %v709_v47  ;;  %v662_v45 = vadd.f32 %v661_v51, %v10023_v46 }
 0x112   : > { %v770_v63 = vpop.f32.mrf.mxu1 }
 0x113   : > { %v1125_v17 = vmax.f32 %v818_v57, 0.0  ;;  %700 = vmatmul.bf16.gmra.mxu0 %v10039_v49  ;;  %750 = vmatmul.bf16.gmra.mxu2 %v10041_v50  ;;  %v10057_v57 = vpack.c.bf16 %v1085_v21, %v1083_v20  ;;  %v771_v20 = vadd.f32 %v770_v63, %v662_v45 }
 0x114   : > { %859 = vmatmul.bf16.gmra.mxu3 %v10043_v56 }
 0x115   : > { %809 = vmatmul.bf16.gmra.mxu1 %v10045_v62  ;;  %v10053_v7 = vpack.c.bf16 %v1125_v17, %v1123_v9  ;;  %13656 = vst [vmem:[#allocation59_spill] sm:$0xff] %v10057_v57 }
 0x116   : > { %v711_v14 = vpop.f32.mrf.mxu2 }
 0x117   : > { %13655 = vst [vmem:[#allocation58_spill] sm:$0xff] %v10053_v7  ;;  %v712_v16 = vadd.f32 %v711_v14, %v10023_v46  ;;  %v820_v18 = vpop.f32.mrf.mxu3 }
 0x118   : > { %v663_v3 = vpop.f32.mrf.mxu0 }
 0x119   : > { %v821_v19 = vadd.f32 %v820_v18, %v712_v16  ;;  %v664_v14 = vadd.f32 %v663_v3, %v10023_v46  ;;  %v7982_v16 = vor.u32 %v9032_v15, %v7981_v6 }
 0x11a   : > { %v772_v2 = vpop.f32.mrf.mxu1 }
 0x11b   : > { %v1127_v8 = vmax.f32 %v821_v19, 0.0  ;;  %1514 = vmatpush.bf16.msrb.mxu1 %v7982_v16  ;;  %v773_v21 = vadd.f32 %v772_v2, %v664_v14 }
 0x11e   : > { %v713_v39 = vpop.f32.mrf.mxu2 }
 0x11f   : > { %v714_v47 = vadd.f32 %v713_v39, %v10023_v46  ;;  %v822_v48 = vpop.f32.mrf.mxu3 }
 0x120   : > { %v666_v56 = vpop.f32.mrf.mxu0 }
 0x121   : > { %v823_v9 = vadd.f32 %v822_v48, %v714_v47  ;;  %v1087_v48 = vmax.f32 %v771_v20, 0.0  ;;  %v667_v16 = vadd.f32 %v666_v56, %v10023_v46 }
 0x122   : > { %v775_v17 = vpop.f32.mrf.mxu1 }
 0x123   : > { %v1129_v38 = vmax.f32 %v823_v9, 0.0  ;;  %873 = vmatmul.bf16.vlgmr.msrb.gmra.mxu2 %v9852_v0  ;;  %1411 = vmatmul.bf16.vlgmr.msrb.gmra.mxu0 %v10057_v57  ;;  %v1089_v9 = vmax.f32 %v773_v21, 0.0  ;;  %v9017_v0 = vld [vmem:[#allocation5 + $0x164] sm:$0xf]  ;;  %v7927_v57 = vld [vmem:[#allocation5 + $0x168] sm:$0xf0] }
 0x124   : > { %982 = vmatmul.bf16.vlgmr.msrb.gmra.mxu3 %v9858_v5  ;;  %v7930_v50 = vor.u32 %v9017_v0, %v7927_v57  ;;  %v7991_v5 = vld [vmem:[#allocation5 + $0x1e8] sm:$0xf0] }
 0x125   : > { %v10064_v18 = vpack.c.bf16 %v1129_v38, %v1127_v8  ;;  %v7994_v6 = vor.u32 %v9033_v27, %v7991_v5  ;;  %v10068_v45 = vpack.c.bf16 %v1089_v9, %v1087_v48  ;;  %v7973_v5 = vld [vmem:[#allocation5 + $0x1c0] sm:$0xf]  ;;  %v9030_v27 = vld [vmem:[#allocation5 + $0x1c4] sm:$0xf0] }
 0x126   : > { %v716_v31 = vpop.f32.mrf.mxu2  ;;  %1622 = vmatpush.bf16.msra.mxu2 %v7930_v50  ;;  %v7974_v50 = vor.u32 %v9030_v27, %v7973_v5 }
 0x127   : > { %13657 = vst [vmem:[#allocation60_spill] sm:$0xff] %v10064_v18  ;;  %v717_v51 = vadd.f32 %v716_v31, %v10023_v46  ;;  %v825_v19 = vpop.f32.mrf.mxu3  ;;  %1731 = vmatpush.bf16.msra.mxu3 %v7994_v6 }
 0x128   : > { %v668_v3 = vpop.f32.mrf.mxu0  ;;  %1515 = vmatpush.bf16.msrb.mxu1 %v7974_v50 }
 0x129   : > { %v826_v39 = vadd.f32 %v825_v19, %v717_v51  ;;  %v669_v20 = vadd.f32 %v668_v3, %v10023_v46  ;;  %v776_v19 = vadd.f32 %v775_v17, %v667_v16 }
 0x12a   : > { %v777_v47 = vpop.f32.mrf.mxu1 }
 0x12b   : > { %v1131_v31 = vmax.f32 %v826_v39, 0.0  ;;  %v778_v39 = vadd.f32 %v777_v47, %v669_v20  ;;  %v1091_v6 = vmax.f32 %v776_v19, 0.0 }
 0x12e   : > { %v718_v8 = vpop.f32.mrf.mxu2 }
 0x12f   : > { %v719_v38 = vadd.f32 %v718_v8, %v10023_v46  ;;  %v827_v63 = vpop.f32.mrf.mxu3  ;;  %v1093_v8 = vmax.f32 %v778_v39, 0.0 }
 0x130   : > { %v671_v2 = vpop.f32.mrf.mxu0 }
 0x131   : > { %v828_v14 = vadd.f32 %v827_v63, %v719_v38  ;;  %v672_v17 = vadd.f32 %v671_v2, %v10023_v46 }
 0x132   : > { %v780_v15 = vpop.f32.mrf.mxu1 }
 0x133   : > { %v1133_v0 = vmax.f32 %v828_v14, 0.0  ;;  %878 = vmatmul.bf16.gmra.mxu2 %v9872_v22  ;;  %1416 = vmatmul.bf16.gmra.mxu0 %v10068_v45  ;;  %v9026_v22 = vld [vmem:[#allocation5 + $0x1a4] sm:$0xf0] }
 0x134   : > { %987 = vmatmul.bf16.gmra.mxu3 %v9878_v25  ;;  %v10079_v25 = vpack.c.bf16 %v1093_v8, %v1091_v6  ;;  %v7965_v8 = vld [vmem:[#allocation5 + $0x1b0] sm:$0xf] }
 0x135   : > { %v10075_v57 = vpack.c.bf16 %v1133_v0, %v1131_v31 }
 0x136   : > { %v721_v51 = vpop.f32.mrf.mxu2 }
 0x137   : > { %13658 = vst [vmem:[#allocation61_spill] sm:$0xff] %v10075_v57  ;;  %v722_v21 = vadd.f32 %v721_v51, %v10023_v46  ;;  %v830_v56 = vpop.f32.mrf.mxu3  ;;  %v781_v51 = vadd.f32 %v780_v15, %v672_v17 }
 0x138   : > { %v673_v3 = vpop.f32.mrf.mxu0 }
 0x139   : > { %v831_v48 = vadd.f32 %v830_v56, %v722_v21  ;;  %v674_v47 = vadd.f32 %v673_v3, %v10023_v46  ;;  %v1095_v6 = vmax.f32 %v781_v51, 0.0 }
 0x13a   : > { %v782_v9 = vpop.f32.mrf.mxu1 }
 0x13b   : > { %v1135_v16 = vmax.f32 %v831_v48, 0.0  ;;  %v783_v56 = vadd.f32 %v782_v9, %v674_v47 }
 0x13d   : > { %v1097_v3 = vmax.f32 %v783_v56, 0.0  ;;  %v7919_v56 = vld [vmem:[#allocation5 + $0x158] sm:$0xf0] }
 0x13e   : > { %v723_v38 = vpop.f32.mrf.mxu2 }
 0x13f   : > { %v724_v63 = vadd.f32 %v723_v38, %v10023_v46  ;;  %v832_v14 = vpop.f32.mrf.mxu3  ;;  %v9028_v38 = vld [vmem:[#allocation5 + $0x1b4] sm:$0xf0] }
 0x140   : > { %v676_v31 = vpop.f32.mrf.mxu0 }
 0x141   : > { %v833_v0 = vadd.f32 %v832_v14, %v724_v63  ;;  %v7966_v63 = vor.u32 %v9028_v38, %v7965_v8  ;;  %v677_v9 = vadd.f32 %v676_v31, %v10023_v46  ;;  %v9031_v8 = vld [vmem:[#allocation5 + $0x1d4] sm:$0xf] }
 0x142   : > { %v785_v5 = vpop.f32.mrf.mxu1 }
 0x143   : > { %v1137_v20 = vmax.f32 %v833_v0, 0.0  ;;  %883 = vmatmul.bf16.gmra.mxu2 %v9892_v40  ;;  %1421 = vmatmul.bf16.gmra.mxu0 %v10079_v25  ;;  %v786_v31 = vadd.f32 %v785_v5, %v677_v9  ;;  %v7957_v40 = vld [vmem:[#allocation5 + $0x1a0] sm:$0xf] }
 0x144   : > { %992 = vmatmul.bf16.gmra.mxu3 %v9898_v43  ;;  %1516 = vmatpush.bf16.msrb.mxu1 %v7966_v63 }
 0x145   : > { %v10086_v27 = vpack.c.bf16 %v1137_v20, %v1135_v16  ;;  %v10090_v20 = vpack.c.bf16 %v1097_v3, %v1095_v6  ;;  %v7983_v3 = vld [vmem:[#allocation5 + $0x1d8] sm:$0xf0] }
 0x146   : > { %v726_v50 = vpop.f32.mrf.mxu2 }
 0x147   : > { %13659 = vst [vmem:[#allocation62_spill] sm:$0xff] %v10086_v27  ;;  %v727_v19 = vadd.f32 %v726_v50, %v10023_v46  ;;  %v835_v21 = vpop.f32.mrf.mxu3 }
 0x148   : > { %v678_v39 = vpop.f32.mrf.mxu0 }
 0x149   : > { %v836_v2 = vadd.f32 %v835_v21, %v727_v19  ;;  %v679_v19 = vadd.f32 %v678_v39, %v10023_v46  ;;  %v9015_v21 = vld [vmem:[#allocation5 + $0x154] sm:$0xf] }
 0x14a   : > { %v787_v48 = vpop.f32.mrf.mxu1  ;;  %v7922_v6 = vor.u32 %v9015_v21, %v7919_v56  ;;  %v7958_v21 = vor.u32 %v9026_v22, %v7957_v40 }
 0x14b   : > { %v1139_v47 = vmax.f32 %v836_v2, 0.0 }
 0x14c   : > { %1623 = vmatpush.bf16.msra.mxu2 %v7922_v6  ;;  %1517 = vmatpush.bf16.msrb.mxu1 %v7958_v21 }
 0x14e   : > { %v728_v14 = vpop.f32.mrf.mxu2 }
 0x14f   : > { %v729_v0 = vadd.f32 %v728_v14, %v10023_v46  ;;  %v837_v16 = vpop.f32.mrf.mxu3  ;;  %v7986_v14 = vor.u32 %v9031_v8, %v7983_v3 }
 0x150   : > { %v681_v15 = vpop.f32.mrf.mxu0 }
 0x151   : > { %v838_v17 = vadd.f32 %v837_v16, %v729_v0  ;;  %v788_v0 = vadd.f32 %v787_v48, %v679_v19  ;;  %1732 = vmatpush.bf16.msra.mxu3 %v7986_v14  ;;  %v682_v19 = vadd.f32 %v681_v15, %v10023_v46 }
 0x152   : > { %v790_v50 = vpop.f32.mrf.mxu1 }
 0x153   : > { %v1141_v51 = vmax.f32 %v838_v17, 0.0  ;;  %888 = vmatmul.bf16.gmra.mxu2 %v9912_v52  ;;  %1426 = vmatmul.bf16.gmra.mxu0 %v10090_v20  ;;  %v1101_v52 = vmax.f32 %v788_v0, 0.0 }
 0x154   : > { %997 = vmatmul.bf16.gmra.mxu3 %v9918_v55  ;;  %v1099_v55 = vmax.f32 %v786_v31, 0.0 }
 0x155   : > { %v10097_v38 = vpack.c.bf16 %v1141_v51, %v1139_v47 }
 0x156   : > { %v731_v63 = vpop.f32.mrf.mxu2  ;;  %v10101_v5 = vpack.c.bf16 %v1101_v52, %v1099_v55  ;;  %v791_v52 = vadd.f32 %v790_v50, %v682_v19 }
 0x157   : > { %13660 = vst [vmem:[#allocation63_spill] sm:$0xff] %v10097_v38  ;;  %v732_v2 = vadd.f32 %v731_v63, %v10023_v46  ;;  %v840_v39 = vpop.f32.mrf.mxu3 }
 0x158   : > { %v683_v16 = vpop.f32.mrf.mxu0  ;;  %v1103_v0 = vmax.f32 %v791_v52, 0.0 }
 0x159   : > { %v841_v17 = vadd.f32 %v840_v39, %v732_v2  ;;  %v684_v3 = vadd.f32 %v683_v16, %v10023_v46 }
 0x15a   : > { %v792_v43 = vpop.f32.mrf.mxu1 }
 0x15b   : > { %v1143_v6 = vmax.f32 %v841_v17, 0.0  ;;  %v793_v31 = vadd.f32 %v792_v43, %v684_v3  ;;  %v7949_v3 = vld [vmem:[#allocation5 + $0x190] sm:$0xf] }
 0x15d   : > { %v1105_v16 = vmax.f32 %v793_v31, 0.0 }
 0x15e   : > { %v733_v56 = vpop.f32.mrf.mxu2 }
 0x15f   : > { %v734_v47 = vadd.f32 %v733_v56, %v10023_v46  ;;  %v842_v51 = vpop.f32.mrf.mxu3 }
 0x160   : > { %v686_v9 = vpop.f32.mrf.mxu0 }
 0x161   : > { %v843_v8 = vadd.f32 %v842_v51, %v734_v47  ;;  %v10112_v47 = vpack.c.bf16 %v1105_v16, %v1103_v0  ;;  %v687_v50 = vadd.f32 %v686_v9, %v10023_v46 }
 0x162   : > { %v795_v48 = vpop.f32.mrf.mxu1 }
 0x163   : > { %v1145_v63 = vmax.f32 %v843_v8, 0.0  ;;  %893 = vmatmul.bf16.gmra.mxu2 %v9932_v10  ;;  %1431 = vmatmul.bf16.gmra.mxu0 %v10101_v5  ;;  %v796_v31 = vadd.f32 %v795_v48, %v687_v50  ;;  %v9029_v10 = vld [vmem:[#allocation5 + $0x1c4] sm:$0xf] }
 0x164   : > { %1002 = vmatmul.bf16.gmra.mxu3 %v9938_v13 }
 0x165   : > { %v10108_v22 = vpack.c.bf16 %v1145_v63, %v1143_v6 }
 0x166   : > { %v736_v40 = vpop.f32.mrf.mxu2 }
 0x167   : > { %13661 = vst [vmem:[#allocation64_spill] sm:$0xff] %v10108_v22  ;;  %v737_v55 = vadd.f32 %v736_v40, %v10023_v46  ;;  %v845_v14 = vpop.f32.mrf.mxu3  ;;  %v9024_v40 = vld [vmem:[#allocation5 + $0x194] sm:$0xf0] }
 0x168   : > { %v688_v2 = vpop.f32.mrf.mxu0  ;;  %v7950_v52 = vor.u32 %v9024_v40, %v7949_v3 }
 0x169   : > { %v846_v15 = vadd.f32 %v845_v14, %v737_v55  ;;  %v689_v63 = vadd.f32 %v688_v2, %v10023_v46 }
 0x16a   : > { %v797_v39 = vpop.f32.mrf.mxu1  ;;  %1518 = vmatpush.bf16.msrb.mxu1 %v7950_v52 }
 0x16b   : > { %v1147_v19 = vmax.f32 %v846_v15, 0.0  ;;  %v798_v0 = vadd.f32 %v797_v39, %v689_v63 }
 0x16e   : > { %v738_v17 = vpop.f32.mrf.mxu2 }
 0x16f   : > { %v739_v21 = vadd.f32 %v738_v17, %v10023_v46  ;;  %v847_v56 = vpop.f32.mrf.mxu3  ;;  %v1107_v17 = vmax.f32 %v796_v31, 0.0 }
 0x170   : > { %v691_v51 = vpop.f32.mrf.mxu0 }
 0x171   : > { %v848_v8 = vadd.f32 %v847_v56, %v739_v21  ;;  %v1109_v21 = vmax.f32 %v798_v0, 0.0  ;;  %v9013_v56 = vld [vmem:[#allocation5 + $0x144] sm:$0xf]  ;;  %v692_v40 = vadd.f32 %v691_v51, %v10023_v46 }
 0x172   : > { %v800_v6 = vpop.f32.mrf.mxu1 }
 0x173   : > { %v1149_v43 = vmax.f32 %v848_v8, 0.0  ;;  %898 = vmatmul.bf16.gmra.mxu2 %v9952_v32  ;;  %1436 = vmatmul.bf16.gmra.mxu0 %v10112_v47  ;;  %v7911_v8 = vld [vmem:[#allocation5 + $0x148] sm:$0xf0]  ;;  %v10123_v50 = vpack.c.bf16 %v1109_v21, %v1107_v17  ;;  %v801_v17 = vadd.f32 %v800_v6, %v692_v40 }
 0x174   : > { %1007 = vmatmul.bf16.gmra.mxu3 %v9958_v35  ;;  %v7914_v32 = vor.u32 %v9013_v56, %v7911_v8  ;;  %v7975_v35 = vld [vmem:[#allocation5 + $0x1c8] sm:$0xf0] }
 0x175   : > { %v10119_v55 = vpack.c.bf16 %v1149_v43, %v1147_v19  ;;  %v7978_v3 = vor.u32 %v9029_v10, %v7975_v35  ;;  %v7941_v10 = vld [vmem:[#allocation5 + $0x180] sm:$0xf]  ;;  %v1111_v8 = vmax.f32 %v801_v17, 0.0 }
 0x176   : > { %v741_v14 = vpop.f32.mrf.mxu2  ;;  %1624 = vmatpush.bf16.msra.mxu2 %v7914_v32  ;;  %v9022_v32 = vld [vmem:[#allocation5 + $0x184] sm:$0xf0] }
 0x177   : > { %13662 = vst [vmem:[#allocation65_spill] sm:$0xff] %v10119_v55  ;;  %v742_v9 = vadd.f32 %v741_v14, %v10023_v46  ;;  %v850_v15 = vpop.f32.mrf.mxu3  ;;  %1733 = vmatpush.bf16.msra.mxu3 %v7978_v3  ;;  %v7942_v35 = vor.u32 %v9022_v32, %v7941_v10 }
 0x178   : > { %v693_v2 = vpop.f32.mrf.mxu0 }
 0x179   : > { %v851_v16 = vadd.f32 %v850_v15, %v742_v9  ;;  %v694_v14 = vadd.f32 %v693_v2, %v10023_v46  ;;  %1519 = vmatpush.bf16.msrb.mxu1 %v7942_v35 }
 0x17a   : > { %v802_v13 = vpop.f32.mrf.mxu1 }
 0x17b   : > { %v1151_v52 = vmax.f32 %v851_v16, 0.0  ;;  %v803_v21 = vadd.f32 %v802_v13, %v694_v14 }
 0x17d   : > { %v1113_v3 = vmax.f32 %v803_v21, 0.0 }
 0x17e   : > { %v743_v19 = vpop.f32.mrf.mxu2 }
 0x17f   : > { %v744_v43 = vadd.f32 %v743_v19, %v10023_v46  ;;  %v852_v48 = vpop.f32.mrf.mxu3 }
 0x180   : > { %v696_v39 = vpop.f32.mrf.mxu0 }
 0x181   : > { %v853_v63 = vadd.f32 %v852_v48, %v744_v43  ;;  %v697_v6 = vadd.f32 %v696_v39, %v10023_v46 }
 0x182   : > { %v805_v0 = vpop.f32.mrf.mxu1 }
 0x183   : > { %v1153_v31 = vmax.f32 %v853_v63, 0.0  ;;  %903 = vmatmul.bf16.gmra.mxu2 %v9972_v58  ;;  %1441 = vmatmul.bf16.gmra.mxu0 %v10123_v50  ;;  %v10134_v63 = vpack.c.bf16 %v1113_v3, %v1111_v8  ;;  %v8061_v3 = vld [vmem:[#allocation5 + $0x270] sm:$0xf] }
 0x184   : > { %1012 = vmatmul.bf16.gmra.mxu3 %v9978_v61 }
 0x185   : > { %v10130_v9 = vpack.c.bf16 %v1153_v31, %v1151_v52 }
 0x186   : > { %v746_v15 = vpop.f32.mrf.mxu2 }
 0x187   : > { %13663 = vst [vmem:[#allocation66_spill] sm:$0xff] %v10130_v9  ;;  %v747_v51 = vadd.f32 %v746_v15, %v10023_v46  ;;  %v855_v16 = vpop.f32.mrf.mxu3  ;;  %v806_v15 = vadd.f32 %v805_v0, %v697_v6 }
 0x188   : > { %v698_v2 = vpop.f32.mrf.mxu0 }
 0x189   : > { %v856_v56 = vadd.f32 %v855_v16, %v747_v51  ;;  %v699_v32 = vadd.f32 %v698_v2, %v10023_v46  ;;  %v1115_v8 = vmax.f32 %v806_v15, 0.0 }
 0x18a   : > { %v807_v31 = vpop.f32.mrf.mxu1 }
 0x18b   : > { %v1155_v40 = vmax.f32 %v856_v56, 0.0  ;;  %v808_v16 = vadd.f32 %v807_v31, %v699_v32 }
 0x18d   : > { %v1117_v2 = vmax.f32 %v808_v16, 0.0  ;;  %v7903_v16 = vld [vmem:[#allocation5 + $0x138] sm:$0xf0] }
 0x18e   : > { %v748_v19 = vpop.f32.mrf.mxu2 }
 0x18f   : > { %v749_v43 = vadd.f32 %v748_v19, %v10023_v46  ;;  %v857_v48 = vpop.f32.mrf.mxu3  ;;  %v9052_v19 = vld [vmem:[#allocation5 + $0x274] sm:$0xf0]  ;;  %v10145_v6 = vpack.c.bf16 %v1117_v2, %v1115_v8  ;;  %v9027_v8 = vld [vmem:[#allocation5 + $0x1b4] sm:$0xf]  ;;  %v7967_v2 = vld [vmem:[#allocation5 + $0x1b8] sm:$0xf0] }
 0x190   : > { %v701_v52 = vpop.f32.mrf.mxu0 }
 0x191   : > { %v858_v10 = vadd.f32 %v857_v48, %v749_v43  ;;  %v8062_v43 = vor.u32 %v9052_v19, %v8061_v3  ;;  %v8125_v48 = vld [vmem:[#allocation5 + $0x2f0] sm:$0xf] }
 0x192   : > { %v810_v56 = vpop.f32.mrf.mxu1 }
 0x193   : > { %v1157_v13 = vmax.f32 %v858_v10, 0.0  ;;  %908 = vmatmul.bf16.gmra.mxu2 %v9992_v29  ;;  %1446 = vmatmul.bf16.gmra.mxu0 %v10134_v63  ;;  %v9068_v10 = vld [vmem:[#allocation5 + $0x2f4] sm:$0xf0] }
 0x194   : > { %1017 = vmatmul.bf16.gmra.mxu3 %v9998_v37  ;;  %v8126_v61 = vor.u32 %v9068_v10, %v8125_v48  ;;  %2159 = vmatpush.bf16.msra.mxu0 %v8062_v43 }
 0x195   : > { %v10141_v14 = vpack.c.bf16 %v1157_v13, %v1155_v40  ;;  %v702_v13 = vadd.f32 %v701_v52, %v10023_v46  ;;  %v7970_v52 = vor.u32 %v9027_v8, %v7967_v2 }
 0x196   : > { %v751_v35 = vpop.f32.mrf.mxu2  ;;  %2268 = vmatpush.bf16.msra.mxu1 %v8126_v61 }
 0x197   : > { %13664 = vst [vmem:[#allocation67_spill] sm:$0xff] %v10141_v14  ;;  %v752_v17 = vadd.f32 %v751_v35, %v10023_v46  ;;  %v860_v51 = vpop.f32.mrf.mxu3  ;;  %1734 = vmatpush.bf16.msra.mxu3 %v7970_v52 }
 0x198   : > { %v703_v21 = vpop.f32.mrf.mxu0 }
 0x199   : > { %v861_v39 = vadd.f32 %v860_v51, %v752_v17  ;;  %v704_v15 = vadd.f32 %v703_v21, %v10023_v46  ;;  %v9011_v51 = vld [vmem:[#allocation5 + $0x134] sm:$0xf] }
 0x19a   : > { %v7906_v61 = vor.u32 %v9011_v51, %v7903_v16 }
 0x19b   : > { %v1159_v35 = vmax.f32 %v861_v39, 0.0  ;;  %v811_v39 = vadd.f32 %v810_v56, %v702_v13 }
 0x19c   : > { %1625 = vmatpush.bf16.msra.mxu2 %v7906_v61 }
 0x19d   : > { %v1119_v10 = vmax.f32 %v811_v39, 0.0 }
 0x19e   : > { %v753_v37 = vpop.f32.mrf.mxu2 }
 0x19f   : > { %v754_v40 = vadd.f32 %v753_v37, %v10023_v46  ;;  %v862_v0 = vpop.f32.mrf.mxu3  ;;  %v812_v37 = vpop.f32.mrf.mxu1  ;;  %v10157_v46 = vperm.slane %v10016_v28, 1 }
 0x1a0   : > { %v10147_v31 = vpop.f32.mrf.mxu0  ;;  %v813_v43 = vadd.f32 %v812_v37, %v704_v15 }
 0x1a1   : > { %v863_v32 = vadd.f32 %v862_v0, %v754_v40 }
 0x1a2   : > { %v1121_v0 = vmax.f32 %v813_v43, 0.0 }
 0x1a3   : > { %v1161_v17 = vmax.f32 %v863_v32, 0.0  ;;  %913 = vmatmul.bf16.gmra.mxu2 %v10012_v26  ;;  %1451 = vmatmul.bf16.gmra.mxu0 %v10145_v6 }
 0x1a4   : > { %1022 = vmatmul.bf16.gmra.mxu3 %v10020_v44  ;;  %v10163_v16 = vpack.c.bf16 %v1121_v0, %v1119_v10 }
 0x1a5   : > { %v10154_v3 = vpack.c.bf16 %v1161_v17, %v1159_v35 }
 0x1a6   : > { %v874_v19 = vpop.f32.mrf.mxu2 }
 0x1a7   : > { %13665 = vst [vmem:[#allocation68_spill] sm:$0xff] %v10154_v3  ;;  %v983_v21 = vpop.f32.mrf.mxu3  ;;  %v875_v40 = vadd.f32 %v874_v19, %v10157_v46 }
 0x1a8   : > { %v10159_v48 = vpop.f32.mrf.mxu0 }
 0x1a9   : > { %v984_v51 = vadd.f32 %v983_v21, %v875_v40 }
 0x1ab   : > { %v1084_v13 = vmax.f32 %v984_v51, 0.0  ;;  %v8053_v51 = vld [vmem:[#allocation5 + $0x260] sm:$0xf] }
 0x1ae   : > { %v876_v32 = vpop.f32.mrf.mxu2 }
 0x1af   : > { %v877_v35 = vadd.f32 %v876_v32, %v10157_v46  ;;  %v985_v17 = vpop.f32.mrf.mxu3 }
 0x1b0   : > { %v10165_v56 = vpop.f32.mrf.mxu0 }
 0x1b1   : > { %v986_v28 = vadd.f32 %v985_v17, %v877_v35  ;;  %v9050_v35 = vld [vmem:[#allocation5 + $0x264] sm:$0xf0] }
 0x1b2   : > { %v8054_v17 = vor.u32 %v9050_v35, %v8053_v51  ;;  %v7959_v51 = vld [vmem:[#allocation5 + $0x1a8] sm:$0xf0] }
 0x1b3   : > { %v1086_v15 = vmax.f32 %v986_v28, 0.0  ;;  %918 = vmatmul.bf16.gmra.mxu2 %v10039_v49  ;;  %1456 = vmatmul.bf16.gmra.mxu0 %v10163_v16  ;;  %v8117_v28 = vld [vmem:[#allocation5 + $0x2e0] sm:$0xf] }
 0x1b4   : > { %1027 = vmatmul.bf16.gmra.mxu3 %v10045_v62  ;;  %2160 = vmatpush.bf16.msra.mxu0 %v8054_v17 }
 0x1b5   : > { %v10170_v37 = vpack.c.bf16 %v1086_v15, %v1084_v13  ;;  %v9066_v13 = vld [vmem:[#allocation5 + $0x2e4] sm:$0xf0] }
 0x1b6   : > { %v879_v8 = vpop.f32.mrf.mxu2 }
 0x1b7   : > { %v988_v61 = vpop.f32.mrf.mxu3  ;;  %1520 = vmatmul.bf16.vlgmr.msrb.gmra.mxu1 %v10170_v37  ;;  %v880_v19 = vadd.f32 %v879_v8, %v10157_v46  ;;  %v8118_v8 = vor.u32 %v9066_v13, %v8117_v28 }
 0x1b8   : > { %v10173_v2 = vpop.f32.mrf.mxu0 }
 0x1b9   : > { %v989_v39 = vadd.f32 %v988_v61, %v880_v19  ;;  %2269 = vmatpush.bf16.msra.mxu1 %v8118_v8 }
 0x1bb   : > { %v1088_v0 = vmax.f32 %v989_v39, 0.0 }
 0x1be   : > { %v881_v52 = vpop.f32.mrf.mxu2 }
 0x1bf   : > { %v882_v21 = vadd.f32 %v881_v52, %v10157_v46  ;;  %v990_v43 = vpop.f32.mrf.mxu3 }
 0x1c0   : > { %v10177_v10 = vpop.f32.mrf.mxu0 }
 0x1c1   : > { %v991_v40 = vadd.f32 %v990_v43, %v882_v21  ;;  %v9009_v21 = vld [vmem:[#allocation5 + $0x124] sm:$0xf]  ;;  %v7895_v43 = vld [vmem:[#allocation5 + $0x128] sm:$0xf0] }
 0x1c3   : > { %v1090_v32 = vmax.f32 %v991_v40, 0.0  ;;  %923 = vmatmul.bf16.gmra.mxu2 %v9854_v1  ;;  %1461 = vmatmul.bf16.gmra.mxu0 %v10053_v7  ;;  %v7898_v40 = vor.u32 %v9009_v21, %v7895_v43 }
 0x1c4   : > { %1032 = vmatmul.bf16.gmra.mxu3 %v9856_v4  ;;  %v9025_v4 = vld [vmem:[#allocation5 + $0x1a4] sm:$0xf] }
 0x1c5   : > { %v10182_v15 = vpack.c.bf16 %v1090_v32, %v1088_v0  ;;  %v7962_v35 = vor.u32 %v9025_v4, %v7959_v51  ;;  %1626 = vmatpush.bf16.msra.mxu2 %v7898_v40 }
 0x1c6   : > { %v884_v61 = vpop.f32.mrf.mxu2 }
 0x1c7   : > { %v993_v19 = vpop.f32.mrf.mxu3  ;;  %1525 = vmatmul.bf16.gmra.mxu1 %v10182_v15  ;;  %v885_v39 = vadd.f32 %v884_v61, %v10157_v46  ;;  %1735 = vmatpush.bf16.msra.mxu3 %v7962_v35 }
 0x1c8   : > { %v10185_v52 = vpop.f32.mrf.mxu0 }
 0x1c9   : > { %v994_v0 = vadd.f32 %v993_v19, %v885_v39 }
 0x1cb   : > { %v1092_v44 = vmax.f32 %v994_v0, 0.0 }
 0x1ce   : > { %v886_v62 = vpop.f32.mrf.mxu2 }
 0x1cf   : > { %v887_v32 = vadd.f32 %v886_v62, %v10157_v46  ;;  %v995_v17 = vpop.f32.mrf.mxu3 }
 0x1d0   : > { %v10189_v28 = vpop.f32.mrf.mxu0 }
 0x1d1   : > { %v996_v13 = vadd.f32 %v995_v17, %v887_v32 }
 0x1d3   : > { %v1094_v8 = vmax.f32 %v996_v13, 0.0  ;;  %928 = vmatmul.bf16.gmra.mxu2 %v9874_v23  ;;  %1466 = vmatmul.bf16.gmra.mxu0 %v10064_v18 }
 0x1d4   : > { %1037 = vmatmul.bf16.gmra.mxu3 %v9876_v24 }
 0x1d5   : > { %v10194_v61 = vpack.c.bf16 %v1094_v8, %v1092_v44 }
 0x1d6   : > { %v889_v4 = vpop.f32.mrf.mxu2 }
 0x1d7   : > { %v998_v21 = vpop.f32.mrf.mxu3  ;;  %1530 = vmatmul.bf16.gmra.mxu1 %v10194_v61  ;;  %v890_v19 = vadd.f32 %v889_v4, %v10157_v46 }
 0x1d8   : > { %v10197_v62 = vpop.f32.mrf.mxu0 }
 0x1d9   : > { %v999_v43 = vadd.f32 %v998_v21, %v890_v19  ;;  %v8045_v19 = vld [vmem:[#allocation5 + $0x250] sm:$0xf] }
 0x1db   : > { %v1096_v32 = vmax.f32 %v999_v43, 0.0 }
 0x1de   : > { %v891_v39 = vpop.f32.mrf.mxu2 }
 0x1df   : > { %v892_v40 = vadd.f32 %v891_v39, %v10157_v46  ;;  %v1000_v51 = vpop.f32.mrf.mxu3  ;;  %v9048_v39 = vld [vmem:[#allocation5 + $0x254] sm:$0xf0] }
 0x1e0   : > { %v10201_v35 = vpop.f32.mrf.mxu0  ;;  %v8046_v43 = vor.u32 %v9048_v39, %v8045_v19  ;;  %v7887_v19 = vld [vmem:[#allocation5 + $0x118] sm:$0xf0]  ;;  %v9023_v39 = vld [vmem:[#allocation5 + $0x194] sm:$0xf] }
 0x1e1   : > { %v1001_v0 = vadd.f32 %v1000_v51, %v892_v40  ;;  %v8109_v40 = vld [vmem:[#allocation5 + $0x2d0] sm:$0xf]  ;;  %v9064_v51 = vld [vmem:[#allocation5 + $0x2d4] sm:$0xf0] }
 0x1e2   : > { %2161 = vmatpush.bf16.msra.mxu0 %v8046_v43 }
 0x1e3   : > { %v1098_v17 = vmax.f32 %v1001_v0, 0.0  ;;  %933 = vmatmul.bf16.gmra.mxu2 %v9894_v41  ;;  %1471 = vmatmul.bf16.gmra.mxu0 %v10075_v57  ;;  %v8110_v0 = vor.u32 %v9064_v51, %v8109_v40 }
 0x1e4   : > { %1042 = vmatmul.bf16.gmra.mxu3 %v9896_v42 }
 0x1e5   : > { %v10206_v44 = vpack.c.bf16 %v1098_v17, %v1096_v32  ;;  %2270 = vmatpush.bf16.msra.mxu1 %v8110_v0 }
 0x1e6   : > { %v894_v13 = vpop.f32.mrf.mxu2 }
 0x1e7   : > { %v1003_v8 = vpop.f32.mrf.mxu3  ;;  %1535 = vmatmul.bf16.gmra.mxu1 %v10206_v44  ;;  %v895_v21 = vadd.f32 %v894_v13, %v10157_v46  ;;  %v9007_v13 = vld [vmem:[#allocation5 + $0x114] sm:$0xf] }
 0x1e8   : > { %v10209_v4 = vpop.f32.mrf.mxu0 }
 0x1e9   : > { %v1004_v41 = vadd.f32 %v1003_v8, %v895_v21  ;;  %v7890_v8 = vor.u32 %v9007_v13, %v7887_v19 }
 0x1eb   : > { %v1100_v1 = vmax.f32 %v1004_v41, 0.0  ;;  %1627 = vmatpush.bf16.msra.mxu2 %v7890_v8 }
 0x1ee   : > { %v896_v24 = vpop.f32.mrf.mxu2 }
 0x1ef   : > { %v897_v32 = vadd.f32 %v896_v24, %v10157_v46  ;;  %v1005_v17 = vpop.f32.mrf.mxu3  ;;  %v7951_v24 = vld [vmem:[#allocation5 + $0x198] sm:$0xf0] }
 0x1f0   : > { %v10213_v42 = vpop.f32.mrf.mxu0  ;;  %v7954_v40 = vor.u32 %v9023_v39, %v7951_v24 }
 0x1f1   : > { %v1006_v23 = vadd.f32 %v1005_v17, %v897_v32 }
 0x1f2   : > { %1736 = vmatpush.bf16.msra.mxu3 %v7954_v40 }
 0x1f3   : > { %v1102_v49 = vmax.f32 %v1006_v23, 0.0  ;;  %938 = vmatmul.bf16.gmra.mxu2 %v9914_v53  ;;  %1476 = vmatmul.bf16.gmra.mxu0 %v10086_v27  ;;  %v9062_v53 = vld [vmem:[#allocation5 + $0x2c4] sm:$0xf0]  ;;  %v8005_v27 = vld [vmem:[#allocation5 + $0x200] sm:$0xf] }
 0x1f4   : > { %1047 = vmatmul.bf16.gmra.mxu3 %v9916_v54 }
 0x1f5   : > { %v10218_v43 = vpack.c.bf16 %v1102_v49, %v1100_v1 }
 0x1f6   : > { %v899_v21 = vpop.f32.mrf.mxu2 }
 0x1f7   : > { %v1008_v51 = vpop.f32.mrf.mxu3  ;;  %1540 = vmatmul.bf16.gmra.mxu1 %v10218_v43  ;;  %v900_v41 = vadd.f32 %v899_v21, %v10157_v46 }
 0x1f8   : > { %v10221_v23 = vpop.f32.mrf.mxu0 }
 0x1f9   : > { %v1009_v32 = vadd.f32 %v1008_v51, %v900_v41 }
 0x1fb   : > { %v1104_v13 = vmax.f32 %v1009_v32, 0.0 }
 0x1fe   : > { %v901_v0 = vpop.f32.mrf.mxu2 }
 0x1ff   : > { %v902_v17 = vadd.f32 %v901_v0, %v10157_v46  ;;  %v1010_v54 = vpop.f32.mrf.mxu3 }
 0x200   : > { %v10225_v1 = vpop.f32.mrf.mxu0 }
 0x201   : > { %v1011_v49 = vadd.f32 %v1010_v54, %v902_v17 }
 0x203   : > { %v1106_v19 = vmax.f32 %v1011_v49, 0.0  ;;  %943 = vmatmul.bf16.gmra.mxu2 %v9934_v11  ;;  %1481 = vmatmul.bf16.gmra.mxu0 %v10097_v38 }
 0x204   : > { %1052 = vmatmul.bf16.gmra.mxu3 %v9936_v12 }
 0x205   : > { %v10230_v39 = vpack.c.bf16 %v1106_v19, %v1104_v13  ;;  %v8037_v13 = vld [vmem:[#allocation5 + $0x240] sm:$0xf]  ;;  %v9046_v19 = vld [vmem:[#allocation5 + $0x244] sm:$0xf0] }
 0x206   : > { %v904_v8 = vpop.f32.mrf.mxu2  ;;  %v8038_v11 = vor.u32 %v9046_v19, %v8037_v13  ;;  %v9021_v19 = vld [vmem:[#allocation5 + $0x184] sm:$0xf] }
 0x207   : > { %v1013_v24 = vpop.f32.mrf.mxu3  ;;  %1545 = vmatmul.bf16.gmra.mxu1 %v10230_v39  ;;  %v905_v40 = vadd.f32 %v904_v8, %v10157_v46  ;;  %v8101_v8 = vld [vmem:[#allocation5 + $0x2c0] sm:$0xf] }
 0x208   : > { %v10233_v21 = vpop.f32.mrf.mxu0  ;;  %2162 = vmatpush.bf16.msra.mxu0 %v8038_v11 }
 0x209   : > { %v1014_v54 = vadd.f32 %v1013_v24, %v905_v40  ;;  %v8102_v40 = vor.u32 %v9062_v53, %v8101_v8  ;;  %v7943_v8 = vld [vmem:[#allocation5 + $0x188] sm:$0xf0] }
 0x20a   : > { %v7946_v29 = vor.u32 %v9021_v19, %v7943_v8 }
 0x20b   : > { %v1108_v49 = vmax.f32 %v1014_v54, 0.0  ;;  %2271 = vmatpush.bf16.msra.mxu1 %v8102_v40 }
 0x20c   : > { %1737 = vmatpush.bf16.msra.mxu3 %v7946_v29  ;;  %v9044_v29 = vld [vmem:[#allocation5 + $0x234] sm:$0xf0] }
 0x20e   : > { %v906_v51 = vpop.f32.mrf.mxu2 }
 0x20f   : > { %v907_v41 = vadd.f32 %v906_v51, %v10157_v46  ;;  %v1015_v0 = vpop.f32.mrf.mxu3 }
 0x210   : > { %v10237_v32 = vpop.f32.mrf.mxu0 }
 0x211   : > { %v1016_v17 = vadd.f32 %v1015_v0, %v907_v41  ;;  %v9005_v0 = vld [vmem:[#allocation5 + $0x104] sm:$0xf] }
 0x213   : > { %v1110_v12 = vmax.f32 %v1016_v17, 0.0  ;;  %948 = vmatmul.bf16.gmra.mxu2 %v9954_v33  ;;  %1486 = vmatmul.bf16.gmra.mxu0 %v10108_v22  ;;  %v7879_v17 = vld [vmem:[#allocation5 + $0x108] sm:$0xf0] }
 0x214   : > { %1057 = vmatmul.bf16.gmra.mxu3 %v9956_v34  ;;  %v7882_v33 = vor.u32 %v9005_v0, %v7879_v17 }
 0x215   : > { %v10242_v24 = vpack.c.bf16 %v1110_v12, %v1108_v49 }
 0x216   : > { %v909_v51 = vpop.f32.mrf.mxu2  ;;  %1628 = vmatpush.bf16.msra.mxu2 %v7882_v33 }
 0x217   : > { %v1018_v26 = vpop.f32.mrf.mxu3  ;;  %1550 = vmatmul.bf16.gmra.mxu1 %v10242_v24  ;;  %v910_v41 = vadd.f32 %v909_v51, %v10157_v46 }
 0x218   : > { %v10245_v54 = vpop.f32.mrf.mxu0 }
 0x219   : > { %v1019_v13 = vadd.f32 %v1018_v26, %v910_v41 }
 0x21b   : > { %v1112_v58 = vmax.f32 %v1019_v13, 0.0 }
 0x21e   : > { %v911_v34 = vpop.f32.mrf.mxu2 }
 0x21f   : > { %v912_v12 = vadd.f32 %v911_v34, %v10157_v46  ;;  %v1020_v49 = vpop.f32.mrf.mxu3 }
 0x220   : > { %v10249_v53 = vpop.f32.mrf.mxu0 }
 0x221   : > { %v1021_v11 = vadd.f32 %v1020_v49, %v912_v12  ;;  %v10263_v49 = vld [vmem:[#allocation7 + $0x2] sm:$0x3] }
 0x223   : > { %v1114_v22 = vmax.f32 %v1021_v11, 0.0  ;;  %953 = vmatmul.bf16.gmra.mxu2 %v9974_v59  ;;  %1491 = vmatmul.bf16.gmra.mxu0 %v10119_v55  ;;  %v9060_v59 = vld [vmem:[#allocation5 + $0x2b4] sm:$0xf0] }
 0x224   : > { %1062 = vmatmul.bf16.gmra.mxu3 %v9976_v60 }
 0x225   : > { %v10254_v40 = vpack.c.bf16 %v1114_v22, %v1112_v58  ;;  %v8029_v22 = vld [vmem:[#allocation5 + $0x230] sm:$0xf] }
 0x226   : > { %v914_v33 = vpop.f32.mrf.mxu2  ;;  %v8030_v8 = vor.u32 %v9044_v29, %v8029_v22 }
 0x227   : > { %v1023_v34 = vpop.f32.mrf.mxu3  ;;  %1555 = vmatmul.bf16.gmra.mxu1 %v10254_v40  ;;  %v915_v51 = vadd.f32 %v914_v33, %v10157_v46  ;;  %v10268_v33 = vperm.slane %v10263_v49, 0 }
 0x228   : > { %v10257_v26 = vpop.f32.mrf.mxu0  ;;  %2163 = vmatpush.bf16.msra.mxu0 %v8030_v8  ;;  %v8093_v8 = vld [vmem:[#allocation5 + $0x2b0] sm:$0xf] }
 0x229   : > { %v1024_v0 = vadd.f32 %v1023_v34, %v915_v51  ;;  %v8094_v38 = vor.u32 %v9060_v59, %v8093_v8 }
 0x22b   : > { %v1116_v11 = vmax.f32 %v1024_v0, 0.0  ;;  %2272 = vmatpush.bf16.msra.mxu1 %v8094_v38  ;;  %v13668_v38 = vld [vmem:[#allocation52_spill] sm:$0xff] }
 0x22e   : > { %v916_v41 = vpop.f32.mrf.mxu2 }
 0x22f   : > { %v917_v17 = vadd.f32 %v916_v41, %v10157_v46  ;;  %v1025_v13 = vpop.f32.mrf.mxu3 }
 0x230   : > { %v10261_v12 = vpop.f32.mrf.mxu0 }
 0x231   : > { %v1026_v58 = vadd.f32 %v1025_v13, %v917_v17  ;;  %v8021_v17 = vld [vmem:[#allocation5 + $0x220] sm:$0xf]  ;;  %v9042_v13 = vld [vmem:[#allocation5 + $0x224] sm:$0xf0] }
 0x232   : > { %v8022_v0 = vor.u32 %v9042_v13, %v8021_v17 }
 0x233   : > { %v1118_v19 = vmax.f32 %v1026_v58, 0.0  ;;  %958 = vmatmul.bf16.gmra.mxu2 %v9994_v30  ;;  %1496 = vmatmul.bf16.gmra.mxu0 %v10130_v9  ;;  %v1413_v58 = vadd.f32 %v10147_v31, %v10268_v33  ;;  %v8013_v30 = vld [vmem:[#allocation5 + $0x210] sm:$0xf] }
 0x234   : > { %1067 = vmatmul.bf16.gmra.mxu3 %v9996_v36  ;;  %v1521_v34 = vpop.f32.mrf.mxu1  ;;  %2164 = vmatpush.bf16.msra.mxu0 %v8022_v0  ;;  %v9040_v36 = vld [vmem:[#allocation5 + $0x214] sm:$0xf0]  ;;  %v9038_v0 = vld [vmem:[#allocation5 + $0x204] sm:$0xf0] }
 0x235   : > { %v10271_v51 = vpack.c.bf16 %v1118_v19, %v1116_v11  ;;  %v1522_v29 = vadd.f32 %v1521_v34, %v1413_v58  ;;  %v1415_v11 = vadd.f32 %v10159_v48, %v10268_v33  ;;  %v8014_v9 = vor.u32 %v9040_v36, %v8013_v30 }
 0x236   : > { %v919_v41 = vpop.f32.mrf.mxu2  ;;  %v8006_v48 = vor.u32 %v9038_v0, %v8005_v27  ;;  %v1420_v0 = vadd.f32 %v10173_v2, %v10268_v33  ;;  %v13669_v2 = vld [vmem:[#allocation55_spill] sm:$0xff] }
 0x237   : > { %v1028_v60 = vpop.f32.mrf.mxu3  ;;  %1560 = vmatmul.bf16.gmra.mxu1 %v10271_v51  ;;  %v920_v19 = vadd.f32 %v919_v41, %v10157_v46  ;;  %v1839_v13 = vmax.f32 %v1522_v29, 0.0  ;;  %v8063_v29 = vld [vmem:[#allocation5 + $0x278] sm:$0xf0] }
 0x238   : > { %v10276_v22 = vpop.f32.mrf.mxu0  ;;  %2165 = vmatpush.bf16.msra.mxu0 %v8014_v9  ;;  %v9051_v9 = vld [vmem:[#allocation5 + $0x274] sm:$0xf] }
 0x239   : > { %v1029_v34 = vadd.f32 %v1028_v60, %v920_v19  ;;  %v8066_v27 = vor.u32 %v9051_v9, %v8063_v29 }
 0x23b   : > { %v1120_v59 = vmax.f32 %v1029_v34, 0.0  ;;  %2377 = vmatpush.bf16.msrb.mxu2 %v8066_v27 }
 0x23c   : > { %v1523_v55 = vpop.f32.mrf.mxu1  ;;  %2166 = vmatpush.bf16.msra.mxu0 %v8006_v48 }
 0x23d   : > { %v1524_v17 = vadd.f32 %v1523_v55, %v1415_v11  ;;  %v13667_v55 = vld [vmem:[#allocation51_spill] sm:$0xff] }
 0x23e   : > { %v921_v31 = vpop.f32.mrf.mxu2 }
 0x23f   : > { %v1841_v58 = vmax.f32 %v1524_v17, 0.0  ;;  %v922_v57 = vadd.f32 %v921_v31, %v10157_v46  ;;  %v1030_v18 = vpop.f32.mrf.mxu3  ;;  %v1418_v31 = vadd.f32 %v10165_v56, %v10268_v33 }
 0x240   : > { %v10282_v7 = vpop.f32.mrf.mxu0 }
 0x241   : > { %v10284_v41 = vpack.c.bf16 %v1841_v58, %v1839_v13  ;;  %v1031_v30 = vadd.f32 %v1030_v18, %v922_v57  ;;  %v9067_v18 = vld [vmem:[#allocation5 + $0x2f4] sm:$0xf]  ;;  %v8127_v57 = vld [vmem:[#allocation5 + $0x2f8] sm:$0xf0] }
 0x242   : > { %v8130_v13 = vor.u32 %v9067_v18, %v8127_v57 }
 0x243   : > { %13666 = vst [vmem:[#allocation69_spill] sm:$0xff] %v10284_v41  ;;  %v1122_v36 = vmax.f32 %v1031_v30, 0.0  ;;  %963 = vmatmul.bf16.gmra.mxu2 %v13667_v55  ;;  %1501 = vmatmul.bf16.gmra.mxu0 %v10141_v14 }
 0x244   : > { %1072 = vmatmul.bf16.gmra.mxu3 %v13668_v38  ;;  %v1526_v60 = vpop.f32.mrf.mxu1 }
 0x245   : > { %v10289_v11 = vpack.c.bf16 %v1122_v36, %v1120_v59  ;;  %2486 = vmatpush.bf16.msrb.mxu3 %v8130_v13  ;;  %v1527_v34 = vadd.f32 %v1526_v60, %v1418_v31  ;;  %v13670_v60 = vld [vmem:[#allocation56_spill] sm:$0xff] }
 0x246   : > { %v924_v19 = vpop.f32.mrf.mxu2 }
 0x247   : > { %v1033_v8 = vpop.f32.mrf.mxu3  ;;  %1565 = vmatmul.bf16.gmra.mxu1 %v10289_v11  ;;  %v925_v58 = vadd.f32 %v924_v19, %v10157_v46  ;;  %v1843_v36 = vmax.f32 %v1527_v34, 0.0 }
 0x248   : > { %v10292_v17 = vpop.f32.mrf.mxu0 }
 0x249   : > { %v1034_v9 = vadd.f32 %v1033_v8, %v925_v58  ;;  %v1425_v58 = vadd.f32 %v10185_v52, %v10268_v33  ;;  %v13671_v52 = vld [vmem:[#allocation59_spill] sm:$0xff] }
 0x24b   : > { %v1124_v13 = vmax.f32 %v1034_v9, 0.0 }
 0x24c   : > { %v1528_v48 = vpop.f32.mrf.mxu1 }
 0x24d   : > { %v1529_v30 = vadd.f32 %v1528_v48, %v1420_v0 }
 0x24e   : > { %v926_v59 = vpop.f32.mrf.mxu2 }
 0x24f   : > { %v1845_v29 = vmax.f32 %v1529_v30, 0.0  ;;  %v927_v27 = vadd.f32 %v926_v59, %v10157_v46  ;;  %v1035_v38 = vpop.f32.mrf.mxu3 }
 0x250   : > { %v10300_v18 = vpop.f32.mrf.mxu0 }
 0x251   : > { %v1036_v57 = vadd.f32 %v1035_v38, %v927_v27  ;;  %v10302_v56 = vpack.c.bf16 %v1845_v29, %v1843_v36  ;;  %v1423_v38 = vadd.f32 %v10177_v10, %v10268_v33 }
 0x253   : > { %v1126_v55 = vmax.f32 %v1036_v57, 0.0  ;;  %968 = vmatmul.bf16.gmra.mxu2 %v13669_v2  ;;  %1506 = vmatmul.bf16.gmra.mxu0 %v10154_v3 }
 0x254   : > { %1077 = vmatmul.bf16.gmra.mxu3 %v13670_v60  ;;  %v1531_v19 = vpop.f32.mrf.mxu1 }
 0x255   : > { %v10307_v31 = vpack.c.bf16 %v1126_v55, %v1124_v13  ;;  %v1532_v48 = vadd.f32 %v1531_v19, %v1423_v38  ;;  %v8085_v19 = vld [vmem:[#allocation5 + $0x2a0] sm:$0xf] }
 0x256   : > { %v929_v8 = vpop.f32.mrf.mxu2 }
 0x257   : > { %v1038_v0 = vpop.f32.mrf.mxu3  ;;  %1570 = vmatmul.bf16.gmra.mxu1 %v10307_v31  ;;  %v930_v30 = vadd.f32 %v929_v8, %v10157_v46  ;;  %v1847_v55 = vmax.f32 %v1532_v48, 0.0  ;;  %v9058_v8 = vld [vmem:[#allocation5 + $0x2a4] sm:$0xf0] }
 0x258   : > { %v10310_v34 = vpop.f32.mrf.mxu0  ;;  %v8086_v38 = vor.u32 %v9058_v8, %v8085_v19 }
 0x259   : > { %v1039_v29 = vadd.f32 %v1038_v0, %v930_v30 }
 0x25a   : > { %2273 = vmatpush.bf16.msra.mxu1 %v8086_v38 }
 0x25b   : > { %v1128_v10 = vmax.f32 %v1039_v29, 0.0  ;;  %v8055_v29 = vld [vmem:[#allocation5 + $0x268] sm:$0xf0] }
 0x25c   : > { %v1533_v59 = vpop.f32.mrf.mxu1 }
 0x25d   : > { %v1534_v36 = vadd.f32 %v1533_v59, %v1425_v58 }
 0x25e   : > { %v931_v9 = vpop.f32.mrf.mxu2 }
 0x25f   : > { %v1849_v27 = vmax.f32 %v1534_v36, 0.0  ;;  %v932_v57 = vadd.f32 %v931_v9, %v10157_v46  ;;  %v1040_v13 = vpop.f32.mrf.mxu3  ;;  %v1430_v36 = vadd.f32 %v10197_v62, %v10268_v33 }
 0x260   : > { %v10318_v60 = vpop.f32.mrf.mxu0 }
 0x261   : > { %v1041_v2 = vadd.f32 %v1040_v13, %v932_v57  ;;  %v10320_v3 = vpack.c.bf16 %v1849_v27, %v1847_v55  ;;  %v9049_v55 = vld [vmem:[#allocation5 + $0x264] sm:$0xf] }
 0x262   : > { %v8058_v27 = vor.u32 %v9049_v55, %v8055_v29  ;;  %v1433_v29 = vadd.f32 %v10201_v35, %v10268_v33 }
 0x263   : > { %v1130_v14 = vmax.f32 %v1041_v2, 0.0  ;;  %1629 = vmatmul.bf16.vlgmr.msra.gmra.mxu2 %v13671_v52  ;;  %2167 = vmatmul.bf16.vlgmr.msra.gmra.mxu0 %v10284_v41  ;;  %v1428_v2 = vadd.f32 %v10189_v28, %v10268_v33  ;;  %v9065_v28 = vld [vmem:[#allocation5 + $0x2e4] sm:$0xf]  ;;  %v8119_v41 = vld [vmem:[#allocation5 + $0x2e8] sm:$0xf0] }
 0x264   : > { %1738 = vmatmul.bf16.vlgmr.msra.gmra.mxu3 %v10170_v37  ;;  %v1536_v0 = vpop.f32.mrf.mxu1  ;;  %2378 = vmatpush.bf16.msrb.mxu2 %v8058_v27  ;;  %v8122_v62 = vor.u32 %v9065_v28, %v8119_v41 }
 0x265   : > { %v10325_v58 = vpack.c.bf16 %v1130_v14, %v1128_v10  ;;  %v1537_v9 = vadd.f32 %v1536_v0, %v1428_v2 }
 0x266   : > { %v934_v48 = vpop.f32.mrf.mxu2  ;;  %2487 = vmatpush.bf16.msrb.mxu3 %v8122_v62 }
 0x267   : > { %13672 = vst [vmem:[#allocation59_spill] sm:$0xff] %v10325_v58  ;;  %v1043_v30 = vpop.f32.mrf.mxu3  ;;  %1575 = vmatmul.bf16.gmra.mxu1 %v10325_v58  ;;  %v935_v37 = vadd.f32 %v934_v48, %v10157_v46  ;;  %v1851_v10 = vmax.f32 %v1537_v9, 0.0 }
 0x268   : > { %v10328_v59 = vpop.f32.mrf.mxu0 }
 0x269   : > { %v1044_v52 = vadd.f32 %v1043_v30, %v935_v37 }
 0x26b   : > { %v1132_v2 = vmax.f32 %v1044_v52, 0.0 }
 0x26c   : > { %v1538_v14 = vpop.f32.mrf.mxu1 }
 0x26d   : > { %v1539_v57 = vadd.f32 %v1538_v14, %v1430_v36  ;;  %v1435_v14 = vadd.f32 %v10209_v4, %v10268_v33 }
 0x26e   : > { %v936_v13 = vpop.f32.mrf.mxu2 }
 0x26f   : > { %v1853_v19 = vmax.f32 %v1539_v57, 0.0  ;;  %v937_v8 = vadd.f32 %v936_v13, %v10157_v46  ;;  %v1045_v38 = vpop.f32.mrf.mxu3 }
 0x270   : > { %v10336_v58 = vpop.f32.mrf.mxu0 }
 0x271   : > { %v1046_v0 = vadd.f32 %v1045_v38, %v937_v8  ;;  %v10338_v48 = vpack.c.bf16 %v1853_v19, %v1851_v10 }
 0x273   : > { %v1134_v55 = vmax.f32 %v1046_v0, 0.0  ;;  %1634 = vmatmul.bf16.gmra.mxu2 %v10068_v45  ;;  %2172 = vmatmul.bf16.gmra.mxu0 %v10302_v56 }
 0x274   : > { %1743 = vmatmul.bf16.gmra.mxu3 %v10182_v15  ;;  %v1541_v30 = vpop.f32.mrf.mxu1 }
 0x275   : > { %v10343_v36 = vpack.c.bf16 %v1134_v55, %v1132_v2  ;;  %v1542_v45 = vadd.f32 %v1541_v30, %v1433_v29  ;;  %v1438_v29 = vadd.f32 %v10213_v42, %v10268_v33 }
 0x276   : > { %v939_v9 = vpop.f32.mrf.mxu2 }
 0x277   : > { %v1048_v37 = vpop.f32.mrf.mxu3  ;;  %1580 = vmatmul.bf16.gmra.mxu1 %v10343_v36  ;;  %v940_v27 = vadd.f32 %v939_v9, %v10157_v46  ;;  %v1855_v10 = vmax.f32 %v1542_v45, 0.0 }
 0x278   : > { %v10346_v41 = vpop.f32.mrf.mxu0 }
 0x279   : > { %v1049_v52 = vadd.f32 %v1048_v37, %v940_v27  ;;  %v8077_v27 = vld [vmem:[#allocation5 + $0x290] sm:$0xf] }
 0x27b   : > { %v1136_v35 = vmax.f32 %v1049_v52, 0.0 }
 0x27c   : > { %v1543_v57 = vpop.f32.mrf.mxu1 }
 0x27d   : > { %v1544_v15 = vadd.f32 %v1543_v57, %v1435_v14  ;;  %v1440_v14 = vadd.f32 %v10221_v23, %v10268_v33 }
 0x27e   : > { %v941_v13 = vpop.f32.mrf.mxu2 }
 0x27f   : > { %v1857_v19 = vmax.f32 %v1544_v15, 0.0  ;;  %v942_v8 = vadd.f32 %v941_v13, %v10157_v46  ;;  %v1050_v38 = vpop.f32.mrf.mxu3 }
 0x280   : > { %v10354_v28 = vpop.f32.mrf.mxu0 }
 0x281   : > { %v1051_v62 = vadd.f32 %v1050_v38, %v942_v8  ;;  %v10356_v0 = vpack.c.bf16 %v1857_v19, %v1855_v10 }
 0x283   : > { %v1138_v2 = vmax.f32 %v1051_v62, 0.0  ;;  %1639 = vmatmul.bf16.gmra.mxu2 %v10079_v25  ;;  %2177 = vmatmul.bf16.gmra.mxu0 %v10320_v3 }
 0x284   : > { %1748 = vmatmul.bf16.gmra.mxu3 %v10194_v61  ;;  %v1546_v4 = vpop.f32.mrf.mxu1  ;;  %v9056_v61 = vld [vmem:[#allocation5 + $0x294] sm:$0xf0] }
 0x285   : > { %v10361_v55 = vpack.c.bf16 %v1138_v2, %v1136_v35  ;;  %v1547_v25 = vadd.f32 %v1546_v4, %v1438_v29  ;;  %v8078_v15 = vor.u32 %v9056_v61, %v8077_v27  ;;  %v9047_v29 = vld [vmem:[#allocation5 + $0x254] sm:$0xf] }
 0x286   : > { %v944_v30 = vpop.f32.mrf.mxu2  ;;  %v9063_v61 = vld [vmem:[#allocation5 + $0x2d4] sm:$0xf] }
 0x287   : > { %v1053_v9 = vpop.f32.mrf.mxu3  ;;  %1585 = vmatmul.bf16.gmra.mxu1 %v10361_v55  ;;  %v945_v45 = vadd.f32 %v944_v30, %v10157_v46  ;;  %v1859_v52 = vmax.f32 %v1547_v25, 0.0 }
 0x288   : > { %v10364_v37 = vpop.f32.mrf.mxu0  ;;  %2274 = vmatpush.bf16.msra.mxu1 %v8078_v15 }
 0x289   : > { %v1054_v19 = vadd.f32 %v1053_v9, %v945_v45  ;;  %v8047_v9 = vld [vmem:[#allocation5 + $0x258] sm:$0xf0] }
 0x28a   : > { %v8050_v25 = vor.u32 %v9047_v29, %v8047_v9 }
 0x28b   : > { %v1140_v2 = vmax.f32 %v1054_v19, 0.0 }
 0x28c   : > { %v1548_v57 = vpop.f32.mrf.mxu1  ;;  %2379 = vmatpush.bf16.msrb.mxu2 %v8050_v25 }
 0x28d   : > { %v1549_v13 = vadd.f32 %v1548_v57, %v1440_v14  ;;  %v8111_v57 = vld [vmem:[#allocation5 + $0x2d8] sm:$0xf0] }
 0x28e   : > { %v946_v10 = vpop.f32.mrf.mxu2 }
 0x28f   : > { %v1861_v8 = vmax.f32 %v1549_v13, 0.0  ;;  %v947_v38 = vadd.f32 %v946_v10, %v10157_v46  ;;  %v1055_v62 = vpop.f32.mrf.mxu3  ;;  %v1443_v13 = vadd.f32 %v10225_v1, %v10268_v33 }
 0x290   : > { %v10372_v42 = vpop.f32.mrf.mxu0 }
 0x291   : > { %v1056_v35 = vadd.f32 %v1055_v62, %v947_v38  ;;  %v10374_v23 = vpack.c.bf16 %v1861_v8, %v1859_v52 }
 0x293   : > { %v1142_v4 = vmax.f32 %v1056_v35, 0.0  ;;  %1644 = vmatmul.bf16.gmra.mxu2 %v10090_v20  ;;  %2182 = vmatmul.bf16.gmra.mxu0 %v10338_v48  ;;  %v8114_v20 = vor.u32 %v9063_v61, %v8111_v57 }
 0x294   : > { %1753 = vmatmul.bf16.gmra.mxu3 %v10206_v44  ;;  %v1551_v30 = vpop.f32.mrf.mxu1  ;;  %v1445_v44 = vadd.f32 %v10233_v21, %v10268_v33 }
 0x295   : > { %v10379_v14 = vpack.c.bf16 %v1142_v4, %v1140_v2  ;;  %2488 = vmatpush.bf16.msrb.mxu3 %v8114_v20  ;;  %v1552_v10 = vadd.f32 %v1551_v30, %v1443_v13  ;;  %v1448_v13 = vadd.f32 %v10237_v32, %v10268_v33 }
 0x296   : > { %v949_v45 = vpop.f32.mrf.mxu2 }
 0x297   : > { %v1058_v27 = vpop.f32.mrf.mxu3  ;;  %1590 = vmatmul.bf16.gmra.mxu1 %v10379_v14  ;;  %v950_v52 = vadd.f32 %v949_v45, %v10157_v46  ;;  %v1863_v62 = vmax.f32 %v1552_v10, 0.0 }
 0x298   : > { %v10382_v15 = vpop.f32.mrf.mxu0 }
 0x299   : > { %v1059_v35 = vadd.f32 %v1058_v27, %v950_v52 }
 0x29b   : > { %v1144_v61 = vmax.f32 %v1059_v35, 0.0 }
 0x29c   : > { %v1553_v19 = vpop.f32.mrf.mxu1 }
 0x29d   : > { %v1554_v8 = vadd.f32 %v1553_v19, %v1445_v44  ;;  %v1450_v44 = vadd.f32 %v10245_v54, %v10268_v33  ;;  %v8069_v54 = vld [vmem:[#allocation5 + $0x280] sm:$0xf] }
 0x29e   : > { %v951_v38 = vpop.f32.mrf.mxu2 }
 0x29f   : > { %v1865_v2 = vmax.f32 %v1554_v8, 0.0  ;;  %v952_v4 = vadd.f32 %v951_v38, %v10157_v46  ;;  %v1060_v29 = vpop.f32.mrf.mxu3 }
 0x2a0   : > { %v10390_v9 = vpop.f32.mrf.mxu0 }
 0x2a1   : > { %v1061_v25 = vadd.f32 %v1060_v29, %v952_v4  ;;  %v10392_v1 = vpack.c.bf16 %v1865_v2, %v1863_v62 }
 0x2a3   : > { %v1146_v57 = vmax.f32 %v1061_v25, 0.0  ;;  %1649 = vmatmul.bf16.gmra.mxu2 %v10101_v5  ;;  %2187 = vmatmul.bf16.gmra.mxu0 %v10356_v0 }
 0x2a4   : > { %1758 = vmatmul.bf16.gmra.mxu3 %v10218_v43  ;;  %v1556_v21 = vpop.f32.mrf.mxu1 }
 0x2a5   : > { %v10397_v30 = vpack.c.bf16 %v1146_v57, %v1144_v61  ;;  %v1557_v5 = vadd.f32 %v1556_v21, %v1448_v13  ;;  %v9054_v57 = vld [vmem:[#allocation5 + $0x284] sm:$0xf0] }
 0x2a6   : > { %v954_v45 = vpop.f32.mrf.mxu2 }
 0x2a7   : > { %v1063_v27 = vpop.f32.mrf.mxu3  ;;  %1595 = vmatmul.bf16.gmra.mxu1 %v10397_v30  ;;  %v955_v10 = vadd.f32 %v954_v45, %v10157_v46  ;;  %v1867_v8 = vmax.f32 %v1557_v5, 0.0  ;;  %v8070_v45 = vor.u32 %v9054_v57, %v8069_v54  ;;  %v8103_v57 = vld [vmem:[#allocation5 + $0x2c8] sm:$0xf0] }
 0x2a8   : > { %v10400_v20 = vpop.f32.mrf.mxu0 }
 0x2a9   : > { %v1064_v38 = vadd.f32 %v1063_v27, %v955_v10  ;;  %2275 = vmatpush.bf16.msra.mxu1 %v8070_v45  ;;  %v1455_v10 = vadd.f32 %v10257_v26, %v10268_v33 }
 0x2ab   : > { %v1148_v32 = vmax.f32 %v1064_v38, 0.0 }
 0x2ac   : > { %v1558_v52 = vpop.f32.mrf.mxu1 }
 0x2ad   : > { %v1559_v43 = vadd.f32 %v1558_v52, %v1450_v44 }
 0x2ae   : > { %v956_v19 = vpop.f32.mrf.mxu2 }
 0x2af   : > { %v1869_v62 = vmax.f32 %v1559_v43, 0.0  ;;  %v957_v35 = vadd.f32 %v956_v19, %v10157_v46  ;;  %v1065_v2 = vpop.f32.mrf.mxu3  ;;  %v9045_v43 = vld [vmem:[#allocation5 + $0x244] sm:$0xf]  ;;  %v8039_v19 = vld [vmem:[#allocation5 + $0x248] sm:$0xf0] }
 0x2b0   : > { %v10408_v4 = vpop.f32.mrf.mxu0  ;;  %v8042_v38 = vor.u32 %v9045_v43, %v8039_v19 }
 0x2b1   : > { %v1066_v29 = vadd.f32 %v1065_v2, %v957_v35  ;;  %v10410_v25 = vpack.c.bf16 %v1869_v62, %v1867_v8 }
 0x2b2   : > { %2380 = vmatpush.bf16.msrb.mxu2 %v8042_v38  ;;  %v1460_v38 = vadd.f32 %v10276_v22, %v10268_v33 }
 0x2b3   : > { %v1150_v61 = vmax.f32 %v1066_v29, 0.0  ;;  %1654 = vmatmul.bf16.gmra.mxu2 %v10112_v47  ;;  %2192 = vmatmul.bf16.gmra.mxu0 %v10374_v23  ;;  %v1453_v47 = vadd.f32 %v10249_v53, %v10268_v33  ;;  %v9061_v53 = vld [vmem:[#allocation5 + $0x2c4] sm:$0xf] }
 0x2b4   : > { %1763 = vmatmul.bf16.gmra.mxu3 %v10230_v39  ;;  %v1561_v21 = vpop.f32.mrf.mxu1  ;;  %v8106_v26 = vor.u32 %v9061_v53, %v8103_v57 }
 0x2b5   : > { %v10415_v27 = vpack.c.bf16 %v1150_v61, %v1148_v32  ;;  %v1562_v52 = vadd.f32 %v1561_v21, %v1453_v47 }
 0x2b6   : > { %v959_v13 = vpop.f32.mrf.mxu2  ;;  %2489 = vmatpush.bf16.msrb.mxu3 %v8106_v26 }
 0x2b7   : > { %v1068_v44 = vpop.f32.mrf.mxu3  ;;  %1600 = vmatmul.bf16.gmra.mxu1 %v10415_v27  ;;  %v960_v39 = vadd.f32 %v959_v13, %v10157_v46  ;;  %v1871_v2 = vmax.f32 %v1562_v52, 0.0 }
 0x2b8   : > { %v10418_v5 = vpop.f32.mrf.mxu0 }
 0x2b9   : > { %v1069_v29 = vadd.f32 %v1068_v44, %v960_v39 }
 0x2bb   : > { %v1152_v47 = vmax.f32 %v1069_v29, 0.0 }
 0x2bc   : > { %v1563_v8 = vpop.f32.mrf.mxu1 }
 0x2bd   : > { %v1564_v62 = vadd.f32 %v1563_v8, %v1455_v10  ;;  %v1458_v8 = vadd.f32 %v10261_v12, %v10268_v33 }
 0x2be   : > { %v961_v35 = vpop.f32.mrf.mxu2 }
 0x2bf   : > { %v1873_v32 = vmax.f32 %v1564_v62, 0.0  ;;  %v962_v61 = vadd.f32 %v961_v35, %v10157_v46  ;;  %v1070_v54 = vpop.f32.mrf.mxu3 }
 0x2c0   : > { %v10426_v45 = vpop.f32.mrf.mxu0 }
 0x2c1   : > { %v1071_v21 = vadd.f32 %v1070_v54, %v962_v61  ;;  %v10428_v13 = vpack.c.bf16 %v1873_v32, %v1871_v2 }
 0x2c3   : > { %v1154_v43 = vmax.f32 %v1071_v21, 0.0  ;;  %1659 = vmatmul.bf16.gmra.mxu2 %v10123_v50  ;;  %2197 = vmatmul.bf16.gmra.mxu0 %v10392_v1 }
 0x2c4   : > { %1768 = vmatmul.bf16.gmra.mxu3 %v10242_v24  ;;  %v1566_v44 = vpop.f32.mrf.mxu1 }
 0x2c5   : > { %v10433_v10 = vpack.c.bf16 %v1154_v43, %v1152_v47  ;;  %v1567_v50 = vadd.f32 %v1566_v44, %v1458_v8  ;;  %v1463_v8 = vadd.f32 %v10282_v7, %v10268_v33 }
 0x2c6   : > { %v964_v52 = vpop.f32.mrf.mxu2 }
 0x2c7   : > { %v1073_v39 = vpop.f32.mrf.mxu3  ;;  %1605 = vmatmul.bf16.gmra.mxu1 %v10433_v10  ;;  %v965_v62 = vadd.f32 %v964_v52, %v10157_v46  ;;  %v1875_v29 = vmax.f32 %v1567_v50, 0.0 }
 0x2c8   : > { %v10436_v19 = vpop.f32.mrf.mxu0 }
 0x2c9   : > { %v1074_v32 = vadd.f32 %v1073_v39, %v965_v62  ;;  %v8189_v62 = vld [vmem:[#allocation5 + $0x370] sm:$0xf] }
 0x2cb   : > { %v1156_v12 = vmax.f32 %v1074_v32, 0.0 }
 0x2cc   : > { %v1568_v35 = vpop.f32.mrf.mxu1 }
 0x2cd   : > { %v1569_v24 = vadd.f32 %v1568_v35, %v1460_v38  ;;  %v1465_v38 = vadd.f32 %v10292_v17, %v10268_v33 }
 0x2ce   : > { %v966_v2 = vpop.f32.mrf.mxu2 }
 0x2cf   : > { %v1877_v61 = vmax.f32 %v1569_v24, 0.0  ;;  %v967_v54 = vadd.f32 %v966_v2, %v10157_v46  ;;  %v1075_v53 = vpop.f32.mrf.mxu3  ;;  %v8253_v2 = vld [vmem:[#allocation5 + $0x3f0] sm:$0xf] }
 0x2d0   : > { %v10444_v57 = vpop.f32.mrf.mxu0 }
 0x2d1   : > { %v1076_v26 = vadd.f32 %v1075_v53, %v967_v54  ;;  %v10446_v21 = vpack.c.bf16 %v1877_v61, %v1875_v29  ;;  %v9100_v29 = vld [vmem:[#allocation5 + $0x3f4] sm:$0xf0] }
 0x2d2   : > { %v8254_v61 = vor.u32 %v9100_v29, %v8253_v2  ;;  %v9059_v2 = vld [vmem:[#allocation5 + $0x2b4] sm:$0xf] }
 0x2d3   : > { %13673 = vst [vmem:[#allocation70_spill] sm:$0xff] %v10446_v21  ;;  %v1158_v47 = vmax.f32 %v1076_v26, 0.0  ;;  %1664 = vmatmul.bf16.gmra.mxu2 %v10134_v63  ;;  %2202 = vmatmul.bf16.gmra.mxu0 %v10410_v25 }
 0x2d4   : > { %1773 = vmatmul.bf16.gmra.mxu3 %v10254_v40  ;;  %v1571_v22 = vpop.f32.mrf.mxu1  ;;  %v9084_v40 = vld [vmem:[#allocation5 + $0x374] sm:$0xf0]  ;;  %3024 = vmatpush.bf16.msrb.mxu1 %v8254_v61  ;;  %v1470_v61 = vadd.f32 %v10310_v34, %v10268_v33 }
 0x2d5   : > { %v10451_v43 = vpack.c.bf16 %v1158_v47, %v1156_v12  ;;  %v1572_v63 = vadd.f32 %v1571_v22, %v1463_v8  ;;  %v8190_v24 = vor.u32 %v9084_v40, %v8189_v62 }
 0x2d6   : > { %v969_v44 = vpop.f32.mrf.mxu2 }
 0x2d7   : > { %v1078_v52 = vpop.f32.mrf.mxu3  ;;  %1610 = vmatmul.bf16.gmra.mxu1 %v10451_v43  ;;  %v970_v50 = vadd.f32 %v969_v44, %v10157_v46  ;;  %2915 = vmatpush.bf16.msrb.mxu0 %v8190_v24  ;;  %v1879_v53 = vmax.f32 %v1572_v63, 0.0  ;;  %v8031_v63 = vld [vmem:[#allocation5 + $0x238] sm:$0xf0] }
 0x2d8   : > { %v10454_v39 = vpop.f32.mrf.mxu0 }
 0x2d9   : > { %v1079_v26 = vadd.f32 %v1078_v52, %v970_v50  ;;  %v9043_v52 = vld [vmem:[#allocation5 + $0x234] sm:$0xf] }
 0x2db   : > { %v1160_v8 = vmax.f32 %v1079_v26, 0.0 }
 0x2dc   : > { %v1573_v35 = vpop.f32.mrf.mxu1 }
 0x2dd   : > { %v1574_v32 = vadd.f32 %v1573_v35, %v1465_v38  ;;  %v10472_v35 = vperm.slane %v10263_v49, 1 }
 0x2de   : > { %v971_v54 = vpop.f32.mrf.mxu2 }
 0x2df   : > { %v1881_v12 = vmax.f32 %v1574_v32, 0.0  ;;  %v972_v7 = vadd.f32 %v971_v54, %v10157_v46  ;;  %v1080_v47 = vpop.f32.mrf.mxu3  ;;  %v8034_v46 = vor.u32 %v9043_v52, %v8031_v63 }
 0x2e0   : > { %v10462_v17 = vpop.f32.mrf.mxu0 }
 0x2e1   : > { %v1081_v22 = vadd.f32 %v1080_v47, %v972_v7  ;;  %v10464_v44 = vpack.c.bf16 %v1881_v12, %v1879_v53  ;;  %2381 = vmatpush.bf16.msrb.mxu2 %v8034_v46 }
 0x2e3   : > { %13674 = vst [vmem:[#allocation71_spill] sm:$0xff] %v10464_v44  ;;  %v1162_v62 = vmax.f32 %v1081_v22, 0.0  ;;  %1669 = vmatmul.bf16.gmra.mxu2 %v10145_v6  ;;  %2207 = vmatmul.bf16.gmra.mxu0 %v10428_v13  ;;  %v8095_v6 = vld [vmem:[#allocation5 + $0x2b8] sm:$0xf0] }
 0x2e4   : > { %1778 = vmatmul.bf16.gmra.mxu3 %v10271_v51  ;;  %v1576_v38 = vpop.f32.mrf.mxu1  ;;  %v8098_v32 = vor.u32 %v9059_v2, %v8095_v6  ;;  %v1468_v51 = vadd.f32 %v10300_v18, %v10268_v33 }
 0x2e5   : > { %v10469_v50 = vpack.c.bf16 %v1162_v62, %v1160_v8 }
 0x2e6   : > { %v1630_v40 = vpop.f32.mrf.mxu2  ;;  %2490 = vmatpush.bf16.msrb.mxu3 %v8098_v32  ;;  %v1577_v54 = vadd.f32 %v1576_v38, %v1468_v51  ;;  %v1473_v32 = vadd.f32 %v10318_v60, %v10268_v33  ;;  %v1475_v51 = vadd.f32 %v10328_v59, %v10268_v33  ;;  %v13677_v59 = vld [vmem:[#allocation58_spill] sm:$0xff] }
 0x2e7   : > { %v1739_v24 = vpop.f32.mrf.mxu3  ;;  %1615 = vmatmul.bf16.gmra.mxu1 %v10469_v50  ;;  %v1631_v49 = vadd.f32 %v1630_v40, %v10472_v35 }
 0x2e8   : > { %v10475_v29 = vpop.f32.mrf.mxu0  ;;  %v1883_v7 = vmax.f32 %v1577_v54, 0.0 }
 0x2e9   : > { %v1740_v47 = vadd.f32 %v1739_v24, %v1631_v49 }
 0x2eb   : > { %v1840_v46 = vmax.f32 %v1740_v47, 0.0 }
 0x2ec   : > { %v1578_v53 = vpop.f32.mrf.mxu1 }
 0x2ed   : > { %v1579_v26 = vadd.f32 %v1578_v53, %v1470_v61 }
 0x2ee   : > { %v1632_v12 = vpop.f32.mrf.mxu2 }
 0x2ef   : > { %v1885_v22 = vmax.f32 %v1579_v26, 0.0  ;;  %v1633_v8 = vadd.f32 %v1632_v12, %v10472_v35  ;;  %v1741_v62 = vpop.f32.mrf.mxu3 }
 0x2f0   : > { %v10483_v52 = vpop.f32.mrf.mxu0 }
 0x2f1   : > { %v1742_v63 = vadd.f32 %v1741_v62, %v1633_v8  ;;  %v10485_v18 = vpack.c.bf16 %v1885_v22, %v1883_v7 }
 0x2f3   : > { %13675 = vst [vmem:[#allocation72_spill] sm:$0xff] %v10485_v18  ;;  %v1842_v2 = vmax.f32 %v1742_v63, 0.0  ;;  %1674 = vmatmul.bf16.gmra.mxu2 %v10163_v16  ;;  %2212 = vmatmul.bf16.gmra.mxu0 %v10446_v21 }
 0x2f4   : > { %1783 = vmatmul.bf16.gmra.mxu3 %v10289_v11  ;;  %v1581_v34 = vpop.f32.mrf.mxu1 }
 0x2f5   : > { %v10490_v38 = vpack.c.bf16 %v1842_v2, %v1840_v46  ;;  %v1582_v16 = vadd.f32 %v1581_v34, %v1473_v32  ;;  %v8181_v46 = vld [vmem:[#allocation5 + $0x360] sm:$0xf]  ;;  %v9082_v2 = vld [vmem:[#allocation5 + $0x364] sm:$0xf0] }
 0x2f6   : > { %v1635_v40 = vpop.f32.mrf.mxu2  ;;  %v9098_v32 = vld [vmem:[#allocation5 + $0x3e4] sm:$0xf0] }
 0x2f7   : > { %v1744_v24 = vpop.f32.mrf.mxu3  ;;  %2276 = vmatmul.bf16.vlgmr.msra.gmra.mxu1 %v10490_v38  ;;  %v1636_v61 = vadd.f32 %v1635_v40, %v10472_v35  ;;  %v1887_v53 = vmax.f32 %v1582_v16, 0.0  ;;  %v8182_v40 = vor.u32 %v9082_v2, %v8181_v46 }
 0x2f8   : > { %v10493_v6 = vpop.f32.mrf.mxu0 }
 0x2f9   : > { %v1745_v26 = vadd.f32 %v1744_v24, %v1636_v61  ;;  %v8245_v24 = vld [vmem:[#allocation5 + $0x3e0] sm:$0xf]  ;;  %2916 = vmatpush.bf16.msrb.mxu0 %v8182_v40 }
 0x2fa   : > { %v8246_v16 = vor.u32 %v9098_v32, %v8245_v24  ;;  %v8087_v32 = vld [vmem:[#allocation5 + $0x2a8] sm:$0xf0] }
 0x2fb   : > { %v1844_v60 = vmax.f32 %v1745_v26, 0.0 }
 0x2fc   : > { %v1583_v54 = vpop.f32.mrf.mxu1  ;;  %3025 = vmatpush.bf16.msrb.mxu1 %v8246_v16 }
 0x2fd   : > { %v1584_v11 = vadd.f32 %v1583_v54, %v1475_v51 }
 0x2fe   : > { %v1637_v49 = vpop.f32.mrf.mxu2 }
 0x2ff   : > { %v1889_v12 = vmax.f32 %v1584_v11, 0.0  ;;  %v1638_v7 = vadd.f32 %v1637_v49, %v10472_v35  ;;  %v1746_v47 = vpop.f32.mrf.mxu3  ;;  %v1478_v49 = vadd.f32 %v10336_v58, %v10268_v33  ;;  %v9057_v58 = vld [vmem:[#allocation5 + $0x2a4] sm:$0xf] }
 0x300   : > { %v10501_v22 = vpop.f32.mrf.mxu0 }
 0x301   : > { %v1747_v8 = vadd.f32 %v1746_v47, %v1638_v7  ;;  %v10503_v62 = vpack.c.bf16 %v1889_v12, %v1887_v53  ;;  %v9041_v12 = vld [vmem:[#allocation5 + $0x224] sm:$0xf]  ;;  %v8023_v7 = vld [vmem:[#allocation5 + $0x228] sm:$0xf0] }
 0x303   : > { %13676 = vst [vmem:[#allocation73_spill] sm:$0xff] %v10503_v62  ;;  %v1846_v63 = vmax.f32 %v1747_v8, 0.0  ;;  %1679 = vmatmul.bf16.gmra.mxu2 %v13677_v59  ;;  %2217 = vmatmul.bf16.gmra.mxu0 %v10464_v44  ;;  %v8026_v8 = vor.u32 %v9041_v12, %v8023_v7 }
 0x304   : > { %1788 = vmatmul.bf16.gmra.mxu3 %v10307_v31  ;;  %v1586_v34 = vpop.f32.mrf.mxu1  ;;  %v1480_v31 = vadd.f32 %v10346_v41, %v10268_v33  ;;  %v8090_v41 = vor.u32 %v9057_v58, %v8087_v32 }
 0x305   : > { %v10508_v51 = vpack.c.bf16 %v1846_v63, %v1844_v60  ;;  %v1587_v53 = vadd.f32 %v1586_v34, %v1478_v49  ;;  %2382 = vmatpush.bf16.msrb.mxu2 %v8026_v8 }
 0x306   : > { %v1640_v61 = vpop.f32.mrf.mxu2  ;;  %2491 = vmatpush.bf16.msrb.mxu3 %v8090_v41 }
 0x307   : > { %v1749_v54 = vpop.f32.mrf.mxu3  ;;  %2281 = vmatmul.bf16.gmra.mxu1 %v10508_v51  ;;  %v1641_v26 = vadd.f32 %v1640_v61, %v10472_v35  ;;  %v1891_v59 = vmax.f32 %v1587_v53, 0.0 }
 0x308   : > { %v10511_v11 = vpop.f32.mrf.mxu0 }
 0x309   : > { %v1750_v46 = vadd.f32 %v1749_v54, %v1641_v26  ;;  %v13680_v54 = vld [vmem:[#allocation59_spill] sm:$0xff] }
 0x30b   : > { %v1848_v49 = vmax.f32 %v1750_v46, 0.0 }
 0x30c   : > { %v1588_v47 = vpop.f32.mrf.mxu1 }
 0x30d   : > { %v1589_v60 = vadd.f32 %v1588_v47, %v1480_v31  ;;  %v13679_v31 = vld [vmem:[#allocation60_spill] sm:$0xff] }
 0x30e   : > { %v1642_v63 = vpop.f32.mrf.mxu2 }
 0x30f   : > { %v1893_v2 = vmax.f32 %v1589_v60, 0.0  ;;  %v1643_v40 = vadd.f32 %v1642_v63, %v10472_v35  ;;  %v1751_v24 = vpop.f32.mrf.mxu3  ;;  %v1483_v60 = vadd.f32 %v10354_v28, %v10268_v33  ;;  %v1485_v63 = vadd.f32 %v10364_v37, %v10268_v33  ;;  %v13682_v37 = vld [vmem:[#allocation61_spill] sm:$0xff] }
 0x310   : > { %v10519_v16 = vpop.f32.mrf.mxu0 }
 0x311   : > { %v1752_v34 = vadd.f32 %v1751_v24, %v1643_v40  ;;  %v10521_v61 = vpack.c.bf16 %v1893_v2, %v1891_v59 }
 0x313   : > { %13678 = vst [vmem:[#allocation58_spill] sm:$0xff] %v10521_v61  ;;  %v1850_v12 = vmax.f32 %v1752_v34, 0.0  ;;  %1684 = vmatmul.bf16.gmra.mxu2 %v13679_v31  ;;  %2222 = vmatmul.bf16.gmra.mxu0 %v10485_v18 }
 0x314   : > { %1793 = vmatmul.bf16.gmra.mxu3 %v13680_v54  ;;  %v1591_v53 = vpop.f32.mrf.mxu1 }
 0x315   : > { %v10526_v26 = vpack.c.bf16 %v1850_v12, %v1848_v49  ;;  %v1592_v59 = vadd.f32 %v1591_v53, %v1483_v60 }
 0x316   : > { %v1645_v7 = vpop.f32.mrf.mxu2 }
 0x317   : > { %v1754_v47 = vpop.f32.mrf.mxu3  ;;  %2286 = vmatmul.bf16.gmra.mxu1 %v10526_v26  ;;  %v1646_v46 = vadd.f32 %v1645_v7, %v10472_v35  ;;  %v1895_v58 = vmax.f32 %v1592_v59, 0.0  ;;  %v1488_v59 = vadd.f32 %v10372_v42, %v10268_v33 }
 0x318   : > { %v10529_v8 = vpop.f32.mrf.mxu0 }
 0x319   : > { %v1755_v32 = vadd.f32 %v1754_v47, %v1646_v46  ;;  %v1490_v46 = vadd.f32 %v10382_v15, %v10268_v33 }
 0x31b   : > { %v1852_v28 = vmax.f32 %v1755_v32, 0.0  ;;  %v8237_v32 = vld [vmem:[#allocation5 + $0x3d0] sm:$0xf] }
 0x31c   : > { %v1593_v2 = vpop.f32.mrf.mxu1 }
 0x31d   : > { %v1594_v40 = vadd.f32 %v1593_v2, %v1485_v63 }
 0x31e   : > { %v1647_v24 = vpop.f32.mrf.mxu2 }
 0x31f   : > { %v1897_v41 = vmax.f32 %v1594_v40, 0.0  ;;  %v1648_v34 = vadd.f32 %v1647_v24, %v10472_v35  ;;  %v1756_v49 = vpop.f32.mrf.mxu3  ;;  %v8173_v24 = vld [vmem:[#allocation5 + $0x350] sm:$0xf] }
 0x320   : > { %v10537_v12 = vpop.f32.mrf.mxu0 }
 0x321   : > { %v1757_v31 = vadd.f32 %v1756_v49, %v1648_v34  ;;  %v10539_v54 = vpack.c.bf16 %v1897_v41, %v1895_v58  ;;  %v9096_v41 = vld [vmem:[#allocation5 + $0x3d4] sm:$0xf0] }
 0x322   : > { %v8238_v49 = vor.u32 %v9096_v41, %v8237_v32 }
 0x323   : > { %13681 = vst [vmem:[#allocation60_spill] sm:$0xff] %v10539_v54  ;;  %v1854_v18 = vmax.f32 %v1757_v31, 0.0  ;;  %1689 = vmatmul.bf16.gmra.mxu2 %v13682_v37  ;;  %2227 = vmatmul.bf16.gmra.mxu0 %v10503_v62 }
 0x324   : > { %1798 = vmatmul.bf16.gmra.mxu3 %v10343_v36  ;;  %v1596_v53 = vpop.f32.mrf.mxu1  ;;  %v9080_v36 = vld [vmem:[#allocation5 + $0x354] sm:$0xf0]  ;;  %3026 = vmatpush.bf16.msrb.mxu1 %v8238_v49  ;;  %v1493_v49 = vadd.f32 %v10390_v9, %v10268_v33 }
 0x325   : > { %v10544_v7 = vpack.c.bf16 %v1854_v18, %v1852_v28  ;;  %v1597_v2 = vadd.f32 %v1596_v53, %v1488_v59  ;;  %v8174_v18 = vor.u32 %v9080_v36, %v8173_v24  ;;  %v13684_v36 = vld [vmem:[#allocation62_spill] sm:$0xff] }
 0x326   : > { %v1650_v47 = vpop.f32.mrf.mxu2 }
 0x327   : > { %v1759_v60 = vpop.f32.mrf.mxu3  ;;  %2291 = vmatmul.bf16.gmra.mxu1 %v10544_v7  ;;  %v1651_v40 = vadd.f32 %v1650_v47, %v10472_v35  ;;  %2917 = vmatpush.bf16.msrb.mxu0 %v8174_v18  ;;  %v1899_v28 = vmax.f32 %v1597_v2, 0.0  ;;  %v8015_v2 = vld [vmem:[#allocation5 + $0x218] sm:$0xf0] }
 0x328   : > { %v10547_v63 = vpop.f32.mrf.mxu0 }
 0x329   : > { %v1760_v37 = vadd.f32 %v1759_v60, %v1651_v40  ;;  %v9039_v60 = vld [vmem:[#allocation5 + $0x214] sm:$0xf] }
 0x32b   : > { %v1856_v59 = vmax.f32 %v1760_v37, 0.0 }
 0x32c   : > { %v1598_v58 = vpop.f32.mrf.mxu1 }
 0x32d   : > { %v1599_v34 = vadd.f32 %v1598_v58, %v1490_v46  ;;  %v8018_v58 = vor.u32 %v9039_v60, %v8015_v2 }
 0x32e   : > { %v1652_v31 = vpop.f32.mrf.mxu2 }
 0x32f   : > { %v1901_v62 = vmax.f32 %v1599_v34, 0.0  ;;  %v1653_v42 = vadd.f32 %v1652_v31, %v10472_v35  ;;  %v1761_v44 = vpop.f32.mrf.mxu3  ;;  %2383 = vmatpush.bf16.msrb.mxu2 %v8018_v58 }
 0x330   : > { %v10555_v15 = vpop.f32.mrf.mxu0 }
 0x331   : > { %v1762_v53 = vadd.f32 %v1761_v44, %v1653_v42  ;;  %v10557_v47 = vpack.c.bf16 %v1901_v62, %v1899_v28  ;;  %v9055_v44 = vld [vmem:[#allocation5 + $0x294] sm:$0xf]  ;;  %v8079_v62 = vld [vmem:[#allocation5 + $0x298] sm:$0xf0] }
 0x332   : > { %v8082_v34 = vor.u32 %v9055_v44, %v8079_v62 }
 0x333   : > { %13683 = vst [vmem:[#allocation59_spill] sm:$0xff] %v10557_v47  ;;  %v1858_v24 = vmax.f32 %v1762_v53, 0.0  ;;  %1694 = vmatmul.bf16.gmra.mxu2 %v13684_v36  ;;  %2232 = vmatmul.bf16.gmra.mxu0 %v10521_v61 }
 0x334   : > { %1803 = vmatmul.bf16.gmra.mxu3 %v10361_v55  ;;  %v1601_v46 = vpop.f32.mrf.mxu1  ;;  %v1495_v55 = vadd.f32 %v10400_v20, %v10268_v33  ;;  %v13686_v20 = vld [vmem:[#allocation63_spill] sm:$0xff] }
 0x335   : > { %v10562_v40 = vpack.c.bf16 %v1858_v24, %v1856_v59  ;;  %2492 = vmatpush.bf16.msrb.mxu3 %v8082_v34  ;;  %v1602_v31 = vadd.f32 %v1601_v46, %v1493_v49 }
 0x336   : > { %v1655_v18 = vpop.f32.mrf.mxu2 }
 0x337   : > { %v1764_v32 = vpop.f32.mrf.mxu3  ;;  %2296 = vmatmul.bf16.gmra.mxu1 %v10562_v40  ;;  %v1656_v28 = vadd.f32 %v1655_v18, %v10472_v35  ;;  %v1903_v59 = vmax.f32 %v1602_v31, 0.0  ;;  %v1498_v31 = vadd.f32 %v10408_v4, %v10268_v33 }
 0x338   : > { %v10565_v41 = vpop.f32.mrf.mxu0 }
 0x339   : > { %v1765_v24 = vadd.f32 %v1764_v32, %v1656_v28  ;;  %v1500_v28 = vadd.f32 %v10418_v5, %v10268_v33  ;;  %v13688_v5 = vld [vmem:[#allocation64_spill] sm:$0xff] }
 0x33b   : > { %v1860_v62 = vmax.f32 %v1765_v24, 0.0 }
 0x33c   : > { %v1603_v37 = vpop.f32.mrf.mxu1 }
 0x33d   : > { %v1604_v42 = vadd.f32 %v1603_v37, %v1495_v55 }
 0x33e   : > { %v1657_v53 = vpop.f32.mrf.mxu2 }
 0x33f   : > { %v1905_v36 = vmax.f32 %v1604_v42, 0.0  ;;  %v1658_v60 = vadd.f32 %v1657_v53, %v10472_v35  ;;  %v1766_v2 = vpop.f32.mrf.mxu3 }
 0x340   : > { %v10573_v58 = vpop.f32.mrf.mxu0 }
 0x341   : > { %v1767_v44 = vadd.f32 %v1766_v2, %v1658_v60  ;;  %v10575_v9 = vpack.c.bf16 %v1905_v36, %v1903_v59 }
 0x343   : > { %13685 = vst [vmem:[#allocation61_spill] sm:$0xff] %v10575_v9  ;;  %v1862_v34 = vmax.f32 %v1767_v44, 0.0  ;;  %1699 = vmatmul.bf16.gmra.mxu2 %v13686_v20  ;;  %2237 = vmatmul.bf16.gmra.mxu0 %v10539_v54 }
 0x344   : > { %1808 = vmatmul.bf16.gmra.mxu3 %v10379_v14  ;;  %v1606_v46 = vpop.f32.mrf.mxu1 }
 0x345   : > { %v10580_v18 = vpack.c.bf16 %v1862_v34, %v1860_v62  ;;  %v1607_v37 = vadd.f32 %v1606_v46, %v1498_v31  ;;  %v8165_v46 = vld [vmem:[#allocation5 + $0x340] sm:$0xf] }
 0x346   : > { %v1660_v32 = vpop.f32.mrf.mxu2 }
 0x347   : > { %v1769_v49 = vpop.f32.mrf.mxu3  ;;  %2301 = vmatmul.bf16.gmra.mxu1 %v10580_v18  ;;  %v1661_v42 = vadd.f32 %v1660_v32, %v10472_v35  ;;  %v1907_v24 = vmax.f32 %v1607_v37, 0.0  ;;  %v9078_v32 = vld [vmem:[#allocation5 + $0x344] sm:$0xf0] }
 0x348   : > { %v10583_v55 = vpop.f32.mrf.mxu0  ;;  %v8166_v31 = vor.u32 %v9078_v32, %v8165_v46  ;;  %v9094_v37 = vld [vmem:[#allocation5 + $0x3c4] sm:$0xf0] }
 0x349   : > { %v1770_v36 = vadd.f32 %v1769_v49, %v1661_v42 }
 0x34a   : > { %2918 = vmatpush.bf16.msrb.mxu0 %v8166_v31 }
 0x34b   : > { %v1864_v4 = vmax.f32 %v1770_v36, 0.0  ;;  %v1503_v36 = vadd.f32 %v10426_v45, %v10268_v33 }
 0x34c   : > { %v1608_v53 = vpop.f32.mrf.mxu1 }
 0x34d   : > { %v1609_v14 = vadd.f32 %v1608_v53, %v1500_v28  ;;  %v8229_v28 = vld [vmem:[#allocation5 + $0x3c0] sm:$0xf] }
 0x34e   : > { %v1662_v59 = vpop.f32.mrf.mxu2  ;;  %v8230_v53 = vor.u32 %v9094_v37, %v8229_v28 }
 0x34f   : > { %v1909_v60 = vmax.f32 %v1609_v14, 0.0  ;;  %v1663_v2 = vadd.f32 %v1662_v59, %v10472_v35  ;;  %v1771_v44 = vpop.f32.mrf.mxu3 }
 0x350   : > { %v10591_v62 = vpop.f32.mrf.mxu0  ;;  %3027 = vmatpush.bf16.msrb.mxu1 %v8230_v53 }
 0x351   : > { %v1772_v34 = vadd.f32 %v1771_v44, %v1663_v2  ;;  %v10593_v20 = vpack.c.bf16 %v1909_v60, %v1907_v24  ;;  %v8007_v44 = vld [vmem:[#allocation5 + $0x208] sm:$0xf0] }
 0x353   : > { %13687 = vst [vmem:[#allocation62_spill] sm:$0xff] %v10593_v20  ;;  %v1866_v54 = vmax.f32 %v1772_v34, 0.0  ;;  %1704 = vmatmul.bf16.gmra.mxu2 %v13688_v5  ;;  %2242 = vmatmul.bf16.gmra.mxu0 %v10557_v47 }
 0x354   : > { %1813 = vmatmul.bf16.gmra.mxu3 %v10397_v30  ;;  %v1611_v49 = vpop.f32.mrf.mxu1  ;;  %v1505_v30 = vadd.f32 %v10436_v19, %v10268_v33  ;;  %v9053_v19 = vld [vmem:[#allocation5 + $0x284] sm:$0xf] }
 0x355   : > { %v10598_v42 = vpack.c.bf16 %v1866_v54, %v1864_v4  ;;  %v1612_v60 = vadd.f32 %v1611_v49, %v1503_v36  ;;  %v9037_v54 = vld [vmem:[#allocation5 + $0x204] sm:$0xf]  ;;  %v8071_v49 = vld [vmem:[#allocation5 + $0x288] sm:$0xf0] }
 0x356   : > { %v1665_v14 = vpop.f32.mrf.mxu2  ;;  %v8010_v4 = vor.u32 %v9037_v54, %v8007_v44  ;;  %v13689_v54 = vld [vmem:[#allocation65_spill] sm:$0xff] }
 0x357   : > { %v1774_v59 = vpop.f32.mrf.mxu3  ;;  %2306 = vmatmul.bf16.gmra.mxu1 %v10598_v42  ;;  %v1666_v2 = vadd.f32 %v1665_v14, %v10472_v35  ;;  %v1911_v32 = vmax.f32 %v1612_v60, 0.0  ;;  %v8074_v14 = vor.u32 %v9053_v19, %v8071_v49  ;;  %v10629_v19 = vld [vmem:[#allocation7 + $0x4] sm:$0x3] }
 0x358   : > { %v10601_v24 = vpop.f32.mrf.mxu0  ;;  %2384 = vmatpush.bf16.msrb.mxu2 %v8010_v4  ;;  %13690 = vst [vmem:[#allocation63_spill] sm:$0xff] %v10629_v19 }
 0x359   : > { %v1775_v31 = vadd.f32 %v1774_v59, %v1666_v2  ;;  %2493 = vmatpush.bf16.msrb.mxu3 %v8074_v14 }
 0x35b   : > { %v1868_v61 = vmax.f32 %v1775_v31, 0.0 }
 0x35c   : > { %v1613_v34 = vpop.f32.mrf.mxu1 }
 0x35d   : > { %v1614_v5 = vadd.f32 %v1613_v34, %v1505_v30  ;;  %v1508_v34 = vadd.f32 %v10444_v57, %v10268_v33 }
 0x35e   : > { %v1667_v46 = vpop.f32.mrf.mxu2 }
 0x35f   : > { %v1913_v28 = vmax.f32 %v1614_v5, 0.0  ;;  %v1668_v37 = vadd.f32 %v1667_v46, %v10472_v35  ;;  %v1776_v53 = vpop.f32.mrf.mxu3 }
 0x360   : > { %v10609_v45 = vpop.f32.mrf.mxu0 }
 0x361   : > { %v1777_v47 = vadd.f32 %v1776_v53, %v1668_v37  ;;  %v10611_v36 = vpack.c.bf16 %v1913_v28, %v1911_v32 }
 0x363   : > { %v1870_v21 = vmax.f32 %v1777_v47, 0.0  ;;  %1709 = vmatmul.bf16.gmra.mxu2 %v13689_v54  ;;  %2247 = vmatmul.bf16.gmra.mxu0 %v10575_v9  ;;  %v1510_v47 = vadd.f32 %v10454_v39, %v10268_v33  ;;  %v8157_v33 = vld [vmem:[#allocation5 + $0x330] sm:$0xf]  ;;  %v9076_v39 = vld [vmem:[#allocation5 + $0x334] sm:$0xf0] }
 0x364   : > { %1818 = vmatmul.bf16.gmra.mxu3 %v10415_v27  ;;  %v1616_v59 = vpop.f32.mrf.mxu1 }
 0x365   : > { %v10616_v30 = vpack.c.bf16 %v1870_v21, %v1868_v61  ;;  %v1617_v4 = vadd.f32 %v1616_v59, %v1508_v34  ;;  %v13692_v59 = vld [vmem:[#allocation66_spill] sm:$0xff] }
 0x366   : > { %v1670_v60 = vpop.f32.mrf.mxu2 }
 0x367   : > { %v1779_v2 = vpop.f32.mrf.mxu3  ;;  %2311 = vmatmul.bf16.gmra.mxu1 %v10616_v30  ;;  %v1671_v5 = vadd.f32 %v1670_v60, %v10472_v35  ;;  %v1915_v61 = vmax.f32 %v1617_v4, 0.0  ;;  %v8158_v60 = vor.u32 %v9076_v39, %v8157_v33  ;;  %v8221_v33 = vld [vmem:[#allocation5 + $0x3b0] sm:$0xf]  ;;  %v9092_v39 = vld [vmem:[#allocation5 + $0x3b4] sm:$0xf0] }
 0x368   : > { %v10619_v44 = vpop.f32.mrf.mxu0 }
 0x369   : > { %v1780_v32 = vadd.f32 %v1779_v2, %v1671_v5  ;;  %v10636_v2 = vperm.slane %v10629_v19, 0  ;;  %2919 = vmatpush.bf16.msrb.mxu0 %v8158_v60  ;;  %v8149_v5 = vld [vmem:[#allocation5 + $0x320] sm:$0xf] }
 0x36b   : > { %v1872_v14 = vmax.f32 %v1780_v32, 0.0 }
 0x36c   : > { %v1618_v27 = vpop.f32.mrf.mxu1 }
 0x36d   : > { %v1619_v46 = vadd.f32 %v1618_v27, %v1510_v47  ;;  %v9074_v27 = vld [vmem:[#allocation5 + $0x324] sm:$0xf0] }
 0x36e   : > { %v1672_v21 = vpop.f32.mrf.mxu2 }
 0x36f   : > { %v1917_v31 = vmax.f32 %v1619_v46, 0.0  ;;  %v1673_v28 = vadd.f32 %v1672_v21, %v10472_v35  ;;  %v1781_v37 = vpop.f32.mrf.mxu3  ;;  %v8150_v21 = vor.u32 %v9074_v27, %v8149_v5  ;;  %v8133_v27 = vld [vmem:[#allocation5 + $0x300] sm:$0xf] }
 0x370   : > { %v10627_v53 = vpop.f32.mrf.mxu0 }
 0x371   : > { %v1782_v57 = vadd.f32 %v1781_v37, %v1673_v28  ;;  %v10631_v49 = vpack.c.bf16 %v1917_v31, %v1915_v61  ;;  %v2169_v61 = vadd.f32 %v10462_v17, %v10636_v2  ;;  %2920 = vmatpush.bf16.msrb.mxu0 %v8150_v21  ;;  %v8141_v28 = vld [vmem:[#allocation5 + $0x310] sm:$0xf]  ;;  %v2171_v37 = vadd.f32 %v10475_v29, %v10636_v2  ;;  %v9070_v21 = vld [vmem:[#allocation5 + $0x304] sm:$0xf0] }
 0x372   : > { %v8134_v29 = vor.u32 %v9070_v21, %v8133_v27 }
 0x373   : > { %13691 = vst [vmem:[#allocation64_spill] sm:$0xff] %v10631_v49  ;;  %v1874_v54 = vmax.f32 %v1782_v57, 0.0  ;;  %1714 = vmatmul.bf16.gmra.mxu2 %v13692_v59  ;;  %2252 = vmatmul.bf16.gmra.mxu0 %v10593_v20  ;;  %v8222_v59 = vor.u32 %v9092_v39, %v8221_v33  ;;  %v13694_v33 = vld [vmem:[#allocation67_spill] sm:$0xff] }
 0x374   : > { %1823 = vmatmul.bf16.gmra.mxu3 %v10433_v10  ;;  %v2277_v34 = vpop.f32.mrf.mxu1  ;;  %v9072_v10 = vld [vmem:[#allocation5 + $0x314] sm:$0xf0] }
 0x375   : > { %v10639_v47 = vpack.c.bf16 %v1874_v54, %v1872_v14  ;;  %v2278_v31 = vadd.f32 %v2277_v34, %v2169_v61  ;;  %v8142_v14 = vor.u32 %v9072_v10, %v8141_v28  ;;  %3028 = vmatpush.bf16.msrb.mxu1 %v8222_v59 }
 0x376   : > { %v1675_v4 = vpop.f32.mrf.mxu2 }
 0x377   : > { %v1784_v46 = vpop.f32.mrf.mxu3  ;;  %2316 = vmatmul.bf16.gmra.mxu1 %v10639_v47  ;;  %v1676_v57 = vadd.f32 %v1675_v4, %v10472_v35  ;;  %2921 = vmatpush.bf16.msrb.mxu0 %v8142_v14  ;;  %v2595_v5 = vmax.f32 %v2278_v31, 0.0  ;;  %v9083_v31 = vld [vmem:[#allocation5 + $0x374] sm:$0xf] }
 0x378   : > { %v10644_v32 = vpop.f32.mrf.mxu0 }
 0x379   : > { %v1785_v34 = vadd.f32 %v1784_v46, %v1676_v57  ;;  %v8191_v57 = vld [vmem:[#allocation5 + $0x378] sm:$0xf0] }
 0x37a   : > { %v8194_v14 = vor.u32 %v9083_v31, %v8191_v57 }
 0x37b   : > { %2922 = vmatpush.bf16.msrb.mxu0 %v8134_v29  ;;  %v1876_v10 = vmax.f32 %v1785_v34, 0.0 }
 0x37c   : > { %v2279_v54 = vpop.f32.mrf.mxu1  ;;  %3133 = vmatpush.bf16.msra.mxu2 %v8194_v14 }
 0x37d   : > { %v2280_v60 = vadd.f32 %v2279_v54, %v2171_v37 }
 0x37e   : > { %v1677_v17 = vpop.f32.mrf.mxu2 }
 0x37f   : > { %v2597_v61 = vmax.f32 %v2280_v60, 0.0  ;;  %v1678_v20 = vadd.f32 %v1677_v17, %v10472_v35  ;;  %v1786_v9 = vpop.f32.mrf.mxu3  ;;  %v2174_v17 = vadd.f32 %v10483_v52, %v10636_v2 }
 0x380   : > { %v10650_v19 = vpop.f32.mrf.mxu0 }
 0x381   : > { %v10652_v4 = vpack.c.bf16 %v2597_v61, %v2595_v5  ;;  %v1787_v28 = vadd.f32 %v1786_v9, %v1678_v20  ;;  %v9099_v9 = vld [vmem:[#allocation5 + $0x3f4] sm:$0xf]  ;;  %v8255_v20 = vld [vmem:[#allocation5 + $0x3f8] sm:$0xf0] }
 0x382   : > { %v8258_v5 = vor.u32 %v9099_v9, %v8255_v20 }
 0x383   : > { %13693 = vst [vmem:[#allocation65_spill] sm:$0xff] %v10652_v4  ;;  %v1878_v37 = vmax.f32 %v1787_v28, 0.0  ;;  %1719 = vmatmul.bf16.gmra.mxu2 %v13694_v33  ;;  %2257 = vmatmul.bf16.gmra.mxu0 %v10611_v36 }
 0x384   : > { %1828 = vmatmul.bf16.gmra.mxu3 %v10451_v43  ;;  %v2282_v46 = vpop.f32.mrf.mxu1  ;;  %v2176_v43 = vadd.f32 %v10493_v6, %v10636_v2  ;;  %v13695_v6 = vld [vmem:[#allocation68_spill] sm:$0xff] }
 0x385   : > { %v10657_v39 = vpack.c.bf16 %v1878_v37, %v1876_v10  ;;  %3242 = vmatpush.bf16.msra.mxu3 %v8258_v5  ;;  %v2283_v27 = vadd.f32 %v2282_v46, %v2174_v17 }
 0x386   : > { %v1680_v54 = vpop.f32.mrf.mxu2 }
 0x387   : > { %v1789_v59 = vpop.f32.mrf.mxu3  ;;  %2321 = vmatmul.bf16.gmra.mxu1 %v10657_v39  ;;  %v1681_v21 = vadd.f32 %v1680_v54, %v10472_v35  ;;  %v2599_v28 = vmax.f32 %v2283_v27, 0.0  ;;  %v2181_v27 = vadd.f32 %v10511_v11, %v10636_v2  ;;  %v13696_v11 = vld [vmem:[#allocation69_spill] sm:$0xff] }
 0x388   : > { %v10660_v60 = vpop.f32.mrf.mxu0 }
 0x389   : > { %v1790_v10 = vadd.f32 %v1789_v59, %v1681_v21 }
 0x38b   : > { %v1880_v9 = vmax.f32 %v1790_v10, 0.0 }
 0x38c   : > { %v2284_v34 = vpop.f32.mrf.mxu1 }
 0x38d   : > { %v2285_v61 = vadd.f32 %v2284_v34, %v2176_v43  ;;  %v2179_v43 = vadd.f32 %v10501_v22, %v10636_v2 }
 0x38e   : > { %v1682_v29 = vpop.f32.mrf.mxu2 }
 0x38f   : > { %v2601_v37 = vmax.f32 %v2285_v61, 0.0  ;;  %v1683_v33 = vadd.f32 %v1682_v29, %v10472_v35  ;;  %v1791_v31 = vpop.f32.mrf.mxu3 }
 0x390   : > { %v10668_v57 = vpop.f32.mrf.mxu0 }
 0x391   : > { %v1792_v14 = vadd.f32 %v1791_v31, %v1683_v33  ;;  %v10670_v52 = vpack.c.bf16 %v2601_v37, %v2599_v28 }
 0x393   : > { %v1882_v20 = vmax.f32 %v1792_v14, 0.0  ;;  %1724 = vmatmul.bf16.gmra.mxu2 %v13695_v6  ;;  %2262 = vmatmul.bf16.gmra.mxu0 %v10631_v49 }
 0x394   : > { %1833 = vmatmul.bf16.gmra.mxu3 %v10469_v50  ;;  %v2287_v46 = vpop.f32.mrf.mxu1 }
 0x395   : > { %v10675_v54 = vpack.c.bf16 %v1882_v20, %v1880_v9  ;;  %v2288_v21 = vadd.f32 %v2287_v46, %v2179_v43  ;;  %v8213_v46 = vld [vmem:[#allocation5 + $0x3a0] sm:$0xf] }
 0x396   : > { %v1685_v59 = vpop.f32.mrf.mxu2 }
 0x397   : > { %v1794_v5 = vpop.f32.mrf.mxu3  ;;  %2326 = vmatmul.bf16.gmra.mxu1 %v10675_v54  ;;  %v1686_v34 = vadd.f32 %v1685_v59, %v10472_v35  ;;  %v2603_v28 = vmax.f32 %v2288_v21, 0.0  ;;  %v9090_v59 = vld [vmem:[#allocation5 + $0x3a4] sm:$0xf0] }
 0x398   : > { %v10678_v17 = vpop.f32.mrf.mxu0  ;;  %v8214_v43 = vor.u32 %v9090_v59, %v8213_v46 }
 0x399   : > { %v1795_v10 = vadd.f32 %v1794_v5, %v1686_v34 }
 0x39a   : > { %3029 = vmatpush.bf16.msrb.mxu1 %v8214_v43 }
 0x39b   : > { %v1884_v22 = vmax.f32 %v1795_v10, 0.0  ;;  %v9081_v10 = vld [vmem:[#allocation5 + $0x364] sm:$0xf] }
 0x39c   : > { %v2289_v61 = vpop.f32.mrf.mxu1 }
 0x39d   : > { %v2290_v50 = vadd.f32 %v2289_v61, %v2181_v27 }
 0x39e   : > { %v1687_v29 = vpop.f32.mrf.mxu2 }
 0x39f   : > { %v2605_v37 = vmax.f32 %v2290_v50, 0.0  ;;  %v1688_v33 = vadd.f32 %v1687_v29, %v10472_v35  ;;  %v1796_v31 = vpop.f32.mrf.mxu3  ;;  %v2184_v50 = vadd.f32 %v10519_v16, %v10636_v2  ;;  %v2186_v29 = vadd.f32 %v10529_v8, %v10636_v2  ;;  %v9097_v16 = vld [vmem:[#allocation5 + $0x3e4] sm:$0xf] }
 0x3a0   : > { %v10686_v14 = vpop.f32.mrf.mxu0 }
 0x3a1   : > { %v1797_v9 = vadd.f32 %v1796_v31, %v1688_v33  ;;  %v10688_v20 = vpack.c.bf16 %v2605_v37, %v2603_v28  ;;  %v8183_v37 = vld [vmem:[#allocation5 + $0x368] sm:$0xf0] }
 0x3a2   : > { %v8186_v31 = vor.u32 %v9081_v10, %v8183_v37  ;;  %v2189_v37 = vadd.f32 %v10537_v12, %v10636_v2 }
 0x3a3   : > { %v1886_v6 = vmax.f32 %v1797_v9, 0.0  ;;  %2385 = vmatmul.bf16.vlgmr.msrb.gmra.mxu2 %v13696_v11  ;;  %2923 = vmatmul.bf16.vlgmr.msrb.gmra.mxu0 %v10652_v4  ;;  %v8247_v4 = vld [vmem:[#allocation5 + $0x3e8] sm:$0xf0] }
 0x3a4   : > { %2494 = vmatmul.bf16.vlgmr.msrb.gmra.mxu3 %v10490_v38  ;;  %v2292_v5 = vpop.f32.mrf.mxu1  ;;  %3134 = vmatpush.bf16.msra.mxu2 %v8186_v31  ;;  %v8250_v8 = vor.u32 %v9097_v16, %v8247_v4 }
 0x3a5   : > { %v10693_v27 = vpack.c.bf16 %v1886_v6, %v1884_v22  ;;  %v2293_v28 = vadd.f32 %v2292_v5, %v2184_v50 }
 0x3a6   : > { %v1690_v21 = vpop.f32.mrf.mxu2  ;;  %3243 = vmatpush.bf16.msra.mxu3 %v8250_v8 }
 0x3a7   : > { %v1799_v34 = vpop.f32.mrf.mxu3  ;;  %2331 = vmatmul.bf16.gmra.mxu1 %v10693_v27  ;;  %v1691_v38 = vadd.f32 %v1690_v21, %v10472_v35  ;;  %v2607_v6 = vmax.f32 %v2293_v28, 0.0 }
 0x3a8   : > { %v10696_v61 = vpop.f32.mrf.mxu0 }
 0x3a9   : > { %v1800_v11 = vadd.f32 %v1799_v34, %v1691_v38 }
 0x3ab   : > { %v1888_v50 = vmax.f32 %v1800_v11, 0.0 }
 0x3ac   : > { %v2294_v33 = vpop.f32.mrf.mxu1 }
 0x3ad   : > { %v2295_v9 = vadd.f32 %v2294_v33, %v2186_v29  ;;  %v2191_v33 = vadd.f32 %v10547_v63, %v10636_v2 }
 0x3ae   : > { %v1692_v22 = vpop.f32.mrf.mxu2 }
 0x3af   : > { %v2609_v46 = vmax.f32 %v2295_v9, 0.0  ;;  %v1693_v59 = vadd.f32 %v1692_v22, %v10472_v35  ;;  %v1801_v43 = vpop.f32.mrf.mxu3 }
 0x3b0   : > { %v10704_v49 = vpop.f32.mrf.mxu0 }
 0x3b1   : > { %v1802_v5 = vadd.f32 %v1801_v43, %v1693_v59  ;;  %v10706_v21 = vpack.c.bf16 %v2609_v46, %v2607_v6 }
 0x3b3   : > { %v1890_v10 = vmax.f32 %v1802_v5, 0.0  ;;  %2390 = vmatmul.bf16.gmra.mxu2 %v10302_v56  ;;  %2928 = vmatmul.bf16.gmra.mxu0 %v10670_v52 }
 0x3b4   : > { %2499 = vmatmul.bf16.gmra.mxu3 %v10508_v51  ;;  %v2297_v34 = vpop.f32.mrf.mxu1 }
 0x3b5   : > { %v10711_v29 = vpack.c.bf16 %v1890_v10, %v1888_v50  ;;  %v2298_v56 = vadd.f32 %v2297_v34, %v2189_v37  ;;  %v2194_v37 = vadd.f32 %v10555_v15, %v10636_v2 }
 0x3b6   : > { %v1695_v28 = vpop.f32.mrf.mxu2 }
 0x3b7   : > { %v1804_v38 = vpop.f32.mrf.mxu3  ;;  %2336 = vmatmul.bf16.gmra.mxu1 %v10711_v29  ;;  %v1696_v31 = vadd.f32 %v1695_v28, %v10472_v35  ;;  %v2611_v6 = vmax.f32 %v2298_v56, 0.0 }
 0x3b8   : > { %v10714_v4 = vpop.f32.mrf.mxu0 }
 0x3b9   : > { %v1805_v11 = vadd.f32 %v1804_v38, %v1696_v31  ;;  %v8205_v31 = vld [vmem:[#allocation5 + $0x390] sm:$0xf] }
 0x3bb   : > { %v1892_v12 = vmax.f32 %v1805_v11, 0.0 }
 0x3bc   : > { %v2299_v9 = vpop.f32.mrf.mxu1 }
 0x3bd   : > { %v2300_v51 = vadd.f32 %v2299_v9, %v2191_v33  ;;  %v2196_v33 = vadd.f32 %v10565_v41, %v10636_v2 }
 0x3be   : > { %v1697_v22 = vpop.f32.mrf.mxu2 }
 0x3bf   : > { %v2613_v46 = vmax.f32 %v2300_v51, 0.0  ;;  %v1698_v59 = vadd.f32 %v1697_v22, %v10472_v35  ;;  %v1806_v43 = vpop.f32.mrf.mxu3 }
 0x3c0   : > { %v10722_v16 = vpop.f32.mrf.mxu0 }
 0x3c1   : > { %v1807_v8 = vadd.f32 %v1806_v43, %v1698_v59  ;;  %v10724_v5 = vpack.c.bf16 %v2613_v46, %v2611_v6 }
 0x3c3   : > { %v1894_v50 = vmax.f32 %v1807_v8, 0.0  ;;  %2395 = vmatmul.bf16.gmra.mxu2 %v10320_v3  ;;  %2933 = vmatmul.bf16.gmra.mxu0 %v10688_v20 }
 0x3c4   : > { %2504 = vmatmul.bf16.gmra.mxu3 %v10526_v26  ;;  %v2302_v63 = vpop.f32.mrf.mxu1  ;;  %v9088_v26 = vld [vmem:[#allocation5 + $0x394] sm:$0xf0] }
 0x3c5   : > { %v10729_v10 = vpack.c.bf16 %v1894_v50, %v1892_v12  ;;  %v2303_v3 = vadd.f32 %v2302_v63, %v2194_v37  ;;  %v8206_v51 = vor.u32 %v9088_v26, %v8205_v31  ;;  %v9079_v37 = vld [vmem:[#allocation5 + $0x354] sm:$0xf] }
 0x3c6   : > { %v1700_v34 = vpop.f32.mrf.mxu2  ;;  %v9095_v26 = vld [vmem:[#allocation5 + $0x3d4] sm:$0xf] }
 0x3c7   : > { %v1809_v28 = vpop.f32.mrf.mxu3  ;;  %2341 = vmatmul.bf16.gmra.mxu1 %v10729_v10  ;;  %v1701_v56 = vadd.f32 %v1700_v34, %v10472_v35  ;;  %v2615_v11 = vmax.f32 %v2303_v3, 0.0 }
 0x3c8   : > { %v10732_v38 = vpop.f32.mrf.mxu0  ;;  %3030 = vmatpush.bf16.msrb.mxu1 %v8206_v51 }
 0x3c9   : > { %v1810_v46 = vadd.f32 %v1809_v28, %v1701_v56  ;;  %v8175_v28 = vld [vmem:[#allocation5 + $0x358] sm:$0xf0] }
 0x3ca   : > { %v8178_v3 = vor.u32 %v9079_v37, %v8175_v28 }
 0x3cb   : > { %v1896_v50 = vmax.f32 %v1810_v46, 0.0 }
 0x3cc   : > { %v2304_v9 = vpop.f32.mrf.mxu1  ;;  %3135 = vmatpush.bf16.msra.mxu2 %v8178_v3 }
 0x3cd   : > { %v2305_v22 = vadd.f32 %v2304_v9, %v2196_v33  ;;  %v8239_v9 = vld [vmem:[#allocation5 + $0x3d8] sm:$0xf0] }
 0x3ce   : > { %v1702_v6 = vpop.f32.mrf.mxu2 }
 0x3cf   : > { %v2617_v59 = vmax.f32 %v2305_v22, 0.0  ;;  %v1703_v43 = vadd.f32 %v1702_v6, %v10472_v35  ;;  %v1811_v8 = vpop.f32.mrf.mxu3  ;;  %v2199_v22 = vadd.f32 %v10573_v58, %v10636_v2 }
 0x3d0   : > { %v10740_v15 = vpop.f32.mrf.mxu0 }
 0x3d1   : > { %v1812_v12 = vadd.f32 %v1811_v8, %v1703_v43  ;;  %v10742_v41 = vpack.c.bf16 %v2617_v59, %v2615_v11 }
 0x3d3   : > { %v1898_v63 = vmax.f32 %v1812_v12, 0.0  ;;  %2400 = vmatmul.bf16.gmra.mxu2 %v10338_v48  ;;  %2938 = vmatmul.bf16.gmra.mxu0 %v10706_v21  ;;  %v8242_v48 = vor.u32 %v9095_v26, %v8239_v9 }
 0x3d4   : > { %2509 = vmatmul.bf16.gmra.mxu3 %v10544_v7  ;;  %v2307_v34 = vpop.f32.mrf.mxu1  ;;  %v2201_v7 = vadd.f32 %v10583_v55, %v10636_v2 }
 0x3d5   : > { %v10747_v33 = vpack.c.bf16 %v1898_v63, %v1896_v50  ;;  %3244 = vmatpush.bf16.msra.mxu3 %v8242_v48  ;;  %v2308_v6 = vadd.f32 %v2307_v34, %v2199_v22  ;;  %v2204_v22 = vadd.f32 %v10591_v62, %v10636_v2 }
 0x3d6   : > { %v1705_v56 = vpop.f32.mrf.mxu2 }
 0x3d7   : > { %v1814_v31 = vpop.f32.mrf.mxu3  ;;  %2346 = vmatmul.bf16.gmra.mxu1 %v10747_v33  ;;  %v1706_v11 = vadd.f32 %v1705_v56, %v10472_v35  ;;  %v2619_v8 = vmax.f32 %v2308_v6, 0.0 }
 0x3d8   : > { %v10750_v51 = vpop.f32.mrf.mxu0 }
 0x3d9   : > { %v1815_v12 = vadd.f32 %v1814_v31, %v1706_v11 }
 0x3db   : > { %v1900_v26 = vmax.f32 %v1815_v12, 0.0 }
 0x3dc   : > { %v2309_v46 = vpop.f32.mrf.mxu1 }
 0x3dd   : > { %v2310_v59 = vadd.f32 %v2309_v46, %v2201_v7  ;;  %v2206_v7 = vadd.f32 %v10601_v24, %v10636_v2  ;;  %v8197_v24 = vld [vmem:[#allocation5 + $0x380] sm:$0xf] }
 0x3de   : > { %v1707_v43 = vpop.f32.mrf.mxu2 }
 0x3df   : > { %v2621_v50 = vmax.f32 %v2310_v59, 0.0  ;;  %v1708_v63 = vadd.f32 %v1707_v43, %v10472_v35  ;;  %v1816_v37 = vpop.f32.mrf.mxu3 }
 0x3e0   : > { %v10758_v28 = vpop.f32.mrf.mxu0 }
 0x3e1   : > { %v1817_v3 = vadd.f32 %v1816_v37, %v1708_v63  ;;  %v10760_v58 = vpack.c.bf16 %v2621_v50, %v2619_v8 }
 0x3e3   : > { %v1902_v9 = vmax.f32 %v1817_v3, 0.0  ;;  %2405 = vmatmul.bf16.gmra.mxu2 %v10356_v0  ;;  %2943 = vmatmul.bf16.gmra.mxu0 %v10724_v5 }
 0x3e4   : > { %2514 = vmatmul.bf16.gmra.mxu3 %v10562_v40  ;;  %v2312_v55 = vpop.f32.mrf.mxu1 }
 0x3e5   : > { %v10765_v34 = vpack.c.bf16 %v1902_v9, %v1900_v26  ;;  %v2313_v0 = vadd.f32 %v2312_v55, %v2204_v22  ;;  %v9086_v9 = vld [vmem:[#allocation5 + $0x384] sm:$0xf0] }
 0x3e6   : > { %v1710_v56 = vpop.f32.mrf.mxu2 }
 0x3e7   : > { %v1819_v31 = vpop.f32.mrf.mxu3  ;;  %2351 = vmatmul.bf16.gmra.mxu1 %v10765_v34  ;;  %v1711_v6 = vadd.f32 %v1710_v56, %v10472_v35  ;;  %v2623_v59 = vmax.f32 %v2313_v0, 0.0  ;;  %v8198_v56 = vor.u32 %v9086_v9, %v8197_v24  ;;  %v8231_v9 = vld [vmem:[#allocation5 + $0x3c8] sm:$0xf0] }
 0x3e8   : > { %v10768_v48 = vpop.f32.mrf.mxu0 }
 0x3e9   : > { %v1820_v43 = vadd.f32 %v1819_v31, %v1711_v6  ;;  %3031 = vmatpush.bf16.msrb.mxu1 %v8198_v56  ;;  %v2211_v6 = vadd.f32 %v10619_v44, %v10636_v2 }
 0x3eb   : > { %v1904_v62 = vmax.f32 %v1820_v43, 0.0 }
 0x3ec   : > { %v2314_v11 = vpop.f32.mrf.mxu1 }
 0x3ed   : > { %v2315_v40 = vadd.f32 %v2314_v11, %v2206_v7 }
 0x3ee   : > { %v1712_v46 = vpop.f32.mrf.mxu2 }
 0x3ef   : > { %v2625_v8 = vmax.f32 %v2315_v40, 0.0  ;;  %v1713_v12 = vadd.f32 %v1712_v46, %v10472_v35  ;;  %v1821_v50 = vpop.f32.mrf.mxu3  ;;  %v9077_v40 = vld [vmem:[#allocation5 + $0x344] sm:$0xf]  ;;  %v8167_v46 = vld [vmem:[#allocation5 + $0x348] sm:$0xf0] }
 0x3f0   : > { %v10776_v63 = vpop.f32.mrf.mxu0  ;;  %v8170_v43 = vor.u32 %v9077_v40, %v8167_v46 }
 0x3f1   : > { %v1822_v37 = vadd.f32 %v1821_v50, %v1713_v12  ;;  %v10778_v3 = vpack.c.bf16 %v2625_v8, %v2623_v59 }
 0x3f2   : > { %3136 = vmatpush.bf16.msra.mxu2 %v8170_v43  ;;  %v2216_v43 = vadd.f32 %v10644_v32, %v10636_v2 }
 0x3f3   : > { %v1906_v26 = vmax.f32 %v1822_v37, 0.0  ;;  %2410 = vmatmul.bf16.gmra.mxu2 %v10374_v23  ;;  %2948 = vmatmul.bf16.gmra.mxu0 %v10742_v41  ;;  %v2209_v23 = vadd.f32 %v10609_v45, %v10636_v2  ;;  %v9093_v45 = vld [vmem:[#allocation5 + $0x3c4] sm:$0xf] }
 0x3f4   : > { %2519 = vmatmul.bf16.gmra.mxu3 %v10580_v18  ;;  %v2317_v55 = vpop.f32.mrf.mxu1  ;;  %v8234_v44 = vor.u32 %v9093_v45, %v8231_v9 }
 0x3f5   : > { %v10783_v31 = vpack.c.bf16 %v1906_v26, %v1904_v62  ;;  %v2318_v11 = vadd.f32 %v2317_v55, %v2209_v23 }
 0x3f6   : > { %v1715_v22 = vpop.f32.mrf.mxu2  ;;  %3245 = vmatpush.bf16.msra.mxu3 %v8234_v44 }
 0x3f7   : > { %v1824_v7 = vpop.f32.mrf.mxu3  ;;  %2356 = vmatmul.bf16.gmra.mxu1 %v10783_v31  ;;  %v1716_v18 = vadd.f32 %v1715_v22, %v10472_v35  ;;  %v2627_v50 = vmax.f32 %v2318_v11, 0.0 }
 0x3f8   : > { %v10786_v0 = vpop.f32.mrf.mxu0 }
 0x3f9   : > { %v1825_v37 = vadd.f32 %v1824_v7, %v1716_v18 }
 0x3fb   : > { %v1908_v23 = vmax.f32 %v1825_v37, 0.0 }
 0x3fc   : > { %v2319_v59 = vpop.f32.mrf.mxu1 }
 0x3fd   : > { %v2320_v8 = vadd.f32 %v2319_v59, %v2211_v6  ;;  %v2214_v59 = vadd.f32 %v10627_v53, %v10636_v2 }
 0x3fe   : > { %v1717_v12 = vpop.f32.mrf.mxu2 }
 0x3ff   : > { %v2629_v62 = vmax.f32 %v2320_v8, 0.0  ;;  %v1718_v26 = vadd.f32 %v1717_v12, %v10472_v35  ;;  %v1826_v24 = vpop.f32.mrf.mxu3 }
 0x400   : > { %v10794_v56 = vpop.f32.mrf.mxu0 }
 0x401   : > { %v1827_v55 = vadd.f32 %v1826_v24, %v1718_v26  ;;  %v10796_v22 = vpack.c.bf16 %v2629_v62, %v2627_v50 }
 0x403   : > { %13697 = vst [vmem:[#allocation66_spill] sm:$0xff] %v10796_v22  ;;  %v1910_v40 = vmax.f32 %v1827_v55, 0.0  ;;  %2415 = vmatmul.bf16.gmra.mxu2 %v10392_v1  ;;  %2953 = vmatmul.bf16.gmra.mxu0 %v10760_v58 }
 0x404   : > { %2524 = vmatmul.bf16.gmra.mxu3 %v10598_v42  ;;  %v2322_v7 = vpop.f32.mrf.mxu1 }
 0x405   : > { %v10801_v6 = vpack.c.bf16 %v1910_v40, %v1908_v23  ;;  %v2323_v1 = vadd.f32 %v2322_v7, %v2214_v59  ;;  %v2219_v59 = vadd.f32 %v10650_v19, %v10636_v2 }
 0x406   : > { %v1720_v11 = vpop.f32.mrf.mxu2 }
 0x407   : > { %v1829_v18 = vpop.f32.mrf.mxu3  ;;  %2361 = vmatmul.bf16.gmra.mxu1 %v10801_v6  ;;  %v1721_v8 = vadd.f32 %v1720_v11, %v10472_v35  ;;  %v2631_v37 = vmax.f32 %v2323_v1, 0.0 }
 0x408   : > { %v10804_v46 = vpop.f32.mrf.mxu0 }
 0x409   : > { %v1830_v62 = vadd.f32 %v1829_v18, %v1721_v8  ;;  %v8317_v8 = vld [vmem:[#allocation5 + $0x470] sm:$0xf] }
 0x40b   : > { %v1912_v53 = vmax.f32 %v1830_v62, 0.0 }
 0x40c   : > { %v2324_v12 = vpop.f32.mrf.mxu1 }
 0x40d   : > { %v2325_v42 = vadd.f32 %v2324_v12, %v2216_v43  ;;  %v2221_v43 = vadd.f32 %v10660_v60, %v10636_v2 }
 0x40e   : > { %v1722_v50 = vpop.f32.mrf.mxu2 }
 0x40f   : > { %v2633_v26 = vmax.f32 %v2325_v42, 0.0  ;;  %v1723_v24 = vadd.f32 %v1722_v50, %v10472_v35  ;;  %v1831_v45 = vpop.f32.mrf.mxu3  ;;  %v8381_v50 = vld [vmem:[#allocation5 + $0x4f0] sm:$0xf] }
 0x410   : > { %v10812_v9 = vpop.f32.mrf.mxu0 }
 0x411   : > { %v1832_v44 = vadd.f32 %v1831_v45, %v1723_v24  ;;  %v10814_v55 = vpack.c.bf16 %v2633_v26, %v2631_v37  ;;  %v9132_v37 = vld [vmem:[#allocation5 + $0x4f4] sm:$0xf0] }
 0x412   : > { %v8382_v26 = vor.u32 %v9132_v37, %v8381_v50  ;;  %v9091_v37 = vld [vmem:[#allocation5 + $0x3b4] sm:$0xf] }
 0x413   : > { %13698 = vst [vmem:[#allocation67_spill] sm:$0xff] %v10814_v55  ;;  %v1914_v23 = vmax.f32 %v1832_v44, 0.0  ;;  %2420 = vmatmul.bf16.gmra.mxu2 %v10410_v25  ;;  %2958 = vmatmul.bf16.gmra.mxu0 %v10778_v3 }
 0x414   : > { %2529 = vmatmul.bf16.gmra.mxu3 %v10616_v30  ;;  %v2327_v32 = vpop.f32.mrf.mxu1  ;;  %v9116_v30 = vld [vmem:[#allocation5 + $0x474] sm:$0xf0]  ;;  %3780 = vmatpush.bf16.msra.mxu1 %v8382_v26 }
 0x415   : > { %v10819_v40 = vpack.c.bf16 %v1914_v23, %v1912_v53  ;;  %v2328_v25 = vadd.f32 %v2327_v32, %v2219_v59  ;;  %v8318_v42 = vor.u32 %v9116_v30, %v8317_v8 }
 0x416   : > { %v1725_v7 = vpop.f32.mrf.mxu2 }
 0x417   : > { %v1834_v11 = vpop.f32.mrf.mxu3  ;;  %2366 = vmatmul.bf16.gmra.mxu1 %v10819_v40  ;;  %v1726_v1 = vadd.f32 %v1725_v7, %v10472_v35  ;;  %3671 = vmatpush.bf16.msra.mxu0 %v8318_v42  ;;  %v2635_v45 = vmax.f32 %v2328_v25, 0.0  ;;  %v8159_v25 = vld [vmem:[#allocation5 + $0x338] sm:$0xf0] }
 0x418   : > { %v10822_v18 = vpop.f32.mrf.mxu0 }
 0x419   : > { %v1835_v44 = vadd.f32 %v1834_v11, %v1726_v1  ;;  %v9075_v11 = vld [vmem:[#allocation5 + $0x334] sm:$0xf] }
 0x41b   : > { %v1916_v59 = vmax.f32 %v1835_v44, 0.0 }
 0x41c   : > { %v2329_v12 = vpop.f32.mrf.mxu1 }
 0x41d   : > { %v2330_v62 = vadd.f32 %v2329_v12, %v2221_v43  ;;  %v13700_v12 = vld [vmem:[#allocation63_spill] sm:$0xff] }
 0x41e   : > { %v1727_v24 = vpop.f32.mrf.mxu2  ;;  %v10840_v42 = vperm.slane %v13700_v12, 1 }
 0x41f   : > { %v2637_v53 = vmax.f32 %v2330_v62, 0.0  ;;  %v1728_v19 = vadd.f32 %v1727_v24, %v10472_v35  ;;  %v1836_v23 = vpop.f32.mrf.mxu3  ;;  %v8162_v35 = vor.u32 %v9075_v11, %v8159_v25  ;;  %v2226_v24 = vadd.f32 %v10678_v17, %v10636_v2  ;;  %v13702_v17 = vld [vmem:[#allocation70_spill] sm:$0xff] }
 0x420   : > { %v10830_v60 = vpop.f32.mrf.mxu0 }
 0x421   : > { %v1837_v32 = vadd.f32 %v1836_v23, %v1728_v19  ;;  %v10832_v7 = vpack.c.bf16 %v2637_v53, %v2635_v45  ;;  %3137 = vmatpush.bf16.msra.mxu2 %v8162_v35 }
 0x423   : > { %13699 = vst [vmem:[#allocation68_spill] sm:$0xff] %v10832_v7  ;;  %v1918_v8 = vmax.f32 %v1837_v32, 0.0  ;;  %2425 = vmatmul.bf16.gmra.mxu2 %v10428_v13  ;;  %2963 = vmatmul.bf16.gmra.mxu0 %v10796_v22  ;;  %v8223_v13 = vld [vmem:[#allocation5 + $0x3b8] sm:$0xf0] }
 0x424   : > { %2534 = vmatmul.bf16.gmra.mxu3 %v10639_v47  ;;  %v2332_v43 = vpop.f32.mrf.mxu1  ;;  %v8226_v26 = vor.u32 %v9091_v37, %v8223_v13  ;;  %v2224_v47 = vadd.f32 %v10668_v57, %v10636_v2 }
 0x425   : > { %v10837_v1 = vpack.c.bf16 %v1918_v8, %v1916_v59 }
 0x426   : > { %v2386_v30 = vpop.f32.mrf.mxu2  ;;  %3246 = vmatpush.bf16.msra.mxu3 %v8226_v26  ;;  %v2333_v45 = vadd.f32 %v2332_v43, %v2224_v47 }
 0x427   : > { %v2495_v50 = vpop.f32.mrf.mxu3  ;;  %2371 = vmatmul.bf16.gmra.mxu1 %v10837_v1  ;;  %v2387_v44 = vadd.f32 %v2386_v30, %v10840_v42 }
 0x428   : > { %v10843_v62 = vpop.f32.mrf.mxu0  ;;  %v2639_v32 = vmax.f32 %v2333_v45, 0.0  ;;  %v2231_v45 = vadd.f32 %v10696_v61, %v10636_v2  ;;  %v13704_v61 = vld [vmem:[#allocation71_spill] sm:$0xff] }
 0x429   : > { %v2496_v59 = vadd.f32 %v2495_v50, %v2387_v44 }
 0x42b   : > { %v2596_v37 = vmax.f32 %v2496_v59, 0.0 }
 0x42c   : > { %v2334_v53 = vpop.f32.mrf.mxu1 }
 0x42d   : > { %v2335_v19 = vadd.f32 %v2334_v53, %v2226_v24  ;;  %v2229_v24 = vadd.f32 %v10686_v14, %v10636_v2 }
 0x42e   : > { %v2388_v23 = vpop.f32.mrf.mxu2 }
 0x42f   : > { %v2641_v8 = vmax.f32 %v2335_v19, 0.0  ;;  %v2389_v11 = vadd.f32 %v2388_v23, %v10840_v42  ;;  %v2497_v25 = vpop.f32.mrf.mxu3 }
 0x430   : > { %v10851_v35 = vpop.f32.mrf.mxu0 }
 0x431   : > { %v2498_v12 = vadd.f32 %v2497_v25, %v2389_v11  ;;  %v10853_v57 = vpack.c.bf16 %v2641_v8, %v2639_v32 }
 0x433   : > { %13701 = vst [vmem:[#allocation69_spill] sm:$0xff] %v10853_v57  ;;  %v2598_v13 = vmax.f32 %v2498_v12, 0.0  ;;  %2430 = vmatmul.bf16.gmra.mxu2 %v13702_v17  ;;  %2968 = vmatmul.bf16.gmra.mxu0 %v10814_v55 }
 0x434   : > { %2539 = vmatmul.bf16.gmra.mxu3 %v10657_v39  ;;  %v2337_v43 = vpop.f32.mrf.mxu1 }
 0x435   : > { %v10858_v30 = vpack.c.bf16 %v2598_v13, %v2596_v37  ;;  %v2338_v44 = vadd.f32 %v2337_v43, %v2229_v24  ;;  %v8309_v43 = vld [vmem:[#allocation5 + $0x460] sm:$0xf] }
 0x436   : > { %v2391_v50 = vpop.f32.mrf.mxu2 }
 0x437   : > { %v2500_v26 = vpop.f32.mrf.mxu3  ;;  %3032 = vmatmul.bf16.vlgmr.msrb.gmra.mxu1 %v10858_v30  ;;  %v2392_v53 = vadd.f32 %v2391_v50, %v10840_v42  ;;  %v2643_v32 = vmax.f32 %v2338_v44, 0.0  ;;  %v9114_v50 = vld [vmem:[#allocation5 + $0x464] sm:$0xf0] }
 0x438   : > { %v10861_v47 = vpop.f32.mrf.mxu0  ;;  %v8310_v24 = vor.u32 %v9114_v50, %v8309_v43  ;;  %v9130_v44 = vld [vmem:[#allocation5 + $0x4e4] sm:$0xf0] }
 0x439   : > { %v2501_v59 = vadd.f32 %v2500_v26, %v2392_v53 }
 0x43a   : > { %3672 = vmatpush.bf16.msra.mxu0 %v8310_v24 }
 0x43b   : > { %v2600_v14 = vmax.f32 %v2501_v59, 0.0  ;;  %v2234_v59 = vadd.f32 %v10704_v49, %v10636_v2  ;;  %v9089_v49 = vld [vmem:[#allocation5 + $0x3a4] sm:$0xf] }
 0x43c   : > { %v2339_v19 = vpop.f32.mrf.mxu1 }
 0x43d   : > { %v2340_v39 = vadd.f32 %v2339_v19, %v2231_v45  ;;  %v8373_v45 = vld [vmem:[#allocation5 + $0x4e0] sm:$0xf] }
 0x43e   : > { %v2393_v23 = vpop.f32.mrf.mxu2  ;;  %v8374_v19 = vor.u32 %v9130_v44, %v8373_v45 }
 0x43f   : > { %v2645_v8 = vmax.f32 %v2340_v39, 0.0  ;;  %v2394_v11 = vadd.f32 %v2393_v23, %v10840_v42  ;;  %v2502_v25 = vpop.f32.mrf.mxu3 }
 0x440   : > { %v10869_v12 = vpop.f32.mrf.mxu0  ;;  %3781 = vmatpush.bf16.msra.mxu1 %v8374_v19 }
 0x441   : > { %v2503_v37 = vadd.f32 %v2502_v25, %v2394_v11  ;;  %v10871_v13 = vpack.c.bf16 %v2645_v8, %v2643_v32  ;;  %v9073_v25 = vld [vmem:[#allocation5 + $0x324] sm:$0xf] }
 0x443   : > { %13703 = vst [vmem:[#allocation63_spill] sm:$0xff] %v10871_v13  ;;  %v2602_v17 = vmax.f32 %v2503_v37, 0.0  ;;  %2435 = vmatmul.bf16.gmra.mxu2 %v13704_v61  ;;  %2973 = vmatmul.bf16.gmra.mxu0 %v10832_v7  ;;  %v8151_v37 = vld [vmem:[#allocation5 + $0x328] sm:$0xf0] }
 0x444   : > { %2544 = vmatmul.bf16.gmra.mxu3 %v10675_v54  ;;  %v2342_v26 = vpop.f32.mrf.mxu1  ;;  %v2236_v54 = vadd.f32 %v10714_v4, %v10636_v2  ;;  %v8215_v7 = vld [vmem:[#allocation5 + $0x3a8] sm:$0xf0] }
 0x445   : > { %v10876_v53 = vpack.c.bf16 %v2602_v17, %v2600_v14  ;;  %v2343_v8 = vadd.f32 %v2342_v26, %v2234_v59  ;;  %v8154_v17 = vor.u32 %v9073_v25, %v8151_v37  ;;  %v8218_v4 = vor.u32 %v9089_v49, %v8215_v7 }
 0x446   : > { %v2396_v39 = vpop.f32.mrf.mxu2 }
 0x447   : > { %v2505_v23 = vpop.f32.mrf.mxu3  ;;  %3037 = vmatmul.bf16.gmra.mxu1 %v10876_v53  ;;  %v2397_v11 = vadd.f32 %v2396_v39, %v10840_v42  ;;  %3138 = vmatpush.bf16.msra.mxu2 %v8154_v17  ;;  %v2647_v50 = vmax.f32 %v2343_v8, 0.0  ;;  %v2241_v17 = vadd.f32 %v10732_v38, %v10636_v2  ;;  %v13708_v38 = vld [vmem:[#allocation73_spill] sm:$0xff] }
 0x448   : > { %v10879_v32 = vpop.f32.mrf.mxu0  ;;  %3247 = vmatpush.bf16.msra.mxu3 %v8218_v4 }
 0x449   : > { %v2506_v24 = vadd.f32 %v2505_v23, %v2397_v11 }
 0x44b   : > { %v2604_v59 = vmax.f32 %v2506_v24, 0.0 }
 0x44c   : > { %v2344_v14 = vpop.f32.mrf.mxu1 }
 0x44d   : > { %v2345_v61 = vadd.f32 %v2344_v14, %v2236_v54  ;;  %v13706_v54 = vld [vmem:[#allocation72_spill] sm:$0xff]  ;;  %v2239_v14 = vadd.f32 %v10722_v16, %v10636_v2 }
 0x44e   : > { %v2398_v43 = vpop.f32.mrf.mxu2 }
 0x44f   : > { %v2649_v45 = vmax.f32 %v2345_v61, 0.0  ;;  %v2399_v44 = vadd.f32 %v2398_v43, %v10840_v42  ;;  %v2507_v19 = vpop.f32.mrf.mxu3 }
 0x450   : > { %v10887_v55 = vpop.f32.mrf.mxu0 }
 0x451   : > { %v2508_v26 = vadd.f32 %v2507_v19, %v2399_v44  ;;  %v10889_v39 = vpack.c.bf16 %v2649_v45, %v2647_v50 }
 0x453   : > { %13705 = vst [vmem:[#allocation70_spill] sm:$0xff] %v10889_v39  ;;  %v2606_v25 = vmax.f32 %v2508_v26, 0.0  ;;  %2440 = vmatmul.bf16.gmra.mxu2 %v13706_v54  ;;  %2978 = vmatmul.bf16.gmra.mxu0 %v10853_v57 }
 0x454   : > { %2549 = vmatmul.bf16.gmra.mxu3 %v10693_v27  ;;  %v2347_v23 = vpop.f32.mrf.mxu1 }
 0x455   : > { %v10894_v8 = vpack.c.bf16 %v2606_v25, %v2604_v59  ;;  %v2348_v61 = vadd.f32 %v2347_v23, %v2239_v14 }
 0x456   : > { %v2401_v11 = vpop.f32.mrf.mxu2 }
 0x457   : > { %v2510_v37 = vpop.f32.mrf.mxu3  ;;  %3042 = vmatmul.bf16.gmra.mxu1 %v10894_v8  ;;  %v2402_v43 = vadd.f32 %v2401_v11, %v10840_v42  ;;  %v2651_v45 = vmax.f32 %v2348_v61, 0.0  ;;  %v2244_v61 = vadd.f32 %v10740_v15, %v10636_v2 }
 0x458   : > { %v10897_v7 = vpop.f32.mrf.mxu0 }
 0x459   : > { %v2511_v44 = vadd.f32 %v2510_v37, %v2402_v43  ;;  %v2246_v43 = vadd.f32 %v10750_v51, %v10636_v2 }
 0x45b   : > { %v2608_v16 = vmax.f32 %v2511_v44, 0.0 }
 0x45c   : > { %v2349_v50 = vpop.f32.mrf.mxu1 }
 0x45d   : > { %v2350_v27 = vadd.f32 %v2349_v50, %v2241_v17 }
 0x45e   : > { %v2403_v24 = vpop.f32.mrf.mxu2 }
 0x45f   : > { %v2653_v19 = vmax.f32 %v2350_v27, 0.0  ;;  %v2404_v49 = vadd.f32 %v2403_v24, %v10840_v42  ;;  %v2512_v4 = vpop.f32.mrf.mxu3  ;;  %v8301_v24 = vld [vmem:[#allocation5 + $0x450] sm:$0xf] }
 0x460   : > { %v10905_v26 = vpop.f32.mrf.mxu0 }
 0x461   : > { %v2513_v59 = vadd.f32 %v2512_v4, %v2404_v49  ;;  %v10907_v25 = vpack.c.bf16 %v2653_v19, %v2651_v45  ;;  %v8365_v19 = vld [vmem:[#allocation5 + $0x4d0] sm:$0xf]  ;;  %v9128_v49 = vld [vmem:[#allocation5 + $0x4d4] sm:$0xf0] }
 0x463   : > { %13707 = vst [vmem:[#allocation71_spill] sm:$0xff] %v10907_v25  ;;  %v2610_v54 = vmax.f32 %v2513_v59, 0.0  ;;  %2445 = vmatmul.bf16.gmra.mxu2 %v13708_v38  ;;  %2983 = vmatmul.bf16.gmra.mxu0 %v10871_v13  ;;  %v8366_v59 = vor.u32 %v9128_v49, %v8365_v19 }
 0x464   : > { %2554 = vmatmul.bf16.gmra.mxu3 %v10711_v29  ;;  %v2352_v23 = vpop.f32.mrf.mxu1  ;;  %v9112_v29 = vld [vmem:[#allocation5 + $0x454] sm:$0xf0] }
 0x465   : > { %v10912_v11 = vpack.c.bf16 %v2610_v54, %v2608_v16  ;;  %v2353_v50 = vadd.f32 %v2352_v23, %v2244_v61  ;;  %v8302_v44 = vor.u32 %v9112_v29, %v8301_v24  ;;  %3782 = vmatpush.bf16.msra.mxu1 %v8366_v59  ;;  %v13710_v29 = vld [vmem:[#allocation58_spill] sm:$0xff]  ;;  %v2249_v59 = vadd.f32 %v10758_v28, %v10636_v2 }
 0x466   : > { %v2406_v37 = vpop.f32.mrf.mxu2 }
 0x467   : > { %v2515_v14 = vpop.f32.mrf.mxu3  ;;  %3047 = vmatmul.bf16.gmra.mxu1 %v10912_v11  ;;  %v2407_v27 = vadd.f32 %v2406_v37, %v10840_v42  ;;  %3673 = vmatpush.bf16.msra.mxu0 %v8302_v44  ;;  %v2655_v54 = vmax.f32 %v2353_v50, 0.0  ;;  %v8143_v50 = vld [vmem:[#allocation5 + $0x318] sm:$0xf0] }
 0x468   : > { %v10915_v17 = vpop.f32.mrf.mxu0 }
 0x469   : > { %v2516_v38 = vadd.f32 %v2515_v14, %v2407_v27  ;;  %v9071_v14 = vld [vmem:[#allocation5 + $0x314] sm:$0xf] }
 0x46b   : > { %v2612_v61 = vmax.f32 %v2516_v38, 0.0 }
 0x46c   : > { %v2354_v45 = vpop.f32.mrf.mxu1 }
 0x46d   : > { %v2355_v4 = vadd.f32 %v2354_v45, %v2246_v43  ;;  %v8146_v45 = vor.u32 %v9071_v14, %v8143_v50 }
 0x46e   : > { %v2408_v16 = vpop.f32.mrf.mxu2 }
 0x46f   : > { %v2657_v13 = vmax.f32 %v2355_v4, 0.0  ;;  %v2409_v15 = vadd.f32 %v2408_v16, %v10840_v42  ;;  %v2517_v57 = vpop.f32.mrf.mxu3  ;;  %3139 = vmatpush.bf16.msra.mxu2 %v8146_v45 }
 0x470   : > { %v10923_v51 = vpop.f32.mrf.mxu0 }
 0x471   : > { %v2518_v23 = vadd.f32 %v2517_v57, %v2409_v15  ;;  %v10925_v37 = vpack.c.bf16 %v2657_v13, %v2655_v54  ;;  %v9087_v57 = vld [vmem:[#allocation5 + $0x394] sm:$0xf]  ;;  %v8207_v13 = vld [vmem:[#allocation5 + $0x398] sm:$0xf0] }
 0x472   : > { %v8210_v4 = vor.u32 %v9087_v57, %v8207_v13 }
 0x473   : > { %13709 = vst [vmem:[#allocation72_spill] sm:$0xff] %v10925_v37  ;;  %v2614_v24 = vmax.f32 %v2518_v23, 0.0  ;;  %2450 = vmatmul.bf16.gmra.mxu2 %v13710_v29  ;;  %2988 = vmatmul.bf16.gmra.mxu0 %v10889_v39 }
 0x474   : > { %2559 = vmatmul.bf16.gmra.mxu3 %v10729_v10  ;;  %v2357_v43 = vpop.f32.mrf.mxu1  ;;  %v2251_v10 = vadd.f32 %v10768_v48, %v10636_v2  ;;  %v13712_v48 = vld [vmem:[#allocation60_spill] sm:$0xff] }
 0x475   : > { %v10930_v27 = vpack.c.bf16 %v2614_v24, %v2612_v61  ;;  %3248 = vmatpush.bf16.msra.mxu3 %v8210_v4  ;;  %v2358_v16 = vadd.f32 %v2357_v43, %v2249_v59 }
 0x476   : > { %v2411_v44 = vpop.f32.mrf.mxu2 }
 0x477   : > { %v2520_v19 = vpop.f32.mrf.mxu3  ;;  %3052 = vmatmul.bf16.gmra.mxu1 %v10930_v27  ;;  %v2412_v54 = vadd.f32 %v2411_v44, %v10840_v42  ;;  %v2659_v61 = vmax.f32 %v2358_v16, 0.0  ;;  %v2254_v16 = vadd.f32 %v10776_v63, %v10636_v2 }
 0x478   : > { %v10933_v49 = vpop.f32.mrf.mxu0 }
 0x479   : > { %v2521_v24 = vadd.f32 %v2520_v19, %v2412_v54  ;;  %v2256_v54 = vadd.f32 %v10786_v0, %v10636_v2  ;;  %v13714_v0 = vld [vmem:[#allocation59_spill] sm:$0xff] }
 0x47b   : > { %v2616_v13 = vmax.f32 %v2521_v24, 0.0 }
 0x47c   : > { %v2359_v38 = vpop.f32.mrf.mxu1 }
 0x47d   : > { %v2360_v15 = vadd.f32 %v2359_v38, %v2251_v10 }
 0x47e   : > { %v2413_v23 = vpop.f32.mrf.mxu2 }
 0x47f   : > { %v2661_v29 = vmax.f32 %v2360_v15, 0.0  ;;  %v2414_v14 = vadd.f32 %v2413_v23, %v10840_v42  ;;  %v2522_v50 = vpop.f32.mrf.mxu3 }
 0x480   : > { %v10941_v45 = vpop.f32.mrf.mxu0 }
 0x481   : > { %v2523_v57 = vadd.f32 %v2522_v50, %v2414_v14  ;;  %v10943_v28 = vpack.c.bf16 %v2661_v29, %v2659_v61 }
 0x483   : > { %13711 = vst [vmem:[#allocation73_spill] sm:$0xff] %v10943_v28  ;;  %v2618_v4 = vmax.f32 %v2523_v57, 0.0  ;;  %2455 = vmatmul.bf16.gmra.mxu2 %v13712_v48  ;;  %2993 = vmatmul.bf16.gmra.mxu0 %v10907_v25 }
 0x484   : > { %2564 = vmatmul.bf16.gmra.mxu3 %v10747_v33  ;;  %v2362_v43 = vpop.f32.mrf.mxu1 }
 0x485   : > { %v10948_v44 = vpack.c.bf16 %v2618_v4, %v2616_v13  ;;  %v2363_v38 = vadd.f32 %v2362_v43, %v2254_v16  ;;  %v8293_v43 = vld [vmem:[#allocation5 + $0x440] sm:$0xf] }
 0x486   : > { %v2416_v19 = vpop.f32.mrf.mxu2 }
 0x487   : > { %v2525_v59 = vpop.f32.mrf.mxu3  ;;  %3057 = vmatmul.bf16.gmra.mxu1 %v10948_v44  ;;  %v2417_v15 = vadd.f32 %v2416_v19, %v10840_v42  ;;  %v2663_v24 = vmax.f32 %v2363_v38, 0.0  ;;  %v9110_v19 = vld [vmem:[#allocation5 + $0x444] sm:$0xf0] }
 0x488   : > { %v10951_v10 = vpop.f32.mrf.mxu0  ;;  %v8294_v16 = vor.u32 %v9110_v19, %v8293_v43  ;;  %v9126_v38 = vld [vmem:[#allocation5 + $0x4c4] sm:$0xf0] }
 0x489   : > { %v2526_v29 = vadd.f32 %v2525_v59, %v2417_v15 }
 0x48a   : > { %3674 = vmatpush.bf16.msra.mxu0 %v8294_v16 }
 0x48b   : > { %v2620_v63 = vmax.f32 %v2526_v29, 0.0  ;;  %v2259_v29 = vadd.f32 %v10794_v56, %v10636_v2 }
 0x48c   : > { %v2364_v23 = vpop.f32.mrf.mxu1 }
 0x48d   : > { %v2365_v33 = vadd.f32 %v2364_v23, %v2256_v54  ;;  %v8357_v54 = vld [vmem:[#allocation5 + $0x4c0] sm:$0xf] }
 0x48e   : > { %v2418_v61 = vpop.f32.mrf.mxu2  ;;  %v8358_v23 = vor.u32 %v9126_v38, %v8357_v54 }
 0x48f   : > { %v2665_v14 = vmax.f32 %v2365_v33, 0.0  ;;  %v2419_v50 = vadd.f32 %v2418_v61, %v10840_v42  ;;  %v2527_v57 = vpop.f32.mrf.mxu3 }
 0x490   : > { %v10959_v13 = vpop.f32.mrf.mxu0  ;;  %3783 = vmatpush.bf16.msra.mxu1 %v8358_v23 }
 0x491   : > { %v2528_v4 = vadd.f32 %v2527_v57, %v2419_v50  ;;  %v10961_v48 = vpack.c.bf16 %v2665_v14, %v2663_v24  ;;  %v8135_v57 = vld [vmem:[#allocation5 + $0x308] sm:$0xf0] }
 0x493   : > { %13713 = vst [vmem:[#allocation58_spill] sm:$0xff] %v10961_v48  ;;  %v2622_v25 = vmax.f32 %v2528_v4, 0.0  ;;  %2460 = vmatmul.bf16.gmra.mxu2 %v13714_v0  ;;  %2998 = vmatmul.bf16.gmra.mxu0 %v10925_v37 }
 0x494   : > { %2569 = vmatmul.bf16.gmra.mxu3 %v10765_v34  ;;  %v2367_v59 = vpop.f32.mrf.mxu1  ;;  %v2261_v34 = vadd.f32 %v10804_v46, %v10636_v2  ;;  %v9085_v46 = vld [vmem:[#allocation5 + $0x384] sm:$0xf] }
 0x495   : > { %v10966_v15 = vpack.c.bf16 %v2622_v25, %v2620_v63  ;;  %v2368_v14 = vadd.f32 %v2367_v59, %v2259_v29  ;;  %v9069_v25 = vld [vmem:[#allocation5 + $0x304] sm:$0xf]  ;;  %v8199_v59 = vld [vmem:[#allocation5 + $0x388] sm:$0xf0] }
 0x496   : > { %v2421_v33 = vpop.f32.mrf.mxu2  ;;  %v8138_v63 = vor.u32 %v9069_v25, %v8135_v57  ;;  %v13715_v25 = vld [vmem:[#allocation61_spill] sm:$0xff] }
 0x497   : > { %v2530_v61 = vpop.f32.mrf.mxu3  ;;  %3062 = vmatmul.bf16.gmra.mxu1 %v10966_v15  ;;  %v2422_v50 = vadd.f32 %v2421_v33, %v10840_v42  ;;  %v2667_v19 = vmax.f32 %v2368_v14, 0.0  ;;  %v8202_v33 = vor.u32 %v9085_v46, %v8199_v59  ;;  %v10997_v46 = vld [vmem:[#allocation7 + $0x6] sm:$0x3] }
 0x498   : > { %v10969_v24 = vpop.f32.mrf.mxu0  ;;  %3140 = vmatpush.bf16.msra.mxu2 %v8138_v63  ;;  %13716 = vst [vmem:[#allocation60_spill] sm:$0xff] %v10997_v46 }
 0x499   : > { %v2531_v16 = vadd.f32 %v2530_v61, %v2422_v50  ;;  %3249 = vmatpush.bf16.msra.mxu3 %v8202_v33 }
 0x49b   : > { %v2624_v39 = vmax.f32 %v2531_v16, 0.0 }
 0x49c   : > { %v2369_v4 = vpop.f32.mrf.mxu1 }
 0x49d   : > { %v2370_v0 = vadd.f32 %v2369_v4, %v2261_v34  ;;  %v2264_v4 = vadd.f32 %v10812_v9, %v10636_v2 }
 0x49e   : > { %v2423_v43 = vpop.f32.mrf.mxu2 }
 0x49f   : > { %v2669_v54 = vmax.f32 %v2370_v0, 0.0  ;;  %v2424_v38 = vadd.f32 %v2423_v43, %v10840_v42  ;;  %v2532_v23 = vpop.f32.mrf.mxu3 }
 0x4a0   : > { %v10977_v56 = vpop.f32.mrf.mxu0 }
 0x4a1   : > { %v2533_v37 = vadd.f32 %v2532_v23, %v2424_v38  ;;  %v10979_v29 = vpack.c.bf16 %v2669_v54, %v2667_v19 }
 0x4a3   : > { %v2626_v22 = vmax.f32 %v2533_v37, 0.0  ;;  %2465 = vmatmul.bf16.gmra.mxu2 %v13715_v25  ;;  %3003 = vmatmul.bf16.gmra.mxu0 %v10943_v28  ;;  %v2266_v37 = vadd.f32 %v10822_v18, %v10636_v2  ;;  %v8285_v2 = vld [vmem:[#allocation5 + $0x430] sm:$0xf]  ;;  %v9108_v18 = vld [vmem:[#allocation5 + $0x434] sm:$0xf0] }
 0x4a4   : > { %2574 = vmatmul.bf16.gmra.mxu3 %v10783_v31  ;;  %v2372_v61 = vpop.f32.mrf.mxu1 }
 0x4a5   : > { %v10984_v34 = vpack.c.bf16 %v2626_v22, %v2624_v39  ;;  %v2373_v63 = vadd.f32 %v2372_v61, %v2264_v4  ;;  %v13717_v61 = vld [vmem:[#allocation62_spill] sm:$0xff] }
 0x4a6   : > { %v2426_v14 = vpop.f32.mrf.mxu2 }
 0x4a7   : > { %v2535_v50 = vpop.f32.mrf.mxu3  ;;  %3067 = vmatmul.bf16.gmra.mxu1 %v10984_v34  ;;  %v2427_v0 = vadd.f32 %v2426_v14, %v10840_v42  ;;  %v2671_v39 = vmax.f32 %v2373_v63, 0.0  ;;  %v8286_v14 = vor.u32 %v9108_v18, %v8285_v2  ;;  %v8349_v2 = vld [vmem:[#allocation5 + $0x4b0] sm:$0xf]  ;;  %v9124_v18 = vld [vmem:[#allocation5 + $0x4b4] sm:$0xf0] }
 0x4a8   : > { %v10987_v57 = vpop.f32.mrf.mxu0 }
 0x4a9   : > { %v2536_v19 = vadd.f32 %v2535_v50, %v2427_v0  ;;  %v11004_v50 = vperm.slane %v10997_v46, 0  ;;  %3675 = vmatpush.bf16.msra.mxu0 %v8286_v14  ;;  %v8277_v0 = vld [vmem:[#allocation5 + $0x420] sm:$0xf] }
 0x4ab   : > { %v2628_v33 = vmax.f32 %v2536_v19, 0.0 }
 0x4ac   : > { %v2374_v31 = vpop.f32.mrf.mxu1 }
 0x4ad   : > { %v2375_v43 = vadd.f32 %v2374_v31, %v2266_v37  ;;  %v9106_v31 = vld [vmem:[#allocation5 + $0x424] sm:$0xf0] }
 0x4ae   : > { %v2428_v22 = vpop.f32.mrf.mxu2 }
 0x4af   : > { %v2673_v16 = vmax.f32 %v2375_v43, 0.0  ;;  %v2429_v54 = vadd.f32 %v2428_v22, %v10840_v42  ;;  %v2537_v38 = vpop.f32.mrf.mxu3  ;;  %v8278_v22 = vor.u32 %v9106_v31, %v8277_v0  ;;  %v8261_v31 = vld [vmem:[#allocation5 + $0x400] sm:$0xf] }
 0x4b0   : > { %v10995_v23 = vpop.f32.mrf.mxu0 }
 0x4b1   : > { %v2538_v9 = vadd.f32 %v2537_v38, %v2429_v54  ;;  %v10999_v59 = vpack.c.bf16 %v2673_v16, %v2671_v39  ;;  %v2925_v39 = vadd.f32 %v10830_v60, %v11004_v50  ;;  %3676 = vmatpush.bf16.msra.mxu0 %v8278_v22  ;;  %v8269_v54 = vld [vmem:[#allocation5 + $0x410] sm:$0xf]  ;;  %v2927_v38 = vadd.f32 %v10843_v62, %v11004_v50  ;;  %v9102_v22 = vld [vmem:[#allocation5 + $0x404] sm:$0xf0] }
 0x4b2   : > { %v8262_v62 = vor.u32 %v9102_v22, %v8261_v31 }
 0x4b3   : > { %v2630_v25 = vmax.f32 %v2538_v9, 0.0  ;;  %2470 = vmatmul.bf16.gmra.mxu2 %v13717_v61  ;;  %3008 = vmatmul.bf16.gmra.mxu0 %v10961_v48  ;;  %v8350_v61 = vor.u32 %v9124_v18, %v8349_v2 }
 0x4b4   : > { %2579 = vmatmul.bf16.gmra.mxu3 %v10801_v6  ;;  %v3033_v4 = vpop.f32.mrf.mxu1  ;;  %v9104_v6 = vld [vmem:[#allocation5 + $0x414] sm:$0xf0] }
 0x4b5   : > { %v11007_v37 = vpack.c.bf16 %v2630_v25, %v2628_v33  ;;  %v3034_v16 = vadd.f32 %v3033_v4, %v2925_v39  ;;  %v8270_v33 = vor.u32 %v9104_v6, %v8269_v54  ;;  %3784 = vmatpush.bf16.msra.mxu1 %v8350_v61 }
 0x4b6   : > { %v2431_v63 = vpop.f32.mrf.mxu2 }
 0x4b7   : > { %v2540_v43 = vpop.f32.mrf.mxu3  ;;  %3072 = vmatmul.bf16.gmra.mxu1 %v11007_v37  ;;  %v2432_v9 = vadd.f32 %v2431_v63, %v10840_v42  ;;  %3677 = vmatpush.bf16.msra.mxu0 %v8270_v33  ;;  %v3351_v0 = vmax.f32 %v3034_v16, 0.0  ;;  %v9115_v16 = vld [vmem:[#allocation5 + $0x474] sm:$0xf] }
 0x4b8   : > { %v11012_v19 = vpop.f32.mrf.mxu0 }
 0x4b9   : > { %v2541_v4 = vadd.f32 %v2540_v43, %v2432_v9  ;;  %v8319_v9 = vld [vmem:[#allocation5 + $0x478] sm:$0xf0] }
 0x4ba   : > { %v8322_v18 = vor.u32 %v9115_v16, %v8319_v9 }
 0x4bb   : > { %3678 = vmatpush.bf16.msra.mxu0 %v8262_v62  ;;  %v2632_v6 = vmax.f32 %v2541_v4, 0.0 }
 0x4bc   : > { %v3035_v25 = vpop.f32.mrf.mxu1  ;;  %3889 = vmatpush.bf16.msrb.mxu2 %v8322_v18 }
 0x4bd   : > { %v3036_v14 = vadd.f32 %v3035_v25, %v2927_v38 }
 0x4be   : > { %v2433_v60 = vpop.f32.mrf.mxu2 }
 0x4bf   : > { %v3353_v39 = vmax.f32 %v3036_v14, 0.0  ;;  %v2434_v48 = vadd.f32 %v2433_v60, %v10840_v42  ;;  %v2542_v28 = vpop.f32.mrf.mxu3  ;;  %v2930_v14 = vadd.f32 %v10851_v35, %v11004_v50 }
 0x4c0   : > { %v11018_v46 = vpop.f32.mrf.mxu0 }
 0x4c1   : > { %v11020_v63 = vpack.c.bf16 %v3353_v39, %v3351_v0  ;;  %v2543_v54 = vadd.f32 %v2542_v28, %v2434_v48  ;;  %v9131_v28 = vld [vmem:[#allocation5 + $0x4f4] sm:$0xf]  ;;  %v8383_v48 = vld [vmem:[#allocation5 + $0x4f8] sm:$0xf0] }
 0x4c3   : > { %13718 = vst [vmem:[#allocation59_spill] sm:$0xff] %v11020_v63  ;;  %v2634_v38 = vmax.f32 %v2543_v54, 0.0  ;;  %2475 = vmatmul.bf16.gmra.mxu2 %v10611_v36  ;;  %3013 = vmatmul.bf16.gmra.mxu0 %v10979_v29  ;;  %v8386_v36 = vor.u32 %v9131_v28, %v8383_v48 }
 0x4c4   : > { %2584 = vmatmul.bf16.gmra.mxu3 %v10819_v40  ;;  %v3038_v43 = vpop.f32.mrf.mxu1  ;;  %v2932_v40 = vadd.f32 %v10861_v47, %v11004_v50  ;;  %v13719_v47 = vld [vmem:[#allocation64_spill] sm:$0xff] }
 0x4c5   : > { %v11025_v2 = vpack.c.bf16 %v2634_v38, %v2632_v6  ;;  %3998 = vmatpush.bf16.msrb.mxu3 %v8386_v36  ;;  %v3039_v0 = vadd.f32 %v3038_v43, %v2930_v14  ;;  %v2935_v14 = vadd.f32 %v10869_v12, %v11004_v50 }
 0x4c6   : > { %v2436_v33 = vpop.f32.mrf.mxu2 }
 0x4c7   : > { %v2545_v25 = vpop.f32.mrf.mxu3  ;;  %3077 = vmatmul.bf16.gmra.mxu1 %v11025_v2  ;;  %v2437_v60 = vadd.f32 %v2436_v33, %v10840_v42  ;;  %v3355_v39 = vmax.f32 %v3039_v0, 0.0 }
 0x4c8   : > { %v11028_v61 = vpop.f32.mrf.mxu0 }
 0x4c9   : > { %v2546_v62 = vadd.f32 %v2545_v25, %v2437_v60 }
 0x4cb   : > { %v2636_v18 = vmax.f32 %v2546_v62, 0.0 }
 0x4cc   : > { %v3040_v31 = vpop.f32.mrf.mxu1 }
 0x4cd   : > { %v3041_v22 = vadd.f32 %v3040_v31, %v2932_v40  ;;  %v2937_v40 = vadd.f32 %v10879_v32, %v11004_v50  ;;  %v13720_v32 = vld [vmem:[#allocation65_spill] sm:$0xff] }
 0x4ce   : > { %v2438_v4 = vpop.f32.mrf.mxu2 }
 0x4cf   : > { %v3357_v54 = vmax.f32 %v3041_v22, 0.0  ;;  %v2439_v6 = vadd.f32 %v2438_v4, %v10840_v42  ;;  %v2547_v38 = vpop.f32.mrf.mxu3 }
 0x4d0   : > { %v11036_v16 = vpop.f32.mrf.mxu0 }
 0x4d1   : > { %v2548_v9 = vadd.f32 %v2547_v38, %v2439_v6  ;;  %v11038_v35 = vpack.c.bf16 %v3357_v54, %v3355_v39 }
 0x4d3   : > { %v2638_v28 = vmax.f32 %v2548_v9, 0.0  ;;  %2480 = vmatmul.bf16.gmra.mxu2 %v13719_v47  ;;  %3018 = vmatmul.bf16.gmra.mxu0 %v10999_v59  ;;  %v8341_v47 = vld [vmem:[#allocation5 + $0x4a0] sm:$0xf] }
 0x4d4   : > { %2589 = vmatmul.bf16.gmra.mxu3 %v10837_v1  ;;  %v3043_v43 = vpop.f32.mrf.mxu1 }
 0x4d5   : > { %v11043_v33 = vpack.c.bf16 %v2638_v28, %v2636_v18  ;;  %v3044_v0 = vadd.f32 %v3043_v43, %v2935_v14  ;;  %v9122_v43 = vld [vmem:[#allocation5 + $0x4a4] sm:$0xf0] }
 0x4d6   : > { %v2441_v25 = vpop.f32.mrf.mxu2 }
 0x4d7   : > { %v2550_v48 = vpop.f32.mrf.mxu3  ;;  %3082 = vmatmul.bf16.gmra.mxu1 %v11043_v33  ;;  %v2442_v60 = vadd.f32 %v2441_v25, %v10840_v42  ;;  %v3359_v4 = vmax.f32 %v3044_v0, 0.0 }
 0x4d8   : > { %v11046_v36 = vpop.f32.mrf.mxu0 }
 0x4d9   : > { %v2551_v39 = vadd.f32 %v2550_v48, %v2442_v60  ;;  %v8342_v48 = vor.u32 %v9122_v43, %v8341_v47 }
 0x4db   : > { %v2640_v12 = vmax.f32 %v2551_v39, 0.0  ;;  %3785 = vmatpush.bf16.msra.mxu1 %v8342_v48  ;;  %v8311_v39 = vld [vmem:[#allocation5 + $0x468] sm:$0xf0] }
 0x4dc   : > { %v3045_v31 = vpop.f32.mrf.mxu1  ;;  %v8375_v48 = vld [vmem:[#allocation5 + $0x4e8] sm:$0xf0] }
 0x4dd   : > { %v3046_v1 = vadd.f32 %v3045_v31, %v2937_v40  ;;  %v2940_v31 = vadd.f32 %v10887_v55, %v11004_v50  ;;  %v9129_v55 = vld [vmem:[#allocation5 + $0x4e4] sm:$0xf] }
 0x4de   : > { %v2443_v22 = vpop.f32.mrf.mxu2 }
 0x4df   : > { %v3361_v62 = vmax.f32 %v3046_v1, 0.0  ;;  %v2444_v54 = vadd.f32 %v2443_v22, %v10840_v42  ;;  %v2552_v6 = vpop.f32.mrf.mxu3  ;;  %v2942_v1 = vadd.f32 %v10897_v7, %v11004_v50  ;;  %v8378_v7 = vor.u32 %v9129_v55, %v8375_v48 }
 0x4e0   : > { %v11054_v38 = vpop.f32.mrf.mxu0 }
 0x4e1   : > { %v2553_v9 = vadd.f32 %v2552_v6, %v2444_v54  ;;  %v11056_v18 = vpack.c.bf16 %v3361_v62, %v3359_v4  ;;  %v9113_v4 = vld [vmem:[#allocation5 + $0x464] sm:$0xf]  ;;  %3999 = vmatpush.bf16.msrb.mxu3 %v8378_v7 }
 0x4e2   : > { %v8314_v54 = vor.u32 %v9113_v4, %v8311_v39 }
 0x4e3   : > { %v2642_v28 = vmax.f32 %v2553_v9, 0.0  ;;  %3141 = vmatmul.bf16.vlgmr.msra.gmra.mxu2 %v13720_v32  ;;  %3679 = vmatmul.bf16.vlgmr.msra.gmra.mxu0 %v11020_v63 }
 0x4e4   : > { %3250 = vmatmul.bf16.vlgmr.msra.gmra.mxu3 %v10858_v30  ;;  %v3048_v25 = vpop.f32.mrf.mxu1  ;;  %3890 = vmatpush.bf16.msrb.mxu2 %v8314_v54  ;;  %v2947_v54 = vadd.f32 %v10915_v17, %v11004_v50 }
 0x4e5   : > { %v11061_v14 = vpack.c.bf16 %v2642_v28, %v2640_v12  ;;  %v3049_v22 = vadd.f32 %v3048_v25, %v2940_v31 }
 0x4e6   : > { %v2446_v40 = vpop.f32.mrf.mxu2 }
 0x4e7   : > { %v2555_v0 = vpop.f32.mrf.mxu3  ;;  %3087 = vmatmul.bf16.gmra.mxu1 %v11061_v14  ;;  %v2447_v30 = vadd.f32 %v2446_v40, %v10840_v42  ;;  %v3363_v12 = vmax.f32 %v3049_v22, 0.0 }
 0x4e8   : > { %v11064_v60 = vpop.f32.mrf.mxu0 }
 0x4e9   : > { %v2556_v28 = vadd.f32 %v2555_v0, %v2447_v30 }
 0x4eb   : > { %v2644_v31 = vmax.f32 %v2556_v28, 0.0 }
 0x4ec   : > { %v3050_v62 = vpop.f32.mrf.mxu1 }
 0x4ed   : > { %v3051_v6 = vadd.f32 %v3050_v62, %v2942_v1  ;;  %v2945_v62 = vadd.f32 %v10905_v26, %v11004_v50 }
 0x4ee   : > { %v2448_v9 = vpop.f32.mrf.mxu2 }
 0x4ef   : > { %v3365_v32 = vmax.f32 %v3051_v6, 0.0  ;;  %v2449_v47 = vadd.f32 %v2448_v9, %v10840_v42  ;;  %v2557_v43 = vpop.f32.mrf.mxu3 }
 0x4f0   : > { %v11072_v63 = vpop.f32.mrf.mxu0 }
 0x4f1   : > { %v2558_v25 = vadd.f32 %v2557_v43, %v2449_v47  ;;  %v11074_v40 = vpack.c.bf16 %v3365_v32, %v3363_v12 }
 0x4f3   : > { %v2646_v4 = vmax.f32 %v2558_v25, 0.0  ;;  %3146 = vmatmul.bf16.gmra.mxu2 %v10670_v52  ;;  %3684 = vmatmul.bf16.gmra.mxu0 %v11038_v35 }
 0x4f4   : > { %3255 = vmatmul.bf16.gmra.mxu3 %v10876_v53  ;;  %v3053_v0 = vpop.f32.mrf.mxu1 }
 0x4f5   : > { %v11079_v1 = vpack.c.bf16 %v2646_v4, %v2644_v31  ;;  %v3054_v52 = vadd.f32 %v3053_v0, %v2945_v62  ;;  %v2950_v62 = vadd.f32 %v10923_v51, %v11004_v50 }
 0x4f6   : > { %v2451_v22 = vpop.f32.mrf.mxu2 }
 0x4f7   : > { %v2560_v30 = vpop.f32.mrf.mxu3  ;;  %3092 = vmatmul.bf16.gmra.mxu1 %v11079_v1  ;;  %v2452_v6 = vadd.f32 %v2451_v22, %v10840_v42  ;;  %v3367_v28 = vmax.f32 %v3054_v52, 0.0 }
 0x4f8   : > { %v11082_v39 = vpop.f32.mrf.mxu0 }
 0x4f9   : > { %v2561_v32 = vadd.f32 %v2560_v30, %v2452_v6  ;;  %v8333_v6 = vld [vmem:[#allocation5 + $0x490] sm:$0xf] }
 0x4fb   : > { %v2648_v26 = vmax.f32 %v2561_v32, 0.0 }
 0x4fc   : > { %v3055_v9 = vpop.f32.mrf.mxu1 }
 0x4fd   : > { %v3056_v53 = vadd.f32 %v3055_v9, %v2947_v54  ;;  %v2952_v54 = vadd.f32 %v10933_v49, %v11004_v50 }
 0x4fe   : > { %v2453_v12 = vpop.f32.mrf.mxu2 }
 0x4ff   : > { %v3369_v47 = vmax.f32 %v3056_v53, 0.0  ;;  %v2454_v43 = vadd.f32 %v2453_v12, %v10840_v42  ;;  %v2562_v55 = vpop.f32.mrf.mxu3 }
 0x500   : > { %v11090_v48 = vpop.f32.mrf.mxu0 }
 0x501   : > { %v2563_v7 = vadd.f32 %v2562_v55, %v2454_v43  ;;  %v11092_v25 = vpack.c.bf16 %v3369_v47, %v3367_v28 }
 0x503   : > { %v2650_v31 = vmax.f32 %v2563_v7, 0.0  ;;  %3151 = vmatmul.bf16.gmra.mxu2 %v10688_v20  ;;  %3689 = vmatmul.bf16.gmra.mxu0 %v11056_v18 }
 0x504   : > { %3260 = vmatmul.bf16.gmra.mxu3 %v10894_v8  ;;  %v3058_v17 = vpop.f32.mrf.mxu1  ;;  %v9120_v8 = vld [vmem:[#allocation5 + $0x494] sm:$0xf0] }
 0x505   : > { %v11097_v4 = vpack.c.bf16 %v2650_v31, %v2648_v26  ;;  %v3059_v20 = vadd.f32 %v3058_v17, %v2950_v62  ;;  %v8334_v53 = vor.u32 %v9120_v8, %v8333_v6  ;;  %v9111_v62 = vld [vmem:[#allocation5 + $0x454] sm:$0xf] }
 0x506   : > { %v2456_v0 = vpop.f32.mrf.mxu2  ;;  %v9127_v8 = vld [vmem:[#allocation5 + $0x4d4] sm:$0xf] }
 0x507   : > { %v2565_v22 = vpop.f32.mrf.mxu3  ;;  %3097 = vmatmul.bf16.gmra.mxu1 %v11097_v4  ;;  %v2457_v52 = vadd.f32 %v2456_v0, %v10840_v42  ;;  %v3371_v32 = vmax.f32 %v3059_v20, 0.0 }
 0x508   : > { %v11100_v30 = vpop.f32.mrf.mxu0  ;;  %3786 = vmatpush.bf16.msra.mxu1 %v8334_v53 }
 0x509   : > { %v2566_v47 = vadd.f32 %v2565_v22, %v2457_v52  ;;  %v8303_v22 = vld [vmem:[#allocation5 + $0x458] sm:$0xf0] }
 0x50a   : > { %v8306_v20 = vor.u32 %v9111_v62, %v8303_v22 }
 0x50b   : > { %v2652_v31 = vmax.f32 %v2566_v47, 0.0 }
 0x50c   : > { %v3060_v9 = vpop.f32.mrf.mxu1  ;;  %3891 = vmatpush.bf16.msrb.mxu2 %v8306_v20 }
 0x50d   : > { %v3061_v12 = vadd.f32 %v3060_v9, %v2952_v54  ;;  %v8367_v9 = vld [vmem:[#allocation5 + $0x4d8] sm:$0xf0] }
 0x50e   : > { %v2458_v28 = vpop.f32.mrf.mxu2 }
 0x50f   : > { %v3373_v43 = vmax.f32 %v3061_v12, 0.0  ;;  %v2459_v55 = vadd.f32 %v2458_v28, %v10840_v42  ;;  %v2567_v7 = vpop.f32.mrf.mxu3  ;;  %v2955_v12 = vadd.f32 %v10941_v45, %v11004_v50 }
 0x510   : > { %v11108_v51 = vpop.f32.mrf.mxu0 }
 0x511   : > { %v2568_v26 = vadd.f32 %v2567_v7, %v2459_v55  ;;  %v11110_v49 = vpack.c.bf16 %v3373_v43, %v3371_v32 }
 0x513   : > { %v2654_v17 = vmax.f32 %v2568_v26, 0.0  ;;  %3156 = vmatmul.bf16.gmra.mxu2 %v10706_v21  ;;  %3694 = vmatmul.bf16.gmra.mxu0 %v11074_v40  ;;  %v8370_v21 = vor.u32 %v9127_v8, %v8367_v9 }
 0x514   : > { %3265 = vmatmul.bf16.gmra.mxu3 %v10912_v11  ;;  %v3063_v0 = vpop.f32.mrf.mxu1  ;;  %v2957_v11 = vadd.f32 %v10951_v10, %v11004_v50 }
 0x515   : > { %v11115_v54 = vpack.c.bf16 %v2654_v17, %v2652_v31  ;;  %4000 = vmatpush.bf16.msrb.mxu3 %v8370_v21  ;;  %v3064_v28 = vadd.f32 %v3063_v0, %v2955_v12  ;;  %v2960_v12 = vadd.f32 %v10959_v13, %v11004_v50 }
 0x516   : > { %v2461_v52 = vpop.f32.mrf.mxu2 }
 0x517   : > { %v2570_v6 = vpop.f32.mrf.mxu3  ;;  %3102 = vmatmul.bf16.gmra.mxu1 %v11115_v54  ;;  %v2462_v32 = vadd.f32 %v2461_v52, %v10840_v42  ;;  %v3375_v7 = vmax.f32 %v3064_v28, 0.0 }
 0x518   : > { %v11118_v53 = vpop.f32.mrf.mxu0 }
 0x519   : > { %v2571_v26 = vadd.f32 %v2570_v6, %v2462_v32 }
 0x51b   : > { %v2656_v8 = vmax.f32 %v2571_v26, 0.0 }
 0x51c   : > { %v3065_v47 = vpop.f32.mrf.mxu1 }
 0x51d   : > { %v3066_v43 = vadd.f32 %v3065_v47, %v2957_v11  ;;  %v2962_v11 = vadd.f32 %v10969_v24, %v11004_v50  ;;  %v8325_v24 = vld [vmem:[#allocation5 + $0x480] sm:$0xf] }
 0x51e   : > { %v2463_v55 = vpop.f32.mrf.mxu2 }
 0x51f   : > { %v3377_v31 = vmax.f32 %v3066_v43, 0.0  ;;  %v2464_v17 = vadd.f32 %v2463_v55, %v10840_v42  ;;  %v2572_v62 = vpop.f32.mrf.mxu3 }
 0x520   : > { %v11126_v22 = vpop.f32.mrf.mxu0 }
 0x521   : > { %v2573_v20 = vadd.f32 %v2572_v62, %v2464_v17  ;;  %v11128_v45 = vpack.c.bf16 %v3377_v31, %v3375_v7 }
 0x523   : > { %v2658_v9 = vmax.f32 %v2573_v20, 0.0  ;;  %3161 = vmatmul.bf16.gmra.mxu2 %v10724_v5  ;;  %3699 = vmatmul.bf16.gmra.mxu0 %v11092_v25 }
 0x524   : > { %3270 = vmatmul.bf16.gmra.mxu3 %v10930_v27  ;;  %v3068_v10 = vpop.f32.mrf.mxu1 }
 0x525   : > { %v11133_v0 = vpack.c.bf16 %v2658_v9, %v2656_v8  ;;  %v3069_v5 = vadd.f32 %v3068_v10, %v2960_v12  ;;  %v9118_v9 = vld [vmem:[#allocation5 + $0x484] sm:$0xf0] }
 0x526   : > { %v2466_v52 = vpop.f32.mrf.mxu2 }
 0x527   : > { %v2575_v6 = vpop.f32.mrf.mxu3  ;;  %3107 = vmatmul.bf16.gmra.mxu1 %v11133_v0  ;;  %v2467_v28 = vadd.f32 %v2466_v52, %v10840_v42  ;;  %v3379_v43 = vmax.f32 %v3069_v5, 0.0  ;;  %v8326_v52 = vor.u32 %v9118_v9, %v8325_v24  ;;  %v8359_v9 = vld [vmem:[#allocation5 + $0x4c8] sm:$0xf0] }
 0x528   : > { %v11136_v21 = vpop.f32.mrf.mxu0 }
 0x529   : > { %v2576_v55 = vadd.f32 %v2575_v6, %v2467_v28  ;;  %3787 = vmatpush.bf16.msra.mxu1 %v8326_v52  ;;  %v2967_v28 = vadd.f32 %v10987_v57, %v11004_v50 }
 0x52b   : > { %v2660_v13 = vmax.f32 %v2576_v55, 0.0 }
 0x52c   : > { %v3070_v32 = vpop.f32.mrf.mxu1 }
 0x52d   : > { %v3071_v27 = vadd.f32 %v3070_v32, %v2962_v11 }
 0x52e   : > { %v2468_v47 = vpop.f32.mrf.mxu2 }
 0x52f   : > { %v3381_v7 = vmax.f32 %v3071_v27, 0.0  ;;  %v2469_v26 = vadd.f32 %v2468_v47, %v10840_v42  ;;  %v2577_v31 = vpop.f32.mrf.mxu3  ;;  %v9109_v27 = vld [vmem:[#allocation5 + $0x444] sm:$0xf]  ;;  %v8295_v47 = vld [vmem:[#allocation5 + $0x448] sm:$0xf0] }
 0x530   : > { %v11144_v17 = vpop.f32.mrf.mxu0  ;;  %v8298_v55 = vor.u32 %v9109_v27, %v8295_v47 }
 0x531   : > { %v2578_v62 = vadd.f32 %v2577_v31, %v2469_v26  ;;  %v11146_v20 = vpack.c.bf16 %v3381_v7, %v3379_v43 }
 0x532   : > { %3892 = vmatpush.bf16.msrb.mxu2 %v8298_v55  ;;  %v2972_v55 = vadd.f32 %v11012_v19, %v11004_v50 }
 0x533   : > { %13721 = vst [vmem:[#allocation61_spill] sm:$0xff] %v11146_v20  ;;  %v2662_v8 = vmax.f32 %v2578_v62, 0.0  ;;  %3166 = vmatmul.bf16.gmra.mxu2 %v10742_v41  ;;  %3704 = vmatmul.bf16.gmra.mxu0 %v11110_v49  ;;  %v2965_v41 = vadd.f32 %v10977_v56, %v11004_v50  ;;  %v9125_v56 = vld [vmem:[#allocation5 + $0x4c4] sm:$0xf] }
 0x534   : > { %3275 = vmatmul.bf16.gmra.mxu3 %v10948_v44  ;;  %v3073_v10 = vpop.f32.mrf.mxu1  ;;  %v8362_v57 = vor.u32 %v9125_v56, %v8359_v9 }
 0x535   : > { %v11151_v6 = vpack.c.bf16 %v2662_v8, %v2660_v13  ;;  %v3074_v32 = vadd.f32 %v3073_v10, %v2965_v41 }
 0x536   : > { %v2471_v12 = vpop.f32.mrf.mxu2  ;;  %4001 = vmatpush.bf16.msrb.mxu3 %v8362_v57 }
 0x537   : > { %v2580_v11 = vpop.f32.mrf.mxu3  ;;  %3112 = vmatmul.bf16.gmra.mxu1 %v11151_v6  ;;  %v2472_v44 = vadd.f32 %v2471_v12, %v10840_v42  ;;  %v3383_v31 = vmax.f32 %v3074_v32, 0.0 }
 0x538   : > { %v11154_v5 = vpop.f32.mrf.mxu0 }
 0x539   : > { %v2581_v62 = vadd.f32 %v2580_v11, %v2472_v44 }
 0x53b   : > { %v2664_v41 = vmax.f32 %v2581_v62, 0.0 }
 0x53c   : > { %v3075_v43 = vpop.f32.mrf.mxu1 }
 0x53d   : > { %v3076_v7 = vadd.f32 %v3075_v43, %v2967_v28  ;;  %v2970_v43 = vadd.f32 %v10995_v23, %v11004_v50 }
 0x53e   : > { %v2473_v26 = vpop.f32.mrf.mxu2 }
 0x53f   : > { %v3385_v13 = vmax.f32 %v3076_v7, 0.0  ;;  %v2474_v8 = vadd.f32 %v2473_v26, %v10840_v42  ;;  %v2582_v24 = vpop.f32.mrf.mxu3 }
 0x540   : > { %v11162_v52 = vpop.f32.mrf.mxu0 }
 0x541   : > { %v2583_v10 = vadd.f32 %v2582_v24, %v2474_v8  ;;  %v11164_v12 = vpack.c.bf16 %v3385_v13, %v3383_v31 }
 0x543   : > { %13722 = vst [vmem:[#allocation62_spill] sm:$0xff] %v11164_v12  ;;  %v2666_v27 = vmax.f32 %v2583_v10, 0.0  ;;  %3171 = vmatmul.bf16.gmra.mxu2 %v10760_v58  ;;  %3709 = vmatmul.bf16.gmra.mxu0 %v11128_v45 }
 0x544   : > { %3280 = vmatmul.bf16.gmra.mxu3 %v10966_v15  ;;  %v3078_v11 = vpop.f32.mrf.mxu1 }
 0x545   : > { %v11169_v28 = vpack.c.bf16 %v2666_v27, %v2664_v41  ;;  %v3079_v58 = vadd.f32 %v3078_v11, %v2970_v43  ;;  %v2975_v43 = vadd.f32 %v11018_v46, %v11004_v50 }
 0x546   : > { %v2476_v32 = vpop.f32.mrf.mxu2 }
 0x547   : > { %v2585_v44 = vpop.f32.mrf.mxu3  ;;  %3117 = vmatmul.bf16.gmra.mxu1 %v11169_v28  ;;  %v2477_v7 = vadd.f32 %v2476_v32, %v10840_v42  ;;  %v3387_v62 = vmax.f32 %v3079_v58, 0.0 }
 0x548   : > { %v11172_v47 = vpop.f32.mrf.mxu0 }
 0x549   : > { %v2586_v13 = vadd.f32 %v2585_v44, %v2477_v7  ;;  %v8445_v7 = vld [vmem:[#allocation5 + $0x870] sm:$0xf] }
 0x54b   : > { %v2668_v23 = vmax.f32 %v2586_v13, 0.0 }
 0x54c   : > { %v3080_v26 = vpop.f32.mrf.mxu1 }
 0x54d   : > { %v3081_v15 = vadd.f32 %v3080_v26, %v2972_v55  ;;  %v2977_v55 = vadd.f32 %v11028_v61, %v11004_v50 }
 0x54e   : > { %v2478_v31 = vpop.f32.mrf.mxu2 }
 0x54f   : > { %v3389_v8 = vmax.f32 %v3081_v15, 0.0  ;;  %v2479_v24 = vadd.f32 %v2478_v31, %v10840_v42  ;;  %v2587_v56 = vpop.f32.mrf.mxu3  ;;  %v8509_v31 = vld [vmem:[#allocation5 + $0x8f0] sm:$0xf] }
 0x550   : > { %v11180_v9 = vpop.f32.mrf.mxu0 }
 0x551   : > { %v2588_v57 = vadd.f32 %v2587_v56, %v2479_v24  ;;  %v11182_v10 = vpack.c.bf16 %v3389_v8, %v3387_v62  ;;  %v9196_v62 = vld [vmem:[#allocation5 + $0x8f4] sm:$0xf0] }
 0x552   : > { %v8510_v8 = vor.u32 %v9196_v62, %v8509_v31 }
 0x553   : > { %13723 = vst [vmem:[#allocation64_spill] sm:$0xff] %v11182_v10  ;;  %v2670_v41 = vmax.f32 %v2588_v57, 0.0  ;;  %3176 = vmatmul.bf16.gmra.mxu2 %v10778_v3  ;;  %3714 = vmatmul.bf16.gmra.mxu0 %v11146_v20 }
 0x554   : > { %3285 = vmatmul.bf16.gmra.mxu3 %v10984_v34  ;;  %v3083_v19 = vpop.f32.mrf.mxu1  ;;  %v9180_v34 = vld [vmem:[#allocation5 + $0x874] sm:$0xf0]  ;;  %4562 = vmatpush.bf16.msrb.mxu1 %v8510_v8  ;;  %v8351_v8 = vld [vmem:[#allocation5 + $0x4b8] sm:$0xf0] }
 0x555   : > { %v11187_v27 = vpack.c.bf16 %v2670_v41, %v2668_v23  ;;  %v3084_v3 = vadd.f32 %v3083_v19, %v2975_v43  ;;  %v8446_v15 = vor.u32 %v9180_v34, %v8445_v7  ;;  %v13725_v34 = vld [vmem:[#allocation66_spill] sm:$0xff] }
 0x556   : > { %v2481_v11 = vpop.f32.mrf.mxu2 }
 0x557   : > { %v2590_v32 = vpop.f32.mrf.mxu3  ;;  %3122 = vmatmul.bf16.gmra.mxu1 %v11187_v27  ;;  %v2482_v58 = vadd.f32 %v2481_v11, %v10840_v42  ;;  %4453 = vmatpush.bf16.msrb.mxu0 %v8446_v15  ;;  %v3391_v56 = vmax.f32 %v3084_v3, 0.0  ;;  %v8287_v3 = vld [vmem:[#allocation5 + $0x438] sm:$0xf0]  ;;  %v13726_v15 = vld [vmem:[#allocation60_spill] sm:$0xff] }
 0x558   : > { %v11190_v44 = vpop.f32.mrf.mxu0  ;;  %v11208_v31 = vperm.slane %v13726_v15, 1 }
 0x559   : > { %v2591_v57 = vadd.f32 %v2590_v32, %v2482_v58  ;;  %v9107_v32 = vld [vmem:[#allocation5 + $0x434] sm:$0xf] }
 0x55b   : > { %v2672_v43 = vmax.f32 %v2591_v57, 0.0  ;;  %v2982_v57 = vadd.f32 %v11046_v36, %v11004_v50  ;;  %v13728_v36 = vld [vmem:[#allocation67_spill] sm:$0xff] }
 0x55c   : > { %v3085_v26 = vpop.f32.mrf.mxu1 }
 0x55d   : > { %v3086_v13 = vadd.f32 %v3085_v26, %v2977_v55 }
 0x55e   : > { %v2483_v24 = vpop.f32.mrf.mxu2 }
 0x55f   : > { %v3393_v23 = vmax.f32 %v3086_v13, 0.0  ;;  %v2484_v46 = vadd.f32 %v2483_v24, %v10840_v42  ;;  %v2592_v41 = vpop.f32.mrf.mxu3  ;;  %v8290_v42 = vor.u32 %v9107_v32, %v8287_v3  ;;  %v9123_v13 = vld [vmem:[#allocation5 + $0x4b4] sm:$0xf] }
 0x560   : > { %v11198_v61 = vpop.f32.mrf.mxu0 }
 0x561   : > { %v2593_v19 = vadd.f32 %v2592_v41, %v2484_v46  ;;  %v11200_v11 = vpack.c.bf16 %v3393_v23, %v3391_v56  ;;  %3893 = vmatpush.bf16.msrb.mxu2 %v8290_v42  ;;  %v8354_v56 = vor.u32 %v9123_v13, %v8351_v8 }
 0x563   : > { %13724 = vst [vmem:[#allocation65_spill] sm:$0xff] %v11200_v11  ;;  %v2674_v7 = vmax.f32 %v2593_v19, 0.0  ;;  %3181 = vmatmul.bf16.gmra.mxu2 %v13725_v34  ;;  %3719 = vmatmul.bf16.gmra.mxu0 %v11164_v12 }
 0x564   : > { %3290 = vmatmul.bf16.gmra.mxu3 %v11007_v37  ;;  %v3088_v55 = vpop.f32.mrf.mxu1  ;;  %v2980_v37 = vadd.f32 %v11036_v16, %v11004_v50 }
 0x565   : > { %v11205_v58 = vpack.c.bf16 %v2674_v7, %v2672_v43  ;;  %4002 = vmatpush.bf16.msrb.mxu3 %v8354_v56 }
 0x566   : > { %v3142_v26 = vpop.f32.mrf.mxu2  ;;  %v3089_v23 = vadd.f32 %v3088_v55, %v2980_v37 }
 0x567   : > { %v3251_v62 = vpop.f32.mrf.mxu3  ;;  %3127 = vmatmul.bf16.gmra.mxu1 %v11205_v58  ;;  %v3143_v46 = vadd.f32 %v3142_v26, %v11208_v31 }
 0x568   : > { %v11211_v24 = vpop.f32.mrf.mxu0  ;;  %v3395_v7 = vmax.f32 %v3089_v23, 0.0  ;;  %v2985_v23 = vadd.f32 %v11054_v38, %v11004_v50 }
 0x569   : > { %v3252_v34 = vadd.f32 %v3251_v62, %v3143_v46  ;;  %v2987_v46 = vadd.f32 %v11064_v60, %v11004_v50  ;;  %v13730_v60 = vld [vmem:[#allocation68_spill] sm:$0xff] }
 0x56b   : > { %v3352_v8 = vmax.f32 %v3252_v34, 0.0 }
 0x56c   : > { %v3090_v41 = vpop.f32.mrf.mxu1 }
 0x56d   : > { %v3091_v19 = vadd.f32 %v3090_v41, %v2982_v57 }
 0x56e   : > { %v3144_v43 = vpop.f32.mrf.mxu2 }
 0x56f   : > { %v3397_v32 = vmax.f32 %v3091_v19, 0.0  ;;  %v3145_v3 = vadd.f32 %v3144_v43, %v11208_v31  ;;  %v3253_v42 = vpop.f32.mrf.mxu3 }
 0x570   : > { %v11219_v15 = vpop.f32.mrf.mxu0 }
 0x571   : > { %v3254_v13 = vadd.f32 %v3253_v42, %v3145_v3  ;;  %v11221_v16 = vpack.c.bf16 %v3397_v32, %v3395_v7 }
 0x573   : > { %13727 = vst [vmem:[#allocation66_spill] sm:$0xff] %v11221_v16  ;;  %v3354_v56 = vmax.f32 %v3254_v13, 0.0  ;;  %3186 = vmatmul.bf16.gmra.mxu2 %v13728_v36  ;;  %3724 = vmatmul.bf16.gmra.mxu0 %v11182_v10 }
 0x574   : > { %3295 = vmatmul.bf16.gmra.mxu3 %v11025_v2  ;;  %v3093_v55 = vpop.f32.mrf.mxu1 }
 0x575   : > { %v11226_v26 = vpack.c.bf16 %v3354_v56, %v3352_v8  ;;  %v3094_v41 = vadd.f32 %v3093_v55, %v2985_v23  ;;  %v8437_v55 = vld [vmem:[#allocation5 + $0x860] sm:$0xf] }
 0x576   : > { %v3147_v62 = vpop.f32.mrf.mxu2 }
 0x577   : > { %v3256_v37 = vpop.f32.mrf.mxu3  ;;  %3788 = vmatmul.bf16.vlgmr.msra.gmra.mxu1 %v11226_v26  ;;  %v3148_v19 = vadd.f32 %v3147_v62, %v11208_v31  ;;  %v3399_v34 = vmax.f32 %v3094_v41, 0.0  ;;  %v9178_v62 = vld [vmem:[#allocation5 + $0x864] sm:$0xf0] }
 0x578   : > { %v11229_v57 = vpop.f32.mrf.mxu0  ;;  %v8438_v23 = vor.u32 %v9178_v62, %v8437_v55  ;;  %v9194_v41 = vld [vmem:[#allocation5 + $0x8e4] sm:$0xf0] }
 0x579   : > { %v3257_v32 = vadd.f32 %v3256_v37, %v3148_v19 }
 0x57a   : > { %4454 = vmatpush.bf16.msrb.mxu0 %v8438_v23 }
 0x57b   : > { %v3356_v38 = vmax.f32 %v3257_v32, 0.0  ;;  %v2990_v32 = vadd.f32 %v11072_v63, %v11004_v50  ;;  %v9121_v63 = vld [vmem:[#allocation5 + $0x4a4] sm:$0xf] }
 0x57c   : > { %v3095_v43 = vpop.f32.mrf.mxu1 }
 0x57d   : > { %v3096_v2 = vadd.f32 %v3095_v43, %v2987_v46  ;;  %v8501_v46 = vld [vmem:[#allocation5 + $0x8e0] sm:$0xf] }
 0x57e   : > { %v3149_v7 = vpop.f32.mrf.mxu2  ;;  %v8502_v43 = vor.u32 %v9194_v41, %v8501_v46 }
 0x57f   : > { %v3401_v3 = vmax.f32 %v3096_v2, 0.0  ;;  %v3150_v42 = vadd.f32 %v3149_v7, %v11208_v31  ;;  %v3258_v13 = vpop.f32.mrf.mxu3 }
 0x580   : > { %v11237_v8 = vpop.f32.mrf.mxu0  ;;  %4563 = vmatpush.bf16.msrb.mxu1 %v8502_v43 }
 0x581   : > { %v3259_v56 = vadd.f32 %v3258_v13, %v3150_v42  ;;  %v11239_v36 = vpack.c.bf16 %v3401_v3, %v3399_v34  ;;  %v8279_v13 = vld [vmem:[#allocation5 + $0x428] sm:$0xf0] }
 0x583   : > { %13729 = vst [vmem:[#allocation60_spill] sm:$0xff] %v11239_v36  ;;  %v3358_v10 = vmax.f32 %v3259_v56, 0.0  ;;  %3191 = vmatmul.bf16.gmra.mxu2 %v13730_v60  ;;  %3729 = vmatmul.bf16.gmra.mxu0 %v11200_v11  ;;  %v8343_v11 = vld [vmem:[#allocation5 + $0x4a8] sm:$0xf0] }
 0x584   : > { %3300 = vmatmul.bf16.gmra.mxu3 %v11043_v33  ;;  %v3098_v37 = vpop.f32.mrf.mxu1  ;;  %v2992_v33 = vadd.f32 %v11082_v39, %v11004_v50  ;;  %v8346_v39 = vor.u32 %v9121_v63, %v8343_v11 }
 0x585   : > { %v11244_v19 = vpack.c.bf16 %v3358_v10, %v3356_v38  ;;  %v3099_v3 = vadd.f32 %v3098_v37, %v2990_v32  ;;  %v9105_v10 = vld [vmem:[#allocation5 + $0x424] sm:$0xf] }
 0x586   : > { %v3152_v2 = vpop.f32.mrf.mxu2  ;;  %v8282_v38 = vor.u32 %v9105_v10, %v8279_v13  ;;  %4003 = vmatpush.bf16.msrb.mxu3 %v8346_v39 }
 0x587   : > { %v3261_v7 = vpop.f32.mrf.mxu3  ;;  %3793 = vmatmul.bf16.gmra.mxu1 %v11244_v19  ;;  %v3153_v42 = vadd.f32 %v3152_v2, %v11208_v31  ;;  %v3403_v62 = vmax.f32 %v3099_v3, 0.0 }
 0x588   : > { %v11247_v34 = vpop.f32.mrf.mxu0  ;;  %3894 = vmatpush.bf16.msrb.mxu2 %v8282_v38  ;;  %v2997_v38 = vadd.f32 %v11100_v30, %v11004_v50  ;;  %v13734_v30 = vld [vmem:[#allocation63_spill] sm:$0xff] }
 0x589   : > { %v3262_v23 = vadd.f32 %v3261_v7, %v3153_v42 }
 0x58b   : > { %v3360_v32 = vmax.f32 %v3262_v23, 0.0 }
 0x58c   : > { %v3100_v56 = vpop.f32.mrf.mxu1 }
 0x58d   : > { %v3101_v60 = vadd.f32 %v3100_v56, %v2992_v33  ;;  %v13732_v33 = vld [vmem:[#allocation69_spill] sm:$0xff]  ;;  %v2995_v56 = vadd.f32 %v11090_v48, %v11004_v50 }
 0x58e   : > { %v3154_v55 = vpop.f32.mrf.mxu2 }
 0x58f   : > { %v3405_v46 = vmax.f32 %v3101_v60, 0.0  ;;  %v3155_v41 = vadd.f32 %v3154_v55, %v11208_v31  ;;  %v3263_v43 = vpop.f32.mrf.mxu3 }
 0x590   : > { %v11255_v12 = vpop.f32.mrf.mxu0 }
 0x591   : > { %v3264_v37 = vadd.f32 %v3263_v43, %v3155_v41  ;;  %v11257_v2 = vpack.c.bf16 %v3405_v46, %v3403_v62 }
 0x593   : > { %13731 = vst [vmem:[#allocation67_spill] sm:$0xff] %v11257_v2  ;;  %v3362_v10 = vmax.f32 %v3264_v37, 0.0  ;;  %3196 = vmatmul.bf16.gmra.mxu2 %v13732_v33  ;;  %3734 = vmatmul.bf16.gmra.mxu0 %v11221_v16 }
 0x594   : > { %3305 = vmatmul.bf16.gmra.mxu3 %v11061_v14  ;;  %v3103_v7 = vpop.f32.mrf.mxu1 }
 0x595   : > { %v11262_v3 = vpack.c.bf16 %v3362_v10, %v3360_v32  ;;  %v3104_v60 = vadd.f32 %v3103_v7, %v2995_v56 }
 0x596   : > { %v3157_v42 = vpop.f32.mrf.mxu2 }
 0x597   : > { %v3266_v13 = vpop.f32.mrf.mxu3  ;;  %3798 = vmatmul.bf16.gmra.mxu1 %v11262_v3  ;;  %v3158_v55 = vadd.f32 %v3157_v42, %v11208_v31  ;;  %v3407_v46 = vmax.f32 %v3104_v60, 0.0  ;;  %v3000_v60 = vadd.f32 %v11108_v51, %v11004_v50 }
 0x598   : > { %v11265_v11 = vpop.f32.mrf.mxu0 }
 0x599   : > { %v3267_v41 = vadd.f32 %v3266_v13, %v3158_v55  ;;  %v3002_v55 = vadd.f32 %v11118_v53, %v11004_v50 }
 0x59b   : > { %v3364_v48 = vmax.f32 %v3267_v41, 0.0 }
 0x59c   : > { %v3105_v62 = vpop.f32.mrf.mxu1 }
 0x59d   : > { %v3106_v14 = vadd.f32 %v3105_v62, %v2997_v38 }
 0x59e   : > { %v3159_v23 = vpop.f32.mrf.mxu2 }
 0x59f   : > { %v3409_v43 = vmax.f32 %v3106_v14, 0.0  ;;  %v3160_v63 = vadd.f32 %v3159_v23, %v11208_v31  ;;  %v3268_v39 = vpop.f32.mrf.mxu3  ;;  %v8429_v23 = vld [vmem:[#allocation5 + $0x850] sm:$0xf] }
 0x5a0   : > { %v11273_v37 = vpop.f32.mrf.mxu0 }
 0x5a1   : > { %v3269_v32 = vadd.f32 %v3268_v39, %v3160_v63  ;;  %v11275_v10 = vpack.c.bf16 %v3409_v43, %v3407_v46  ;;  %v8493_v43 = vld [vmem:[#allocation5 + $0x8d0] sm:$0xf]  ;;  %v9192_v63 = vld [vmem:[#allocation5 + $0x8d4] sm:$0xf0] }
 0x5a3   : > { %13733 = vst [vmem:[#allocation68_spill] sm:$0xff] %v11275_v10  ;;  %v3366_v33 = vmax.f32 %v3269_v32, 0.0  ;;  %3201 = vmatmul.bf16.gmra.mxu2 %v13734_v30  ;;  %3739 = vmatmul.bf16.gmra.mxu0 %v11239_v36  ;;  %v8494_v32 = vor.u32 %v9192_v63, %v8493_v43 }
 0x5a4   : > { %3310 = vmatmul.bf16.gmra.mxu3 %v11079_v1  ;;  %v3108_v7 = vpop.f32.mrf.mxu1  ;;  %v9176_v1 = vld [vmem:[#allocation5 + $0x854] sm:$0xf0] }
 0x5a5   : > { %v11280_v42 = vpack.c.bf16 %v3366_v33, %v3364_v48  ;;  %v3109_v62 = vadd.f32 %v3108_v7, %v3000_v60  ;;  %v8430_v41 = vor.u32 %v9176_v1, %v8429_v23  ;;  %4564 = vmatpush.bf16.msrb.mxu1 %v8494_v32  ;;  %v13736_v1 = vld [vmem:[#allocation70_spill] sm:$0xff]  ;;  %v3005_v32 = vadd.f32 %v11126_v22, %v11004_v50 }
 0x5a6   : > { %v3162_v13 = vpop.f32.mrf.mxu2 }
 0x5a7   : > { %v3271_v56 = vpop.f32.mrf.mxu3  ;;  %3803 = vmatmul.bf16.gmra.mxu1 %v11280_v42  ;;  %v3163_v14 = vadd.f32 %v3162_v13, %v11208_v31  ;;  %4455 = vmatpush.bf16.msrb.mxu0 %v8430_v41  ;;  %v3411_v33 = vmax.f32 %v3109_v62, 0.0  ;;  %v8271_v62 = vld [vmem:[#allocation5 + $0x418] sm:$0xf0] }
 0x5a8   : > { %v11283_v38 = vpop.f32.mrf.mxu0 }
 0x5a9   : > { %v3272_v30 = vadd.f32 %v3271_v56, %v3163_v14  ;;  %v9103_v56 = vld [vmem:[#allocation5 + $0x414] sm:$0xf] }
 0x5ab   : > { %v3368_v60 = vmax.f32 %v3272_v30, 0.0 }
 0x5ac   : > { %v3110_v46 = vpop.f32.mrf.mxu1 }
 0x5ad   : > { %v3111_v39 = vadd.f32 %v3110_v46, %v3002_v55  ;;  %v8274_v46 = vor.u32 %v9103_v56, %v8271_v62 }
 0x5ae   : > { %v3164_v48 = vpop.f32.mrf.mxu2 }
 0x5af   : > { %v3413_v36 = vmax.f32 %v3111_v39, 0.0  ;;  %v3165_v51 = vadd.f32 %v3164_v48, %v11208_v31  ;;  %v3273_v16 = vpop.f32.mrf.mxu3  ;;  %3895 = vmatpush.bf16.msrb.mxu2 %v8274_v46 }
 0x5b0   : > { %v11291_v53 = vpop.f32.mrf.mxu0 }
 0x5b1   : > { %v3274_v7 = vadd.f32 %v3273_v16, %v3165_v51  ;;  %v11293_v13 = vpack.c.bf16 %v3413_v36, %v3411_v33  ;;  %v9119_v16 = vld [vmem:[#allocation5 + $0x494] sm:$0xf]  ;;  %v8335_v36 = vld [vmem:[#allocation5 + $0x498] sm:$0xf0] }
 0x5b2   : > { %v8338_v39 = vor.u32 %v9119_v16, %v8335_v36 }
 0x5b3   : > { %13735 = vst [vmem:[#allocation69_spill] sm:$0xff] %v11293_v13  ;;  %v3370_v23 = vmax.f32 %v3274_v7, 0.0  ;;  %3206 = vmatmul.bf16.gmra.mxu2 %v13736_v1  ;;  %3744 = vmatmul.bf16.gmra.mxu0 %v11257_v2 }
 0x5b4   : > { %3315 = vmatmul.bf16.gmra.mxu3 %v11097_v4  ;;  %v3113_v55 = vpop.f32.mrf.mxu1  ;;  %v3007_v4 = vadd.f32 %v11136_v21, %v11004_v50  ;;  %v13738_v21 = vld [vmem:[#allocation71_spill] sm:$0xff] }
 0x5b5   : > { %v11298_v14 = vpack.c.bf16 %v3370_v23, %v3368_v60  ;;  %4004 = vmatpush.bf16.msrb.mxu3 %v8338_v39  ;;  %v3114_v48 = vadd.f32 %v3113_v55, %v3005_v32 }
 0x5b6   : > { %v3167_v41 = vpop.f32.mrf.mxu2 }
 0x5b7   : > { %v3276_v43 = vpop.f32.mrf.mxu3  ;;  %3808 = vmatmul.bf16.gmra.mxu1 %v11298_v14  ;;  %v3168_v33 = vadd.f32 %v3167_v41, %v11208_v31  ;;  %v3415_v60 = vmax.f32 %v3114_v48, 0.0  ;;  %v3010_v48 = vadd.f32 %v11144_v17, %v11004_v50 }
 0x5b8   : > { %v11301_v63 = vpop.f32.mrf.mxu0 }
 0x5b9   : > { %v3277_v23 = vadd.f32 %v3276_v43, %v3168_v33  ;;  %v3012_v33 = vadd.f32 %v11154_v5, %v11004_v50  ;;  %v13740_v5 = vld [vmem:[#allocation72_spill] sm:$0xff] }
 0x5bb   : > { %v3372_v36 = vmax.f32 %v3277_v23, 0.0 }
 0x5bc   : > { %v3115_v30 = vpop.f32.mrf.mxu1 }
 0x5bd   : > { %v3116_v51 = vadd.f32 %v3115_v30, %v3007_v4 }
 0x5be   : > { %v3169_v7 = vpop.f32.mrf.mxu2 }
 0x5bf   : > { %v3417_v1 = vmax.f32 %v3116_v51, 0.0  ;;  %v3170_v56 = vadd.f32 %v3169_v7, %v11208_v31  ;;  %v3278_v62 = vpop.f32.mrf.mxu3 }
 0x5c0   : > { %v11309_v46 = vpop.f32.mrf.mxu0 }
 0x5c1   : > { %v3279_v16 = vadd.f32 %v3278_v62, %v3170_v56  ;;  %v11311_v22 = vpack.c.bf16 %v3417_v1, %v3415_v60 }
 0x5c3   : > { %13737 = vst [vmem:[#allocation63_spill] sm:$0xff] %v11311_v22  ;;  %v3374_v39 = vmax.f32 %v3279_v16, 0.0  ;;  %3211 = vmatmul.bf16.gmra.mxu2 %v13738_v21  ;;  %3749 = vmatmul.bf16.gmra.mxu0 %v11275_v10 }
 0x5c4   : > { %3320 = vmatmul.bf16.gmra.mxu3 %v11115_v54  ;;  %v3118_v55 = vpop.f32.mrf.mxu1 }
 0x5c5   : > { %v11316_v41 = vpack.c.bf16 %v3374_v39, %v3372_v36  ;;  %v3119_v30 = vadd.f32 %v3118_v55, %v3010_v48  ;;  %v8421_v55 = vld [vmem:[#allocation5 + $0x840] sm:$0xf] }
 0x5c6   : > { %v3172_v43 = vpop.f32.mrf.mxu2 }
 0x5c7   : > { %v3281_v32 = vpop.f32.mrf.mxu3  ;;  %3813 = vmatmul.bf16.gmra.mxu1 %v11316_v41  ;;  %v3173_v51 = vadd.f32 %v3172_v43, %v11208_v31  ;;  %v3419_v23 = vmax.f32 %v3119_v30, 0.0  ;;  %v9174_v43 = vld [vmem:[#allocation5 + $0x844] sm:$0xf0] }
 0x5c8   : > { %v11319_v4 = vpop.f32.mrf.mxu0  ;;  %v8422_v48 = vor.u32 %v9174_v43, %v8421_v55  ;;  %v9190_v30 = vld [vmem:[#allocation5 + $0x8c4] sm:$0xf0] }
 0x5c9   : > { %v3282_v1 = vadd.f32 %v3281_v32, %v3173_v51 }
 0x5ca   : > { %4456 = vmatpush.bf16.msrb.mxu0 %v8422_v48 }
 0x5cb   : > { %v3376_v17 = vmax.f32 %v3282_v1, 0.0  ;;  %v3015_v1 = vadd.f32 %v11162_v52, %v11004_v50 }
 0x5cc   : > { %v3120_v7 = vpop.f32.mrf.mxu1 }
 0x5cd   : > { %v3121_v54 = vadd.f32 %v3120_v7, %v3012_v33  ;;  %v8485_v33 = vld [vmem:[#allocation5 + $0x8c0] sm:$0xf] }
 0x5ce   : > { %v3174_v60 = vpop.f32.mrf.mxu2  ;;  %v8486_v7 = vor.u32 %v9190_v30, %v8485_v33 }
 0x5cf   : > { %v3421_v56 = vmax.f32 %v3121_v54, 0.0  ;;  %v3175_v62 = vadd.f32 %v3174_v60, %v11208_v31  ;;  %v3283_v16 = vpop.f32.mrf.mxu3 }
 0x5d0   : > { %v11327_v36 = vpop.f32.mrf.mxu0  ;;  %4565 = vmatpush.bf16.msrb.mxu1 %v8486_v7 }
 0x5d1   : > { %v3284_v39 = vadd.f32 %v3283_v16, %v3175_v62  ;;  %v11329_v21 = vpack.c.bf16 %v3421_v56, %v3419_v23  ;;  %v8263_v16 = vld [vmem:[#allocation5 + $0x408] sm:$0xf0] }
 0x5d3   : > { %13739 = vst [vmem:[#allocation70_spill] sm:$0xff] %v11329_v21  ;;  %v3378_v10 = vmax.f32 %v3284_v39, 0.0  ;;  %3216 = vmatmul.bf16.gmra.mxu2 %v13740_v5  ;;  %3754 = vmatmul.bf16.gmra.mxu0 %v11293_v13 }
 0x5d4   : > { %3325 = vmatmul.bf16.gmra.mxu3 %v11133_v0  ;;  %v3123_v32 = vpop.f32.mrf.mxu1  ;;  %v3017_v0 = vadd.f32 %v11172_v47, %v11004_v50  ;;  %v9117_v47 = vld [vmem:[#allocation5 + $0x484] sm:$0xf] }
 0x5d5   : > { %v11334_v51 = vpack.c.bf16 %v3378_v10, %v3376_v17  ;;  %v3124_v56 = vadd.f32 %v3123_v32, %v3015_v1  ;;  %v9101_v10 = vld [vmem:[#allocation5 + $0x404] sm:$0xf]  ;;  %v8327_v32 = vld [vmem:[#allocation5 + $0x488] sm:$0xf0] }
 0x5d6   : > { %v3177_v54 = vpop.f32.mrf.mxu2  ;;  %v8266_v17 = vor.u32 %v9101_v10, %v8263_v16  ;;  %v13741_v10 = vld [vmem:[#allocation73_spill] sm:$0xff] }
 0x5d7   : > { %v3286_v60 = vpop.f32.mrf.mxu3  ;;  %3818 = vmatmul.bf16.gmra.mxu1 %v11334_v51  ;;  %v3178_v62 = vadd.f32 %v3177_v54, %v11208_v31  ;;  %v3423_v43 = vmax.f32 %v3124_v56, 0.0  ;;  %v8330_v54 = vor.u32 %v9117_v47, %v8327_v32  ;;  %v8413_v32 = vld [vmem:[#allocation5 + $0x830] sm:$0xf] }
 0x5d8   : > { %v11337_v23 = vpop.f32.mrf.mxu0  ;;  %3896 = vmatpush.bf16.msrb.mxu2 %v8266_v17  ;;  %v11361_v17 = vld [vmem:[#allocation7 + $0x8] sm:$0x3] }
 0x5d9   : > { %v3287_v48 = vadd.f32 %v3286_v60, %v3178_v62  ;;  %4005 = vmatpush.bf16.msrb.mxu3 %v8330_v54  ;;  %v9172_v54 = vld [vmem:[#allocation5 + $0x834] sm:$0xf0] }
 0x5db   : > { %v3380_v2 = vmax.f32 %v3287_v48, 0.0 }
 0x5dc   : > { %v3125_v39 = vpop.f32.mrf.mxu1 }
 0x5dd   : > { %v3126_v5 = vadd.f32 %v3125_v39, %v3017_v0  ;;  %v3020_v39 = vadd.f32 %v11180_v9, %v11004_v50 }
 0x5de   : > { %v3179_v55 = vpop.f32.mrf.mxu2 }
 0x5df   : > { %v3425_v33 = vmax.f32 %v3126_v5, 0.0  ;;  %v3180_v30 = vadd.f32 %v3179_v55, %v11208_v31  ;;  %v3288_v7 = vpop.f32.mrf.mxu3  ;;  %v11365_v55 = vperm.slane %v11361_v17, 0 }
 0x5e0   : > { %v11345_v52 = vpop.f32.mrf.mxu0 }
 0x5e1   : > { %v3289_v13 = vadd.f32 %v3288_v7, %v3180_v30  ;;  %v11347_v1 = vpack.c.bf16 %v3425_v33, %v3423_v43 }
 0x5e3   : > { %v3382_v20 = vmax.f32 %v3289_v13, 0.0  ;;  %3221 = vmatmul.bf16.gmra.mxu2 %v13741_v10  ;;  %3759 = vmatmul.bf16.gmra.mxu0 %v11311_v22  ;;  %v3022_v13 = vadd.f32 %v11190_v44, %v11004_v50  ;;  %v3681_v10 = vadd.f32 %v11198_v61, %v11365_v55 }
 0x5e4   : > { %3330 = vmatmul.bf16.gmra.mxu3 %v11151_v6  ;;  %v3128_v60 = vpop.f32.mrf.mxu1 }
 0x5e5   : > { %v11352_v0 = vpack.c.bf16 %v3382_v20, %v3380_v2  ;;  %v3129_v5 = vadd.f32 %v3128_v60, %v3020_v39  ;;  %v13742_v39 = vld [vmem:[#allocation58_spill] sm:$0xff] }
 0x5e6   : > { %v3182_v56 = vpop.f32.mrf.mxu2 }
 0x5e7   : > { %v3291_v62 = vpop.f32.mrf.mxu3  ;;  %3823 = vmatmul.bf16.gmra.mxu1 %v11352_v0  ;;  %v3183_v6 = vadd.f32 %v3182_v56, %v11208_v31  ;;  %v3427_v48 = vmax.f32 %v3129_v5, 0.0 }
 0x5e8   : > { %v11355_v16 = vpop.f32.mrf.mxu0 }
 0x5e9   : > { %v3292_v33 = vadd.f32 %v3291_v62, %v3183_v6  ;;  %v8414_v62 = vor.u32 %v9172_v54, %v8413_v32  ;;  %v9188_v32 = vld [vmem:[#allocation5 + $0x8b4] sm:$0xf0] }
 0x5eb   : > { %v3384_v60 = vmax.f32 %v3292_v33, 0.0  ;;  %4457 = vmatpush.bf16.msrb.mxu0 %v8414_v62 }
 0x5ec   : > { %v3130_v20 = vpop.f32.mrf.mxu1 }
 0x5ed   : > { %v3131_v2 = vadd.f32 %v3130_v20, %v3022_v13 }
 0x5ee   : > { %v3184_v43 = vpop.f32.mrf.mxu2 }
 0x5ef   : > { %v3429_v30 = vmax.f32 %v3131_v2, 0.0  ;;  %v3185_v7 = vadd.f32 %v3184_v43, %v11208_v31  ;;  %v3293_v9 = vpop.f32.mrf.mxu3  ;;  %v8405_v2 = vld [vmem:[#allocation5 + $0x820] sm:$0xf]  ;;  %v9170_v43 = vld [vmem:[#allocation5 + $0x824] sm:$0xf0] }
 0x5f0   : > { %v11368_v47 = vpop.f32.mrf.mxu0  ;;  %v8406_v61 = vor.u32 %v9170_v43, %v8405_v2  ;;  %v9166_v2 = vld [vmem:[#allocation5 + $0x804] sm:$0xf0] }
 0x5f1   : > { %v3294_v50 = vadd.f32 %v3293_v9, %v3185_v7  ;;  %v11370_v44 = vpack.c.bf16 %v3429_v30, %v3427_v48  ;;  %v8397_v30 = vld [vmem:[#allocation5 + $0x810] sm:$0xf]  ;;  %v9168_v7 = vld [vmem:[#allocation5 + $0x814] sm:$0xf0] }
 0x5f2   : > { %4458 = vmatpush.bf16.msrb.mxu0 %v8406_v61  ;;  %v8398_v54 = vor.u32 %v9168_v7, %v8397_v30  ;;  %v3686_v7 = vadd.f32 %v11219_v15, %v11365_v55  ;;  %v9195_v15 = vld [vmem:[#allocation5 + $0x8f4] sm:$0xf] }
 0x5f3   : > { %v3386_v56 = vmax.f32 %v3294_v50, 0.0  ;;  %3226 = vmatmul.bf16.gmra.mxu2 %v13742_v39  ;;  %3764 = vmatmul.bf16.gmra.mxu0 %v11329_v21  ;;  %v8477_v50 = vld [vmem:[#allocation5 + $0x8b0] sm:$0xf] }
 0x5f4   : > { %3335 = vmatmul.bf16.gmra.mxu3 %v11169_v28  ;;  %v3789_v13 = vpop.f32.mrf.mxu1  ;;  %v3683_v28 = vadd.f32 %v11211_v24, %v11365_v55 }
 0x5f5   : > { %v3790_v5 = vadd.f32 %v3789_v13, %v3681_v10  ;;  %v11377_v6 = vpack.c.bf16 %v3386_v56, %v3384_v60  ;;  %v8478_v60 = vor.u32 %v9188_v32, %v8477_v50  ;;  %v8389_v13 = vld [vmem:[#allocation5 + $0x800] sm:$0xf]  ;;  %v8447_v50 = vld [vmem:[#allocation5 + $0x878] sm:$0xf0] }
 0x5f6   : > { %v3187_v20 = vpop.f32.mrf.mxu2  ;;  %4459 = vmatpush.bf16.msrb.mxu0 %v8398_v54  ;;  %v8390_v24 = vor.u32 %v9166_v2, %v8389_v13 }
 0x5f7   : > { %13743 = vst [vmem:[#allocation71_spill] sm:$0xff] %v11377_v6  ;;  %v3296_v48 = vpop.f32.mrf.mxu3  ;;  %3828 = vmatmul.bf16.gmra.mxu1 %v11377_v6  ;;  %v3188_v9 = vadd.f32 %v3187_v20, %v11208_v31  ;;  %v4107_v39 = vmax.f32 %v3790_v5, 0.0 }
 0x5f8   : > { %v11380_v33 = vpop.f32.mrf.mxu0  ;;  %4566 = vmatpush.bf16.msrb.mxu1 %v8478_v60  ;;  %v8511_v60 = vld [vmem:[#allocation5 + $0x8f8] sm:$0xf0] }
 0x5f9   : > { %v3297_v43 = vadd.f32 %v3296_v48, %v3188_v9  ;;  %v9179_v9 = vld [vmem:[#allocation5 + $0x874] sm:$0xf] }
 0x5fa   : > { %4460 = vmatpush.bf16.msrb.mxu0 %v8390_v24 }
 0x5fb   : > { %v3388_v5 = vmax.f32 %v3297_v43, 0.0 }
 0x5fc   : > { %v3791_v10 = vpop.f32.mrf.mxu1 }
 0x5fd   : > { %v3792_v56 = vadd.f32 %v3791_v10, %v3683_v28  ;;  %v8450_v10 = vor.u32 %v9179_v9, %v8447_v50  ;;  %v3691_v9 = vadd.f32 %v11237_v8, %v11365_v55  ;;  %v3693_v8 = vadd.f32 %v11247_v34, %v11365_v55 }
 0x5fe   : > { %v3189_v62 = vpop.f32.mrf.mxu2 }
 0x5ff   : > { %v4109_v61 = vmax.f32 %v3792_v56, 0.0  ;;  %v3190_v21 = vadd.f32 %v3189_v62, %v11208_v31  ;;  %v3298_v22 = vpop.f32.mrf.mxu3  ;;  %4671 = vmatpush.bf16.msra.mxu2 %v8450_v10 }
 0x600   : > { %v11386_v6 = vpop.f32.mrf.mxu0 }
 0x601   : > { %v11388_v20 = vpack.c.bf16 %v4109_v61, %v4107_v39  ;;  %v3299_v30 = vadd.f32 %v3298_v22, %v3190_v21 }
 0x603   : > { %13744 = vst [vmem:[#allocation72_spill] sm:$0xff] %v11388_v20  ;;  %v3390_v28 = vmax.f32 %v3299_v30, 0.0  ;;  %3231 = vmatmul.bf16.gmra.mxu2 %v10979_v29  ;;  %3769 = vmatmul.bf16.gmra.mxu0 %v11347_v1  ;;  %v8514_v29 = vor.u32 %v9195_v15, %v8511_v60 }
 0x604   : > { %3340 = vmatmul.bf16.gmra.mxu3 %v11187_v27  ;;  %v3794_v48 = vpop.f32.mrf.mxu1  ;;  %v3688_v27 = vadd.f32 %v11229_v57, %v11365_v55 }
 0x605   : > { %v3795_v32 = vadd.f32 %v3794_v48, %v3686_v7  ;;  %v11395_v54 = vpack.c.bf16 %v3390_v28, %v3388_v5  ;;  %4780 = vmatpush.bf16.msra.mxu3 %v8514_v29 }
 0x606   : > { %v3192_v22 = vpop.f32.mrf.mxu2 }
 0x607   : > { %v3301_v21 = vpop.f32.mrf.mxu3  ;;  %3833 = vmatmul.bf16.gmra.mxu1 %v11395_v54  ;;  %v3193_v39 = vadd.f32 %v3192_v22, %v11208_v31  ;;  %v4111_v43 = vmax.f32 %v3795_v32, 0.0 }
 0x608   : > { %v11398_v56 = vpop.f32.mrf.mxu0 }
 0x609   : > { %v3302_v61 = vadd.f32 %v3301_v21, %v3193_v39 }
 0x60b   : > { %v3392_v57 = vmax.f32 %v3302_v61, 0.0 }
 0x60c   : > { %v3796_v62 = vpop.f32.mrf.mxu1 }
 0x60d   : > { %v3797_v13 = vadd.f32 %v3796_v62, %v3688_v27 }
 0x60e   : > { %v3194_v2 = vpop.f32.mrf.mxu2 }
 0x60f   : > { %v4113_v24 = vmax.f32 %v3797_v13, 0.0  ;;  %v3195_v30 = vadd.f32 %v3194_v2, %v11208_v31  ;;  %v3303_v7 = vpop.f32.mrf.mxu3 }
 0x610   : > { %v11404_v5 = vpop.f32.mrf.mxu0 }
 0x611   : > { %v3304_v28 = vadd.f32 %v3303_v7, %v3195_v30  ;;  %v11406_v48 = vpack.c.bf16 %v4113_v24, %v4111_v43  ;;  %v3696_v7 = vadd.f32 %v11255_v12, %v11365_v55 }
 0x613   : > { %13745 = vst [vmem:[#allocation73_spill] sm:$0xff] %v11406_v48  ;;  %v3394_v50 = vmax.f32 %v3304_v28, 0.0  ;;  %3236 = vmatmul.bf16.gmra.mxu2 %v10999_v59  ;;  %3774 = vmatmul.bf16.gmra.mxu0 %v11370_v44 }
 0x614   : > { %3345 = vmatmul.bf16.gmra.mxu3 %v11205_v58  ;;  %v3799_v32 = vpop.f32.mrf.mxu1 }
 0x615   : > { %v3800_v10 = vadd.f32 %v3799_v32, %v3691_v9  ;;  %v11413_v22 = vpack.c.bf16 %v3394_v50, %v3392_v57  ;;  %v13747_v9 = vld [vmem:[#allocation59_spill] sm:$0xff]  ;;  %v13748_v57 = vld [vmem:[#allocation18_spill] sm:$0xff]  ;;  %v9186_v32 = vld [vmem:[#allocation5 + $0x8a4] sm:$0xf0] }
 0x616   : > { %v3197_v21 = vpop.f32.mrf.mxu2  ;;  %v8469_v50 = vld [vmem:[#allocation5 + $0x8a0] sm:$0xf] }
 0x617   : > { %v3306_v15 = vpop.f32.mrf.mxu3  ;;  %3838 = vmatmul.bf16.gmra.mxu1 %v11413_v22  ;;  %v3198_v29 = vadd.f32 %v3197_v21, %v11208_v31  ;;  %v4115_v62 = vmax.f32 %v3800_v10, 0.0  ;;  %v8470_v21 = vor.u32 %v9186_v32, %v8469_v50  ;;  %v9193_v50 = vld [vmem:[#allocation5 + $0x8e4] sm:$0xf]  ;;  %v8503_v32 = vld [vmem:[#allocation5 + $0x8e8] sm:$0xf0] }
 0x618   : > { %v11416_v60 = vpop.f32.mrf.mxu0 }
 0x619   : > { %v3307_v58 = vadd.f32 %v3306_v15, %v3198_v29  ;;  %4567 = vmatpush.bf16.msrb.mxu1 %v8470_v21 }
 0x61b   : > { %v3396_v34 = vmax.f32 %v3307_v58, 0.0  ;;  %v8439_v58 = vld [vmem:[#allocation5 + $0x868] sm:$0xf0] }
 0x61c   : > { %v3801_v59 = vpop.f32.mrf.mxu1 }
 0x61d   : > { %v3802_v27 = vadd.f32 %v3801_v59, %v3693_v8 }
 0x61e   : > { %v3199_v39 = vpop.f32.mrf.mxu2 }
 0x61f   : > { %v4117_v13 = vmax.f32 %v3802_v27, 0.0  ;;  %v3200_v2 = vadd.f32 %v3199_v39, %v11208_v31  ;;  %v3308_v43 = vpop.f32.mrf.mxu3  ;;  %v3698_v27 = vadd.f32 %v11265_v11, %v11365_v55  ;;  %v8506_v11 = vor.u32 %v9193_v50, %v8503_v32 }
 0x620   : > { %v11422_v61 = vpop.f32.mrf.mxu0 }
 0x621   : > { %v3309_v24 = vadd.f32 %v3308_v43, %v3200_v2  ;;  %v11424_v30 = vpack.c.bf16 %v4117_v13, %v4115_v62  ;;  %v9177_v62 = vld [vmem:[#allocation5 + $0x864] sm:$0xf]  ;;  %4781 = vmatpush.bf16.msra.mxu3 %v8506_v11 }
 0x622   : > { %v8442_v13 = vor.u32 %v9177_v62, %v8439_v58 }
 0x623   : > { %13746 = vst [vmem:[#allocation58_spill] sm:$0xff] %v11424_v30  ;;  %v3398_v28 = vmax.f32 %v3309_v24, 0.0  ;;  %3897 = vmatmul.bf16.vlgmr.msrb.gmra.mxu2 %v13747_v9  ;;  %4461 = vmatmul.bf16.vlgmr.msrb.gmra.mxu0 %v13748_v57 }
 0x624   : > { %4006 = vmatmul.bf16.vlgmr.msrb.gmra.mxu3 %v11226_v26  ;;  %v3804_v10 = vpop.f32.mrf.mxu1  ;;  %4672 = vmatpush.bf16.msra.mxu2 %v8442_v13 }
 0x625   : > { %v3805_v15 = vadd.f32 %v3804_v10, %v3696_v7  ;;  %v11431_v8 = vpack.c.bf16 %v3398_v28, %v3396_v34 }
 0x626   : > { %v3202_v29 = vpop.f32.mrf.mxu2 }
 0x627   : > { %v3311_v59 = vpop.f32.mrf.mxu3  ;;  %3843 = vmatmul.bf16.gmra.mxu1 %v11431_v8  ;;  %v3203_v39 = vadd.f32 %v3202_v29, %v11208_v31  ;;  %v4119_v24 = vmax.f32 %v3805_v15, 0.0  ;;  %v13750_v15 = vld [vmem:[#allocation22_spill] sm:$0xff] }
 0x628   : > { %v11434_v12 = vpop.f32.mrf.mxu0 }
 0x629   : > { %v3312_v7 = vadd.f32 %v3311_v59, %v3203_v39 }
 0x62b   : > { %v3400_v62 = vmax.f32 %v3312_v7, 0.0 }
 0x62c   : > { %v3806_v26 = vpop.f32.mrf.mxu1 }
 0x62d   : > { %v3807_v2 = vadd.f32 %v3806_v26, %v3698_v27  ;;  %v3701_v27 = vadd.f32 %v11273_v37, %v11365_v55  ;;  %v3703_v37 = vadd.f32 %v11283_v38, %v11365_v55 }
 0x62e   : > { %v3204_v43 = vpop.f32.mrf.mxu2 }
 0x62f   : > { %v4121_v34 = vmax.f32 %v3807_v2, 0.0  ;;  %v3205_v28 = vadd.f32 %v3204_v43, %v11208_v31  ;;  %v3313_v9 = vpop.f32.mrf.mxu3 }
 0x630   : > { %v11440_v10 = vpop.f32.mrf.mxu0 }
 0x631   : > { %v3314_v21 = vadd.f32 %v3313_v9, %v3205_v28  ;;  %v11442_v29 = vpack.c.bf16 %v4121_v34, %v4119_v24 }
 0x633   : > { %13749 = vst [vmem:[#allocation59_spill] sm:$0xff] %v11442_v29  ;;  %v3402_v58 = vmax.f32 %v3314_v21, 0.0  ;;  %3902 = vmatmul.bf16.gmra.mxu2 %v11038_v35  ;;  %4466 = vmatmul.bf16.gmra.mxu0 %v13750_v15 }
 0x634   : > { %4011 = vmatmul.bf16.gmra.mxu3 %v11244_v19  ;;  %v3809_v59 = vpop.f32.mrf.mxu1 }
 0x635   : > { %v3810_v39 = vadd.f32 %v3809_v59, %v3701_v27  ;;  %v11449_v26 = vpack.c.bf16 %v3402_v58, %v3400_v62  ;;  %v3706_v62 = vadd.f32 %v11291_v53, %v11365_v55  ;;  %v13752_v59 = vld [vmem:[#allocation26_spill] sm:$0xff]  ;;  %v3708_v53 = vadd.f32 %v11301_v63, %v11365_v55 }
 0x636   : > { %v3207_v13 = vpop.f32.mrf.mxu2  ;;  %v3711_v63 = vadd.f32 %v11309_v46, %v11365_v55  ;;  %v9191_v46 = vld [vmem:[#allocation5 + $0x8d4] sm:$0xf] }
 0x637   : > { %v3316_v2 = vpop.f32.mrf.mxu3  ;;  %3848 = vmatmul.bf16.gmra.mxu1 %v11449_v26  ;;  %v3208_v24 = vadd.f32 %v3207_v13, %v11208_v31  ;;  %v4123_v28 = vmax.f32 %v3810_v39, 0.0 }
 0x638   : > { %v11452_v43 = vpop.f32.mrf.mxu0 }
 0x639   : > { %v3317_v19 = vadd.f32 %v3316_v2, %v3208_v24 }
 0x63b   : > { %v3404_v38 = vmax.f32 %v3317_v19, 0.0 }
 0x63c   : > { %v3811_v35 = vpop.f32.mrf.mxu1 }
 0x63d   : > { %v3812_v7 = vadd.f32 %v3811_v35, %v3703_v37 }
 0x63e   : > { %v3209_v34 = vpop.f32.mrf.mxu2 }
 0x63f   : > { %v4125_v9 = vmax.f32 %v3812_v7, 0.0  ;;  %v3210_v50 = vadd.f32 %v3209_v34, %v11208_v31  ;;  %v3318_v32 = vpop.f32.mrf.mxu3  ;;  %v9184_v34 = vld [vmem:[#allocation5 + $0x894] sm:$0xf0] }
 0x640   : > { %v11458_v11 = vpop.f32.mrf.mxu0 }
 0x641   : > { %v3319_v21 = vadd.f32 %v3318_v32, %v3210_v50  ;;  %v11460_v27 = vpack.c.bf16 %v4125_v9, %v4123_v28 }
 0x643   : > { %13751 = vst [vmem:[#allocation18_spill] sm:$0xff] %v11460_v27  ;;  %v3406_v58 = vmax.f32 %v3319_v21, 0.0  ;;  %3907 = vmatmul.bf16.gmra.mxu2 %v11056_v18  ;;  %4471 = vmatmul.bf16.gmra.mxu0 %v13752_v59  ;;  %v8461_v18 = vld [vmem:[#allocation5 + $0x890] sm:$0xf] }
 0x644   : > { %4016 = vmatmul.bf16.gmra.mxu3 %v11262_v3  ;;  %v3814_v39 = vpop.f32.mrf.mxu1  ;;  %v8462_v19 = vor.u32 %v9184_v34, %v8461_v18 }
 0x645   : > { %v3815_v13 = vadd.f32 %v3814_v39, %v3706_v62  ;;  %v11467_v2 = vpack.c.bf16 %v3406_v58, %v3404_v38 }
 0x646   : > { %v3212_v37 = vpop.f32.mrf.mxu2  ;;  %4568 = vmatpush.bf16.msrb.mxu1 %v8462_v19 }
 0x647   : > { %v3321_v24 = vpop.f32.mrf.mxu3  ;;  %3853 = vmatmul.bf16.gmra.mxu1 %v11467_v2  ;;  %v3213_v7 = vadd.f32 %v3212_v37, %v11208_v31  ;;  %v4127_v50 = vmax.f32 %v3815_v13, 0.0 }
 0x648   : > { %v11470_v35 = vpop.f32.mrf.mxu0 }
 0x649   : > { %v3322_v32 = vadd.f32 %v3321_v24, %v3213_v7  ;;  %v9175_v24 = vld [vmem:[#allocation5 + $0x854] sm:$0xf]  ;;  %v8431_v7 = vld [vmem:[#allocation5 + $0x858] sm:$0xf0] }
 0x64b   : > { %v3408_v37 = vmax.f32 %v3322_v32, 0.0 }
 0x64c   : > { %v3816_v28 = vpop.f32.mrf.mxu1 }
 0x64d   : > { %v3817_v3 = vadd.f32 %v3816_v28, %v3708_v53  ;;  %v13754_v53 = vld [vmem:[#allocation30_spill] sm:$0xff]  ;;  %v8434_v28 = vor.u32 %v9175_v24, %v8431_v7 }
 0x64e   : > { %v3214_v9 = vpop.f32.mrf.mxu2 }
 0x64f   : > { %v4129_v21 = vmax.f32 %v3817_v3, 0.0  ;;  %v3215_v62 = vadd.f32 %v3214_v9, %v11208_v31  ;;  %v3323_v38 = vpop.f32.mrf.mxu3  ;;  %4673 = vmatpush.bf16.msra.mxu2 %v8434_v28  ;;  %v8495_v9 = vld [vmem:[#allocation5 + $0x8d8] sm:$0xf0] }
 0x650   : > { %v11476_v58 = vpop.f32.mrf.mxu0 }
 0x651   : > { %v3324_v39 = vadd.f32 %v3323_v38, %v3215_v62  ;;  %v11478_v27 = vpack.c.bf16 %v4129_v21, %v4127_v50 }
 0x653   : > { %13753 = vst [vmem:[#allocation22_spill] sm:$0xff] %v11478_v27  ;;  %v3410_v29 = vmax.f32 %v3324_v39, 0.0  ;;  %3912 = vmatmul.bf16.gmra.mxu2 %v11074_v40  ;;  %4476 = vmatmul.bf16.gmra.mxu0 %v13754_v53  ;;  %v8498_v40 = vor.u32 %v9191_v46, %v8495_v9  ;;  %v3716_v46 = vadd.f32 %v11327_v36, %v11365_v55 }
 0x654   : > { %4021 = vmatmul.bf16.gmra.mxu3 %v11280_v42  ;;  %v3819_v13 = vpop.f32.mrf.mxu1  ;;  %v3713_v42 = vadd.f32 %v11319_v4, %v11365_v55  ;;  %v3718_v36 = vadd.f32 %v11337_v23, %v11365_v55 }
 0x655   : > { %v3820_v18 = vadd.f32 %v3819_v13, %v3711_v63  ;;  %v11485_v34 = vpack.c.bf16 %v3410_v29, %v3408_v37  ;;  %4782 = vmatpush.bf16.msra.mxu3 %v8498_v40 }
 0x656   : > { %v3217_v19 = vpop.f32.mrf.mxu2 }
 0x657   : > { %v3326_v3 = vpop.f32.mrf.mxu3  ;;  %3858 = vmatmul.bf16.gmra.mxu1 %v11485_v34  ;;  %v3218_v32 = vadd.f32 %v3217_v19, %v11208_v31  ;;  %v4131_v38 = vmax.f32 %v3820_v18, 0.0  ;;  %v13756_v19 = vld [vmem:[#allocation34_spill] sm:$0xff] }
 0x658   : > { %v11488_v50 = vpop.f32.mrf.mxu0 }
 0x659   : > { %v3327_v39 = vadd.f32 %v3326_v3, %v3218_v32 }
 0x65b   : > { %v3412_v4 = vmax.f32 %v3327_v39, 0.0 }
 0x65c   : > { %v3821_v21 = vpop.f32.mrf.mxu1 }
 0x65d   : > { %v3822_v29 = vadd.f32 %v3821_v21, %v3713_v42 }
 0x65e   : > { %v3219_v62 = vpop.f32.mrf.mxu2 }
 0x65f   : > { %v4133_v63 = vmax.f32 %v3822_v29, 0.0  ;;  %v3220_v37 = vadd.f32 %v3219_v62, %v11208_v31  ;;  %v3328_v13 = vpop.f32.mrf.mxu3 }
 0x660   : > { %v11494_v24 = vpop.f32.mrf.mxu0 }
 0x661   : > { %v3329_v7 = vadd.f32 %v3328_v13, %v3220_v37  ;;  %v11496_v28 = vpack.c.bf16 %v4133_v63, %v4131_v38 }
 0x663   : > { %13755 = vst [vmem:[#allocation26_spill] sm:$0xff] %v11496_v28  ;;  %v3414_v9 = vmax.f32 %v3329_v7, 0.0  ;;  %3917 = vmatmul.bf16.gmra.mxu2 %v11092_v25  ;;  %4481 = vmatmul.bf16.gmra.mxu0 %v13756_v19 }
 0x664   : > { %4026 = vmatmul.bf16.gmra.mxu3 %v11298_v14  ;;  %v3824_v18 = vpop.f32.mrf.mxu1 }
 0x665   : > { %v3825_v3 = vadd.f32 %v3824_v18, %v3716_v46  ;;  %v11503_v40 = vpack.c.bf16 %v3414_v9, %v3412_v4  ;;  %v3721_v9 = vadd.f32 %v11345_v52, %v11365_v55 }
 0x666   : > { %v3222_v42 = vpop.f32.mrf.mxu2 }
 0x667   : > { %v3331_v32 = vpop.f32.mrf.mxu3  ;;  %3863 = vmatmul.bf16.gmra.mxu1 %v11503_v40  ;;  %v3223_v29 = vadd.f32 %v3222_v42, %v11208_v31  ;;  %v4135_v39 = vmax.f32 %v3825_v3, 0.0  ;;  %v13758_v42 = vld [vmem:[#allocation38_spill] sm:$0xff]  ;;  %v8453_v3 = vld [vmem:[#allocation5 + $0x880] sm:$0xf] }
 0x668   : > { %v11506_v21 = vpop.f32.mrf.mxu0 }
 0x669   : > { %v3332_v14 = vadd.f32 %v3331_v32, %v3223_v29  ;;  %v9182_v32 = vld [vmem:[#allocation5 + $0x884] sm:$0xf0] }
 0x66a   : > { %v8454_v29 = vor.u32 %v9182_v32, %v8453_v3 }
 0x66b   : > { %v3416_v23 = vmax.f32 %v3332_v14, 0.0 }
 0x66c   : > { %v3826_v25 = vpop.f32.mrf.mxu1  ;;  %4569 = vmatpush.bf16.msrb.mxu1 %v8454_v29  ;;  %v9189_v29 = vld [vmem:[#allocation5 + $0x8c4] sm:$0xf] }
 0x66d   : > { %v3827_v62 = vadd.f32 %v3826_v25, %v3718_v36 }
 0x66e   : > { %v3224_v38 = vpop.f32.mrf.mxu2 }
 0x66f   : > { %v4137_v63 = vmax.f32 %v3827_v62, 0.0  ;;  %v3225_v37 = vadd.f32 %v3224_v38, %v11208_v31  ;;  %v3333_v13 = vpop.f32.mrf.mxu3 }
 0x670   : > { %v11512_v7 = vpop.f32.mrf.mxu0 }
 0x671   : > { %v3334_v46 = vadd.f32 %v3333_v13, %v3225_v37  ;;  %v11514_v4 = vpack.c.bf16 %v4137_v63, %v4135_v39  ;;  %v9173_v63 = vld [vmem:[#allocation5 + $0x844] sm:$0xf]  ;;  %v8423_v37 = vld [vmem:[#allocation5 + $0x848] sm:$0xf0] }
 0x672   : > { %v8426_v13 = vor.u32 %v9173_v63, %v8423_v37 }
 0x673   : > { %13757 = vst [vmem:[#allocation30_spill] sm:$0xff] %v11514_v4  ;;  %v3418_v18 = vmax.f32 %v3334_v46, 0.0  ;;  %3922 = vmatmul.bf16.gmra.mxu2 %v11110_v49  ;;  %4486 = vmatmul.bf16.gmra.mxu0 %v13758_v42  ;;  %v3723_v49 = vadd.f32 %v11355_v16, %v11365_v55  ;;  %v8487_v4 = vld [vmem:[#allocation5 + $0x8c8] sm:$0xf0] }
 0x674   : > { %4031 = vmatmul.bf16.gmra.mxu3 %v11316_v41  ;;  %v3829_v36 = vpop.f32.mrf.mxu1  ;;  %4674 = vmatpush.bf16.msra.mxu2 %v8426_v13  ;;  %v8490_v16 = vor.u32 %v9189_v29, %v8487_v4 }
 0x675   : > { %v3830_v25 = vadd.f32 %v3829_v36, %v3721_v9  ;;  %v11521_v62 = vpack.c.bf16 %v3418_v18, %v3416_v23 }
 0x676   : > { %v3227_v38 = vpop.f32.mrf.mxu2  ;;  %4783 = vmatpush.bf16.msra.mxu3 %v8490_v16 }
 0x677   : > { %v3336_v39 = vpop.f32.mrf.mxu3  ;;  %3868 = vmatmul.bf16.gmra.mxu1 %v11521_v62  ;;  %v3228_v14 = vadd.f32 %v3227_v38, %v11208_v31  ;;  %v4139_v23 = vmax.f32 %v3830_v25, 0.0  ;;  %v13760_v25 = vld [vmem:[#allocation42_spill] sm:$0xff] }
 0x678   : > { %v11524_v52 = vpop.f32.mrf.mxu0 }
 0x679   : > { %v3337_v18 = vadd.f32 %v3336_v39, %v3228_v14 }
 0x67b   : > { %v3420_v63 = vmax.f32 %v3337_v18, 0.0 }
 0x67c   : > { %v3831_v41 = vpop.f32.mrf.mxu1 }
 0x67d   : > { %v3832_v46 = vadd.f32 %v3831_v41, %v3723_v49  ;;  %v3726_v49 = vadd.f32 %v11368_v47, %v11365_v55  ;;  %v3728_v47 = vadd.f32 %v11380_v33, %v11365_v55 }
 0x67e   : > { %v3229_v9 = vpop.f32.mrf.mxu2 }
 0x67f   : > { %v4141_v3 = vmax.f32 %v3832_v46, 0.0  ;;  %v3230_v32 = vadd.f32 %v3229_v9, %v11208_v31  ;;  %v3338_v36 = vpop.f32.mrf.mxu3 }
 0x680   : > { %v11530_v28 = vpop.f32.mrf.mxu0 }
 0x681   : > { %v3339_v27 = vadd.f32 %v3338_v36, %v3230_v32  ;;  %v11532_v38 = vpack.c.bf16 %v4141_v3, %v4139_v23 }
 0x683   : > { %13759 = vst [vmem:[#allocation34_spill] sm:$0xff] %v11532_v38  ;;  %v3422_v37 = vmax.f32 %v3339_v27, 0.0  ;;  %3927 = vmatmul.bf16.gmra.mxu2 %v11128_v45  ;;  %4491 = vmatmul.bf16.gmra.mxu0 %v13760_v25 }
 0x684   : > { %4036 = vmatmul.bf16.gmra.mxu3 %v11334_v51  ;;  %v3834_v39 = vpop.f32.mrf.mxu1 }
 0x685   : > { %v3835_v14 = vadd.f32 %v3834_v39, %v3726_v49  ;;  %v11539_v41 = vpack.c.bf16 %v3422_v37, %v3420_v63  ;;  %v3731_v63 = vadd.f32 %v11386_v6, %v11365_v55  ;;  %v13762_v39 = vld [vmem:[#allocation61_spill] sm:$0xff]  ;;  %v3733_v6 = vadd.f32 %v11398_v56, %v11365_v55 }
 0x686   : > { %v3232_v4 = vpop.f32.mrf.mxu2 }
 0x687   : > { %v3341_v13 = vpop.f32.mrf.mxu3  ;;  %3873 = vmatmul.bf16.gmra.mxu1 %v11539_v41  ;;  %v3233_v27 = vadd.f32 %v3232_v4, %v11208_v31  ;;  %v4143_v18 = vmax.f32 %v3835_v14, 0.0  ;;  %v13763_v4 = vld [vmem:[#allocation46_spill] sm:$0xff] }
 0x688   : > { %v11542_v46 = vpop.f32.mrf.mxu0 }
 0x689   : > { %v3342_v51 = vadd.f32 %v3341_v13, %v3233_v27 }
 0x68b   : > { %v3424_v33 = vmax.f32 %v3342_v51, 0.0  ;;  %v9148_v51 = vld [vmem:[#allocation5 + $0x574] sm:$0xf0] }
 0x68c   : > { %v3836_v45 = vpop.f32.mrf.mxu1 }
 0x68d   : > { %v3837_v9 = vadd.f32 %v3836_v45, %v3728_v47 }
 0x68e   : > { %v3234_v23 = vpop.f32.mrf.mxu2 }
 0x68f   : > { %v4145_v3 = vmax.f32 %v3837_v9, 0.0  ;;  %v3235_v32 = vadd.f32 %v3234_v23, %v11208_v31  ;;  %v3343_v36 = vpop.f32.mrf.mxu3 }
 0x690   : > { %v11548_v29 = vpop.f32.mrf.mxu0 }
 0x691   : > { %v3344_v16 = vadd.f32 %v3343_v36, %v3235_v32  ;;  %v11550_v49 = vpack.c.bf16 %v4145_v3, %v4143_v18  ;;  %v8573_v18 = vld [vmem:[#allocation5 + $0x570] sm:$0xf]  ;;  %v9164_v36 = vld [vmem:[#allocation5 + $0x5f4] sm:$0xf0] }
 0x692   : > { %v8574_v32 = vor.u32 %v9148_v51, %v8573_v18  ;;  %v3736_v18 = vadd.f32 %v11404_v5, %v11365_v55 }
 0x693   : > { %13761 = vst [vmem:[#allocation38_spill] sm:$0xff] %v11550_v49  ;;  %v3426_v37 = vmax.f32 %v3344_v16, 0.0  ;;  %3932 = vmatmul.bf16.gmra.mxu2 %v13762_v39  ;;  %4496 = vmatmul.bf16.gmra.mxu0 %v13763_v4 }
 0x694   : > { %4041 = vmatmul.bf16.gmra.mxu3 %v11352_v0  ;;  %v3839_v14 = vpop.f32.mrf.mxu1  ;;  %v8637_v0 = vld [vmem:[#allocation5 + $0x5f0] sm:$0xf]  ;;  %5049 = vmatpush.bf16.msra.mxu0 %v8574_v32  ;;  %v13766_v32 = vld [vmem:[#allocation50_spill] sm:$0xff] }
 0x695   : > { %v3840_v13 = vadd.f32 %v3839_v14, %v3731_v63  ;;  %v11557_v47 = vpack.c.bf16 %v3426_v37, %v3424_v33  ;;  %v8638_v63 = vor.u32 %v9164_v36, %v8637_v0  ;;  %v8415_v0 = vld [vmem:[#allocation5 + $0x838] sm:$0xf0] }
 0x696   : > { %v3237_v27 = vpop.f32.mrf.mxu2 }
 0x697   : > { %v3346_v45 = vpop.f32.mrf.mxu3  ;;  %3878 = vmatmul.bf16.gmra.mxu1 %v11557_v47  ;;  %v3238_v23 = vadd.f32 %v3237_v27, %v11208_v31  ;;  %v4147_v37 = vmax.f32 %v3840_v13, 0.0  ;;  %v11575_v13 = vperm.slane %v11361_v17, 1 }
 0x698   : > { %v11560_v9 = vpop.f32.mrf.mxu0  ;;  %5158 = vmatpush.bf16.msra.mxu1 %v8638_v63 }
 0x699   : > { %v3347_v39 = vadd.f32 %v3346_v45, %v3238_v23  ;;  %v9171_v23 = vld [vmem:[#allocation5 + $0x834] sm:$0xf] }
 0x69a   : > { %v8418_v36 = vor.u32 %v9171_v23, %v8415_v0 }
 0x69b   : > { %v3428_v51 = vmax.f32 %v3347_v39, 0.0 }
 0x69c   : > { %v3841_v3 = vpop.f32.mrf.mxu1  ;;  %4675 = vmatpush.bf16.msra.mxu2 %v8418_v36 }
 0x69d   : > { %v3842_v16 = vadd.f32 %v3841_v3, %v3733_v6  ;;  %v13765_v3 = vld [vmem:[#allocation62_spill] sm:$0xff] }
 0x69e   : > { %v3239_v33 = vpop.f32.mrf.mxu2 }
 0x69f   : > { %v4149_v14 = vmax.f32 %v3842_v16, 0.0  ;;  %v3240_v49 = vadd.f32 %v3239_v33, %v11208_v31  ;;  %v3348_v38 = vpop.f32.mrf.mxu3  ;;  %v13767_v31 = vld [vmem:[#allocation71_spill] sm:$0xff]  ;;  %v9187_v33 = vld [vmem:[#allocation5 + $0x8b4] sm:$0xf] }
 0x6a0   : > { %v11566_v56 = vpop.f32.mrf.mxu0 }
 0x6a1   : > { %v3349_v27 = vadd.f32 %v3348_v38, %v3240_v49  ;;  %v11568_v4 = vpack.c.bf16 %v4149_v14, %v4147_v37  ;;  %v8479_v37 = vld [vmem:[#allocation5 + $0x8b8] sm:$0xf0] }
 0x6a2   : > { %v8482_v39 = vor.u32 %v9187_v33, %v8479_v37  ;;  %v13769_v37 = vld [vmem:[#allocation64_spill] sm:$0xff] }
 0x6a3   : > { %13764 = vst [vmem:[#allocation42_spill] sm:$0xff] %v11568_v4  ;;  %v3430_v6 = vmax.f32 %v3349_v27, 0.0  ;;  %3937 = vmatmul.bf16.gmra.mxu2 %v13765_v3  ;;  %4501 = vmatmul.bf16.gmra.mxu0 %v13766_v32  ;;  %v3738_v27 = vadd.f32 %v11416_v60, %v11365_v55  ;;  %v13770_v60 = vld [vmem:[#allocation54_spill] sm:$0xff]  ;;  %v13774_v4 = vld [vmem:[#allocation65_spill] sm:$0xff] }
 0x6a4   : > { %4046 = vmatmul.bf16.gmra.mxu3 %v13767_v31  ;;  %v3844_v45 = vpop.f32.mrf.mxu1 }
 0x6a5   : > { %v3845_v38 = vadd.f32 %v3844_v45, %v3736_v18  ;;  %v11578_v49 = vpack.c.bf16 %v3430_v6, %v3428_v51  ;;  %4784 = vmatpush.bf16.msra.mxu3 %v8482_v39 }
 0x6a6   : > { %v3898_v16 = vpop.f32.mrf.mxu2 }
 0x6a7   : > { %v3899_v5 = vadd.f32 %v3898_v16, %v11575_v13  ;;  %v4007_v63 = vpop.f32.mrf.mxu3  ;;  %3883 = vmatmul.bf16.gmra.mxu1 %v11578_v49  ;;  %v4151_v3 = vmax.f32 %v3845_v38, 0.0 }
 0x6a8   : > { %v11582_v17 = vpop.f32.mrf.mxu0 }
 0x6a9   : > { %v4008_v14 = vadd.f32 %v4007_v63, %v3899_v5  ;;  %v3741_v5 = vadd.f32 %v11422_v61, %v11365_v55 }
 0x6ab   : > { %v4108_v63 = vmax.f32 %v4008_v14, 0.0  ;;  %v3743_v14 = vadd.f32 %v11434_v12, %v11365_v55  ;;  %v13775_v12 = vld [vmem:[#allocation19_spill] sm:$0xff] }
 0x6ac   : > { %v3846_v18 = vpop.f32.mrf.mxu1 }
 0x6ad   : > { %v3847_v51 = vadd.f32 %v3846_v18, %v3738_v27 }
 0x6ae   : > { %v3900_v6 = vpop.f32.mrf.mxu2 }
 0x6af   : > { %v4153_v31 = vmax.f32 %v3847_v51, 0.0  ;;  %v3901_v45 = vadd.f32 %v3900_v6, %v11575_v13  ;;  %v4009_v23 = vpop.f32.mrf.mxu3 }
 0x6b0   : > { %v11587_v0 = vpop.f32.mrf.mxu0 }
 0x6b1   : > { %v4010_v36 = vadd.f32 %v4009_v23, %v3901_v45  ;;  %v11589_v16 = vpack.c.bf16 %v4153_v31, %v4151_v3  ;;  %v13771_v3 = vld [vmem:[#allocation21_spill] sm:$0xff] }
 0x6b3   : > { %13768 = vst [vmem:[#allocation61_spill] sm:$0xff] %v11589_v16  ;;  %v4110_v33 = vmax.f32 %v4010_v36, 0.0  ;;  %3942 = vmatmul.bf16.gmra.mxu2 %v13769_v37  ;;  %4506 = vmatmul.bf16.gmra.mxu0 %v13770_v60  ;;  %v3746_v16 = vadd.f32 %v11440_v10, %v11365_v55 }
 0x6b4   : > { %4051 = vmatmul.bf16.gmra.mxu3 %v11395_v54  ;;  %v3849_v38 = vpop.f32.mrf.mxu1 }
 0x6b5   : > { %v11596_v39 = vpack.c.bf16 %v4110_v33, %v4108_v63  ;;  %v3850_v27 = vadd.f32 %v3849_v38, %v3741_v5 }
 0x6b6   : > { %v3903_v18 = vpop.f32.mrf.mxu2 }
 0x6b7   : > { %v3904_v51 = vadd.f32 %v3903_v18, %v11575_v13  ;;  %v4012_v6 = vpop.f32.mrf.mxu3  ;;  %4570 = vmatmul.bf16.vlgmr.msrb.gmra.mxu1 %v13771_v3  ;;  %v4155_v54 = vmax.f32 %v3850_v27, 0.0  ;;  %v9146_v27 = vld [vmem:[#allocation5 + $0x564] sm:$0xf0] }
 0x6b8   : > { %v11600_v31 = vpop.f32.mrf.mxu0 }
 0x6b9   : > { %v4013_v61 = vadd.f32 %v4012_v6, %v3904_v51 }
 0x6bb   : > { %v4112_v51 = vmax.f32 %v4013_v61, 0.0 }
 0x6bc   : > { %v3851_v45 = vpop.f32.mrf.mxu1 }
 0x6bd   : > { %v3852_v23 = vadd.f32 %v3851_v45, %v3743_v14  ;;  %v8565_v14 = vld [vmem:[#allocation5 + $0x560] sm:$0xf] }
 0x6be   : > { %v3905_v36 = vpop.f32.mrf.mxu2 }
 0x6bf   : > { %v4157_v37 = vmax.f32 %v3852_v23, 0.0  ;;  %v3906_v63 = vadd.f32 %v3905_v36, %v11575_v13  ;;  %v4014_v5 = vpop.f32.mrf.mxu3  ;;  %v8566_v23 = vor.u32 %v9146_v27, %v8565_v14  ;;  %v8629_v36 = vld [vmem:[#allocation5 + $0x5e0] sm:$0xf]  ;;  %v9169_v14 = vld [vmem:[#allocation5 + $0x824] sm:$0xf] }
 0x6c0   : > { %v11605_v33 = vpop.f32.mrf.mxu0  ;;  %v8407_v27 = vld [vmem:[#allocation5 + $0x828] sm:$0xf0] }
 0x6c1   : > { %13772 = vst [vmem:[#allocation62_spill] sm:$0xff] %v11605_v33  ;;  %v4015_v38 = vadd.f32 %v4014_v5, %v3906_v63  ;;  %v11607_v18 = vpack.c.bf16 %v4157_v37, %v4155_v54  ;;  %v9162_v33 = vld [vmem:[#allocation5 + $0x5e4] sm:$0xf0]  ;;  %5050 = vmatpush.bf16.msra.mxu0 %v8566_v23 }
 0x6c2   : > { %v8630_v54 = vor.u32 %v9162_v33, %v8629_v36  ;;  %v8410_v33 = vor.u32 %v9169_v14, %v8407_v27  ;;  %v13780_v27 = vld [vmem:[#allocation66_spill] sm:$0xff] }
 0x6c3   : > { %13773 = vst [vmem:[#allocation50_spill] sm:$0xff] %v11607_v18  ;;  %v4114_v6 = vmax.f32 %v4015_v38, 0.0  ;;  %3947 = vmatmul.bf16.gmra.mxu2 %v13774_v4  ;;  %4511 = vmatmul.bf16.gmra.mxu0 %v13775_v12  ;;  %v13777_v4 = vld [vmem:[#allocation25_spill] sm:$0xff] }
 0x6c4   : > { %4056 = vmatmul.bf16.gmra.mxu3 %v11413_v22  ;;  %v3854_v45 = vpop.f32.mrf.mxu1  ;;  %5159 = vmatpush.bf16.msra.mxu1 %v8630_v54  ;;  %v3748_v22 = vadd.f32 %v11452_v43, %v11365_v55  ;;  %v8471_v12 = vld [vmem:[#allocation5 + $0x8a8] sm:$0xf0]  ;;  %v3751_v43 = vadd.f32 %v11458_v11, %v11365_v55 }
 0x6c5   : > { %v3855_v63 = vadd.f32 %v3854_v45, %v3746_v16  ;;  %v11614_v37 = vpack.c.bf16 %v4114_v6, %v4112_v51  ;;  %4676 = vmatpush.bf16.msra.mxu2 %v8410_v33 }
 0x6c6   : > { %v3908_v5 = vpop.f32.mrf.mxu2 }
 0x6c7   : > { %13776 = vst [vmem:[#allocation71_spill] sm:$0xff] %v11614_v37  ;;  %v3909_v10 = vadd.f32 %v3908_v5, %v11575_v13  ;;  %v4017_v61 = vpop.f32.mrf.mxu3  ;;  %4575 = vmatmul.bf16.gmra.mxu1 %v13777_v4  ;;  %v4159_v45 = vmax.f32 %v3855_v63, 0.0  ;;  %v9185_v37 = vld [vmem:[#allocation5 + $0x8a4] sm:$0xf]  ;;  %v13781_v63 = vld [vmem:[#allocation23_spill] sm:$0xff] }
 0x6c8   : > { %v11618_v38 = vpop.f32.mrf.mxu0  ;;  %v8474_v54 = vor.u32 %v9185_v37, %v8471_v12 }
 0x6c9   : > { %13778 = vst [vmem:[#allocation64_spill] sm:$0xff] %v11618_v38  ;;  %v4018_v18 = vadd.f32 %v4017_v61, %v3909_v10 }
 0x6ca   : > { %4785 = vmatpush.bf16.msra.mxu3 %v8474_v54 }
 0x6cc   : > { %v3856_v16 = vpop.f32.mrf.mxu1 }
 0x6cd   : > { %v3857_v51 = vadd.f32 %v3856_v16, %v3748_v22  ;;  %v4116_v22 = vmax.f32 %v4018_v18, 0.0  ;;  %v3753_v18 = vadd.f32 %v11470_v35, %v11365_v55  ;;  %v13786_v35 = vld [vmem:[#allocation27_spill] sm:$0xff] }
 0x6ce   : > { %v3910_v6 = vpop.f32.mrf.mxu2 }
 0x6cf   : > { %v4161_v23 = vmax.f32 %v3857_v51, 0.0  ;;  %v3911_v36 = vadd.f32 %v3910_v6, %v11575_v13  ;;  %v4019_v5 = vpop.f32.mrf.mxu3 }
 0x6d0   : > { %v11623_v38 = vpop.f32.mrf.mxu0 }
 0x6d1   : > { %v4020_v10 = vadd.f32 %v4019_v5, %v3911_v36  ;;  %v11625_v61 = vpack.c.bf16 %v4161_v23, %v4159_v45  ;;  %v13782_v45 = vld [vmem:[#allocation29_spill] sm:$0xff] }
 0x6d3   : > { %13779 = vst [vmem:[#allocation54_spill] sm:$0xff] %v11625_v61  ;;  %v4118_v14 = vmax.f32 %v4020_v10, 0.0  ;;  %3952 = vmatmul.bf16.gmra.mxu2 %v13780_v27  ;;  %4516 = vmatmul.bf16.gmra.mxu0 %v13781_v63  ;;  %v13785_v61 = vld [vmem:[#allocation60_spill] sm:$0xff] }
 0x6d4   : > { %4061 = vmatmul.bf16.gmra.mxu3 %v11431_v8  ;;  %v3859_v16 = vpop.f32.mrf.mxu1 }
 0x6d5   : > { %v3860_v33 = vadd.f32 %v3859_v16, %v3751_v43  ;;  %v11632_v51 = vpack.c.bf16 %v4118_v14, %v4116_v22 }
 0x6d6   : > { %v3913_v12 = vpop.f32.mrf.mxu2 }
 0x6d7   : > { %v3914_v37 = vadd.f32 %v3913_v12, %v11575_v13  ;;  %v4022_v6 = vpop.f32.mrf.mxu3  ;;  %4580 = vmatmul.bf16.gmra.mxu1 %v13782_v45  ;;  %v4163_v8 = vmax.f32 %v3860_v33, 0.0  ;;  %v3756_v12 = vadd.f32 %v11476_v58, %v11365_v55 }
 0x6d8   : > { %v11636_v23 = vpop.f32.mrf.mxu0 }
 0x6d9   : > { %v4023_v11 = vadd.f32 %v4022_v6, %v3914_v37 }
 0x6db   : > { %v4120_v37 = vmax.f32 %v4023_v11, 0.0  ;;  %v8557_v11 = vld [vmem:[#allocation5 + $0x550] sm:$0xf] }
 0x6dc   : > { %v3861_v36 = vpop.f32.mrf.mxu1 }
 0x6dd   : > { %v3862_v5 = vadd.f32 %v3861_v36, %v3753_v18 }
 0x6de   : > { %v3915_v54 = vpop.f32.mrf.mxu2 }
 0x6df   : > { %v4165_v10 = vmax.f32 %v3862_v5, 0.0  ;;  %v3916_v43 = vadd.f32 %v3915_v54, %v11575_v13  ;;  %v4024_v22 = vpop.f32.mrf.mxu3 }
 0x6e0   : > { %v11641_v14 = vpop.f32.mrf.mxu0 }
 0x6e1   : > { %13783 = vst [vmem:[#allocation21_spill] sm:$0xff] %v11641_v14  ;;  %v4025_v27 = vadd.f32 %v4024_v22, %v3916_v43  ;;  %v11643_v16 = vpack.c.bf16 %v4165_v10, %v4163_v8  ;;  %v13788_v10 = vld [vmem:[#allocation33_spill] sm:$0xff]  ;;  %v9144_v22 = vld [vmem:[#allocation5 + $0x554] sm:$0xf0] }
 0x6e3   : > { %13784 = vst [vmem:[#allocation65_spill] sm:$0xff] %v11643_v16  ;;  %v4122_v6 = vmax.f32 %v4025_v27, 0.0  ;;  %3957 = vmatmul.bf16.gmra.mxu2 %v13785_v61  ;;  %4521 = vmatmul.bf16.gmra.mxu0 %v13786_v35  ;;  %v3758_v61 = vadd.f32 %v11488_v50, %v11365_v55  ;;  %v8621_v16 = vld [vmem:[#allocation5 + $0x5d0] sm:$0xf] }
 0x6e4   : > { %4066 = vmatmul.bf16.gmra.mxu3 %v11449_v26  ;;  %v3864_v33 = vpop.f32.mrf.mxu1  ;;  %v8558_v26 = vor.u32 %v9144_v22, %v8557_v11  ;;  %v3761_v11 = vadd.f32 %v11494_v24, %v11365_v55  ;;  %v13794_v24 = vld [vmem:[#allocation37_spill] sm:$0xff] }
 0x6e5   : > { %v3865_v18 = vadd.f32 %v3864_v33, %v3756_v12  ;;  %v11650_v36 = vpack.c.bf16 %v4122_v6, %v4120_v37  ;;  %v9160_v12 = vld [vmem:[#allocation5 + $0x5d4] sm:$0xf0] }
 0x6e6   : > { %v3918_v5 = vpop.f32.mrf.mxu2  ;;  %v8622_v6 = vor.u32 %v9160_v12, %v8621_v16  ;;  %5051 = vmatpush.bf16.msra.mxu0 %v8558_v26  ;;  %v13792_v16 = vld [vmem:[#allocation31_spill] sm:$0xff] }
 0x6e7   : > { %13787 = vst [vmem:[#allocation25_spill] sm:$0xff] %v11650_v36  ;;  %v3919_v54 = vadd.f32 %v3918_v5, %v11575_v13  ;;  %v4027_v8 = vpop.f32.mrf.mxu3  ;;  %4585 = vmatmul.bf16.gmra.mxu1 %v13788_v10  ;;  %v4167_v5 = vmax.f32 %v3865_v18, 0.0  ;;  %v8399_v26 = vld [vmem:[#allocation5 + $0x818] sm:$0xf0] }
 0x6e8   : > { %v11654_v43 = vpop.f32.mrf.mxu0  ;;  %5160 = vmatpush.bf16.msra.mxu1 %v8622_v6 }
 0x6e9   : > { %13789 = vst [vmem:[#allocation66_spill] sm:$0xff] %v11654_v43  ;;  %v4028_v58 = vadd.f32 %v4027_v8, %v3919_v54 }
 0x6eb   : > { %v4124_v22 = vmax.f32 %v4028_v58, 0.0  ;;  %v9183_v58 = vld [vmem:[#allocation5 + $0x894] sm:$0xf] }
 0x6ec   : > { %v3866_v27 = vpop.f32.mrf.mxu1 }
 0x6ed   : > { %v3867_v37 = vadd.f32 %v3866_v27, %v3758_v61  ;;  %v13791_v61 = vld [vmem:[#allocation67_spill] sm:$0xff]  ;;  %v9167_v27 = vld [vmem:[#allocation5 + $0x814] sm:$0xf] }
 0x6ee   : > { %v3920_v33 = vpop.f32.mrf.mxu2 }
 0x6ef   : > { %v4169_v36 = vmax.f32 %v3867_v37, 0.0  ;;  %v3921_v35 = vadd.f32 %v3920_v33, %v11575_v13  ;;  %v4029_v14 = vpop.f32.mrf.mxu3  ;;  %v8402_v37 = vor.u32 %v9167_v27, %v8399_v26  ;;  %v8463_v33 = vld [vmem:[#allocation5 + $0x898] sm:$0xf0] }
 0x6f0   : > { %v11659_v54 = vpop.f32.mrf.mxu0 }
 0x6f1   : > { %v4030_v8 = vadd.f32 %v4029_v14, %v3921_v35  ;;  %v11661_v50 = vpack.c.bf16 %v4169_v36, %v4167_v5  ;;  %4677 = vmatpush.bf16.msra.mxu2 %v8402_v37 }
 0x6f3   : > { %13790 = vst [vmem:[#allocation23_spill] sm:$0xff] %v11661_v50  ;;  %v4126_v43 = vmax.f32 %v4030_v8, 0.0  ;;  %3962 = vmatmul.bf16.gmra.mxu2 %v13791_v61  ;;  %4526 = vmatmul.bf16.gmra.mxu0 %v13792_v16  ;;  %v8466_v8 = vor.u32 %v9183_v58, %v8463_v33  ;;  %v13796_v33 = vld [vmem:[#allocation68_spill] sm:$0xff] }
 0x6f4   : > { %4071 = vmatmul.bf16.gmra.mxu3 %v11467_v2  ;;  %v3869_v18 = vpop.f32.mrf.mxu1 }
 0x6f5   : > { %v3870_v12 = vadd.f32 %v3869_v18, %v3761_v11  ;;  %v11668_v6 = vpack.c.bf16 %v4126_v43, %v4124_v22  ;;  %4786 = vmatpush.bf16.msra.mxu3 %v8466_v8  ;;  %v3763_v11 = vadd.f32 %v11506_v21, %v11365_v55  ;;  %v13797_v21 = vld [vmem:[#allocation35_spill] sm:$0xff] }
 0x6f6   : > { %v3923_v14 = vpop.f32.mrf.mxu2 }
 0x6f7   : > { %13793 = vst [vmem:[#allocation29_spill] sm:$0xff] %v11668_v6  ;;  %v3924_v35 = vadd.f32 %v3923_v14, %v11575_v13  ;;  %v4032_v36 = vpop.f32.mrf.mxu3  ;;  %4590 = vmatmul.bf16.gmra.mxu1 %v13794_v24  ;;  %v4171_v18 = vmax.f32 %v3870_v12, 0.0 }
 0x6f8   : > { %v11672_v5 = vpop.f32.mrf.mxu0 }
 0x6f9   : > { %v4033_v2 = vadd.f32 %v4032_v36, %v3924_v35  ;;  %v3766_v35 = vadd.f32 %v11512_v7, %v11365_v55 }
 0x6fb   : > { %v4128_v36 = vmax.f32 %v4033_v2, 0.0  ;;  %v3768_v2 = vadd.f32 %v11524_v52, %v11365_v55  ;;  %v13803_v52 = vld [vmem:[#allocation39_spill] sm:$0xff] }
 0x6fc   : > { %v3871_v61 = vpop.f32.mrf.mxu1 }
 0x6fd   : > { %v3872_v43 = vadd.f32 %v3871_v61, %v3763_v11 }
 0x6fe   : > { %v3925_v22 = vpop.f32.mrf.mxu2 }
 0x6ff   : > { %v4173_v27 = vmax.f32 %v3872_v43, 0.0  ;;  %v3926_v26 = vadd.f32 %v3925_v22, %v11575_v13  ;;  %v4034_v14 = vpop.f32.mrf.mxu3 }
 0x700   : > { %v11677_v50 = vpop.f32.mrf.mxu0 }
 0x701   : > { %v4035_v37 = vadd.f32 %v4034_v14, %v3926_v26  ;;  %v11679_v6 = vpack.c.bf16 %v4173_v27, %v4171_v18  ;;  %v13799_v18 = vld [vmem:[#allocation41_spill] sm:$0xff] }
 0x703   : > { %13795 = vst [vmem:[#allocation60_spill] sm:$0xff] %v11679_v6  ;;  %v4130_v58 = vmax.f32 %v4035_v37, 0.0  ;;  %3967 = vmatmul.bf16.gmra.mxu2 %v13796_v33  ;;  %4531 = vmatmul.bf16.gmra.mxu0 %v13797_v21  ;;  %v3771_v6 = vadd.f32 %v11530_v28, %v11365_v55 }
 0x704   : > { %4076 = vmatmul.bf16.gmra.mxu3 %v11485_v34  ;;  %v3874_v12 = vpop.f32.mrf.mxu1 }
 0x705   : > { %v3875_v8 = vadd.f32 %v3874_v12, %v3766_v35  ;;  %v11686_v11 = vpack.c.bf16 %v4130_v58, %v4128_v36 }
 0x706   : > { %v3928_v61 = vpop.f32.mrf.mxu2 }
 0x707   : > { %13798 = vst [vmem:[#allocation33_spill] sm:$0xff] %v11686_v11  ;;  %v3929_v43 = vadd.f32 %v3928_v61, %v11575_v13  ;;  %v4037_v22 = vpop.f32.mrf.mxu3  ;;  %4595 = vmatmul.bf16.gmra.mxu1 %v13799_v18  ;;  %v4175_v34 = vmax.f32 %v3875_v8, 0.0  ;;  %v13802_v11 = vld [vmem:[#allocation69_spill] sm:$0xff]  ;;  %v9142_v8 = vld [vmem:[#allocation5 + $0x544] sm:$0xf0] }
 0x708   : > { %v11690_v27 = vpop.f32.mrf.mxu0 }
 0x709   : > { %v4038_v7 = vadd.f32 %v4037_v22, %v3929_v43 }
 0x70b   : > { %v4132_v43 = vmax.f32 %v4038_v7, 0.0 }
 0x70c   : > { %v3876_v26 = vpop.f32.mrf.mxu1 }
 0x70d   : > { %v3877_v14 = vadd.f32 %v3876_v26, %v3768_v2  ;;  %v8549_v2 = vld [vmem:[#allocation5 + $0x540] sm:$0xf] }
 0x70e   : > { %v3930_v37 = vpop.f32.mrf.mxu2 }
 0x70f   : > { %v4177_v33 = vmax.f32 %v3877_v14, 0.0  ;;  %v3931_v35 = vadd.f32 %v3930_v37, %v11575_v13  ;;  %v4039_v36 = vpop.f32.mrf.mxu3  ;;  %v8550_v14 = vor.u32 %v9142_v8, %v8549_v2  ;;  %v8613_v37 = vld [vmem:[#allocation5 + $0x5c0] sm:$0xf]  ;;  %v9165_v2 = vld [vmem:[#allocation5 + $0x804] sm:$0xf] }
 0x710   : > { %v11695_v58 = vpop.f32.mrf.mxu0  ;;  %v8391_v8 = vld [vmem:[#allocation5 + $0x808] sm:$0xf0] }
 0x711   : > { %13800 = vst [vmem:[#allocation67_spill] sm:$0xff] %v11695_v58  ;;  %v4040_v12 = vadd.f32 %v4039_v36, %v3931_v35  ;;  %v11697_v61 = vpack.c.bf16 %v4177_v33, %v4175_v34  ;;  %v9158_v58 = vld [vmem:[#allocation5 + $0x5c4] sm:$0xf0]  ;;  %5052 = vmatpush.bf16.msra.mxu0 %v8550_v14 }
 0x712   : > { %v8614_v34 = vor.u32 %v9158_v58, %v8613_v37  ;;  %v8394_v58 = vor.u32 %v9165_v2, %v8391_v8  ;;  %v13808_v8 = vld [vmem:[#allocation63_spill] sm:$0xff] }
 0x713   : > { %13801 = vst [vmem:[#allocation31_spill] sm:$0xff] %v11697_v61  ;;  %v4134_v22 = vmax.f32 %v4040_v12, 0.0  ;;  %3972 = vmatmul.bf16.gmra.mxu2 %v13802_v11  ;;  %4536 = vmatmul.bf16.gmra.mxu0 %v13803_v52  ;;  %v13805_v11 = vld [vmem:[#allocation45_spill] sm:$0xff] }
 0x714   : > { %4081 = vmatmul.bf16.gmra.mxu3 %v11503_v40  ;;  %v3879_v26 = vpop.f32.mrf.mxu1  ;;  %5161 = vmatpush.bf16.msra.mxu1 %v8614_v34  ;;  %v3773_v40 = vadd.f32 %v11542_v46, %v11365_v55 }
 0x715   : > { %v3880_v35 = vadd.f32 %v3879_v26, %v3771_v6  ;;  %v11704_v33 = vpack.c.bf16 %v4134_v22, %v4132_v43  ;;  %v9181_v22 = vld [vmem:[#allocation5 + $0x884] sm:$0xf]  ;;  %v8455_v26 = vld [vmem:[#allocation5 + $0x888] sm:$0xf0]  ;;  %4678 = vmatpush.bf16.msra.mxu2 %v8394_v58 }
 0x716   : > { %v3933_v36 = vpop.f32.mrf.mxu2  ;;  %v8458_v37 = vor.u32 %v9181_v22, %v8455_v26 }
 0x717   : > { %13804 = vst [vmem:[#allocation37_spill] sm:$0xff] %v11704_v33  ;;  %v3934_v28 = vadd.f32 %v3933_v36, %v11575_v13  ;;  %v4042_v7 = vpop.f32.mrf.mxu3  ;;  %4600 = vmatmul.bf16.gmra.mxu1 %v13805_v11  ;;  %v4179_v36 = vmax.f32 %v3880_v35, 0.0 }
 0x718   : > { %v11708_v12 = vpop.f32.mrf.mxu0  ;;  %4787 = vmatpush.bf16.msra.mxu3 %v8458_v37 }
 0x719   : > { %13806 = vst [vmem:[#allocation68_spill] sm:$0xff] %v11708_v12  ;;  %v4043_v61 = vadd.f32 %v4042_v7, %v3934_v28  ;;  %v3776_v7 = vadd.f32 %v11548_v29, %v11365_v55 }
 0x71c   : > { %v3881_v6 = vpop.f32.mrf.mxu1 }
 0x71d   : > { %v3882_v43 = vadd.f32 %v3881_v6, %v3773_v40  ;;  %v4136_v40 = vmax.f32 %v4043_v61, 0.0  ;;  %v13809_v6 = vld [vmem:[#allocation43_spill] sm:$0xff]  ;;  %v3778_v61 = vadd.f32 %v11560_v9, %v11365_v55 }
 0x71e   : > { %v3935_v14 = vpop.f32.mrf.mxu2  ;;  %v13816_v55 = vld [vmem:[#allocation47_spill] sm:$0xff] }
 0x71f   : > { %v4181_v33 = vmax.f32 %v3882_v43, 0.0  ;;  %v3936_v52 = vadd.f32 %v3935_v14, %v11575_v13  ;;  %v4044_v12 = vpop.f32.mrf.mxu3 }
 0x720   : > { %v11713_v34 = vpop.f32.mrf.mxu0 }
 0x721   : > { %v4045_v28 = vadd.f32 %v4044_v12, %v3936_v52  ;;  %v11715_v46 = vpack.c.bf16 %v4181_v33, %v4179_v36  ;;  %v13811_v12 = vld [vmem:[#allocation49_spill] sm:$0xff] }
 0x723   : > { %13807 = vst [vmem:[#allocation35_spill] sm:$0xff] %v11715_v46  ;;  %v4138_v2 = vmax.f32 %v4045_v28, 0.0  ;;  %3977 = vmatmul.bf16.gmra.mxu2 %v13808_v8  ;;  %4541 = vmatmul.bf16.gmra.mxu0 %v13809_v6  ;;  %v9140_v46 = vld [vmem:[#allocation5 + $0x534] sm:$0xf0]  ;;  %v9157_v6 = vld [vmem:[#allocation5 + $0x5c4] sm:$0xf] }
 0x724   : > { %4086 = vmatmul.bf16.gmra.mxu3 %v11521_v62  ;;  %v3884_v35 = vpop.f32.mrf.mxu1 }
 0x725   : > { %v3885_v58 = vadd.f32 %v3884_v35, %v3776_v7  ;;  %v11722_v43 = vpack.c.bf16 %v4138_v2, %v4136_v40 }
 0x726   : > { %v3938_v22 = vpop.f32.mrf.mxu2 }
 0x727   : > { %13810 = vst [vmem:[#allocation41_spill] sm:$0xff] %v11722_v43  ;;  %v3939_v52 = vadd.f32 %v3938_v22, %v11575_v13  ;;  %v4047_v33 = vpop.f32.mrf.mxu3  ;;  %4605 = vmatmul.bf16.gmra.mxu1 %v13811_v12  ;;  %v4183_v62 = vmax.f32 %v3885_v58, 0.0  ;;  %v8541_v22 = vld [vmem:[#allocation5 + $0x530] sm:$0xf] }
 0x728   : > { %v11726_v26 = vpop.f32.mrf.mxu0  ;;  %v8542_v9 = vor.u32 %v9140_v46, %v8541_v22  ;;  %v8525_v46 = vld [vmem:[#allocation5 + $0x510] sm:$0xf] }
 0x729   : > { %13812 = vst [vmem:[#allocation69_spill] sm:$0xff] %v11726_v26  ;;  %v4048_v29 = vadd.f32 %v4047_v33, %v3939_v52  ;;  %v13815_v33 = vld [vmem:[#allocation70_spill] sm:$0xff]  ;;  %v8605_v22 = vld [vmem:[#allocation5 + $0x5b0] sm:$0xf] }
 0x72a   : > { %5053 = vmatpush.bf16.msra.mxu0 %v8542_v9 }
 0x72b   : > { %v4140_v43 = vmax.f32 %v4048_v29, 0.0  ;;  %v13818_v29 = vld [vmem:[#allocation53_spill] sm:$0xff] }
 0x72c   : > { %v3886_v14 = vpop.f32.mrf.mxu1 }
 0x72d   : > { %v3887_v37 = vadd.f32 %v3886_v14, %v3778_v61 }
 0x72e   : > { %v3940_v36 = vpop.f32.mrf.mxu2 }
 0x72f   : > { %v4185_v28 = vmax.f32 %v3887_v37, 0.0  ;;  %v3941_v7 = vadd.f32 %v3940_v36, %v11575_v13  ;;  %v4049_v40 = vpop.f32.mrf.mxu3  ;;  %v8533_v37 = vld [vmem:[#allocation5 + $0x520] sm:$0xf]  ;;  %v9138_v36 = vld [vmem:[#allocation5 + $0x524] sm:$0xf0] }
 0x730   : > { %v11731_v2 = vpop.f32.mrf.mxu0 }
 0x731   : > { %13813 = vst [vmem:[#allocation45_spill] sm:$0xff] %v11731_v2  ;;  %v4050_v8 = vadd.f32 %v4049_v40, %v3941_v7  ;;  %v11733_v35 = vpack.c.bf16 %v4185_v28, %v4183_v62  ;;  %v8534_v7 = vor.u32 %v9138_v36, %v8533_v37  ;;  %v8631_v2 = vld [vmem:[#allocation5 + $0x5e8] sm:$0xf0] }
 0x733   : > { %13814 = vst [vmem:[#allocation63_spill] sm:$0xff] %v11733_v35  ;;  %v4142_v52 = vmax.f32 %v4050_v8, 0.0  ;;  %3982 = vmatmul.bf16.gmra.mxu2 %v13815_v33  ;;  %4546 = vmatmul.bf16.gmra.mxu0 %v13816_v55  ;;  %v9156_v33 = vld [vmem:[#allocation5 + $0x5b4] sm:$0xf0] }
 0x734   : > { %4091 = vmatmul.bf16.gmra.mxu3 %v11539_v41  ;;  %v11738_v58 = vpop.f32.mrf.mxu1  ;;  %5054 = vmatpush.bf16.msra.mxu0 %v8534_v7  ;;  %v9136_v41 = vld [vmem:[#allocation5 + $0x514] sm:$0xf0] }
 0x735   : > { %v11740_v61 = vpack.c.bf16 %v4142_v52, %v4140_v43  ;;  %v8526_v9 = vor.u32 %v9136_v41, %v8525_v46  ;;  %v8606_v52 = vor.u32 %v9156_v33, %v8605_v22  ;;  %v13821_v46 = vld [vmem:[#allocation51_spill] sm:$0xff]  ;;  %v9147_v22 = vld [vmem:[#allocation5 + $0x574] sm:$0xf] }
 0x736   : > { %v3943_v14 = vpop.f32.mrf.mxu2  ;;  %v8575_v33 = vld [vmem:[#allocation5 + $0x578] sm:$0xf0] }
 0x737   : > { %13817 = vst [vmem:[#allocation49_spill] sm:$0xff] %v11740_v61  ;;  %v3944_v62 = vadd.f32 %v3943_v14, %v11575_v13  ;;  %v4052_v28 = vpop.f32.mrf.mxu3  ;;  %4610 = vmatmul.bf16.gmra.mxu1 %v13818_v29  ;;  %v8517_v14 = vld [vmem:[#allocation5 + $0x500] sm:$0xf]  ;;  %v9134_v61 = vld [vmem:[#allocation5 + $0x504] sm:$0xf0] }
 0x738   : > { %v11744_v40 = vpop.f32.mrf.mxu0  ;;  %5055 = vmatpush.bf16.msra.mxu0 %v8526_v9  ;;  %5162 = vmatpush.bf16.msra.mxu1 %v8606_v52  ;;  %v8518_v36 = vor.u32 %v9134_v61, %v8517_v14  ;;  %v8578_v9 = vor.u32 %v9147_v22, %v8575_v33  ;;  %v8639_v52 = vld [vmem:[#allocation5 + $0x5f8] sm:$0xf0] }
 0x739   : > { %13819 = vst [vmem:[#allocation70_spill] sm:$0xff] %v11744_v40  ;;  %v4053_v8 = vadd.f32 %v4052_v28, %v3944_v62 }
 0x73a   : > { %5267 = vmatpush.bf16.msrb.mxu2 %v8578_v9 }
 0x73b   : > { %v4144_v28 = vmax.f32 %v4053_v8, 0.0 }
 0x73c   : > { %v11746_v43 = vpop.f32.mrf.mxu1  ;;  %5056 = vmatpush.bf16.msra.mxu0 %v8518_v36  ;;  %v13823_v36 = vld [vmem:[#allocation57_spill] sm:$0xff] }
 0x73e   : > { %v3945_v35 = vpop.f32.mrf.mxu2 }
 0x73f   : > { %v3946_v55 = vadd.f32 %v3945_v35, %v11575_v13  ;;  %v4054_v37 = vpop.f32.mrf.mxu3  ;;  %v9163_v35 = vld [vmem:[#allocation5 + $0x5f4] sm:$0xf] }
 0x740   : > { %v11749_v40 = vpop.f32.mrf.mxu0 }
 0x741   : > { %13820 = vst [vmem:[#allocation53_spill] sm:$0xff] %v11749_v40  ;;  %v4055_v62 = vadd.f32 %v4054_v37, %v3946_v55  ;;  %v8642_v55 = vor.u32 %v9163_v35, %v8639_v52  ;;  %v9161_v40 = vld [vmem:[#allocation5 + $0x5e4] sm:$0xf] }
 0x743   : > { %v4146_v7 = vmax.f32 %v4055_v62, 0.0  ;;  %3987 = vmatmul.bf16.gmra.mxu2 %v11347_v1  ;;  %4551 = vmatmul.bf16.gmra.mxu0 %v13821_v46 }
 0x744   : > { %4096 = vmatmul.bf16.gmra.mxu3 %v11557_v47  ;;  %v11754_v41 = vpop.f32.mrf.mxu1 }
 0x745   : > { %v11756_v61 = vpack.c.bf16 %v4146_v7, %v4144_v28  ;;  %5376 = vmatpush.bf16.msrb.mxu3 %v8642_v55 }
 0x746   : > { %v3948_v14 = vpop.f32.mrf.mxu2 }
 0x747   : > { %13822 = vst [vmem:[#allocation74_spill] sm:$0xff] %v11756_v61  ;;  %v3949_v8 = vadd.f32 %v3948_v14, %v11575_v13  ;;  %v4057_v37 = vpop.f32.mrf.mxu3  ;;  %4615 = vmatmul.bf16.gmra.mxu1 %v13823_v36  ;;  %v13826_v14 = vld [vmem:[#allocation55_spill] sm:$0xff]  ;;  %v13828_v61 = vld [vmem:[#allocation20_spill] sm:$0xff] }
 0x748   : > { %v11760_v1 = vpop.f32.mrf.mxu0 }
 0x749   : > { %13824 = vst [vmem:[#allocation57_spill] sm:$0xff] %v11760_v1  ;;  %v4058_v47 = vadd.f32 %v4057_v37, %v3949_v8 }
 0x74b   : > { %v4148_v35 = vmax.f32 %v4058_v47, 0.0 }
 0x74c   : > { %v11762_v62 = vpop.f32.mrf.mxu1 }
 0x74e   : > { %v3950_v46 = vpop.f32.mrf.mxu2 }
 0x74f   : > { %v3951_v22 = vadd.f32 %v3950_v46, %v11575_v13  ;;  %v4059_v33 = vpop.f32.mrf.mxu3 }
 0x750   : > { %v11765_v28 = vpop.f32.mrf.mxu0 }
 0x751   : > { %13825 = vst [vmem:[#allocation75_spill] sm:$0xff] %v11765_v28  ;;  %v4060_v7 = vadd.f32 %v4059_v33, %v3951_v22 }
 0x753   : > { %v4150_v52 = vmax.f32 %v4060_v7, 0.0  ;;  %3992 = vmatmul.bf16.gmra.mxu2 %v11370_v44  ;;  %4556 = vmatmul.bf16.gmra.mxu0 %v13826_v14 }
 0x754   : > { %4101 = vmatmul.bf16.gmra.mxu3 %v11578_v49  ;;  %v11770_v9 = vpop.f32.mrf.mxu1 }
 0x755   : > { %v11772_v55 = vpack.c.bf16 %v4150_v52, %v4148_v35 }
 0x756   : > { %v3953_v8 = vpop.f32.mrf.mxu2 }
 0x757   : > { %13827 = vst [vmem:[#allocation76_spill] sm:$0xff] %v11772_v55  ;;  %v3954_v37 = vadd.f32 %v3953_v8, %v11575_v13  ;;  %v4062_v46 = vpop.f32.mrf.mxu3  ;;  %4620 = vmatmul.bf16.gmra.mxu1 %v13828_v61  ;;  %v8597_v8 = vld [vmem:[#allocation5 + $0x5a0] sm:$0xf]  ;;  %v9154_v55 = vld [vmem:[#allocation5 + $0x5a4] sm:$0xf0] }
 0x758   : > { %v11776_v28 = vpop.f32.mrf.mxu0 }
 0x759   : > { %13829 = vst [vmem:[#allocation20_spill] sm:$0xff] %v11776_v28  ;;  %v4063_v47 = vadd.f32 %v4062_v46, %v3954_v37  ;;  %v8598_v46 = vor.u32 %v9154_v55, %v8597_v8 }
 0x75b   : > { %v4152_v35 = vmax.f32 %v4063_v47, 0.0  ;;  %5163 = vmatpush.bf16.msra.mxu1 %v8598_v46  ;;  %v13832_v47 = vld [vmem:[#allocation24_spill] sm:$0xff] }
 0x75c   : > { %v11778_v22 = vpop.f32.mrf.mxu1 }
 0x75e   : > { %v3955_v44 = vpop.f32.mrf.mxu2 }
 0x75f   : > { %v3956_v33 = vadd.f32 %v3955_v44, %v11575_v13  ;;  %v4064_v7 = vpop.f32.mrf.mxu3 }
 0x760   : > { %v11781_v49 = vpop.f32.mrf.mxu0 }
 0x761   : > { %13830 = vst [vmem:[#allocation77_spill] sm:$0xff] %v11781_v49  ;;  %v4065_v14 = vadd.f32 %v4064_v7, %v3956_v33  ;;  %v9145_v7 = vld [vmem:[#allocation5 + $0x564] sm:$0xf] }
 0x763   : > { %v4154_v52 = vmax.f32 %v4065_v14, 0.0  ;;  %4679 = vmatmul.bf16.vlgmr.msra.gmra.mxu2 %v13748_v57  ;;  %5057 = vmatmul.bf16.vlgmr.msra.gmra.mxu0 %v11388_v20  ;;  %v8567_v20 = vld [vmem:[#allocation5 + $0x568] sm:$0xf0] }
 0x764   : > { %4788 = vmatmul.bf16.vlgmr.msra.gmra.mxu3 %v13771_v3  ;;  %v11786_v37 = vpop.f32.mrf.mxu1  ;;  %v8570_v3 = vor.u32 %v9145_v7, %v8567_v20  ;;  %v13836_v7 = vld [vmem:[#allocation28_spill] sm:$0xff] }
 0x765   : > { %v11788_v28 = vpack.c.bf16 %v4154_v52, %v4152_v35  ;;  %v8634_v35 = vor.u32 %v9161_v40, %v8631_v2 }
 0x766   : > { %v3958_v44 = vpop.f32.mrf.mxu2  ;;  %5268 = vmatpush.bf16.msrb.mxu2 %v8570_v3 }
 0x767   : > { %13831 = vst [vmem:[#allocation78_spill] sm:$0xff] %v11788_v28  ;;  %v3959_v49 = vadd.f32 %v3958_v44, %v11575_v13  ;;  %v4067_v33 = vpop.f32.mrf.mxu3  ;;  %4625 = vmatmul.bf16.gmra.mxu1 %v13832_v47  ;;  %5377 = vmatpush.bf16.msrb.mxu3 %v8634_v35 }
 0x768   : > { %v11792_v14 = vpop.f32.mrf.mxu0 }
 0x769   : > { %13833 = vst [vmem:[#allocation24_spill] sm:$0xff] %v11792_v14  ;;  %v4068_v57 = vadd.f32 %v4067_v33, %v3959_v49 }
 0x76b   : > { %v4156_v28 = vmax.f32 %v4068_v57, 0.0 }
 0x76c   : > { %v11794_v1 = vpop.f32.mrf.mxu1 }
 0x76e   : > { %v3960_v55 = vpop.f32.mrf.mxu2 }
 0x76f   : > { %v3961_v52 = vadd.f32 %v3960_v55, %v11575_v13  ;;  %v4069_v8 = vpop.f32.mrf.mxu3 }
 0x770   : > { %v11797_v46 = vpop.f32.mrf.mxu0 }
 0x771   : > { %13834 = vst [vmem:[#allocation79_spill] sm:$0xff] %v11797_v46  ;;  %v4070_v44 = vadd.f32 %v4069_v8, %v3961_v52 }
 0x773   : > { %v4158_v14 = vmax.f32 %v4070_v44, 0.0  ;;  %4684 = vmatmul.bf16.gmra.mxu2 %v13750_v15  ;;  %5062 = vmatmul.bf16.gmra.mxu0 %v11406_v48  ;;  %v13843_v48 = vld [vmem:[#allocation59_spill] sm:$0xff] }
 0x774   : > { %4793 = vmatmul.bf16.gmra.mxu3 %v13777_v4  ;;  %v11802_v20 = vpop.f32.mrf.mxu1 }
 0x775   : > { %v11804_v49 = vpack.c.bf16 %v4158_v14, %v4156_v28 }
 0x776   : > { %v3963_v2 = vpop.f32.mrf.mxu2 }
 0x777   : > { %13835 = vst [vmem:[#allocation80_spill] sm:$0xff] %v11804_v49  ;;  %v3964_v40 = vadd.f32 %v3963_v2, %v11575_v13  ;;  %v4072_v33 = vpop.f32.mrf.mxu3  ;;  %4630 = vmatmul.bf16.gmra.mxu1 %v13836_v7  ;;  %v13840_v49 = vld [vmem:[#allocation32_spill] sm:$0xff] }
 0x778   : > { %v11808_v3 = vpop.f32.mrf.mxu0 }
 0x779   : > { %13837 = vst [vmem:[#allocation28_spill] sm:$0xff] %v11808_v3  ;;  %v4073_v57 = vadd.f32 %v4072_v33, %v3964_v40 }
 0x77b   : > { %v4160_v28 = vmax.f32 %v4073_v57, 0.0 }
 0x77c   : > { %v11810_v55 = vpop.f32.mrf.mxu1 }
 0x77e   : > { %v3965_v15 = vpop.f32.mrf.mxu2 }
 0x77f   : > { %v3966_v35 = vadd.f32 %v3965_v15, %v11575_v13  ;;  %v4074_v52 = vpop.f32.mrf.mxu3 }
 0x780   : > { %v11813_v4 = vpop.f32.mrf.mxu0 }
 0x781   : > { %13838 = vst [vmem:[#allocation81_spill] sm:$0xff] %v11813_v4  ;;  %v4075_v8 = vadd.f32 %v4074_v52, %v3966_v35  ;;  %v8589_v35 = vld [vmem:[#allocation5 + $0x590] sm:$0xf]  ;;  %v9152_v52 = vld [vmem:[#allocation5 + $0x594] sm:$0xf0] }
 0x783   : > { %v4162_v14 = vmax.f32 %v4075_v8, 0.0  ;;  %4689 = vmatmul.bf16.gmra.mxu2 %v13752_v59  ;;  %5067 = vmatmul.bf16.gmra.mxu0 %v11424_v30  ;;  %v8590_v8 = vor.u32 %v9152_v52, %v8589_v35  ;;  %v8559_v35 = vld [vmem:[#allocation5 + $0x558] sm:$0xf0] }
 0x784   : > { %4798 = vmatmul.bf16.gmra.mxu3 %v13782_v45  ;;  %v11818_v44 = vpop.f32.mrf.mxu1 }
 0x785   : > { %v11820_v2 = vpack.c.bf16 %v4162_v14, %v4160_v28  ;;  %5164 = vmatpush.bf16.msra.mxu1 %v8590_v8  ;;  %v9159_v8 = vld [vmem:[#allocation5 + $0x5d4] sm:$0xf] }
 0x786   : > { %v3968_v40 = vpop.f32.mrf.mxu2 }
 0x787   : > { %13839 = vst [vmem:[#allocation82_spill] sm:$0xff] %v11820_v2  ;;  %v3969_v33 = vadd.f32 %v3968_v40, %v11575_v13  ;;  %v4077_v15 = vpop.f32.mrf.mxu3  ;;  %4635 = vmatmul.bf16.gmra.mxu1 %v13840_v49 }
 0x788   : > { %v11824_v4 = vpop.f32.mrf.mxu0 }
 0x789   : > { %13841 = vst [vmem:[#allocation32_spill] sm:$0xff] %v11824_v4  ;;  %v4078_v57 = vadd.f32 %v4077_v15, %v3969_v33  ;;  %v9143_v15 = vld [vmem:[#allocation5 + $0x554] sm:$0xf]  ;;  %v8623_v4 = vld [vmem:[#allocation5 + $0x5d8] sm:$0xf0] }
 0x78a   : > { %v8562_v52 = vor.u32 %v9143_v15, %v8559_v35 }
 0x78b   : > { %v4164_v40 = vmax.f32 %v4078_v57, 0.0 }
 0x78c   : > { %v11826_v59 = vpop.f32.mrf.mxu1  ;;  %5269 = vmatpush.bf16.msrb.mxu2 %v8562_v52 }
 0x78e   : > { %v3970_v30 = vpop.f32.mrf.mxu2 }
 0x78f   : > { %v3971_v45 = vadd.f32 %v3970_v30, %v11575_v13  ;;  %v4079_v28 = vpop.f32.mrf.mxu3 }
 0x790   : > { %v11829_v14 = vpop.f32.mrf.mxu0 }
 0x791   : > { %13842 = vst [vmem:[#allocation83_spill] sm:$0xff] %v11829_v14  ;;  %v4080_v2 = vadd.f32 %v4079_v28, %v3971_v45  ;;  %v8626_v14 = vor.u32 %v9159_v8, %v8623_v4  ;;  %v13845_v45 = vld [vmem:[#allocation36_spill] sm:$0xff] }
 0x793   : > { %v4166_v3 = vmax.f32 %v4080_v2, 0.0  ;;  %4694 = vmatmul.bf16.gmra.mxu2 %v13754_v53  ;;  %5072 = vmatmul.bf16.gmra.mxu0 %v13843_v48 }
 0x794   : > { %4803 = vmatmul.bf16.gmra.mxu3 %v13788_v10  ;;  %v11834_v33 = vpop.f32.mrf.mxu1 }
 0x795   : > { %v11836_v30 = vpack.c.bf16 %v4166_v3, %v4164_v40  ;;  %5378 = vmatpush.bf16.msrb.mxu3 %v8626_v14 }
 0x796   : > { %v3973_v46 = vpop.f32.mrf.mxu2 }
 0x797   : > { %13844 = vst [vmem:[#allocation84_spill] sm:$0xff] %v11836_v30  ;;  %v3974_v57 = vadd.f32 %v3973_v46, %v11575_v13  ;;  %v4082_v2 = vpop.f32.mrf.mxu3  ;;  %4640 = vmatmul.bf16.gmra.mxu1 %v13845_v45  ;;  %v13848_v46 = vld [vmem:[#allocation18_spill] sm:$0xff]  ;;  %v13850_v30 = vld [vmem:[#allocation40_spill] sm:$0xff] }
 0x798   : > { %v11840_v53 = vpop.f32.mrf.mxu0 }
 0x799   : > { %13846 = vst [vmem:[#allocation36_spill] sm:$0xff] %v11840_v53  ;;  %v4083_v10 = vadd.f32 %v4082_v2, %v3974_v57  ;;  %v9150_v53 = vld [vmem:[#allocation5 + $0x584] sm:$0xf0] }
 0x79b   : > { %v4168_v4 = vmax.f32 %v4083_v10, 0.0 }
 0x79c   : > { %v11842_v28 = vpop.f32.mrf.mxu1 }
 0x79e   : > { %v3975_v48 = vpop.f32.mrf.mxu2 }
 0x79f   : > { %v3976_v15 = vadd.f32 %v3975_v48, %v11575_v13  ;;  %v4084_v35 = vpop.f32.mrf.mxu3 }
 0x7a0   : > { %v11845_v3 = vpop.f32.mrf.mxu0 }
 0x7a1   : > { %13847 = vst [vmem:[#allocation85_spill] sm:$0xff] %v11845_v3  ;;  %v4085_v40 = vadd.f32 %v4084_v35, %v3976_v15 }
 0x7a3   : > { %v4170_v8 = vmax.f32 %v4085_v40, 0.0  ;;  %4699 = vmatmul.bf16.gmra.mxu2 %v13756_v19  ;;  %5077 = vmatmul.bf16.gmra.mxu0 %v13848_v46 }
 0x7a4   : > { %4808 = vmatmul.bf16.gmra.mxu3 %v13794_v24  ;;  %v11850_v52 = vpop.f32.mrf.mxu1 }
 0x7a5   : > { %v11852_v14 = vpack.c.bf16 %v4170_v8, %v4168_v4 }
 0x7a6   : > { %v3978_v57 = vpop.f32.mrf.mxu2 }
 0x7a7   : > { %13849 = vst [vmem:[#allocation86_spill] sm:$0xff] %v11852_v14  ;;  %v3979_v2 = vadd.f32 %v3978_v57, %v11575_v13  ;;  %v4087_v48 = vpop.f32.mrf.mxu3  ;;  %4645 = vmatmul.bf16.gmra.mxu1 %v13850_v30  ;;  %v13853_v57 = vld [vmem:[#allocation22_spill] sm:$0xff]  ;;  %v8581_v14 = vld [vmem:[#allocation5 + $0x580] sm:$0xf] }
 0x7a8   : > { %v11856_v3 = vpop.f32.mrf.mxu0 }
 0x7a9   : > { %13851 = vst [vmem:[#allocation40_spill] sm:$0xff] %v11856_v3  ;;  %v4088_v10 = vadd.f32 %v4087_v48, %v3979_v2  ;;  %v8582_v48 = vor.u32 %v9150_v53, %v8581_v14 }
 0x7ab   : > { %v4172_v4 = vmax.f32 %v4088_v10, 0.0  ;;  %5165 = vmatpush.bf16.msra.mxu1 %v8582_v48  ;;  %v13856_v10 = vld [vmem:[#allocation44_spill] sm:$0xff] }
 0x7ac   : > { %v11858_v15 = vpop.f32.mrf.mxu1 }
 0x7ae   : > { %v3980_v19 = vpop.f32.mrf.mxu2 }
 0x7af   : > { %v3981_v35 = vadd.f32 %v3980_v19, %v11575_v13  ;;  %v4089_v40 = vpop.f32.mrf.mxu3 }
 0x7b0   : > { %v11861_v24 = vpop.f32.mrf.mxu0 }
 0x7b1   : > { %13852 = vst [vmem:[#allocation87_spill] sm:$0xff] %v11861_v24  ;;  %v4090_v46 = vadd.f32 %v4089_v40, %v3981_v35  ;;  %v9141_v40 = vld [vmem:[#allocation5 + $0x544] sm:$0xf] }
 0x7b3   : > { %v4174_v8 = vmax.f32 %v4090_v46, 0.0  ;;  %4704 = vmatmul.bf16.gmra.mxu2 %v13758_v42  ;;  %5082 = vmatmul.bf16.gmra.mxu0 %v13853_v57  ;;  %v8551_v57 = vld [vmem:[#allocation5 + $0x548] sm:$0xf0] }
 0x7b4   : > { %4813 = vmatmul.bf16.gmra.mxu3 %v13799_v18  ;;  %v11866_v2 = vpop.f32.mrf.mxu1  ;;  %v8554_v18 = vor.u32 %v9141_v40, %v8551_v57 }
 0x7b5   : > { %13854 = vst [vmem:[#allocation88_spill] sm:$0xff] %v11866_v2  ;;  %v11868_v3 = vpack.c.bf16 %v4174_v8, %v4172_v4  ;;  %v8615_v2 = vld [vmem:[#allocation5 + $0x5c8] sm:$0xf0] }
 0x7b6   : > { %v3983_v19 = vpop.f32.mrf.mxu2  ;;  %5270 = vmatpush.bf16.msrb.mxu2 %v8554_v18  ;;  %v8618_v14 = vor.u32 %v9157_v6, %v8615_v2  ;;  %v13861_v18 = vld [vmem:[#allocation48_spill] sm:$0xff] }
 0x7b7   : > { %13855 = vst [vmem:[#allocation89_spill] sm:$0xff] %v11868_v3  ;;  %v3984_v24 = vadd.f32 %v3983_v19, %v11575_v13  ;;  %v4092_v35 = vpop.f32.mrf.mxu3  ;;  %4650 = vmatmul.bf16.gmra.mxu1 %v13856_v10 }
 0x7b8   : > { %v11872_v46 = vpop.f32.mrf.mxu0  ;;  %5379 = vmatpush.bf16.msrb.mxu3 %v8618_v14 }
 0x7b9   : > { %13857 = vst [vmem:[#allocation44_spill] sm:$0xff] %v11872_v46  ;;  %v4093_v42 = vadd.f32 %v4092_v35, %v3984_v24  ;;  %v13859_v24 = vld [vmem:[#allocation26_spill] sm:$0xff] }
 0x7bb   : > { %v4176_v3 = vmax.f32 %v4093_v42, 0.0 }
 0x7bc   : > { %v11874_v26 = vpop.f32.mrf.mxu1 }
 0x7be   : > { %v3985_v53 = vpop.f32.mrf.mxu2 }
 0x7bf   : > { %v3986_v4 = vadd.f32 %v3985_v53, %v11575_v13  ;;  %v4094_v8 = vpop.f32.mrf.mxu3 }
 0x7c0   : > { %v11877_v48 = vpop.f32.mrf.mxu0 }
 0x7c1   : > { %13858 = vst [vmem:[#allocation90_spill] sm:$0xff] %v11877_v48  ;;  %v4095_v19 = vadd.f32 %v4094_v8, %v3986_v4  ;;  %v13869_v48 = vld [vmem:[#allocation52_spill] sm:$0xff] }
 0x7c3   : > { %v4178_v46 = vmax.f32 %v4095_v19, 0.0  ;;  %4709 = vmatmul.bf16.gmra.mxu2 %v13760_v25  ;;  %5087 = vmatmul.bf16.gmra.mxu0 %v13859_v24 }
 0x7c4   : > { %4818 = vmatmul.bf16.gmra.mxu3 %v13805_v11  ;;  %v11882_v57 = vpop.f32.mrf.mxu1 }
 0x7c5   : > { %v11884_v35 = vpack.c.bf16 %v4178_v46, %v4176_v3 }
 0x7c6   : > { %v3988_v6 = vpop.f32.mrf.mxu2 }
 0x7c7   : > { %13860 = vst [vmem:[#allocation91_spill] sm:$0xff] %v11884_v35  ;;  %v3989_v2 = vadd.f32 %v3988_v6, %v11575_v13  ;;  %v4097_v40 = vpop.f32.mrf.mxu3  ;;  %4655 = vmatmul.bf16.gmra.mxu1 %v13861_v18  ;;  %v13865_v35 = vld [vmem:[#allocation46_spill] sm:$0xff] }
 0x7c8   : > { %v11888_v53 = vpop.f32.mrf.mxu0  ;;  %v13866_v6 = vld [vmem:[#allocation30_spill] sm:$0xff] }
 0x7c9   : > { %13862 = vst [vmem:[#allocation48_spill] sm:$0xff] %v11888_v53  ;;  %v4098_v42 = vadd.f32 %v4097_v40, %v3989_v2 }
 0x7cb   : > { %v4180_v3 = vmax.f32 %v4098_v42, 0.0  ;;  %v8701_v42 = vld [vmem:[#allocation5 + $0x670] sm:$0xf] }
 0x7cc   : > { %v11890_v14 = vpop.f32.mrf.mxu1 }
 0x7cd   : > { %13863 = vst [vmem:[#allocation92_spill] sm:$0xff] %v11890_v14 }
 0x7ce   : > { %v3990_v25 = vpop.f32.mrf.mxu2 }
 0x7cf   : > { %v3991_v4 = vadd.f32 %v3990_v25, %v11575_v13  ;;  %v4099_v8 = vpop.f32.mrf.mxu3 }
 0x7d0   : > { %v11893_v11 = vpop.f32.mrf.mxu0 }
 0x7d1   : > { %13864 = vst [vmem:[#allocation93_spill] sm:$0xff] %v11893_v11  ;;  %v4100_v19 = vadd.f32 %v4099_v8, %v3991_v4  ;;  %v9212_v4 = vld [vmem:[#allocation5 + $0x674] sm:$0xf0] }
 0x7d3   : > { %v4182_v46 = vmax.f32 %v4100_v19, 0.0  ;;  %4714 = vmatmul.bf16.gmra.mxu2 %v13865_v35  ;;  %5092 = vmatmul.bf16.gmra.mxu0 %v13866_v6  ;;  %v8702_v35 = vor.u32 %v9212_v4, %v8701_v42  ;;  %v8765_v19 = vld [vmem:[#allocation5 + $0x6f0] sm:$0xf]  ;;  %v9228_v6 = vld [vmem:[#allocation5 + $0x6f4] sm:$0xf0] }
 0x7d4   : > { %4823 = vmatmul.bf16.gmra.mxu3 %v13811_v12  ;;  %v11898_v24 = vpop.f32.mrf.mxu1  ;;  %v8766_v14 = vor.u32 %v9228_v6, %v8765_v19  ;;  %v13871_v6 = vld [vmem:[#allocation34_spill] sm:$0xff]  ;;  %v8543_v4 = vld [vmem:[#allocation5 + $0x538] sm:$0xf0] }
 0x7d5   : > { %13867 = vst [vmem:[#allocation46_spill] sm:$0xff] %v11898_v24  ;;  %v11900_v2 = vpack.c.bf16 %v4182_v46, %v4180_v3  ;;  %5892 = vmatpush.bf16.msrb.mxu0 %v8702_v35  ;;  %v4572_v46 = vadd.f32 %v11738_v58, %v11566_v56  ;;  %v9139_v42 = vld [vmem:[#allocation5 + $0x534] sm:$0xf] }
 0x7d6   : > { %v3993_v40 = vpop.f32.mrf.mxu2  ;;  %6001 = vmatpush.bf16.msrb.mxu1 %v8766_v14  ;;  %v8546_v56 = vor.u32 %v9139_v42, %v8543_v4  ;;  %v9155_v58 = vld [vmem:[#allocation5 + $0x5b4] sm:$0xf] }
 0x7d7   : > { %13868 = vst [vmem:[#allocation94_spill] sm:$0xff] %v11900_v2  ;;  %v3994_v53 = vadd.f32 %v3993_v40, %v11575_v13  ;;  %v4102_v25 = vpop.f32.mrf.mxu3  ;;  %4660 = vmatmul.bf16.gmra.mxu1 %v13869_v48  ;;  %v13876_v4 = vld [vmem:[#allocation38_spill] sm:$0xff] }
 0x7d8   : > { %v11904_v11 = vpop.f32.mrf.mxu0  ;;  %5271 = vmatpush.bf16.msrb.mxu2 %v8546_v56 }
 0x7d9   : > { %13870 = vst [vmem:[#allocation95_spill] sm:$0xff] %v11904_v11  ;;  %v4103_v8 = vadd.f32 %v4102_v25, %v3994_v53 }
 0x7db   : > { %v4184_v53 = vmax.f32 %v4103_v8, 0.0 }
 0x7dc   : > { %v11906_v12 = vpop.f32.mrf.mxu1 }
 0x7de   : > { %v3995_v3 = vpop.f32.mrf.mxu2 }
 0x7df   : > { %v3996_v40 = vadd.f32 %v3995_v3, %v11575_v13  ;;  %v4104_v2 = vpop.f32.mrf.mxu3  ;;  %v8607_v13 = vld [vmem:[#allocation5 + $0x5b8] sm:$0xf0] }
 0x7e0   : > { %v5058_v48 = vpop.f32.mrf.mxu0 }
 0x7e1   : > { %v4105_v11 = vadd.f32 %v4104_v2, %v3996_v40  ;;  %v11911_v24 = vadd.f32 %v5058_v48, %v4572_v46  ;;  %v8610_v48 = vor.u32 %v9155_v58, %v8607_v13  ;;  %v4579_v13 = vadd.f32 %v11762_v62, %v11600_v31  ;;  %v9210_v31 = vld [vmem:[#allocation5 + $0x664] sm:$0xf0] }
 0x7e3   : > { %v4186_v25 = vmax.f32 %v4105_v11, 0.0  ;;  %4719 = vmatmul.bf16.gmra.mxu2 %v13766_v32  ;;  %5097 = vmatmul.bf16.gmra.mxu0 %v13871_v6  ;;  %v4574_v11 = vadd.f32 %v11746_v43, %v11582_v17  ;;  %v13873_v32 = vld [vmem:[#allocation56_spill] sm:$0xff] }
 0x7e4   : > { %4828 = vmatmul.bf16.gmra.mxu3 %v13818_v29  ;;  %v11916_v14 = vpop.f32.mrf.mxu1 }
 0x7e5   : > { %v11918_v35 = vpack.c.bf16 %v4186_v25, %v4184_v53  ;;  %5380 = vmatpush.bf16.msrb.mxu3 %v8610_v48  ;;  %v4577_v53 = vadd.f32 %v11754_v41, %v11587_v0 }
 0x7e6   : > { %v4680_v2 = vpop.f32.mrf.mxu2 }
 0x7e7   : > { %13872 = vst [vmem:[#allocation96_spill] sm:$0xff] %v11918_v35  ;;  %v4789_v8 = vpop.f32.mrf.mxu3  ;;  %4665 = vmatmul.bf16.gmra.mxu1 %v13873_v32  ;;  %v13922_v35 = vld [vmem:[#allocation47_spill] sm:$0xff] }
 0x7e8   : > { %v11923_v19 = vadd.f32 %v4789_v8, %v4680_v2  ;;  %v5060_v29 = vpop.f32.mrf.mxu0  ;;  %v13878_v8 = vld [vmem:[#allocation62_spill] sm:$0xff] }
 0x7e9   : > { %v11925_v3 = vadd.f32 %v5060_v29, %v4574_v11 }
 0x7ea   : > { %13874 = vst [vmem:[#allocation56_spill] sm:$0xff] %v11923_v19 }
 0x7ec   : > { %v11927_v46 = vpop.f32.mrf.mxu1 }
 0x7ee   : > { %v4682_v40 = vpop.f32.mrf.mxu2 }
 0x7ef   : > { %v4791_v25 = vpop.f32.mrf.mxu3 }
 0x7f0   : > { %v11931_v42 = vadd.f32 %v4791_v25, %v4682_v40  ;;  %v5063_v17 = vpop.f32.mrf.mxu0  ;;  %v8693_v25 = vld [vmem:[#allocation5 + $0x660] sm:$0xf] }
 0x7f1   : > { %v11933_v43 = vadd.f32 %v5063_v17, %v4577_v53  ;;  %v8694_v17 = vor.u32 %v9210_v31, %v8693_v25 }
 0x7f2   : > { %13875 = vst [vmem:[#allocation97_spill] sm:$0xff] %v11931_v42 }
 0x7f3   : > { %4724 = vmatmul.bf16.gmra.mxu2 %v13770_v60  ;;  %5102 = vmatmul.bf16.gmra.mxu0 %v13876_v4 }
 0x7f4   : > { %4833 = vmatmul.bf16.gmra.mxu3 %v13823_v36  ;;  %v11938_v56 = vpop.f32.mrf.mxu1  ;;  %v4582_v36 = vadd.f32 %v11770_v9, %v13878_v8  ;;  %5893 = vmatpush.bf16.msrb.mxu0 %v8694_v17  ;;  %v9153_v17 = vld [vmem:[#allocation5 + $0x5a4] sm:$0xf] }
 0x7f6   : > { %v4685_v58 = vpop.f32.mrf.mxu2 }
 0x7f7   : > { %v4794_v2 = vpop.f32.mrf.mxu3  ;;  %5166 = vmatmul.bf16.vlgmr.msra.gmra.mxu1 %v11596_v39 }
 0x7f8   : > { %v11943_v0 = vadd.f32 %v4794_v2, %v4685_v58  ;;  %v5065_v41 = vpop.f32.mrf.mxu0  ;;  %v8757_v58 = vld [vmem:[#allocation5 + $0x6e0] sm:$0xf]  ;;  %v9226_v2 = vld [vmem:[#allocation5 + $0x6e4] sm:$0xf0] }
 0x7f9   : > { %v11945_v48 = vadd.f32 %v5065_v41, %v4579_v13  ;;  %v13880_v13 = vld [vmem:[#allocation19_spill] sm:$0xff]  ;;  %v13881_v41 = vld [vmem:[#allocation42_spill] sm:$0xff] }
 0x7fa   : > { %13877 = vst [vmem:[#allocation98_spill] sm:$0xff] %v11943_v0  ;;  %v8758_v0 = vor.u32 %v9226_v2, %v8757_v58  ;;  %v9137_v58 = vld [vmem:[#allocation5 + $0x524] sm:$0xf]  ;;  %v8535_v2 = vld [vmem:[#allocation5 + $0x528] sm:$0xf0] }
 0x7fc   : > { %v11947_v11 = vpop.f32.mrf.mxu1  ;;  %6002 = vmatpush.bf16.msrb.mxu1 %v8758_v0  ;;  %v8599_v0 = vld [vmem:[#allocation5 + $0x5a8] sm:$0xf0] }
 0x7fe   : > { %v4687_v60 = vpop.f32.mrf.mxu2 }
 0x7ff   : > { %v4796_v29 = vpop.f32.mrf.mxu3 }
 0x800   : > { %v11951_v40 = vadd.f32 %v4796_v29, %v4687_v60  ;;  %v5068_v53 = vpop.f32.mrf.mxu0  ;;  %v13882_v60 = vld [vmem:[#allocation64_spill] sm:$0xff]  ;;  %v13883_v29 = vld [vmem:[#allocation71_spill] sm:$0xff] }
 0x801   : > { %v11953_v62 = vadd.f32 %v5068_v53, %v4582_v36  ;;  %v4584_v8 = vadd.f32 %v11778_v22, %v13882_v60  ;;  %v4587_v22 = vadd.f32 %v11786_v37, %v11623_v38 }
 0x802   : > { %13879 = vst [vmem:[#allocation62_spill] sm:$0xff] %v11951_v40  ;;  %v8602_v40 = vor.u32 %v9153_v17, %v8599_v0  ;;  %v13888_v17 = vld [vmem:[#allocation21_spill] sm:$0xff] }
 0x803   : > { %4729 = vmatmul.bf16.gmra.mxu2 %v13880_v13  ;;  %5107 = vmatmul.bf16.gmra.mxu0 %v13881_v41  ;;  %v8538_v13 = vor.u32 %v9137_v58, %v8535_v2  ;;  %v4589_v2 = vadd.f32 %v11794_v1, %v11636_v23  ;;  %v13890_v23 = vld [vmem:[#allocation27_spill] sm:$0xff]  ;;  %v13891_v1 = vld [vmem:[#allocation50_spill] sm:$0xff] }
 0x804   : > { %4838 = vmatmul.bf16.gmra.mxu3 %v13828_v61  ;;  %v11958_v4 = vpop.f32.mrf.mxu1 }
 0x805   : > { %5272 = vmatpush.bf16.msrb.mxu2 %v8538_v13  ;;  %5381 = vmatpush.bf16.msrb.mxu3 %v8602_v40 }
 0x806   : > { %v4690_v9 = vpop.f32.mrf.mxu2 }
 0x807   : > { %v4799_v36 = vpop.f32.mrf.mxu3  ;;  %5171 = vmatmul.bf16.gmra.mxu1 %v13883_v29 }
 0x808   : > { %v11963_v53 = vadd.f32 %v4799_v36, %v4690_v9  ;;  %v5070_v25 = vpop.f32.mrf.mxu0  ;;  %v13886_v36 = vld [vmem:[#allocation61_spill] sm:$0xff] }
 0x809   : > { %v11965_v31 = vadd.f32 %v5070_v25, %v4584_v8 }
 0x80a   : > { %13884 = vst [vmem:[#allocation19_spill] sm:$0xff] %v11963_v53 }
 0x80c   : > { %v11967_v61 = vpop.f32.mrf.mxu1 }
 0x80e   : > { %v4692_v41 = vpop.f32.mrf.mxu2 }
 0x80f   : > { %v4801_v60 = vpop.f32.mrf.mxu3 }
 0x810   : > { %v11971_v42 = vadd.f32 %v4801_v60, %v4692_v41  ;;  %v5073_v9 = vpop.f32.mrf.mxu0 }
 0x811   : > { %v11973_v8 = vadd.f32 %v5073_v9, %v4587_v22 }
 0x812   : > { %13885 = vst [vmem:[#allocation64_spill] sm:$0xff] %v11971_v42 }
 0x813   : > { %4734 = vmatmul.bf16.gmra.mxu2 %v13781_v63  ;;  %5112 = vmatmul.bf16.gmra.mxu0 %v13886_v36 }
 0x814   : > { %4843 = vmatmul.bf16.gmra.mxu3 %v13832_v47  ;;  %v11978_v25 = vpop.f32.mrf.mxu1  ;;  %v4592_v47 = vadd.f32 %v11802_v20, %v13888_v17  ;;  %v13893_v20 = vld [vmem:[#allocation25_spill] sm:$0xff] }
 0x816   : > { %v4695_v58 = vpop.f32.mrf.mxu2 }
 0x817   : > { %v4804_v38 = vpop.f32.mrf.mxu3  ;;  %5176 = vmatmul.bf16.gmra.mxu1 %v11632_v51 }
 0x818   : > { %v11983_v37 = vadd.f32 %v4804_v38, %v4695_v58  ;;  %v5075_v40 = vpop.f32.mrf.mxu0  ;;  %v13892_v38 = vld [vmem:[#allocation66_spill] sm:$0xff] }
 0x819   : > { %v11985_v41 = vadd.f32 %v5075_v40, %v4589_v2  ;;  %v4594_v40 = vadd.f32 %v11810_v55, %v13892_v38  ;;  %v4597_v55 = vadd.f32 %v11818_v44, %v11659_v54 }
 0x81a   : > { %13887 = vst [vmem:[#allocation71_spill] sm:$0xff] %v11983_v37 }
 0x81c   : > { %v11987_v13 = vpop.f32.mrf.mxu1 }
 0x81e   : > { %v4697_v63 = vpop.f32.mrf.mxu2 }
 0x81f   : > { %v4806_v0 = vpop.f32.mrf.mxu3 }
 0x820   : > { %v11991_v22 = vadd.f32 %v4806_v0, %v4697_v63  ;;  %v5078_v60 = vpop.f32.mrf.mxu0  ;;  %v9208_v0 = vld [vmem:[#allocation5 + $0x654] sm:$0xf0] }
 0x821   : > { %v11993_v9 = vadd.f32 %v5078_v60, %v4592_v47  ;;  %v8685_v47 = vld [vmem:[#allocation5 + $0x650] sm:$0xf] }
 0x822   : > { %13889 = vst [vmem:[#allocation21_spill] sm:$0xff] %v11991_v22  ;;  %v9224_v22 = vld [vmem:[#allocation5 + $0x6d4] sm:$0xf0] }
 0x823   : > { %4739 = vmatmul.bf16.gmra.mxu2 %v13890_v23  ;;  %5117 = vmatmul.bf16.gmra.mxu0 %v13891_v1  ;;  %v8686_v23 = vor.u32 %v9208_v0, %v8685_v47  ;;  %v8749_v1 = vld [vmem:[#allocation5 + $0x6d0] sm:$0xf]  ;;  %v9151_v0 = vld [vmem:[#allocation5 + $0x594] sm:$0xf] }
 0x824   : > { %4848 = vmatmul.bf16.gmra.mxu3 %v13836_v7  ;;  %v11998_v58 = vpop.f32.mrf.mxu1  ;;  %v8750_v7 = vor.u32 %v9224_v22, %v8749_v1  ;;  %v9135_v1 = vld [vmem:[#allocation5 + $0x514] sm:$0xf] }
 0x825   : > { %5894 = vmatpush.bf16.msrb.mxu0 %v8686_v23  ;;  %v8591_v23 = vld [vmem:[#allocation5 + $0x598] sm:$0xf0] }
 0x826   : > { %v4700_v2 = vpop.f32.mrf.mxu2  ;;  %6003 = vmatpush.bf16.msrb.mxu1 %v8750_v7  ;;  %v8594_v44 = vor.u32 %v9151_v0, %v8591_v23 }
 0x827   : > { %v4809_v37 = vpop.f32.mrf.mxu3  ;;  %5181 = vmatmul.bf16.gmra.mxu1 %v13893_v20 }
 0x828   : > { %v12003_v63 = vadd.f32 %v4809_v37, %v4700_v2  ;;  %v5080_v17 = vpop.f32.mrf.mxu0  ;;  %5382 = vmatpush.bf16.msrb.mxu3 %v8594_v44 }
 0x829   : > { %v12005_v60 = vadd.f32 %v5080_v17, %v4594_v40  ;;  %v13896_v40 = vld [vmem:[#allocation54_spill] sm:$0xff]  ;;  %v8527_v17 = vld [vmem:[#allocation5 + $0x518] sm:$0xf0] }
 0x82a   : > { %13894 = vst [vmem:[#allocation27_spill] sm:$0xff] %v12003_v63  ;;  %v8530_v47 = vor.u32 %v9135_v1, %v8527_v17  ;;  %v4602_v17 = vadd.f32 %v11834_v33, %v11677_v50  ;;  %v13901_v50 = vld [vmem:[#allocation33_spill] sm:$0xff] }
 0x82c   : > { %v12007_v36 = vpop.f32.mrf.mxu1  ;;  %5273 = vmatpush.bf16.msrb.mxu2 %v8530_v47  ;;  %v13900_v47 = vld [vmem:[#allocation65_spill] sm:$0xff] }
 0x82e   : > { %v4702_v42 = vpop.f32.mrf.mxu2 }
 0x82f   : > { %v4811_v38 = vpop.f32.mrf.mxu3 }
 0x830   : > { %v12011_v37 = vadd.f32 %v4811_v38, %v4702_v42  ;;  %v5083_v2 = vpop.f32.mrf.mxu0  ;;  %v4599_v42 = vadd.f32 %v11826_v59, %v11672_v5 }
 0x831   : > { %v12013_v63 = vadd.f32 %v5083_v2, %v4597_v55  ;;  %v13897_v55 = vld [vmem:[#allocation29_spill] sm:$0xff] }
 0x832   : > { %13895 = vst [vmem:[#allocation66_spill] sm:$0xff] %v12011_v37 }
 0x833   : > { %4744 = vmatmul.bf16.gmra.mxu2 %v13792_v16  ;;  %5122 = vmatmul.bf16.gmra.mxu0 %v13896_v40 }
 0x834   : > { %4853 = vmatmul.bf16.gmra.mxu3 %v13840_v49  ;;  %v12018_v22 = vpop.f32.mrf.mxu1 }
 0x836   : > { %v4705_v54 = vpop.f32.mrf.mxu2 }
 0x837   : > { %v4814_v7 = vpop.f32.mrf.mxu3  ;;  %5186 = vmatmul.bf16.gmra.mxu1 %v13897_v55 }
 0x838   : > { %v12023_v16 = vadd.f32 %v4814_v7, %v4705_v54  ;;  %v5085_v38 = vpop.f32.mrf.mxu0 }
 0x839   : > { %v12025_v49 = vadd.f32 %v5085_v38, %v4599_v42  ;;  %v4604_v42 = vadd.f32 %v11842_v28, %v11690_v27  ;;  %v9206_v27 = vld [vmem:[#allocation5 + $0x644] sm:$0xf0] }
 0x83a   : > { %13898 = vst [vmem:[#allocation25_spill] sm:$0xff] %v12023_v16  ;;  %v8677_v16 = vld [vmem:[#allocation5 + $0x640] sm:$0xf] }
 0x83b   : > { %v8678_v40 = vor.u32 %v9206_v27, %v8677_v16 }
 0x83c   : > { %v12027_v2 = vpop.f32.mrf.mxu1 }
 0x83d   : > { %5895 = vmatpush.bf16.msrb.mxu0 %v8678_v40 }
 0x83e   : > { %v4707_v1 = vpop.f32.mrf.mxu2 }
 0x83f   : > { %v4816_v0 = vpop.f32.mrf.mxu3 }
 0x840   : > { %v12031_v23 = vadd.f32 %v4816_v0, %v4707_v1  ;;  %v5088_v5 = vpop.f32.mrf.mxu0  ;;  %v13903_v0 = vld [vmem:[#allocation67_spill] sm:$0xff] }
 0x841   : > { %v12033_v59 = vadd.f32 %v5088_v5, %v4602_v17 }
 0x842   : > { %13899 = vst [vmem:[#allocation29_spill] sm:$0xff] %v12031_v23 }
 0x843   : > { %4749 = vmatmul.bf16.gmra.mxu2 %v13797_v21  ;;  %5127 = vmatmul.bf16.gmra.mxu0 %v13900_v47 }
 0x844   : > { %4858 = vmatmul.bf16.gmra.mxu3 %v13845_v45  ;;  %v12038_v54 = vpop.f32.mrf.mxu1  ;;  %v4607_v45 = vadd.f32 %v11850_v52, %v13903_v0 }
 0x846   : > { %v4710_v44 = vpop.f32.mrf.mxu2 }
 0x847   : > { %v4819_v7 = vpop.f32.mrf.mxu3  ;;  %5191 = vmatmul.bf16.gmra.mxu1 %v13901_v50 }
 0x848   : > { %v12043_v33 = vadd.f32 %v4819_v7, %v4710_v44  ;;  %v5090_v38 = vpop.f32.mrf.mxu0  ;;  %v8741_v44 = vld [vmem:[#allocation5 + $0x6c0] sm:$0xf]  ;;  %v9222_v7 = vld [vmem:[#allocation5 + $0x6c4] sm:$0xf0] }
 0x849   : > { %v12045_v1 = vadd.f32 %v5090_v38, %v4604_v42  ;;  %v13905_v42 = vld [vmem:[#allocation39_spill] sm:$0xff] }
 0x84a   : > { %13902 = vst [vmem:[#allocation33_spill] sm:$0xff] %v12043_v33  ;;  %v8742_v33 = vor.u32 %v9222_v7, %v8741_v44  ;;  %v13906_v38 = vld [vmem:[#allocation23_spill] sm:$0xff]  ;;  %v9133_v44 = vld [vmem:[#allocation5 + $0x504] sm:$0xf]  ;;  %v8519_v7 = vld [vmem:[#allocation5 + $0x508] sm:$0xf0] }
 0x84c   : > { %v12047_v17 = vpop.f32.mrf.mxu1  ;;  %6004 = vmatpush.bf16.msrb.mxu1 %v8742_v33  ;;  %v13910_v33 = vld [vmem:[#allocation88_spill] sm:$0xff] }
 0x84e   : > { %v4712_v21 = vpop.f32.mrf.mxu2 }
 0x84f   : > { %v4821_v5 = vpop.f32.mrf.mxu3 }
 0x850   : > { %v12051_v47 = vadd.f32 %v4821_v5, %v4712_v21  ;;  %v5093_v23 = vpop.f32.mrf.mxu0  ;;  %v13907_v21 = vld [vmem:[#allocation68_spill] sm:$0xff] }
 0x851   : > { %v12053_v28 = vadd.f32 %v5093_v23, %v4607_v45  ;;  %v4609_v0 = vadd.f32 %v11858_v15, %v13907_v21  ;;  %v13908_v45 = vld [vmem:[#allocation37_spill] sm:$0xff] }
 0x852   : > { %13904 = vst [vmem:[#allocation67_spill] sm:$0xff] %v12051_v47 }
 0x853   : > { %4754 = vmatmul.bf16.gmra.mxu2 %v13905_v42  ;;  %5132 = vmatmul.bf16.gmra.mxu0 %v13906_v38  ;;  %v8522_v42 = vor.u32 %v9133_v44, %v8519_v7  ;;  %v4612_v38 = vadd.f32 %v13910_v33, %v11713_v34  ;;  %v13915_v34 = vld [vmem:[#allocation69_spill] sm:$0xff] }
 0x854   : > { %4863 = vmatmul.bf16.gmra.mxu3 %v13850_v30  ;;  %v12058_v37 = vpop.f32.mrf.mxu1  ;;  %v13916_v33 = vld [vmem:[#allocation41_spill] sm:$0xff] }
 0x855   : > { %5274 = vmatpush.bf16.msrb.mxu2 %v8522_v42 }
 0x856   : > { %v4715_v52 = vpop.f32.mrf.mxu2 }
 0x857   : > { %v4824_v23 = vpop.f32.mrf.mxu3  ;;  %5196 = vmatmul.bf16.gmra.mxu1 %v13908_v45 }
 0x858   : > { %v12063_v16 = vadd.f32 %v4824_v23, %v4715_v52  ;;  %v5095_v5 = vpop.f32.mrf.mxu0  ;;  %v13912_v52 = vld [vmem:[#allocation43_spill] sm:$0xff]  ;;  %v9149_v23 = vld [vmem:[#allocation5 + $0x584] sm:$0xf] }
 0x859   : > { %v12065_v27 = vadd.f32 %v5095_v5, %v4609_v0  ;;  %v13913_v0 = vld [vmem:[#allocation60_spill] sm:$0xff]  ;;  %v8583_v5 = vld [vmem:[#allocation5 + $0x588] sm:$0xf0] }
 0x85a   : > { %13909 = vst [vmem:[#allocation39_spill] sm:$0xff] %v12063_v16  ;;  %v8586_v7 = vor.u32 %v9149_v23, %v8583_v5 }
 0x85c   : > { %v12067_v30 = vpop.f32.mrf.mxu1  ;;  %5383 = vmatpush.bf16.msrb.mxu3 %v8586_v7 }
 0x85e   : > { %v4717_v40 = vpop.f32.mrf.mxu2 }
 0x85f   : > { %v4826_v47 = vpop.f32.mrf.mxu3 }
 0x860   : > { %v12071_v15 = vadd.f32 %v4826_v47, %v4717_v40  ;;  %v5098_v21 = vpop.f32.mrf.mxu0  ;;  %v4614_v47 = vadd.f32 %v11874_v26, %v13915_v34  ;;  %v8669_v26 = vld [vmem:[#allocation5 + $0x630] sm:$0xf]  ;;  %v9204_v34 = vld [vmem:[#allocation5 + $0x634] sm:$0xf0] }
 0x861   : > { %v12073_v53 = vadd.f32 %v5098_v21, %v4612_v38 }
 0x862   : > { %13911 = vst [vmem:[#allocation68_spill] sm:$0xff] %v12071_v15 }
 0x863   : > { %4759 = vmatmul.bf16.gmra.mxu2 %v13912_v52  ;;  %5137 = vmatmul.bf16.gmra.mxu0 %v13913_v0 }
 0x864   : > { %4868 = vmatmul.bf16.gmra.mxu3 %v13856_v10  ;;  %v12078_v44 = vpop.f32.mrf.mxu1  ;;  %v13919_v10 = vld [vmem:[#allocation45_spill] sm:$0xff] }
 0x865   : > { %13914 = vst [vmem:[#allocation37_spill] sm:$0xff] %v12078_v44  ;;  %v4617_v16 = vadd.f32 %v11882_v57, %v13919_v10  ;;  %v8661_v10 = vld [vmem:[#allocation5 + $0x620] sm:$0xf]  ;;  %v8653_v44 = vld [vmem:[#allocation5 + $0x610] sm:$0xf] }
 0x866   : > { %v4720_v42 = vpop.f32.mrf.mxu2 }
 0x867   : > { %v4829_v40 = vpop.f32.mrf.mxu3  ;;  %5201 = vmatmul.bf16.gmra.mxu1 %v13916_v33 }
 0x868   : > { %v12083_v38 = vadd.f32 %v4829_v40, %v4720_v42  ;;  %v5100_v21 = vpop.f32.mrf.mxu0  ;;  %v13923_v42 = vld [vmem:[#allocation31_spill] sm:$0xff] }
 0x869   : > { %v12085_v52 = vadd.f32 %v5100_v21, %v4614_v47  ;;  %v8670_v47 = vor.u32 %v9204_v34, %v8669_v26  ;;  %v12098_v21 = vld [vmem:[#allocation7 + $0xa] sm:$0x3] }
 0x86a   : > { %13917 = vst [vmem:[#allocation88_spill] sm:$0xff] %v12083_v38  ;;  %v13927_v38 = vld [vmem:[#allocation49_spill] sm:$0xff] }
 0x86b   : > { %5896 = vmatpush.bf16.msrb.mxu0 %v8670_v47  ;;  %13924 = vst [vmem:[#allocation47_spill] sm:$0xff] %v12098_v21  ;;  %v8733_v47 = vld [vmem:[#allocation5 + $0x6b0] sm:$0xf] }
 0x86c   : > { %v12087_v0 = vpop.f32.mrf.mxu1 }
 0x86d   : > { %13918 = vst [vmem:[#allocation43_spill] sm:$0xff] %v12087_v0  ;;  %v9220_v0 = vld [vmem:[#allocation5 + $0x6b4] sm:$0xf0] }
 0x86e   : > { %v4722_v15 = vpop.f32.mrf.mxu2  ;;  %v8734_v33 = vor.u32 %v9220_v0, %v8733_v47 }
 0x86f   : > { %v4831_v23 = vpop.f32.mrf.mxu3 }
 0x870   : > { %v12091_v5 = vadd.f32 %v4831_v23, %v4722_v15  ;;  %v5103_v7 = vpop.f32.mrf.mxu0  ;;  %v9202_v15 = vld [vmem:[#allocation5 + $0x624] sm:$0xf0]  ;;  %v13925_v23 = vld [vmem:[#allocation70_spill] sm:$0xff]  ;;  %6005 = vmatpush.bf16.msrb.mxu1 %v8734_v33 }
 0x871   : > { %v12093_v19 = vadd.f32 %v5103_v7, %v4617_v16  ;;  %v8662_v6 = vor.u32 %v9202_v15, %v8661_v10  ;;  %v9198_v15 = vld [vmem:[#allocation5 + $0x604] sm:$0xf0] }
 0x872   : > { %13920 = vst [vmem:[#allocation69_spill] sm:$0xff] %v12091_v5  ;;  %v13926_v5 = vld [vmem:[#allocation92_spill] sm:$0xff] }
 0x873   : > { %13921 = vst [vmem:[#allocation45_spill] sm:$0xff] %v12093_v19  ;;  %4764 = vmatmul.bf16.gmra.mxu2 %v13922_v35  ;;  %5142 = vmatmul.bf16.gmra.mxu0 %v13923_v42  ;;  %v4619_v16 = vadd.f32 %v13926_v5, %v13925_v23  ;;  %v9200_v5 = vld [vmem:[#allocation5 + $0x614] sm:$0xf0] }
 0x874   : > { %4873 = vmatmul.bf16.gmra.mxu3 %v13861_v18  ;;  %v5167_v40 = vpop.f32.mrf.mxu1  ;;  %v12107_v18 = vperm.slane %v12098_v21, 0  ;;  %5897 = vmatpush.bf16.msrb.mxu0 %v8662_v6  ;;  %v8654_v23 = vor.u32 %v9200_v5, %v8653_v44 }
 0x875   : > { %v5168_v26 = vadd.f32 %v5167_v40, %v11911_v24  ;;  %v8645_v40 = vld [vmem:[#allocation5 + $0x600] sm:$0xf] }
 0x876   : > { %v4725_v57 = vpop.f32.mrf.mxu2  ;;  %v8646_v0 = vor.u32 %v9198_v15, %v8645_v40  ;;  %v13936_v40 = vld [vmem:[#allocation74_spill] sm:$0xff] }
 0x877   : > { %v4834_v7 = vpop.f32.mrf.mxu3  ;;  %5206 = vmatmul.bf16.gmra.mxu1 %v13927_v38 }
 0x878   : > { %v12103_v35 = vadd.f32 %v4834_v7, %v4725_v57  ;;  %v5105_v42 = vpop.f32.mrf.mxu0  ;;  %v5492_v57 = vadd.f32 %v12107_v18, %v5168_v26  ;;  %5898 = vmatpush.bf16.msrb.mxu0 %v8654_v23  ;;  %v13929_v7 = vld [vmem:[#allocation53_spill] sm:$0xff]  ;;  %v13933_v26 = vld [vmem:[#allocation35_spill] sm:$0xff]  ;;  %v13934_v23 = vld [vmem:[#allocation52_spill] sm:$0xff] }
 0x879   : > { %v12109_v34 = vadd.f32 %v5105_v42, %v4619_v16  ;;  %v13930_v42 = vld [vmem:[#allocation46_spill] sm:$0xff] }
 0x87a   : > { %13928 = vst [vmem:[#allocation70_spill] sm:$0xff] %v12103_v35  ;;  %v4622_v16 = vadd.f32 %v13930_v42, %v13929_v7  ;;  %v5572_v5 = vmax.f32 %v5492_v57, 0.0  ;;  %v13935_v42 = vld [vmem:[#allocation57_spill] sm:$0xff] }
 0x87c   : > { %v5169_v19 = vpop.f32.mrf.mxu1  ;;  %5899 = vmatpush.bf16.msrb.mxu0 %v8646_v0  ;;  %v9211_v0 = vld [vmem:[#allocation5 + $0x674] sm:$0xf] }
 0x87d   : > { %v5170_v10 = vadd.f32 %v5169_v19, %v11925_v3  ;;  %v13932_v3 = vld [vmem:[#allocation51_spill] sm:$0xff] }
 0x87e   : > { %v4727_v24 = vpop.f32.mrf.mxu2 }
 0x87f   : > { %v5494_v6 = vadd.f32 %v12107_v18, %v5170_v10  ;;  %v4836_v35 = vpop.f32.mrf.mxu3 }
 0x880   : > { %v12116_v47 = vadd.f32 %v4836_v35, %v4727_v24  ;;  %v5108_v44 = vpop.f32.mrf.mxu0  ;;  %v4624_v35 = vadd.f32 %v11906_v12, %v13935_v42 }
 0x881   : > { %v5574_v33 = vmax.f32 %v5494_v6, 0.0  ;;  %v12118_v21 = vadd.f32 %v5108_v44, %v4622_v16  ;;  %v8703_v44 = vld [vmem:[#allocation5 + $0x678] sm:$0xf0] }
 0x883   : > { %v12120_v19 = vpack.c.bf16 %v5574_v33, %v5572_v5  ;;  %4769 = vmatmul.bf16.gmra.mxu2 %v13932_v3  ;;  %5147 = vmatmul.bf16.gmra.mxu0 %v13933_v26  ;;  %v8706_v5 = vor.u32 %v9211_v0, %v8703_v44  ;;  %v9227_v33 = vld [vmem:[#allocation5 + $0x6f4] sm:$0xf]  ;;  %v8767_v3 = vld [vmem:[#allocation5 + $0x6f8] sm:$0xf0] }
 0x884   : > { %4878 = vmatmul.bf16.gmra.mxu3 %v13934_v23  ;;  %v5172_v7 = vpop.f32.mrf.mxu1  ;;  %v8770_v23 = vor.u32 %v9227_v33, %v8767_v3  ;;  %v13941_v3 = vld [vmem:[#allocation20_spill] sm:$0xff] }
 0x885   : > { %13931 = vst [vmem:[#allocation92_spill] sm:$0xff] %v12120_v19  ;;  %v5173_v16 = vadd.f32 %v5172_v7, %v11933_v43  ;;  %6110 = vmatpush.bf16.msra.mxu2 %v8706_v5  ;;  %v13939_v5 = vld [vmem:[#allocation55_spill] sm:$0xff] }
 0x886   : > { %v4730_v10 = vpop.f32.mrf.mxu2  ;;  %6219 = vmatpush.bf16.msra.mxu3 %v8770_v23  ;;  %v4629_v23 = vadd.f32 %v11927_v46, %v13941_v3 }
 0x887   : > { %v4839_v24 = vpop.f32.mrf.mxu3  ;;  %5211 = vmatmul.bf16.gmra.mxu1 %v13936_v40  ;;  %v5496_v12 = vadd.f32 %v12107_v18, %v5173_v16  ;;  %v13940_v16 = vld [vmem:[#allocation63_spill] sm:$0xff] }
 0x888   : > { %v12128_v57 = vadd.f32 %v4839_v24, %v4730_v10  ;;  %v5110_v15 = vpop.f32.mrf.mxu0  ;;  %v13938_v24 = vld [vmem:[#allocation75_spill] sm:$0xff] }
 0x889   : > { %v12131_v6 = vadd.f32 %v5110_v15, %v4624_v35  ;;  %v5576_v0 = vmax.f32 %v5496_v12, 0.0 }
 0x88a   : > { %13937 = vst [vmem:[#allocation49_spill] sm:$0xff] %v12128_v57  ;;  %v4627_v57 = vadd.f32 %v11916_v14, %v13938_v24 }
 0x88c   : > { %v5174_v26 = vpop.f32.mrf.mxu1 }
 0x88d   : > { %v5175_v42 = vadd.f32 %v5174_v26, %v11945_v48 }
 0x88e   : > { %v4732_v10 = vpop.f32.mrf.mxu2 }
 0x88f   : > { %v5498_v43 = vadd.f32 %v12107_v18, %v5175_v42  ;;  %v4841_v7 = vpop.f32.mrf.mxu3 }
 0x890   : > { %v12138_v35 = vadd.f32 %v4841_v7, %v4732_v10  ;;  %v5113_v15 = vpop.f32.mrf.mxu0  ;;  %v13942_v10 = vld [vmem:[#allocation76_spill] sm:$0xff] }
 0x891   : > { %v5578_v44 = vmax.f32 %v5498_v43, 0.0  ;;  %v12140_v33 = vadd.f32 %v5113_v15, %v4627_v57 }
 0x893   : > { %4774 = vmatmul.bf16.gmra.mxu2 %v13939_v5  ;;  %5152 = vmatmul.bf16.gmra.mxu0 %v13940_v16  ;;  %v12144_v48 = vpack.c.bf16 %v5578_v44, %v5576_v0  ;;  %v13944_v44 = vld [vmem:[#allocation77_spill] sm:$0xff] }
 0x894   : > { %4883 = vmatmul.bf16.gmra.mxu3 %v13873_v32  ;;  %v5177_v26 = vpop.f32.mrf.mxu1  ;;  %v4632_v5 = vadd.f32 %v11938_v56, %v13944_v44  ;;  %v13947_v44 = vld [vmem:[#allocation78_spill] sm:$0xff] }
 0x895   : > { %v5178_v24 = vadd.f32 %v5177_v26, %v11953_v62  ;;  %v8725_v26 = vld [vmem:[#allocation5 + $0x6a0] sm:$0xf] }
 0x896   : > { %v4735_v14 = vpop.f32.mrf.mxu2 }
 0x897   : > { %v4844_v42 = vpop.f32.mrf.mxu3  ;;  %5216 = vmatmul.bf16.gmra.mxu1 %v13942_v10  ;;  %v5500_v15 = vadd.f32 %v12107_v18, %v5178_v24  ;;  %v13945_v24 = vld [vmem:[#allocation72_spill] sm:$0xff] }
 0x898   : > { %v12150_v12 = vadd.f32 %v4844_v42, %v4735_v14  ;;  %v5115_v57 = vpop.f32.mrf.mxu0 }
 0x899   : > { %v12153_v43 = vadd.f32 %v5115_v57, %v4629_v23  ;;  %v5580_v42 = vmax.f32 %v5500_v15, 0.0  ;;  %v9218_v23 = vld [vmem:[#allocation5 + $0x6a4] sm:$0xf0] }
 0x89a   : > { %13943 = vst [vmem:[#allocation53_spill] sm:$0xff] %v12150_v12  ;;  %v8726_v57 = vor.u32 %v9218_v23, %v8725_v26  ;;  %v13949_v23 = vld [vmem:[#allocation79_spill] sm:$0xff] }
 0x89c   : > { %v5179_v7 = vpop.f32.mrf.mxu1  ;;  %6006 = vmatpush.bf16.msrb.mxu1 %v8726_v57  ;;  %v4637_v57 = vadd.f32 %v11958_v4, %v13949_v23 }
 0x89d   : > { %v5180_v32 = vadd.f32 %v5179_v7, %v11965_v31 }
 0x89e   : > { %v4737_v0 = vpop.f32.mrf.mxu2 }
 0x89f   : > { %v5502_v46 = vadd.f32 %v12107_v18, %v5180_v32  ;;  %v4846_v3 = vpop.f32.mrf.mxu3  ;;  %v13946_v32 = vld [vmem:[#allocation24_spill] sm:$0xff] }
 0x8a0   : > { %v12160_v16 = vadd.f32 %v4846_v3, %v4737_v0  ;;  %v5118_v14 = vpop.f32.mrf.mxu0  ;;  %v4634_v15 = vadd.f32 %v11947_v11, %v13946_v32 }
 0x8a1   : > { %v5582_v12 = vmax.f32 %v5502_v46, 0.0  ;;  %v12162_v62 = vadd.f32 %v5118_v14, %v4632_v5 }
 0x8a3   : > { %5275 = vmatmul.bf16.vlgmr.msrb.gmra.mxu2 %v13945_v24  ;;  %5900 = vmatmul.bf16.vlgmr.msrb.gmra.mxu0 %v12120_v19  ;;  %v12166_v31 = vpack.c.bf16 %v5582_v12, %v5580_v42  ;;  %v8759_v19 = vld [vmem:[#allocation5 + $0x6e8] sm:$0xf0] }
 0x8a4   : > { %5384 = vmatmul.bf16.vlgmr.msrb.gmra.mxu3 %v11596_v39  ;;  %v5182_v56 = vpop.f32.mrf.mxu1 }
 0x8a5   : > { %v5183_v3 = vadd.f32 %v5182_v56, %v11973_v8  ;;  %v9209_v56 = vld [vmem:[#allocation5 + $0x664] sm:$0xf] }
 0x8a6   : > { %v4740_v7 = vpop.f32.mrf.mxu2 }
 0x8a7   : > { %v4849_v0 = vpop.f32.mrf.mxu3  ;;  %5221 = vmatmul.bf16.gmra.mxu1 %v13947_v44  ;;  %v5504_v42 = vadd.f32 %v12107_v18, %v5183_v3  ;;  %v9225_v3 = vld [vmem:[#allocation5 + $0x6e4] sm:$0xf] }
 0x8a8   : > { %v12172_v5 = vadd.f32 %v4849_v0, %v4740_v7  ;;  %v5120_v46 = vpop.f32.mrf.mxu0  ;;  %v8762_v4 = vor.u32 %v9225_v3, %v8759_v19 }
 0x8a9   : > { %v12175_v14 = vadd.f32 %v5120_v46, %v4634_v15  ;;  %v5584_v0 = vmax.f32 %v5504_v42, 0.0  ;;  %v8695_v15 = vld [vmem:[#allocation5 + $0x668] sm:$0xf0] }
 0x8aa   : > { %13948 = vst [vmem:[#allocation46_spill] sm:$0xff] %v12172_v5  ;;  %v8698_v46 = vor.u32 %v9209_v56, %v8695_v15  ;;  %6220 = vmatpush.bf16.msra.mxu3 %v8762_v4 }
 0x8ac   : > { %v5184_v12 = vpop.f32.mrf.mxu1  ;;  %6111 = vmatpush.bf16.msra.mxu2 %v8698_v46  ;;  %v13953_v46 = vld [vmem:[#allocation81_spill] sm:$0xff] }
 0x8ad   : > { %v5185_v39 = vadd.f32 %v5184_v12, %v11985_v41  ;;  %v13950_v41 = vld [vmem:[#allocation73_spill] sm:$0xff]  ;;  %v4642_v3 = vadd.f32 %v11978_v25, %v13953_v46 }
 0x8ae   : > { %v4742_v26 = vpop.f32.mrf.mxu2 }
 0x8af   : > { %v5506_v11 = vadd.f32 %v12107_v18, %v5185_v39  ;;  %v4851_v24 = vpop.f32.mrf.mxu3 }
 0x8b0   : > { %v12182_v32 = vadd.f32 %v4851_v24, %v4742_v26  ;;  %v5123_v7 = vpop.f32.mrf.mxu0  ;;  %v13951_v26 = vld [vmem:[#allocation28_spill] sm:$0xff] }
 0x8b1   : > { %v5586_v5 = vmax.f32 %v5506_v11, 0.0  ;;  %v12184_v8 = vadd.f32 %v5123_v7, %v4637_v57  ;;  %v4639_v23 = vadd.f32 %v11967_v61, %v13951_v26  ;;  %v13952_v11 = vld [vmem:[#allocation80_spill] sm:$0xff] }
 0x8b3   : > { %5280 = vmatmul.bf16.gmra.mxu2 %v13950_v41  ;;  %5905 = vmatmul.bf16.gmra.mxu0 %v12144_v48  ;;  %v12188_v12 = vpack.c.bf16 %v5586_v5, %v5584_v0 }
 0x8b4   : > { %5389 = vmatmul.bf16.gmra.mxu3 %v13883_v29  ;;  %v5187_v39 = vpop.f32.mrf.mxu1 }
 0x8b5   : > { %v5188_v56 = vadd.f32 %v5187_v39, %v11993_v9  ;;  %v13954_v39 = vld [vmem:[#allocation58_spill] sm:$0xff] }
 0x8b6   : > { %v4745_v42 = vpop.f32.mrf.mxu2 }
 0x8b7   : > { %v4854_v57 = vpop.f32.mrf.mxu3  ;;  %5226 = vmatmul.bf16.gmra.mxu1 %v13952_v11  ;;  %v5508_v29 = vadd.f32 %v12107_v18, %v5188_v56 }
 0x8b8   : > { %v12194_v24 = vadd.f32 %v4854_v57, %v4745_v42  ;;  %v5125_v7 = vpop.f32.mrf.mxu0 }
 0x8b9   : > { %v12197_v19 = vadd.f32 %v5125_v7, %v4639_v23  ;;  %v5588_v26 = vmax.f32 %v5508_v29, 0.0  ;;  %v13956_v7 = vld [vmem:[#allocation32_spill] sm:$0xff] }
 0x8ba   : > { %v4644_v56 = vadd.f32 %v11987_v13, %v13956_v7 }
 0x8bc   : > { %v5189_v5 = vpop.f32.mrf.mxu1 }
 0x8bd   : > { %v5190_v0 = vadd.f32 %v5189_v5, %v12005_v60 }
 0x8be   : > { %v4747_v15 = vpop.f32.mrf.mxu2 }
 0x8bf   : > { %v5510_v61 = vadd.f32 %v12107_v18, %v5190_v0  ;;  %v4856_v41 = vpop.f32.mrf.mxu3  ;;  %v13957_v0 = vld [vmem:[#allocation82_spill] sm:$0xff] }
 0x8c0   : > { %v12204_v4 = vadd.f32 %v4856_v41, %v4747_v15  ;;  %v5128_v42 = vpop.f32.mrf.mxu0  ;;  %v9216_v41 = vld [vmem:[#allocation5 + $0x694] sm:$0xf0] }
 0x8c1   : > { %v5590_v57 = vmax.f32 %v5510_v61, 0.0  ;;  %v12206_v9 = vadd.f32 %v5128_v42, %v4642_v3  ;;  %v8717_v61 = vld [vmem:[#allocation5 + $0x690] sm:$0xf] }
 0x8c2   : > { %v8718_v42 = vor.u32 %v9216_v41, %v8717_v61  ;;  %v13960_v61 = vld [vmem:[#allocation59_spill] sm:$0xff]  ;;  %v13962_v41 = vld [vmem:[#allocation36_spill] sm:$0xff] }
 0x8c3   : > { %5285 = vmatmul.bf16.gmra.mxu2 %v13954_v39  ;;  %5910 = vmatmul.bf16.gmra.mxu0 %v12166_v31  ;;  %v12210_v23 = vpack.c.bf16 %v5590_v57, %v5588_v26  ;;  %v13959_v39 = vld [vmem:[#allocation83_spill] sm:$0xff] }
 0x8c4   : > { %5394 = vmatmul.bf16.gmra.mxu3 %v11632_v51  ;;  %v5192_v60 = vpop.f32.mrf.mxu1  ;;  %6007 = vmatpush.bf16.msrb.mxu1 %v8718_v42  ;;  %v4647_v7 = vadd.f32 %v11998_v58, %v13959_v39  ;;  %v4649_v42 = vadd.f32 %v12007_v36, %v13962_v41 }
 0x8c5   : > { %13955 = vst [vmem:[#allocation51_spill] sm:$0xff] %v12210_v23  ;;  %v5193_v46 = vadd.f32 %v5192_v60, %v12013_v63 }
 0x8c6   : > { %v4750_v25 = vpop.f32.mrf.mxu2 }
 0x8c7   : > { %v4859_v5 = vpop.f32.mrf.mxu3  ;;  %5231 = vmatmul.bf16.gmra.mxu1 %v13957_v0  ;;  %v5512_v51 = vadd.f32 %v12107_v18, %v5193_v46 }
 0x8c8   : > { %v12216_v29 = vadd.f32 %v4859_v5, %v4750_v25  ;;  %v5130_v15 = vpop.f32.mrf.mxu0 }
 0x8c9   : > { %v12219_v3 = vadd.f32 %v5130_v15, %v4644_v56  ;;  %v5592_v60 = vmax.f32 %v5512_v51, 0.0 }
 0x8ca   : > { %13958 = vst [vmem:[#allocation52_spill] sm:$0xff] %v12216_v29 }
 0x8cc   : > { %v5194_v26 = vpop.f32.mrf.mxu1 }
 0x8cd   : > { %v5195_v57 = vadd.f32 %v5194_v26, %v12025_v49 }
 0x8ce   : > { %v4752_v13 = vpop.f32.mrf.mxu2 }
 0x8cf   : > { %v5514_v25 = vadd.f32 %v12107_v18, %v5195_v57  ;;  %v4861_v5 = vpop.f32.mrf.mxu3  ;;  %v13963_v57 = vld [vmem:[#allocation84_spill] sm:$0xff] }
 0x8d0   : > { %v12226_v29 = vadd.f32 %v4861_v5, %v4752_v13  ;;  %v5133_v63 = vpop.f32.mrf.mxu0  ;;  %v8687_v5 = vld [vmem:[#allocation5 + $0x658] sm:$0xf0] }
 0x8d1   : > { %v5594_v56 = vmax.f32 %v5514_v25, 0.0  ;;  %v12228_v15 = vadd.f32 %v5133_v63, %v4647_v7  ;;  %v9207_v25 = vld [vmem:[#allocation5 + $0x654] sm:$0xf] }
 0x8d2   : > { %v8690_v63 = vor.u32 %v9207_v25, %v8687_v5 }
 0x8d3   : > { %5290 = vmatmul.bf16.gmra.mxu2 %v13960_v61  ;;  %5915 = vmatmul.bf16.gmra.mxu0 %v12188_v12  ;;  %v12232_v46 = vpack.c.bf16 %v5594_v56, %v5592_v60  ;;  %v9223_v60 = vld [vmem:[#allocation5 + $0x6d4] sm:$0xf] }
 0x8d4   : > { %5399 = vmatmul.bf16.gmra.mxu3 %v13893_v20  ;;  %v5197_v49 = vpop.f32.mrf.mxu1  ;;  %v8751_v20 = vld [vmem:[#allocation5 + $0x6d8] sm:$0xf0]  ;;  %6112 = vmatpush.bf16.msra.mxu2 %v8690_v63  ;;  %v13967_v63 = vld [vmem:[#allocation18_spill] sm:$0xff] }
 0x8d5   : > { %13961 = vst [vmem:[#allocation57_spill] sm:$0xff] %v12232_v46  ;;  %v5198_v39 = vadd.f32 %v5197_v49, %v12033_v59  ;;  %v8754_v56 = vor.u32 %v9223_v60, %v8751_v20  ;;  %v13969_v20 = vld [vmem:[#allocation40_spill] sm:$0xff] }
 0x8d6   : > { %v4755_v58 = vpop.f32.mrf.mxu2 }
 0x8d7   : > { %v4864_v26 = vpop.f32.mrf.mxu3  ;;  %5236 = vmatmul.bf16.gmra.mxu1 %v13963_v57  ;;  %v5516_v36 = vadd.f32 %v12107_v18, %v5198_v39  ;;  %6221 = vmatpush.bf16.msra.mxu3 %v8754_v56  ;;  %v4654_v56 = vadd.f32 %v12027_v2, %v13969_v20 }
 0x8d8   : > { %v12238_v51 = vadd.f32 %v4864_v26, %v4755_v58  ;;  %v5135_v13 = vpop.f32.mrf.mxu0  ;;  %v13965_v26 = vld [vmem:[#allocation85_spill] sm:$0xff] }
 0x8d9   : > { %v12241_v7 = vadd.f32 %v5135_v13, %v4649_v42  ;;  %v5596_v25 = vmax.f32 %v5516_v36, 0.0 }
 0x8da   : > { %13964 = vst [vmem:[#allocation74_spill] sm:$0xff] %v12238_v51  ;;  %v4652_v51 = vadd.f32 %v12018_v22, %v13965_v26 }
 0x8dc   : > { %v5199_v61 = vpop.f32.mrf.mxu1 }
 0x8dd   : > { %v5200_v41 = vadd.f32 %v5199_v61, %v12045_v1 }
 0x8de   : > { %v4757_v58 = vpop.f32.mrf.mxu2 }
 0x8df   : > { %v5518_v59 = vadd.f32 %v12107_v18, %v5200_v41  ;;  %v4866_v49 = vpop.f32.mrf.mxu3  ;;  %v13970_v41 = vld [vmem:[#allocation86_spill] sm:$0xff] }
 0x8e0   : > { %v12248_v42 = vadd.f32 %v4866_v49, %v4757_v58  ;;  %v5138_v13 = vpop.f32.mrf.mxu0 }
 0x8e1   : > { %v5598_v5 = vmax.f32 %v5518_v59, 0.0  ;;  %v12250_v60 = vadd.f32 %v5138_v13, %v4652_v51 }
 0x8e2   : > { %13966 = vst [vmem:[#allocation75_spill] sm:$0xff] %v12248_v42 }
 0x8e3   : > { %5295 = vmatmul.bf16.gmra.mxu2 %v13967_v63  ;;  %5920 = vmatmul.bf16.gmra.mxu0 %v12210_v23  ;;  %v12254_v1 = vpack.c.bf16 %v5598_v5, %v5596_v25  ;;  %v13972_v25 = vld [vmem:[#allocation87_spill] sm:$0xff] }
 0x8e4   : > { %5404 = vmatmul.bf16.gmra.mxu3 %v13897_v55  ;;  %v5202_v39 = vpop.f32.mrf.mxu1  ;;  %v4657_v5 = vadd.f32 %v12038_v54, %v13972_v25  ;;  %v13977_v25 = vld [vmem:[#allocation89_spill] sm:$0xff] }
 0x8e5   : > { %13968 = vst [vmem:[#allocation55_spill] sm:$0xff] %v12254_v1  ;;  %v5203_v58 = vadd.f32 %v5202_v39, %v12053_v28  ;;  %v8709_v39 = vld [vmem:[#allocation5 + $0x680] sm:$0xf] }
 0x8e6   : > { %v4760_v22 = vpop.f32.mrf.mxu2 }
 0x8e7   : > { %v4869_v61 = vpop.f32.mrf.mxu3  ;;  %5241 = vmatmul.bf16.gmra.mxu1 %v13970_v41  ;;  %v5520_v49 = vadd.f32 %v12107_v18, %v5203_v58  ;;  %v13974_v58 = vld [vmem:[#allocation22_spill] sm:$0xff] }
 0x8e8   : > { %v12260_v36 = vadd.f32 %v4869_v61, %v4760_v22  ;;  %v5140_v51 = vpop.f32.mrf.mxu0 }
 0x8e9   : > { %v12263_v26 = vadd.f32 %v5140_v51, %v4654_v56  ;;  %v5600_v61 = vmax.f32 %v5520_v49, 0.0  ;;  %v9214_v56 = vld [vmem:[#allocation5 + $0x684] sm:$0xf0] }
 0x8ea   : > { %13971 = vst [vmem:[#allocation20_spill] sm:$0xff] %v12260_v36  ;;  %v8710_v51 = vor.u32 %v9214_v56, %v8709_v39  ;;  %v13979_v56 = vld [vmem:[#allocation90_spill] sm:$0xff] }
 0x8ec   : > { %v5204_v59 = vpop.f32.mrf.mxu1  ;;  %6008 = vmatpush.bf16.msrb.mxu1 %v8710_v51  ;;  %v4662_v51 = vadd.f32 %v12058_v37, %v13979_v56 }
 0x8ed   : > { %v5205_v55 = vadd.f32 %v5204_v59, %v12065_v27 }
 0x8ee   : > { %v4762_v13 = vpop.f32.mrf.mxu2 }
 0x8ef   : > { %v5522_v2 = vadd.f32 %v12107_v18, %v5205_v55  ;;  %v4871_v63 = vpop.f32.mrf.mxu3  ;;  %v13976_v55 = vld [vmem:[#allocation44_spill] sm:$0xff] }
 0x8f0   : > { %v12270_v20 = vadd.f32 %v4871_v63, %v4762_v13  ;;  %v5143_v22 = vpop.f32.mrf.mxu0  ;;  %v4659_v49 = vadd.f32 %v12047_v17, %v13976_v55 }
 0x8f1   : > { %v5602_v36 = vmax.f32 %v5522_v2, 0.0  ;;  %v12272_v28 = vadd.f32 %v5143_v22, %v4657_v5 }
 0x8f2   : > { %13973 = vst [vmem:[#allocation76_spill] sm:$0xff] %v12270_v20 }
 0x8f3   : > { %5300 = vmatmul.bf16.gmra.mxu2 %v13974_v58  ;;  %5925 = vmatmul.bf16.gmra.mxu0 %v12232_v46  ;;  %v12276_v27 = vpack.c.bf16 %v5602_v36, %v5600_v61  ;;  %v8743_v46 = vld [vmem:[#allocation5 + $0x6c8] sm:$0xf0] }
 0x8f4   : > { %5409 = vmatmul.bf16.gmra.mxu3 %v13901_v50  ;;  %v5207_v54 = vpop.f32.mrf.mxu1 }
 0x8f5   : > { %13975 = vst [vmem:[#allocation77_spill] sm:$0xff] %v12276_v27  ;;  %v5208_v63 = vadd.f32 %v5207_v54, %v12073_v53  ;;  %v9205_v54 = vld [vmem:[#allocation5 + $0x644] sm:$0xf] }
 0x8f6   : > { %v4765_v59 = vpop.f32.mrf.mxu2 }
 0x8f7   : > { %v4874_v13 = vpop.f32.mrf.mxu3  ;;  %5246 = vmatmul.bf16.gmra.mxu1 %v13977_v25  ;;  %v5524_v61 = vadd.f32 %v12107_v18, %v5208_v63  ;;  %v9221_v63 = vld [vmem:[#allocation5 + $0x6c4] sm:$0xf] }
 0x8f8   : > { %v12282_v5 = vadd.f32 %v4874_v13, %v4765_v59  ;;  %v5145_v2 = vpop.f32.mrf.mxu0  ;;  %v8746_v37 = vor.u32 %v9221_v63, %v8743_v46  ;;  %v13987_v63 = vld [vmem:[#allocation93_spill] sm:$0xff] }
 0x8f9   : > { %v12285_v22 = vadd.f32 %v5145_v2, %v4659_v49  ;;  %v5604_v13 = vmax.f32 %v5524_v61, 0.0  ;;  %v8679_v49 = vld [vmem:[#allocation5 + $0x648] sm:$0xf0] }
 0x8fa   : > { %13978 = vst [vmem:[#allocation72_spill] sm:$0xff] %v12282_v5  ;;  %v8682_v2 = vor.u32 %v9205_v54, %v8679_v49  ;;  %6222 = vmatpush.bf16.msra.mxu3 %v8746_v37  ;;  %v13986_v54 = vld [vmem:[#allocation45_spill] sm:$0xff] }
 0x8fc   : > { %v5209_v36 = vpop.f32.mrf.mxu1  ;;  %6113 = vmatpush.bf16.msra.mxu2 %v8682_v2 }
 0x8fd   : > { %v5210_v50 = vadd.f32 %v5209_v36, %v12085_v52  ;;  %v13981_v52 = vld [vmem:[#allocation26_spill] sm:$0xff] }
 0x8fe   : > { %v4767_v39 = vpop.f32.mrf.mxu2 }
 0x8ff   : > { %v5526_v17 = vadd.f32 %v12107_v18, %v5210_v50  ;;  %v4876_v58 = vpop.f32.mrf.mxu3 }
 0x900   : > { %v12292_v55 = vadd.f32 %v4876_v58, %v4767_v39  ;;  %v5148_v59 = vpop.f32.mrf.mxu0  ;;  %v13983_v39 = vld [vmem:[#allocation48_spill] sm:$0xff] }
 0x901   : > { %v5606_v5 = vmax.f32 %v5526_v17, 0.0  ;;  %v12294_v53 = vadd.f32 %v5148_v59, %v4662_v51  ;;  %v4664_v56 = vadd.f32 %v12067_v30, %v13983_v39  ;;  %v13984_v17 = vld [vmem:[#allocation91_spill] sm:$0xff] }
 0x902   : > { %13980 = vst [vmem:[#allocation24_spill] sm:$0xff] %v12292_v55 }
 0x903   : > { %5305 = vmatmul.bf16.gmra.mxu2 %v13981_v52  ;;  %5930 = vmatmul.bf16.gmra.mxu0 %v12254_v1  ;;  %v12298_v36 = vpack.c.bf16 %v5606_v5, %v5604_v13  ;;  %v13988_v52 = vld [vmem:[#allocation37_spill] sm:$0xff] }
 0x904   : > { %5414 = vmatmul.bf16.gmra.mxu3 %v13908_v45  ;;  %v5212_v50 = vpop.f32.mrf.mxu1  ;;  %v4667_v37 = vadd.f32 %v13988_v52, %v13987_v63  ;;  %v13995_v52 = vld [vmem:[#allocation94_spill] sm:$0xff] }
 0x905   : > { %13982 = vst [vmem:[#allocation78_spill] sm:$0xff] %v12298_v36  ;;  %v5213_v49 = vadd.f32 %v5212_v50, %v13986_v54 }
 0x906   : > { %v4770_v61 = vpop.f32.mrf.mxu2 }
 0x907   : > { %v4879_v51 = vpop.f32.mrf.mxu3  ;;  %5251 = vmatmul.bf16.gmra.mxu1 %v13984_v17  ;;  %v5528_v45 = vadd.f32 %v12107_v18, %v5213_v49 }
 0x908   : > { %v12304_v58 = vadd.f32 %v4879_v51, %v4770_v61  ;;  %v5150_v59 = vpop.f32.mrf.mxu0 }
 0x909   : > { %v12307_v46 = vadd.f32 %v5150_v59, %v4664_v56  ;;  %v5608_v51 = vmax.f32 %v5528_v45, 0.0  ;;  %v13990_v56 = vld [vmem:[#allocation30_spill] sm:$0xff] }
 0x90a   : > { %13985 = vst [vmem:[#allocation79_spill] sm:$0xff] %v12304_v58 }
 0x90c   : > { %v5214_v5 = vpop.f32.mrf.mxu1 }
 0x90d   : > { %v5215_v13 = vadd.f32 %v5214_v5, %v12109_v34  ;;  %v13992_v34 = vld [vmem:[#allocation41_spill] sm:$0xff]  ;;  %v13993_v5 = vld [vmem:[#allocation95_spill] sm:$0xff] }
 0x90e   : > { %v4772_v2 = vpop.f32.mrf.mxu2 }
 0x90f   : > { %v5530_v30 = vadd.f32 %v12107_v18, %v5215_v13  ;;  %v4881_v39 = vpop.f32.mrf.mxu3  ;;  %v13994_v13 = vld [vmem:[#allocation43_spill] sm:$0xff] }
 0x910   : > { %v12314_v1 = vadd.f32 %v4881_v39, %v4772_v2  ;;  %v5153_v61 = vpop.f32.mrf.mxu0  ;;  %v4669_v63 = vadd.f32 %v13994_v13, %v13993_v5  ;;  %v9260_v13 = vld [vmem:[#allocation5 + $0x7f4] sm:$0xf0] }
 0x911   : > { %v5610_v58 = vmax.f32 %v5530_v30, 0.0  ;;  %v12316_v50 = vadd.f32 %v5153_v61, %v4667_v37 }
 0x912   : > { %13989 = vst [vmem:[#allocation73_spill] sm:$0xff] %v12314_v1 }
 0x913   : > { %5310 = vmatmul.bf16.gmra.mxu2 %v13990_v56  ;;  %5935 = vmatmul.bf16.gmra.mxu0 %v12276_v27  ;;  %v12320_v59 = vpack.c.bf16 %v5610_v58, %v5608_v51  ;;  %v8829_v56 = vld [vmem:[#allocation5 + $0x770] sm:$0xf] }
 0x914   : > { %5419 = vmatmul.bf16.gmra.mxu3 %v13992_v34  ;;  %v5217_v54 = vpop.f32.mrf.mxu1  ;;  %v9244_v34 = vld [vmem:[#allocation5 + $0x774] sm:$0xf0]  ;;  %v8893_v27 = vld [vmem:[#allocation5 + $0x7f0] sm:$0xf] }
 0x915   : > { %13991 = vst [vmem:[#allocation28_spill] sm:$0xff] %v12320_v59  ;;  %v5218_v30 = vadd.f32 %v5217_v54, %v12118_v21  ;;  %v8830_v5 = vor.u32 %v9244_v34, %v8829_v56  ;;  %v9203_v34 = vld [vmem:[#allocation5 + $0x634] sm:$0xf] }
 0x916   : > { %v4775_v49 = vpop.f32.mrf.mxu2 }
 0x917   : > { %v4884_v2 = vpop.f32.mrf.mxu3  ;;  %5256 = vmatmul.bf16.gmra.mxu1 %v13995_v52  ;;  %v5532_v58 = vadd.f32 %v12107_v18, %v5218_v30  ;;  %6648 = vmatpush.bf16.msra.mxu0 %v8830_v5  ;;  %v8671_v5 = vld [vmem:[#allocation5 + $0x638] sm:$0xf0] }
 0x918   : > { %v12326_v45 = vadd.f32 %v4884_v2, %v4775_v49  ;;  %v5155_v37 = vpop.f32.mrf.mxu0  ;;  %v8894_v2 = vor.u32 %v9260_v13, %v8893_v27  ;;  %v14000_v27 = vld [vmem:[#allocation96_spill] sm:$0xff]  ;;  %v8674_v13 = vor.u32 %v9203_v34, %v8671_v5 }
 0x919   : > { %v12329_v39 = vadd.f32 %v5155_v37, %v4669_v63  ;;  %v5612_v54 = vmax.f32 %v5532_v58, 0.0  ;;  %v13998_v37 = vld [vmem:[#allocation34_spill] sm:$0xff]  ;;  %v14001_v58 = vld [vmem:[#allocation56_spill] sm:$0xff] }
 0x91a   : > { %13996 = vst [vmem:[#allocation80_spill] sm:$0xff] %v12326_v45  ;;  %6757 = vmatpush.bf16.msra.mxu1 %v8894_v2  ;;  %6114 = vmatpush.bf16.msra.mxu2 %v8674_v13 }
 0x91c   : > { %v5219_v61 = vpop.f32.mrf.mxu1 }
 0x91d   : > { %v5220_v51 = vadd.f32 %v5219_v61, %v12131_v6 }
 0x91e   : > { %v4777_v1 = vpop.f32.mrf.mxu2 }
 0x91f   : > { %v5534_v55 = vadd.f32 %v12107_v18, %v5220_v51  ;;  %v4886_v49 = vpop.f32.mrf.mxu3 }
 0x920   : > { %v12334_v45 = vadd.f32 %v4886_v49, %v4777_v1  ;;  %v12336_v21 = vpop.f32.mrf.mxu0 }
 0x921   : > { %v5614_v63 = vmax.f32 %v5534_v55, 0.0 }
 0x922   : > { %13997 = vst [vmem:[#allocation81_spill] sm:$0xff] %v12334_v45  ;;  %v8735_v45 = vld [vmem:[#allocation5 + $0x6b8] sm:$0xf0] }
 0x923   : > { %5315 = vmatmul.bf16.gmra.mxu2 %v13998_v37  ;;  %5940 = vmatmul.bf16.gmra.mxu0 %v12298_v36  ;;  %v12340_v6 = vpack.c.bf16 %v5614_v63, %v5612_v54  ;;  %v9219_v36 = vld [vmem:[#allocation5 + $0x6b4] sm:$0xf] }
 0x924   : > { %5424 = vmatmul.bf16.gmra.mxu3 %v13927_v38  ;;  %v5222_v30 = vpop.f32.mrf.mxu1  ;;  %v14002_v38 = vld [vmem:[#allocation47_spill] sm:$0xff]  ;;  %v8738_v23 = vor.u32 %v9219_v36, %v8735_v45 }
 0x925   : > { %13999 = vst [vmem:[#allocation58_spill] sm:$0xff] %v12340_v6  ;;  %v5223_v56 = vadd.f32 %v5222_v30, %v12140_v33  ;;  %v12350_v63 = vperm.slane %v14002_v38, 1  ;;  %v14003_v30 = vld [vmem:[#allocation97_spill] sm:$0xff] }
 0x926   : > { %v5276_v61 = vpop.f32.mrf.mxu2  ;;  %6223 = vmatpush.bf16.msra.mxu3 %v8738_v23 }
 0x927   : > { %v5385_v51 = vpop.f32.mrf.mxu3  ;;  %5261 = vmatmul.bf16.gmra.mxu1 %v14000_v27  ;;  %v5277_v55 = vadd.f32 %v5276_v61, %v14001_v58  ;;  %v5536_v2 = vadd.f32 %v12107_v18, %v5223_v56 }
 0x928   : > { %v12344_v1 = vpop.f32.mrf.mxu0 }
 0x929   : > { %v5386_v54 = vadd.f32 %v5385_v51, %v5277_v55  ;;  %v5616_v5 = vmax.f32 %v5536_v2, 0.0 }
 0x92b   : > { %v5493_v51 = vadd.f32 %v12350_v63, %v5386_v54 }
 0x92c   : > { %v5224_v49 = vpop.f32.mrf.mxu1 }
 0x92d   : > { %v5225_v37 = vadd.f32 %v5224_v49, %v12153_v43  ;;  %v14004_v43 = vld [vmem:[#allocation38_spill] sm:$0xff]  ;;  %v5573_v45 = vmax.f32 %v5493_v51, 0.0 }
 0x92e   : > { %v5278_v20 = vpop.f32.mrf.mxu2 }
 0x92f   : > { %v5538_v33 = vadd.f32 %v12107_v18, %v5225_v37  ;;  %v5279_v61 = vadd.f32 %v5278_v20, %v14003_v30  ;;  %v5387_v58 = vpop.f32.mrf.mxu3 }
 0x930   : > { %v12355_v34 = vpop.f32.mrf.mxu0 }
 0x931   : > { %v5618_v56 = vmax.f32 %v5538_v33, 0.0  ;;  %v5388_v55 = vadd.f32 %v5387_v58, %v5279_v61  ;;  %v14006_v33 = vld [vmem:[#allocation98_spill] sm:$0xff] }
 0x933   : > { %v5495_v13 = vadd.f32 %v12350_v63, %v5388_v55  ;;  %5320 = vmatmul.bf16.gmra.mxu2 %v14004_v43  ;;  %5945 = vmatmul.bf16.gmra.mxu0 %v12320_v59  ;;  %v12361_v36 = vpack.c.bf16 %v5618_v56, %v5616_v5  ;;  %v14007_v55 = vld [vmem:[#allocation62_spill] sm:$0xff] }
 0x934   : > { %5429 = vmatmul.bf16.gmra.mxu3 %v13936_v40  ;;  %v5227_v20 = vpop.f32.mrf.mxu1  ;;  %v14008_v59 = vld [vmem:[#allocation42_spill] sm:$0xff] }
 0x935   : > { %14005 = vst [vmem:[#allocation32_spill] sm:$0xff] %v12361_v36  ;;  %v5575_v49 = vmax.f32 %v5495_v13, 0.0  ;;  %v5228_v37 = vadd.f32 %v5227_v20, %v12162_v62 }
 0x936   : > { %v5281_v38 = vpop.f32.mrf.mxu2 }
 0x937   : > { %v12364_v23 = vpack.c.bf16 %v5575_v49, %v5573_v45  ;;  %v5390_v2 = vpop.f32.mrf.mxu3  ;;  %v5282_v30 = vadd.f32 %v5281_v38, %v14006_v33  ;;  %v5540_v58 = vadd.f32 %v12107_v18, %v5228_v37 }
 0x938   : > { %v12366_v54 = vpop.f32.mrf.mxu0 }
 0x939   : > { %6009 = vmatmul.bf16.vlgmr.msrb.gmra.mxu1 %v12364_v23  ;;  %v5391_v5 = vadd.f32 %v5390_v2, %v5282_v30  ;;  %v5620_v49 = vmax.f32 %v5540_v58, 0.0 }
 0x93b   : > { %v5497_v62 = vadd.f32 %v12350_v63, %v5391_v5  ;;  %v8885_v5 = vld [vmem:[#allocation5 + $0x7e0] sm:$0xf] }
 0x93c   : > { %v5229_v61 = vpop.f32.mrf.mxu1 }
 0x93d   : > { %v5230_v40 = vadd.f32 %v5229_v61, %v12175_v14  ;;  %v5577_v37 = vmax.f32 %v5497_v62, 0.0  ;;  %v8821_v61 = vld [vmem:[#allocation5 + $0x760] sm:$0xf] }
 0x93e   : > { %v5283_v51 = vpop.f32.mrf.mxu2 }
 0x93f   : > { %v5542_v56 = vadd.f32 %v12107_v18, %v5230_v40  ;;  %v5284_v13 = vadd.f32 %v5283_v51, %v14007_v55  ;;  %v5392_v43 = vpop.f32.mrf.mxu3  ;;  %v9242_v40 = vld [vmem:[#allocation5 + $0x764] sm:$0xf0] }
 0x940   : > { %v12375_v45 = vpop.f32.mrf.mxu0  ;;  %v8822_v51 = vor.u32 %v9242_v40, %v8821_v61 }
 0x941   : > { %v5622_v20 = vmax.f32 %v5542_v56, 0.0  ;;  %v5393_v38 = vadd.f32 %v5392_v43, %v5284_v13  ;;  %v9258_v56 = vld [vmem:[#allocation5 + $0x7e4] sm:$0xf0] }
 0x942   : > { %v8886_v43 = vor.u32 %v9258_v56, %v8885_v5  ;;  %6649 = vmatpush.bf16.msra.mxu0 %v8822_v51 }
 0x943   : > { %v5499_v33 = vadd.f32 %v12350_v63, %v5393_v38  ;;  %5325 = vmatmul.bf16.gmra.mxu2 %v14008_v59  ;;  %5950 = vmatmul.bf16.gmra.mxu0 %v12340_v6  ;;  %v12381_v14 = vpack.c.bf16 %v5622_v20, %v5620_v49  ;;  %v14010_v20 = vld [vmem:[#allocation19_spill] sm:$0xff]  ;;  %v8663_v6 = vld [vmem:[#allocation5 + $0x628] sm:$0xf0] }
 0x944   : > { %5434 = vmatmul.bf16.gmra.mxu3 %v13942_v10  ;;  %v5232_v2 = vpop.f32.mrf.mxu1  ;;  %6758 = vmatpush.bf16.msra.mxu1 %v8886_v43  ;;  %v9201_v43 = vld [vmem:[#allocation5 + $0x624] sm:$0xf] }
 0x945   : > { %14009 = vst [vmem:[#allocation82_spill] sm:$0xff] %v12381_v14  ;;  %v5579_v30 = vmax.f32 %v5499_v33, 0.0  ;;  %v5233_v49 = vadd.f32 %v5232_v2, %v12184_v8  ;;  %v8666_v42 = vor.u32 %v9201_v43, %v8663_v6 }
 0x946   : > { %v5286_v58 = vpop.f32.mrf.mxu2 }
 0x947   : > { %v5395_v55 = vpop.f32.mrf.mxu3  ;;  %v12384_v13 = vpack.c.bf16 %v5579_v30, %v5577_v37  ;;  %v5287_v10 = vadd.f32 %v5286_v58, %v14010_v20  ;;  %v5544_v38 = vadd.f32 %v12107_v18, %v5233_v49  ;;  %v14011_v30 = vld [vmem:[#allocation64_spill] sm:$0xff]  ;;  %v14012_v49 = vld [vmem:[#allocation61_spill] sm:$0xff]  ;;  %6115 = vmatpush.bf16.msra.mxu2 %v8666_v42 }
 0x948   : > { %v12386_v59 = vpop.f32.mrf.mxu0 }
 0x949   : > { %6014 = vmatmul.bf16.gmra.mxu1 %v12384_v13  ;;  %v5396_v33 = vadd.f32 %v5395_v55, %v5287_v10  ;;  %v5624_v8 = vmax.f32 %v5544_v38, 0.0 }
 0x94b   : > { %v5501_v2 = vadd.f32 %v12350_v63, %v5396_v33  ;;  %v9217_v33 = vld [vmem:[#allocation5 + $0x6a4] sm:$0xf] }
 0x94c   : > { %v5234_v62 = vpop.f32.mrf.mxu1 }
 0x94d   : > { %v5235_v61 = vadd.f32 %v5234_v62, %v12197_v19  ;;  %v5581_v62 = vmax.f32 %v5501_v2, 0.0 }
 0x94e   : > { %v5288_v40 = vpop.f32.mrf.mxu2 }
 0x94f   : > { %v5546_v37 = vadd.f32 %v12107_v18, %v5235_v61  ;;  %v5289_v5 = vadd.f32 %v5288_v40, %v14011_v30  ;;  %v5397_v56 = vpop.f32.mrf.mxu3  ;;  %v8727_v61 = vld [vmem:[#allocation5 + $0x6a8] sm:$0xf0] }
 0x950   : > { %v12395_v51 = vpop.f32.mrf.mxu0 }
 0x951   : > { %v5626_v58 = vmax.f32 %v5546_v37, 0.0  ;;  %v5398_v20 = vadd.f32 %v5397_v56, %v5289_v5  ;;  %v8730_v37 = vor.u32 %v9217_v33, %v8727_v61 }
 0x953   : > { %v5503_v55 = vadd.f32 %v12350_v63, %v5398_v20  ;;  %5330 = vmatmul.bf16.gmra.mxu2 %v14012_v49  ;;  %5955 = vmatmul.bf16.gmra.mxu0 %v12361_v36  ;;  %v12401_v19 = vpack.c.bf16 %v5626_v58, %v5624_v8  ;;  %v14014_v8 = vld [vmem:[#allocation71_spill] sm:$0xff]  ;;  %v14015_v49 = vld [vmem:[#allocation21_spill] sm:$0xff] }
 0x954   : > { %5439 = vmatmul.bf16.gmra.mxu3 %v13947_v44  ;;  %v5237_v10 = vpop.f32.mrf.mxu1 }
 0x955   : > { %14013 = vst [vmem:[#allocation83_spill] sm:$0xff] %v12401_v19  ;;  %v5583_v38 = vmax.f32 %v5503_v55, 0.0  ;;  %6224 = vmatpush.bf16.msra.mxu3 %v8730_v37  ;;  %v5238_v56 = vadd.f32 %v5237_v10, %v12206_v9 }
 0x956   : > { %v5291_v40 = vpop.f32.mrf.mxu2 }
 0x957   : > { %v5400_v30 = vpop.f32.mrf.mxu3  ;;  %v12404_v6 = vpack.c.bf16 %v5583_v38, %v5581_v62  ;;  %v5292_v58 = vadd.f32 %v5291_v40, %v14014_v8  ;;  %v5548_v42 = vadd.f32 %v12107_v18, %v5238_v56  ;;  %v14016_v8 = vld [vmem:[#allocation50_spill] sm:$0xff] }
 0x958   : > { %v12406_v5 = vpop.f32.mrf.mxu0 }
 0x959   : > { %6019 = vmatmul.bf16.gmra.mxu1 %v12404_v6  ;;  %v5401_v2 = vadd.f32 %v5400_v30, %v5292_v58  ;;  %v5628_v61 = vmax.f32 %v5548_v42, 0.0 }
 0x95b   : > { %v5505_v9 = vadd.f32 %v12350_v63, %v5401_v2 }
 0x95c   : > { %v5239_v44 = vpop.f32.mrf.mxu1 }
 0x95d   : > { %v5240_v20 = vadd.f32 %v5239_v44, %v12219_v3  ;;  %v5585_v56 = vmax.f32 %v5505_v9, 0.0  ;;  %v8813_v9 = vld [vmem:[#allocation5 + $0x750] sm:$0xf] }
 0x95e   : > { %v5293_v43 = vpop.f32.mrf.mxu2 }
 0x95f   : > { %v5550_v55 = vadd.f32 %v12107_v18, %v5240_v20  ;;  %v5294_v62 = vadd.f32 %v5293_v43, %v14015_v49  ;;  %v5402_v38 = vpop.f32.mrf.mxu3 }
 0x960   : > { %v12415_v33 = vpop.f32.mrf.mxu0 }
 0x961   : > { %v5630_v10 = vmax.f32 %v5550_v55, 0.0  ;;  %v5403_v40 = vadd.f32 %v5402_v38, %v5294_v62  ;;  %v14018_v55 = vld [vmem:[#allocation27_spill] sm:$0xff] }
 0x963   : > { %v5507_v37 = vadd.f32 %v12350_v63, %v5403_v40  ;;  %5335 = vmatmul.bf16.gmra.mxu2 %v14016_v8  ;;  %5960 = vmatmul.bf16.gmra.mxu0 %v12381_v14  ;;  %v12421_v3 = vpack.c.bf16 %v5630_v10, %v5628_v61  ;;  %v9240_v10 = vld [vmem:[#allocation5 + $0x754] sm:$0xf0]  ;;  %v8877_v8 = vld [vmem:[#allocation5 + $0x7d0] sm:$0xf] }
 0x964   : > { %5444 = vmatmul.bf16.gmra.mxu3 %v13952_v11  ;;  %v5242_v30 = vpop.f32.mrf.mxu1  ;;  %v14019_v14 = vld [vmem:[#allocation66_spill] sm:$0xff] }
 0x965   : > { %14017 = vst [vmem:[#allocation59_spill] sm:$0xff] %v12421_v3  ;;  %v5587_v58 = vmax.f32 %v5507_v37, 0.0  ;;  %v5243_v43 = vadd.f32 %v5242_v30, %v12228_v15  ;;  %v8814_v37 = vor.u32 %v9240_v10, %v8813_v9 }
 0x966   : > { %v5296_v44 = vpop.f32.mrf.mxu2 }
 0x967   : > { %v5405_v20 = vpop.f32.mrf.mxu3  ;;  %v12424_v42 = vpack.c.bf16 %v5587_v58, %v5585_v56  ;;  %v5297_v49 = vadd.f32 %v5296_v44, %v14018_v55  ;;  %v5552_v38 = vadd.f32 %v12107_v18, %v5243_v43  ;;  %v9256_v56 = vld [vmem:[#allocation5 + $0x7d4] sm:$0xf0]  ;;  %6650 = vmatpush.bf16.msra.mxu0 %v8814_v37 }
 0x968   : > { %v12426_v2 = vpop.f32.mrf.mxu0  ;;  %v8878_v44 = vor.u32 %v9256_v56, %v8877_v8  ;;  %v14022_v56 = vld [vmem:[#allocation25_spill] sm:$0xff] }
 0x969   : > { %6024 = vmatmul.bf16.gmra.mxu1 %v12424_v42  ;;  %v5406_v61 = vadd.f32 %v5405_v20, %v5297_v49  ;;  %v5632_v36 = vmax.f32 %v5552_v38, 0.0 }
 0x96a   : > { %6759 = vmatpush.bf16.msra.mxu1 %v8878_v44 }
 0x96b   : > { %v5509_v20 = vadd.f32 %v12350_v63, %v5406_v61 }
 0x96c   : > { %v5244_v62 = vpop.f32.mrf.mxu1 }
 0x96d   : > { %v5245_v11 = vadd.f32 %v5244_v62, %v12241_v7  ;;  %v14020_v62 = vld [vmem:[#allocation54_spill] sm:$0xff]  ;;  %v5589_v9 = vmax.f32 %v5509_v20, 0.0 }
 0x96e   : > { %v5298_v40 = vpop.f32.mrf.mxu2 }
 0x96f   : > { %v5554_v58 = vadd.f32 %v12107_v18, %v5245_v11  ;;  %v5299_v15 = vadd.f32 %v5298_v40, %v14019_v14  ;;  %v5407_v30 = vpop.f32.mrf.mxu3 }
 0x970   : > { %v12435_v55 = vpop.f32.mrf.mxu0 }
 0x971   : > { %v5634_v43 = vmax.f32 %v5554_v58, 0.0  ;;  %v5408_v7 = vadd.f32 %v5407_v30, %v5299_v15  ;;  %v9199_v15 = vld [vmem:[#allocation5 + $0x614] sm:$0xf] }
 0x973   : > { %v5511_v49 = vadd.f32 %v12350_v63, %v5408_v7  ;;  %5340 = vmatmul.bf16.gmra.mxu2 %v14020_v62  ;;  %5965 = vmatmul.bf16.gmra.mxu0 %v12401_v19  ;;  %v12441_v11 = vpack.c.bf16 %v5634_v43, %v5632_v36  ;;  %v8655_v36 = vld [vmem:[#allocation5 + $0x618] sm:$0xf0]  ;;  %v9215_v7 = vld [vmem:[#allocation5 + $0x694] sm:$0xf]  ;;  %v9230_v19 = vld [vmem:[#allocation5 + $0x704] sm:$0xf0] }
 0x974   : > { %5449 = vmatmul.bf16.gmra.mxu3 %v13957_v0  ;;  %v5247_v14 = vpop.f32.mrf.mxu1  ;;  %v8658_v30 = vor.u32 %v9199_v15, %v8655_v36 }
 0x975   : > { %14021 = vst [vmem:[#allocation36_spill] sm:$0xff] %v12441_v11  ;;  %v5591_v10 = vmax.f32 %v5511_v49, 0.0  ;;  %v5248_v8 = vadd.f32 %v5247_v14, %v12250_v60  ;;  %v8719_v49 = vld [vmem:[#allocation5 + $0x698] sm:$0xf0]  ;;  %v14023_v14 = vld [vmem:[#allocation29_spill] sm:$0xff] }
 0x976   : > { %v5301_v40 = vpop.f32.mrf.mxu2  ;;  %6116 = vmatpush.bf16.msra.mxu2 %v8658_v30 }
 0x977   : > { %v5410_v38 = vpop.f32.mrf.mxu3  ;;  %v12444_v37 = vpack.c.bf16 %v5591_v10, %v5589_v9  ;;  %v5302_v58 = vadd.f32 %v5301_v40, %v14022_v56  ;;  %v5556_v0 = vadd.f32 %v12107_v18, %v5248_v8  ;;  %v8722_v9 = vor.u32 %v9215_v7, %v8719_v49 }
 0x978   : > { %v12446_v61 = vpop.f32.mrf.mxu0 }
 0x979   : > { %6029 = vmatmul.bf16.gmra.mxu1 %v12444_v37  ;;  %v5411_v20 = vadd.f32 %v5410_v38, %v5302_v58  ;;  %6225 = vmatpush.bf16.msra.mxu3 %v8722_v9  ;;  %v5636_v15 = vmax.f32 %v5556_v0, 0.0 }
 0x97b   : > { %v5513_v36 = vadd.f32 %v12350_v63, %v5411_v20 }
 0x97c   : > { %v5249_v44 = vpop.f32.mrf.mxu1 }
 0x97d   : > { %v5250_v43 = vadd.f32 %v5249_v44, %v12263_v26  ;;  %v14024_v26 = vld [vmem:[#allocation65_spill] sm:$0xff] }
 0x97e   : > { %v5303_v62 = vpop.f32.mrf.mxu2 }
 0x97f   : > { %v5558_v60 = vadd.f32 %v12107_v18, %v5250_v43  ;;  %v5304_v10 = vadd.f32 %v5303_v62, %v14023_v14  ;;  %v5412_v40 = vpop.f32.mrf.mxu3  ;;  %v5593_v43 = vmax.f32 %v5513_v36, 0.0 }
 0x980   : > { %v12455_v56 = vpop.f32.mrf.mxu0 }
 0x981   : > { %v5638_v30 = vmax.f32 %v5558_v60, 0.0  ;;  %v5413_v8 = vadd.f32 %v5412_v40, %v5304_v10  ;;  %v14026_v60 = vld [vmem:[#allocation33_spill] sm:$0xff] }
 0x983   : > { %v5515_v38 = vadd.f32 %v12350_v63, %v5413_v8  ;;  %5345 = vmatmul.bf16.gmra.mxu2 %v14024_v26  ;;  %5970 = vmatmul.bf16.gmra.mxu0 %v12421_v3  ;;  %v12461_v58 = vpack.c.bf16 %v5638_v30, %v5636_v15  ;;  %v14027_v8 = vld [vmem:[#allocation67_spill] sm:$0xff] }
 0x984   : > { %5454 = vmatmul.bf16.gmra.mxu3 %v13963_v57  ;;  %v5252_v44 = vpop.f32.mrf.mxu1  ;;  %v14028_v3 = vld [vmem:[#allocation23_spill] sm:$0xff] }
 0x985   : > { %14025 = vst [vmem:[#allocation84_spill] sm:$0xff] %v12461_v58  ;;  %v5595_v7 = vmax.f32 %v5515_v38, 0.0  ;;  %v5253_v9 = vadd.f32 %v5252_v44, %v12272_v28 }
 0x986   : > { %v5306_v49 = vpop.f32.mrf.mxu2 }
 0x987   : > { %v5415_v62 = vpop.f32.mrf.mxu3  ;;  %v12464_v0 = vpack.c.bf16 %v5595_v7, %v5593_v43  ;;  %v5307_v14 = vadd.f32 %v5306_v49, %v14026_v60  ;;  %v5560_v40 = vadd.f32 %v12107_v18, %v5253_v9 }
 0x988   : > { %v12466_v20 = vpop.f32.mrf.mxu0 }
 0x989   : > { %6034 = vmatmul.bf16.gmra.mxu1 %v12464_v0  ;;  %v5416_v15 = vadd.f32 %v5415_v62, %v5307_v14  ;;  %v5640_v7 = vmax.f32 %v5560_v40, 0.0 }
 0x98b   : > { %v5517_v28 = vadd.f32 %v12350_v63, %v5416_v15  ;;  %v8869_v15 = vld [vmem:[#allocation5 + $0x7c0] sm:$0xf] }
 0x98c   : > { %v5254_v10 = vpop.f32.mrf.mxu1 }
 0x98d   : > { %v5255_v57 = vadd.f32 %v5254_v10, %v12285_v22  ;;  %v5597_v9 = vmax.f32 %v5517_v28, 0.0  ;;  %v8805_v10 = vld [vmem:[#allocation5 + $0x740] sm:$0xf] }
 0x98e   : > { %v5308_v36 = vpop.f32.mrf.mxu2 }
 0x98f   : > { %v5562_v30 = vadd.f32 %v12107_v18, %v5255_v57  ;;  %v5309_v38 = vadd.f32 %v5308_v36, %v14027_v8  ;;  %v5417_v26 = vpop.f32.mrf.mxu3  ;;  %v9238_v57 = vld [vmem:[#allocation5 + $0x744] sm:$0xf0] }
 0x990   : > { %v12475_v43 = vpop.f32.mrf.mxu0  ;;  %v8806_v36 = vor.u32 %v9238_v57, %v8805_v10  ;;  %v9197_v57 = vld [vmem:[#allocation5 + $0x604] sm:$0xf] }
 0x991   : > { %v5642_v44 = vmax.f32 %v5562_v30, 0.0  ;;  %v5418_v49 = vadd.f32 %v5417_v26, %v5309_v38  ;;  %v9254_v30 = vld [vmem:[#allocation5 + $0x7c4] sm:$0xf0] }
 0x992   : > { %v8870_v26 = vor.u32 %v9254_v30, %v8869_v15  ;;  %6651 = vmatpush.bf16.msra.mxu0 %v8806_v36  ;;  %v14031_v36 = vld [vmem:[#allocation68_spill] sm:$0xff] }
 0x993   : > { %v5519_v60 = vadd.f32 %v12350_v63, %v5418_v49  ;;  %5350 = vmatmul.bf16.gmra.mxu2 %v14028_v3  ;;  %5975 = vmatmul.bf16.gmra.mxu0 %v12441_v11  ;;  %v12481_v22 = vpack.c.bf16 %v5642_v44, %v5640_v7  ;;  %v14030_v44 = vld [vmem:[#allocation39_spill] sm:$0xff] }
 0x994   : > { %5459 = vmatmul.bf16.gmra.mxu3 %v13970_v41  ;;  %v5257_v62 = vpop.f32.mrf.mxu1  ;;  %6760 = vmatpush.bf16.msra.mxu1 %v8870_v26 }
 0x995   : > { %14029 = vst [vmem:[#allocation85_spill] sm:$0xff] %v12481_v22  ;;  %v5599_v14 = vmax.f32 %v5519_v60, 0.0  ;;  %v5258_v7 = vadd.f32 %v5257_v62, %v12294_v53 }
 0x996   : > { %v5311_v40 = vpop.f32.mrf.mxu2 }
 0x997   : > { %v5420_v8 = vpop.f32.mrf.mxu3  ;;  %v12484_v38 = vpack.c.bf16 %v5599_v14, %v5597_v9  ;;  %v5312_v41 = vadd.f32 %v5311_v40, %v14030_v44  ;;  %v5564_v49 = vadd.f32 %v12107_v18, %v5258_v7  ;;  %v8647_v9 = vld [vmem:[#allocation5 + $0x608] sm:$0xf0] }
 0x998   : > { %v12486_v3 = vpop.f32.mrf.mxu0  ;;  %v8650_v15 = vor.u32 %v9197_v57, %v8647_v9  ;;  %v9213_v9 = vld [vmem:[#allocation5 + $0x684] sm:$0xf] }
 0x999   : > { %6039 = vmatmul.bf16.gmra.mxu1 %v12484_v38  ;;  %v5421_v60 = vadd.f32 %v5420_v8, %v5312_v41  ;;  %v5644_v40 = vmax.f32 %v5564_v49, 0.0 }
 0x99a   : > { %6117 = vmatpush.bf16.msra.mxu2 %v8650_v15 }
 0x99b   : > { %v5521_v26 = vadd.f32 %v12350_v63, %v5421_v60 }
 0x99c   : > { %v5259_v28 = vpop.f32.mrf.mxu1 }
 0x99d   : > { %v5260_v10 = vadd.f32 %v5259_v28, %v12307_v46  ;;  %v14032_v46 = vld [vmem:[#allocation60_spill] sm:$0xff] }
 0x99e   : > { %v5313_v14 = vpop.f32.mrf.mxu2 }
 0x99f   : > { %v5566_v30 = vadd.f32 %v12107_v18, %v5260_v10  ;;  %v5314_v11 = vadd.f32 %v5313_v14, %v14031_v36  ;;  %v5422_v53 = vpop.f32.mrf.mxu3  ;;  %v5601_v10 = vmax.f32 %v5521_v26, 0.0  ;;  %v8711_v14 = vld [vmem:[#allocation5 + $0x688] sm:$0xf0] }
 0x9a0   : > { %v12495_v62 = vpop.f32.mrf.mxu0  ;;  %v8714_v15 = vor.u32 %v9213_v9, %v8711_v14 }
 0x9a1   : > { %v5646_v44 = vmax.f32 %v5566_v30, 0.0  ;;  %v5423_v7 = vadd.f32 %v5422_v53, %v5314_v11  ;;  %v14034_v53 = vld [vmem:[#allocation88_spill] sm:$0xff] }
 0x9a2   : > { %6226 = vmatpush.bf16.msra.mxu3 %v8714_v15 }
 0x9a3   : > { %v5523_v8 = vadd.f32 %v12350_v63, %v5423_v7  ;;  %5355 = vmatmul.bf16.gmra.mxu2 %v14032_v46  ;;  %5980 = vmatmul.bf16.gmra.mxu0 %v12461_v58  ;;  %v12501_v41 = vpack.c.bf16 %v5646_v44, %v5644_v40  ;;  %v9236_v58 = vld [vmem:[#allocation5 + $0x734] sm:$0xf0] }
 0x9a4   : > { %5464 = vmatmul.bf16.gmra.mxu3 %v13977_v25  ;;  %v5262_v28 = vpop.f32.mrf.mxu1 }
 0x9a5   : > { %v5603_v57 = vmax.f32 %v5523_v8, 0.0  ;;  %v5263_v36 = vadd.f32 %v5262_v28, %v12316_v50 }
 0x9a6   : > { %v5316_v49 = vpop.f32.mrf.mxu2 }
 0x9a7   : > { %v5425_v60 = vpop.f32.mrf.mxu3  ;;  %v12504_v30 = vpack.c.bf16 %v5603_v57, %v5601_v10  ;;  %v5317_v40 = vadd.f32 %v5316_v49, %v14034_v53  ;;  %v5568_v26 = vadd.f32 %v12107_v18, %v5263_v36  ;;  %v14035_v10 = vld [vmem:[#allocation69_spill] sm:$0xff] }
 0x9a8   : > { %v12506_v11 = vpop.f32.mrf.mxu0  ;;  %v8797_v53 = vld [vmem:[#allocation5 + $0x730] sm:$0xf] }
 0x9a9   : > { %14033 = vst [vmem:[#allocation18_spill] sm:$0xff] %v12504_v30  ;;  %6044 = vmatmul.bf16.gmra.mxu1 %v12504_v30  ;;  %v5426_v44 = vadd.f32 %v5425_v60, %v5317_v40  ;;  %v5648_v15 = vmax.f32 %v5568_v26, 0.0  ;;  %v14036_v60 = vld [vmem:[#allocation31_spill] sm:$0xff]  ;;  %v12523_v40 = vld [vmem:[#allocation7 + $0xc] sm:$0x3] }
 0x9aa   : > { %14037 = vst [vmem:[#allocation40_spill] sm:$0xff] %v12523_v40 }
 0x9ab   : > { %v5525_v50 = vadd.f32 %v12350_v63, %v5426_v44 }
 0x9ac   : > { %v5264_v25 = vpop.f32.mrf.mxu1 }
 0x9ad   : > { %v5265_v7 = vadd.f32 %v5264_v25, %v12329_v39  ;;  %v5605_v25 = vmax.f32 %v5525_v50, 0.0  ;;  %v9232_v50 = vld [vmem:[#allocation5 + $0x714] sm:$0xf0] }
 0x9ae   : > { %v5318_v8 = vpop.f32.mrf.mxu2 }
 0x9af   : > { %v5570_v46 = vadd.f32 %v12107_v18, %v5265_v7  ;;  %v5319_v57 = vadd.f32 %v5318_v8, %v14035_v10  ;;  %v5427_v9 = vpop.f32.mrf.mxu3  ;;  %v8798_v18 = vor.u32 %v9236_v58, %v8797_v53  ;;  %v8789_v8 = vld [vmem:[#allocation5 + $0x720] sm:$0xf]  ;;  %v12527_v10 = vperm.slane %v12523_v40, 0  ;;  %v14039_v58 = vld [vmem:[#allocation70_spill] sm:$0xff] }
 0x9b0   : > { %v12515_v14 = vpop.f32.mrf.mxu0 }
 0x9b1   : > { %v5650_v28 = vmax.f32 %v5570_v46, 0.0  ;;  %v5428_v49 = vadd.f32 %v5427_v9, %v5319_v57  ;;  %6652 = vmatpush.bf16.msra.mxu0 %v8798_v18  ;;  %v9234_v46 = vld [vmem:[#allocation5 + $0x724] sm:$0xf0]  ;;  %v5902_v53 = vadd.f32 %v12336_v21, %v12527_v10 }
 0x9b3   : > { %v5527_v36 = vadd.f32 %v12350_v63, %v5428_v49  ;;  %5360 = vmatmul.bf16.gmra.mxu2 %v14036_v60  ;;  %5985 = vmatmul.bf16.gmra.mxu0 %v12481_v22  ;;  %v12521_v39 = vpack.c.bf16 %v5650_v28, %v5648_v15  ;;  %v8790_v15 = vor.u32 %v9234_v46, %v8789_v8  ;;  %v9252_v8 = vld [vmem:[#allocation5 + $0x7b4] sm:$0xf0] }
 0x9b4   : > { %5469 = vmatmul.bf16.gmra.mxu3 %v13984_v17  ;;  %v8781_v17 = vld [vmem:[#allocation5 + $0x710] sm:$0xf]  ;;  %v5904_v60 = vadd.f32 %v12344_v1, %v12527_v10 }
 0x9b5   : > { %v5607_v26 = vmax.f32 %v5527_v36, 0.0  ;;  %6653 = vmatpush.bf16.msra.mxu0 %v8790_v15  ;;  %v8782_v36 = vor.u32 %v9232_v50, %v8781_v17 }
 0x9b6   : > { %v5321_v44 = vpop.f32.mrf.mxu2  ;;  %v6010_v7 = vpop.f32.mrf.mxu1 }
 0x9b7   : > { %v5430_v57 = vpop.f32.mrf.mxu3  ;;  %v12529_v9 = vpack.c.bf16 %v5607_v26, %v5605_v25  ;;  %v5322_v49 = vadd.f32 %v5321_v44, %v14039_v58  ;;  %v6011_v25 = vadd.f32 %v6010_v7, %v5902_v53  ;;  %v8861_v26 = vld [vmem:[#allocation5 + $0x7b0] sm:$0xf]  ;;  %v8773_v58 = vld [vmem:[#allocation5 + $0x700] sm:$0xf] }
 0x9b8   : > { %v12531_v28 = vpop.f32.mrf.mxu0  ;;  %v8862_v44 = vor.u32 %v9252_v8, %v8861_v26  ;;  %v8774_v30 = vor.u32 %v9230_v19, %v8773_v58  ;;  %v14040_v53 = vld [vmem:[#allocation35_spill] sm:$0xff]  ;;  %v14041_v26 = vld [vmem:[#allocation49_spill] sm:$0xff] }
 0x9b9   : > { %14038 = vst [vmem:[#allocation86_spill] sm:$0xff] %v12529_v9  ;;  %6049 = vmatmul.bf16.gmra.mxu1 %v12529_v9  ;;  %v5431_v18 = vadd.f32 %v5430_v57, %v5322_v49  ;;  %6654 = vmatpush.bf16.msra.mxu0 %v8782_v36  ;;  %v6328_v57 = vmax.f32 %v6011_v25, 0.0  ;;  %v8831_v36 = vld [vmem:[#allocation5 + $0x778] sm:$0xf0] }
 0x9ba   : > { %6761 = vmatpush.bf16.msra.mxu1 %v8862_v44 }
 0x9bb   : > { %v5529_v1 = vadd.f32 %v12350_v63, %v5431_v18 }
 0x9bd   : > { %6655 = vmatpush.bf16.msra.mxu0 %v8774_v30 }
 0x9be   : > { %v5323_v46 = vpop.f32.mrf.mxu2  ;;  %v6012_v22 = vpop.f32.mrf.mxu1 }
 0x9bf   : > { %v5324_v15 = vadd.f32 %v5323_v46, %v12116_v47  ;;  %v5432_v40 = vpop.f32.mrf.mxu3  ;;  %v6013_v9 = vadd.f32 %v6012_v22, %v5904_v60  ;;  %v5609_v47 = vmax.f32 %v5529_v1, 0.0  ;;  %v9243_v22 = vld [vmem:[#allocation5 + $0x774] sm:$0xf]  ;;  %v5909_v46 = vadd.f32 %v12366_v54, %v12527_v10  ;;  %v8895_v1 = vld [vmem:[#allocation5 + $0x7f8] sm:$0xf0] }
 0x9c0   : > { %v12540_v21 = vpop.f32.mrf.mxu0  ;;  %v8834_v25 = vor.u32 %v9243_v22, %v8831_v36 }
 0x9c1   : > { %v5433_v7 = vadd.f32 %v5432_v40, %v5324_v15  ;;  %v6330_v49 = vmax.f32 %v6013_v9, 0.0  ;;  %v9259_v15 = vld [vmem:[#allocation5 + $0x7f4] sm:$0xf] }
 0x9c2   : > { %6866 = vmatpush.bf16.msrb.mxu2 %v8834_v25 }
 0x9c3   : > { %v5531_v17 = vadd.f32 %v12350_v63, %v5433_v7  ;;  %v12544_v50 = vpack.c.bf16 %v6330_v49, %v6328_v57  ;;  %5365 = vmatmul.bf16.gmra.mxu2 %v14040_v53  ;;  %5990 = vmatmul.bf16.gmra.mxu0 %v12501_v41  ;;  %v8898_v49 = vor.u32 %v9259_v15, %v8895_v1 }
 0x9c4   : > { %5474 = vmatmul.bf16.gmra.mxu3 %v13995_v52  ;;  %v5907_v52 = vadd.f32 %v12355_v34, %v12527_v10  ;;  %v5912_v1 = vadd.f32 %v12375_v45, %v12527_v10 }
 0x9c5   : > { %v5611_v19 = vmax.f32 %v5531_v17, 0.0  ;;  %6975 = vmatpush.bf16.msrb.mxu3 %v8898_v49 }
 0x9c6   : > { %v5326_v60 = vpop.f32.mrf.mxu2  ;;  %v6015_v18 = vpop.f32.mrf.mxu1 }
 0x9c7   : > { %v5435_v40 = vpop.f32.mrf.mxu3  ;;  %v12549_v9 = vpack.c.bf16 %v5611_v19, %v5609_v47  ;;  %v5327_v8 = vadd.f32 %v5326_v60, %v14041_v26  ;;  %v6016_v58 = vadd.f32 %v6015_v18, %v5907_v52  ;;  %v14042_v18 = vld [vmem:[#allocation63_spill] sm:$0xff] }
 0x9c8   : > { %v12551_v30 = vpop.f32.mrf.mxu0 }
 0x9c9   : > { %6054 = vmatmul.bf16.gmra.mxu1 %v12549_v9  ;;  %v5436_v44 = vadd.f32 %v5435_v40, %v5327_v8  ;;  %v6332_v34 = vmax.f32 %v6016_v58, 0.0  ;;  %v14043_v58 = vld [vmem:[#allocation53_spill] sm:$0xff] }
 0x9cb   : > { %v5533_v22 = vadd.f32 %v12350_v63, %v5436_v44 }
 0x9ce   : > { %v5328_v57 = vpop.f32.mrf.mxu2  ;;  %v6017_v7 = vpop.f32.mrf.mxu1 }
 0x9cf   : > { %v5329_v17 = vadd.f32 %v5328_v57, %v12138_v35  ;;  %v5437_v53 = vpop.f32.mrf.mxu3  ;;  %v6018_v47 = vadd.f32 %v6017_v7, %v5909_v46  ;;  %v5613_v35 = vmax.f32 %v5533_v22, 0.0  ;;  %v5914_v57 = vadd.f32 %v12386_v59, %v12527_v10 }
 0x9d0   : > { %v12560_v19 = vpop.f32.mrf.mxu0 }
 0x9d1   : > { %v5438_v36 = vadd.f32 %v5437_v53, %v5329_v17  ;;  %v6334_v60 = vmax.f32 %v6018_v47, 0.0 }
 0x9d3   : > { %v5535_v54 = vadd.f32 %v12350_v63, %v5438_v36  ;;  %5370 = vmatmul.bf16.gmra.mxu2 %v14042_v18  ;;  %5995 = vmatmul.bf16.gmra.mxu0 %v12521_v39  ;;  %v12566_v25 = vpack.c.bf16 %v6334_v60, %v6332_v34 }
 0x9d4   : > { %5479 = vmatmul.bf16.gmra.mxu3 %v14000_v27 }
 0x9d5   : > { %v5615_v40 = vmax.f32 %v5535_v54, 0.0 }
 0x9d6   : > { %v5331_v26 = vpop.f32.mrf.mxu2  ;;  %v6020_v8 = vpop.f32.mrf.mxu1 }
 0x9d7   : > { %v5440_v52 = vpop.f32.mrf.mxu3  ;;  %v12569_v46 = vpack.c.bf16 %v5615_v40, %v5613_v35  ;;  %v5332_v15 = vadd.f32 %v5331_v26, %v14043_v58  ;;  %v6021_v7 = vadd.f32 %v6020_v8, %v5912_v1  ;;  %v14044_v35 = vld [vmem:[#allocation92_spill] sm:$0xff]  ;;  %v8853_v26 = vld [vmem:[#allocation5 + $0x7a0] sm:$0xf] }
 0x9d8   : > { %v12571_v44 = vpop.f32.mrf.mxu0  ;;  %v9250_v8 = vld [vmem:[#allocation5 + $0x7a4] sm:$0xf0] }
 0x9d9   : > { %6059 = vmatmul.bf16.gmra.mxu1 %v12569_v46  ;;  %v5441_v27 = vadd.f32 %v5440_v52, %v5332_v15  ;;  %v6336_v60 = vmax.f32 %v6021_v7, 0.0  ;;  %v8854_v15 = vor.u32 %v9250_v8, %v8853_v26  ;;  %v14045_v7 = vld [vmem:[#allocation46_spill] sm:$0xff] }
 0x9db   : > { %v5537_v36 = vadd.f32 %v12350_v63, %v5441_v27  ;;  %6762 = vmatpush.bf16.msra.mxu1 %v8854_v15 }
 0x9de   : > { %v5333_v49 = vpop.f32.mrf.mxu2  ;;  %v6022_v17 = vpop.f32.mrf.mxu1 }
 0x9df   : > { %v5334_v53 = vadd.f32 %v5333_v49, %v12160_v16  ;;  %v5442_v47 = vpop.f32.mrf.mxu3  ;;  %v6023_v22 = vadd.f32 %v6022_v17, %v5914_v57  ;;  %v5617_v16 = vmax.f32 %v5537_v36, 0.0  ;;  %v5919_v17 = vadd.f32 %v12406_v5, %v12527_v10  ;;  %v8823_v36 = vld [vmem:[#allocation5 + $0x768] sm:$0xf0] }
 0x9e0   : > { %v12580_v34 = vpop.f32.mrf.mxu0 }
 0x9e1   : > { %v5443_v54 = vadd.f32 %v5442_v47, %v5334_v53  ;;  %v6338_v18 = vmax.f32 %v6023_v22, 0.0  ;;  %v9241_v22 = vld [vmem:[#allocation5 + $0x764] sm:$0xf] }
 0x9e3   : > { %v5539_v45 = vadd.f32 %v12350_v63, %v5443_v54  ;;  %6118 = vmatmul.bf16.vlgmr.msra.gmra.mxu2 %v14044_v35  ;;  %6656 = vmatmul.bf16.vlgmr.msra.gmra.mxu0 %v12544_v50  ;;  %v12586_v59 = vpack.c.bf16 %v6338_v18, %v6336_v60  ;;  %v8826_v18 = vor.u32 %v9241_v22, %v8823_v36 }
 0x9e4   : > { %6227 = vmatmul.bf16.vlgmr.msra.gmra.mxu3 %v12364_v23  ;;  %v5917_v23 = vadd.f32 %v12395_v51, %v12527_v10  ;;  %v5924_v36 = vadd.f32 %v12426_v2, %v12527_v10 }
 0x9e5   : > { %v5619_v40 = vmax.f32 %v5539_v45, 0.0  ;;  %6867 = vmatpush.bf16.msrb.mxu2 %v8826_v18 }
 0x9e6   : > { %v5336_v52 = vpop.f32.mrf.mxu2  ;;  %v6025_v58 = vpop.f32.mrf.mxu1 }
 0x9e7   : > { %v5445_v1 = vpop.f32.mrf.mxu3  ;;  %v12589_v57 = vpack.c.bf16 %v5619_v40, %v5617_v16  ;;  %v5337_v49 = vadd.f32 %v5336_v52, %v14045_v7  ;;  %v6026_v47 = vadd.f32 %v6025_v58, %v5917_v23  ;;  %v8887_v7 = vld [vmem:[#allocation5 + $0x7e8] sm:$0xf0] }
 0x9e8   : > { %v12591_v27 = vpop.f32.mrf.mxu0 }
 0x9e9   : > { %6064 = vmatmul.bf16.gmra.mxu1 %v12589_v57  ;;  %v5446_v53 = vadd.f32 %v5445_v1, %v5337_v49  ;;  %v6340_v51 = vmax.f32 %v6026_v47, 0.0  ;;  %v9257_v1 = vld [vmem:[#allocation5 + $0x7e4] sm:$0xf] }
 0x9eb   : > { %v5541_v26 = vadd.f32 %v12350_v63, %v5446_v53 }
 0x9ee   : > { %v5338_v60 = vpop.f32.mrf.mxu2  ;;  %v6027_v54 = vpop.f32.mrf.mxu1 }
 0x9ef   : > { %v5339_v45 = vadd.f32 %v5338_v60, %v12182_v32  ;;  %v5447_v35 = vpop.f32.mrf.mxu3  ;;  %v6028_v16 = vadd.f32 %v6027_v54, %v5919_v17  ;;  %v5621_v32 = vmax.f32 %v5541_v26, 0.0  ;;  %v8890_v17 = vor.u32 %v9257_v1, %v8887_v7 }
 0x9f0   : > { %v12600_v40 = vpop.f32.mrf.mxu0 }
 0x9f1   : > { %v5448_v8 = vadd.f32 %v5447_v35, %v5339_v45  ;;  %v6342_v52 = vmax.f32 %v6028_v16, 0.0  ;;  %6976 = vmatpush.bf16.msrb.mxu3 %v8890_v17  ;;  %v14046_v17 = vld [vmem:[#allocation52_spill] sm:$0xff] }
 0x9f3   : > { %v5543_v5 = vadd.f32 %v12350_v63, %v5448_v8  ;;  %6123 = vmatmul.bf16.gmra.mxu2 %v12144_v48  ;;  %6661 = vmatmul.bf16.gmra.mxu0 %v12566_v25  ;;  %v12606_v58 = vpack.c.bf16 %v6342_v52, %v6340_v51 }
 0x9f4   : > { %6232 = vmatmul.bf16.gmra.mxu3 %v12384_v13  ;;  %v5922_v13 = vadd.f32 %v12415_v33, %v12527_v10 }
 0x9f5   : > { %v5623_v15 = vmax.f32 %v5543_v5, 0.0 }
 0x9f6   : > { %v5341_v49 = vpop.f32.mrf.mxu2  ;;  %v6030_v23 = vpop.f32.mrf.mxu1 }
 0x9f7   : > { %v5450_v53 = vpop.f32.mrf.mxu3  ;;  %v12609_v47 = vpack.c.bf16 %v5623_v15, %v5621_v32  ;;  %v5342_v48 = vadd.f32 %v5341_v49, %v12194_v24  ;;  %v6031_v54 = vadd.f32 %v6030_v23, %v5922_v13 }
 0x9f8   : > { %v12611_v22 = vpop.f32.mrf.mxu0 }
 0x9f9   : > { %6069 = vmatmul.bf16.gmra.mxu1 %v12609_v47  ;;  %v5451_v60 = vadd.f32 %v5450_v53, %v5342_v48  ;;  %v6344_v8 = vmax.f32 %v6031_v54, 0.0  ;;  %v5929_v48 = vadd.f32 %v12446_v61, %v12527_v10 }
 0x9fb   : > { %v5545_v24 = vadd.f32 %v12350_v63, %v5451_v60  ;;  %v9248_v60 = vld [vmem:[#allocation5 + $0x794] sm:$0xf0] }
 0x9fe   : > { %v5343_v18 = vpop.f32.mrf.mxu2  ;;  %v6032_v45 = vpop.f32.mrf.mxu1 }
 0x9ff   : > { %v5344_v35 = vadd.f32 %v5343_v18, %v12204_v4  ;;  %v5452_v16 = vpop.f32.mrf.mxu3  ;;  %v6033_v26 = vadd.f32 %v6032_v45, %v5924_v36  ;;  %v5625_v4 = vmax.f32 %v5545_v24, 0.0  ;;  %v8845_v36 = vld [vmem:[#allocation5 + $0x790] sm:$0xf] }
 0xa00   : > { %v12620_v51 = vpop.f32.mrf.mxu0  ;;  %v8846_v45 = vor.u32 %v9248_v60, %v8845_v36 }
 0xa01   : > { %v5453_v52 = vadd.f32 %v5452_v16, %v5344_v35  ;;  %v6346_v5 = vmax.f32 %v6033_v26, 0.0 }
 0xa02   : > { %6763 = vmatpush.bf16.msra.mxu1 %v8846_v45 }
 0xa03   : > { %v5547_v33 = vadd.f32 %v12350_v63, %v5453_v52  ;;  %6128 = vmatmul.bf16.gmra.mxu2 %v12166_v31  ;;  %6666 = vmatmul.bf16.gmra.mxu0 %v12586_v59  ;;  %v12626_v2 = vpack.c.bf16 %v6346_v5, %v6344_v8  ;;  %v5927_v31 = vadd.f32 %v12435_v55, %v12527_v10 }
 0xa04   : > { %6237 = vmatmul.bf16.gmra.mxu3 %v12404_v6 }
 0xa05   : > { %v5627_v32 = vmax.f32 %v5547_v33, 0.0 }
 0xa06   : > { %v5346_v15 = vpop.f32.mrf.mxu2  ;;  %v6035_v1 = vpop.f32.mrf.mxu1 }
 0xa07   : > { %v5455_v7 = vpop.f32.mrf.mxu3  ;;  %v12629_v49 = vpack.c.bf16 %v5627_v32, %v5625_v4  ;;  %v5347_v53 = vadd.f32 %v5346_v15, %v14046_v17  ;;  %v6036_v13 = vadd.f32 %v6035_v1, %v5927_v31  ;;  %v9239_v32 = vld [vmem:[#allocation5 + $0x754] sm:$0xf]  ;;  %v8815_v15 = vld [vmem:[#allocation5 + $0x758] sm:$0xf0] }
 0xa08   : > { %v12631_v23 = vpop.f32.mrf.mxu0  ;;  %v8818_v17 = vor.u32 %v9239_v32, %v8815_v15  ;;  %v14049_v32 = vld [vmem:[#allocation51_spill] sm:$0xff] }
 0xa09   : > { %6074 = vmatmul.bf16.gmra.mxu1 %v12629_v49  ;;  %v5456_v6 = vadd.f32 %v5455_v7, %v5347_v53  ;;  %v6348_v55 = vmax.f32 %v6036_v13, 0.0  ;;  %v5934_v13 = vadd.f32 %v12466_v20, %v12527_v10 }
 0xa0a   : > { %6868 = vmatpush.bf16.msrb.mxu2 %v8818_v17 }
 0xa0b   : > { %v5549_v8 = vadd.f32 %v12350_v63, %v5456_v6 }
 0xa0e   : > { %v5348_v54 = vpop.f32.mrf.mxu2  ;;  %v6037_v18 = vpop.f32.mrf.mxu1 }
 0xa0f   : > { %v5349_v35 = vadd.f32 %v5348_v54, %v12226_v29  ;;  %v5457_v16 = vpop.f32.mrf.mxu3  ;;  %v6038_v26 = vadd.f32 %v6037_v18, %v5929_v48  ;;  %v5629_v29 = vmax.f32 %v5549_v8, 0.0  ;;  %v9255_v54 = vld [vmem:[#allocation5 + $0x7d4] sm:$0xf]  ;;  %v8879_v18 = vld [vmem:[#allocation5 + $0x7d8] sm:$0xf0] }
 0xa10   : > { %v12640_v24 = vpop.f32.mrf.mxu0 }
 0xa11   : > { %v5458_v52 = vadd.f32 %v5457_v16, %v5349_v35  ;;  %v6350_v5 = vmax.f32 %v6038_v26, 0.0  ;;  %v8882_v16 = vor.u32 %v9255_v54, %v8879_v18  ;;  %v14048_v26 = vld [vmem:[#allocation75_spill] sm:$0xff]  ;;  %v5939_v54 = vadd.f32 %v12486_v3, %v12527_v10 }
 0xa13   : > { %v5551_v61 = vadd.f32 %v12350_v63, %v5458_v52  ;;  %6133 = vmatmul.bf16.gmra.mxu2 %v12188_v12  ;;  %6671 = vmatmul.bf16.gmra.mxu0 %v12606_v58  ;;  %v12646_v33 = vpack.c.bf16 %v6350_v5, %v6348_v55  ;;  %v14047_v12 = vld [vmem:[#allocation74_spill] sm:$0xff] }
 0xa14   : > { %6242 = vmatmul.bf16.gmra.mxu3 %v12424_v42  ;;  %v5932_v42 = vadd.f32 %v12455_v56, %v12527_v10 }
 0xa15   : > { %v5631_v4 = vmax.f32 %v5551_v61, 0.0  ;;  %6977 = vmatpush.bf16.msrb.mxu3 %v8882_v16  ;;  %v14051_v16 = vld [vmem:[#allocation76_spill] sm:$0xff] }
 0xa16   : > { %v5351_v1 = vpop.f32.mrf.mxu2  ;;  %v6040_v7 = vpop.f32.mrf.mxu1 }
 0xa17   : > { %v5460_v53 = vpop.f32.mrf.mxu3  ;;  %v12649_v31 = vpack.c.bf16 %v5631_v4, %v5629_v29  ;;  %v5352_v6 = vadd.f32 %v5351_v1, %v14047_v12  ;;  %v6041_v60 = vadd.f32 %v6040_v7, %v5932_v42 }
 0xa18   : > { %v12651_v48 = vpop.f32.mrf.mxu0 }
 0xa19   : > { %6079 = vmatmul.bf16.gmra.mxu1 %v12649_v31  ;;  %v5461_v36 = vadd.f32 %v5460_v53, %v5352_v6  ;;  %v6352_v56 = vmax.f32 %v6041_v60, 0.0  ;;  %v5937_v60 = vadd.f32 %v12475_v43, %v12527_v10 }
 0xa1b   : > { %v5553_v61 = vadd.f32 %v12350_v63, %v5461_v36 }
 0xa1d   : > { %v5633_v1 = vmax.f32 %v5553_v61, 0.0 }
 0xa1e   : > { %v5353_v45 = vpop.f32.mrf.mxu2  ;;  %v6042_v35 = vpop.f32.mrf.mxu1 }
 0xa1f   : > { %v5354_v8 = vadd.f32 %v5353_v45, %v14048_v26  ;;  %v5462_v55 = vpop.f32.mrf.mxu3  ;;  %v6043_v52 = vadd.f32 %v6042_v35, %v5934_v13  ;;  %v14050_v13 = vld [vmem:[#allocation20_spill] sm:$0xff] }
 0xa20   : > { %v12660_v5 = vpop.f32.mrf.mxu0 }
 0xa21   : > { %v5463_v29 = vadd.f32 %v5462_v55, %v5354_v8  ;;  %v6354_v4 = vmax.f32 %v6043_v52, 0.0 }
 0xa23   : > { %v5555_v20 = vadd.f32 %v12350_v63, %v5463_v29  ;;  %6138 = vmatmul.bf16.gmra.mxu2 %v14049_v32  ;;  %6676 = vmatmul.bf16.gmra.mxu0 %v12626_v2  ;;  %v12666_v15 = vpack.c.bf16 %v6354_v4, %v6352_v56 }
 0xa24   : > { %6247 = vmatmul.bf16.gmra.mxu3 %v12444_v37 }
 0xa25   : > { %v5635_v7 = vmax.f32 %v5555_v20, 0.0  ;;  %v14052_v20 = vld [vmem:[#allocation57_spill] sm:$0xff] }
 0xa26   : > { %v5356_v17 = vpop.f32.mrf.mxu2  ;;  %v6045_v53 = vpop.f32.mrf.mxu1 }
 0xa27   : > { %v5465_v12 = vpop.f32.mrf.mxu3  ;;  %v12669_v6 = vpack.c.bf16 %v5635_v7, %v5633_v1  ;;  %v5357_v36 = vadd.f32 %v5356_v17, %v14050_v13  ;;  %v6046_v18 = vadd.f32 %v6045_v53, %v5937_v60  ;;  %v8837_v7 = vld [vmem:[#allocation5 + $0x780] sm:$0xf]  ;;  %v9246_v17 = vld [vmem:[#allocation5 + $0x784] sm:$0xf0] }
 0xa28   : > { %v12671_v42 = vpop.f32.mrf.mxu0  ;;  %v8838_v13 = vor.u32 %v9246_v17, %v8837_v7 }
 0xa29   : > { %6084 = vmatmul.bf16.gmra.mxu1 %v12669_v6  ;;  %v5466_v37 = vadd.f32 %v5465_v12, %v5357_v36  ;;  %v6356_v56 = vmax.f32 %v6046_v18, 0.0 }
 0xa2a   : > { %6764 = vmatpush.bf16.msra.mxu1 %v8838_v13 }
 0xa2b   : > { %v5557_v61 = vadd.f32 %v12350_v63, %v5466_v37  ;;  %v14054_v37 = vld [vmem:[#allocation72_spill] sm:$0xff] }
 0xa2d   : > { %v5637_v32 = vmax.f32 %v5557_v61, 0.0 }
 0xa2e   : > { %v5358_v45 = vpop.f32.mrf.mxu2  ;;  %v6047_v35 = vpop.f32.mrf.mxu1 }
 0xa2f   : > { %v5359_v26 = vadd.f32 %v5358_v45, %v14051_v16  ;;  %v5467_v8 = vpop.f32.mrf.mxu3  ;;  %v6048_v55 = vadd.f32 %v6047_v35, %v5939_v54  ;;  %v5944_v45 = vadd.f32 %v12506_v11, %v12527_v10 }
 0xa30   : > { %v12680_v52 = vpop.f32.mrf.mxu0 }
 0xa31   : > { %v5468_v29 = vadd.f32 %v5467_v8, %v5359_v26  ;;  %v6358_v4 = vmax.f32 %v6048_v55, 0.0  ;;  %v9237_v26 = vld [vmem:[#allocation5 + $0x744] sm:$0xf]  ;;  %v8807_v8 = vld [vmem:[#allocation5 + $0x748] sm:$0xf0] }
 0xa33   : > { %v5559_v43 = vadd.f32 %v12350_v63, %v5468_v29  ;;  %6143 = vmatmul.bf16.gmra.mxu2 %v14052_v20  ;;  %6681 = vmatmul.bf16.gmra.mxu0 %v12646_v33  ;;  %v12686_v3 = vpack.c.bf16 %v6358_v4, %v6356_v56  ;;  %v8810_v56 = vor.u32 %v9237_v26, %v8807_v8  ;;  %v14055_v29 = vld [vmem:[#allocation24_spill] sm:$0xff] }
 0xa34   : > { %6252 = vmatmul.bf16.gmra.mxu3 %v12464_v0  ;;  %v5942_v0 = vadd.f32 %v12495_v62, %v12527_v10 }
 0xa35   : > { %14053 = vst [vmem:[#allocation87_spill] sm:$0xff] %v12686_v3  ;;  %v5639_v1 = vmax.f32 %v5559_v43, 0.0  ;;  %6869 = vmatpush.bf16.msrb.mxu2 %v8810_v56  ;;  %v5949_v56 = vadd.f32 %v12531_v28, %v12527_v10 }
 0xa36   : > { %v5361_v53 = vpop.f32.mrf.mxu2  ;;  %v6050_v12 = vpop.f32.mrf.mxu1 }
 0xa37   : > { %v5470_v36 = vpop.f32.mrf.mxu3  ;;  %v12689_v60 = vpack.c.bf16 %v5639_v1, %v5637_v32  ;;  %v5362_v18 = vadd.f32 %v5361_v53, %v14054_v37  ;;  %v6051_v16 = vadd.f32 %v6050_v12, %v5942_v0  ;;  %v14056_v53 = vld [vmem:[#allocation55_spill] sm:$0xff]  ;;  %v9253_v37 = vld [vmem:[#allocation5 + $0x7c4] sm:$0xf] }
 0xa38   : > { %v12691_v54 = vpop.f32.mrf.mxu0 }
 0xa39   : > { %6089 = vmatmul.bf16.gmra.mxu1 %v12689_v60  ;;  %v5471_v35 = vadd.f32 %v5470_v36, %v5362_v18  ;;  %v6360_v62 = vmax.f32 %v6051_v16, 0.0  ;;  %v8871_v18 = vld [vmem:[#allocation5 + $0x7c8] sm:$0xf0] }
 0xa3b   : > { %v5561_v1 = vadd.f32 %v12350_v63, %v5471_v35  ;;  %v8874_v35 = vor.u32 %v9253_v37, %v8871_v18  ;;  %v14060_v18 = vld [vmem:[#allocation77_spill] sm:$0xff] }
 0xa3d   : > { %v5641_v13 = vmax.f32 %v5561_v1, 0.0  ;;  %6978 = vmatpush.bf16.msrb.mxu3 %v8874_v35  ;;  %v14059_v1 = vld [vmem:[#allocation73_spill] sm:$0xff] }
 0xa3e   : > { %v5363_v55 = vpop.f32.mrf.mxu2  ;;  %v6052_v61 = vpop.f32.mrf.mxu1 }
 0xa3f   : > { %v5364_v4 = vadd.f32 %v5363_v55, %v14055_v29  ;;  %v5472_v43 = vpop.f32.mrf.mxu3  ;;  %v6053_v20 = vadd.f32 %v6052_v61, %v5944_v45  ;;  %v14058_v55 = vld [vmem:[#allocation79_spill] sm:$0xff] }
 0xa40   : > { %v12700_v32 = vpop.f32.mrf.mxu0 }
 0xa41   : > { %v5473_v7 = vadd.f32 %v5472_v43, %v5364_v4  ;;  %v6362_v17 = vmax.f32 %v6053_v20, 0.0 }
 0xa43   : > { %v5563_v11 = vadd.f32 %v12350_v63, %v5473_v7  ;;  %6148 = vmatmul.bf16.gmra.mxu2 %v14056_v53  ;;  %6686 = vmatmul.bf16.gmra.mxu0 %v12666_v15  ;;  %v12706_v12 = vpack.c.bf16 %v6362_v17, %v6360_v62 }
 0xa44   : > { %6257 = vmatmul.bf16.gmra.mxu3 %v12484_v38  ;;  %v5947_v38 = vadd.f32 %v12515_v14, %v12527_v10 }
 0xa45   : > { %14057 = vst [vmem:[#allocation22_spill] sm:$0xff] %v12706_v12  ;;  %v5643_v36 = vmax.f32 %v5563_v11, 0.0 }
 0xa46   : > { %v5366_v0 = vpop.f32.mrf.mxu2  ;;  %v6055_v45 = vpop.f32.mrf.mxu1 }
 0xa47   : > { %v5475_v16 = vpop.f32.mrf.mxu3  ;;  %v12709_v26 = vpack.c.bf16 %v5643_v36, %v5641_v13  ;;  %v5367_v61 = vadd.f32 %v5366_v0, %v14058_v55  ;;  %v6056_v4 = vadd.f32 %v6055_v45, %v5947_v38  ;;  %v14062_v0 = vld [vmem:[#allocation18_spill] sm:$0xff] }
 0xa48   : > { %v12711_v8 = vpop.f32.mrf.mxu0 }
 0xa49   : > { %6094 = vmatmul.bf16.gmra.mxu1 %v12709_v26  ;;  %v5476_v29 = vadd.f32 %v5475_v16, %v5367_v61  ;;  %v6364_v13 = vmax.f32 %v6056_v4, 0.0 }
 0xa4b   : > { %v5565_v53 = vadd.f32 %v12350_v63, %v5476_v29  ;;  %v14063_v29 = vld [vmem:[#allocation80_spill] sm:$0xff] }
 0xa4d   : > { %v5645_v45 = vmax.f32 %v5565_v53, 0.0 }
 0xa4e   : > { %v5368_v43 = vpop.f32.mrf.mxu2  ;;  %v6057_v20 = vpop.f32.mrf.mxu1 }
 0xa4f   : > { %v5369_v62 = vadd.f32 %v5368_v43, %v14059_v1  ;;  %v5477_v7 = vpop.f32.mrf.mxu3  ;;  %v6058_v17 = vadd.f32 %v6057_v20, %v5949_v56  ;;  %v5952_v43 = vadd.f32 %v12540_v21, %v12527_v10  ;;  %v9268_v20 = vld [vmem:[#allocation8 + $0x38] sm:$0xff] }
 0xa50   : > { %v12720_v11 = vpop.f32.mrf.mxu0  ;;  %v9276_v1 = vld [vmem:[#allocation8 + $0x78] sm:$0xff]  ;;  %7336 = vmatpush.bf16.msrb.mxu0 %v9268_v20 }
 0xa51   : > { %v5478_v36 = vadd.f32 %v5477_v7, %v5369_v62  ;;  %v6366_v37 = vmax.f32 %v6058_v17, 0.0  ;;  %v5954_v62 = vadd.f32 %v12551_v30, %v12527_v10  ;;  %7445 = vmatpush.bf16.msrb.mxu1 %v9276_v1  ;;  %v14065_v30 = vld [vmem:[#allocation78_spill] sm:$0xff] }
 0xa53   : > { %v5567_v14 = vadd.f32 %v12350_v63, %v5478_v36  ;;  %6153 = vmatmul.bf16.gmra.mxu2 %v14060_v18  ;;  %6691 = vmatmul.bf16.gmra.mxu0 %v12686_v3  ;;  %v12726_v28 = vpack.c.bf16 %v6366_v37, %v6364_v13  ;;  %v14064_v36 = vld [vmem:[#allocation81_spill] sm:$0xff]  ;;  %v14077_v3 = vld [vmem:[#allocation83_spill] sm:$0xff] }
 0xa54   : > { %6262 = vmatmul.bf16.gmra.mxu3 %v14062_v0 }
 0xa55   : > { %14061 = vst [vmem:[#allocation44_spill] sm:$0xff] %v12726_v28  ;;  %v5647_v35 = vmax.f32 %v5567_v14, 0.0 }
 0xa56   : > { %v5371_v16 = vpop.f32.mrf.mxu2  ;;  %v6060_v55 = vpop.f32.mrf.mxu1 }
 0xa57   : > { %v5480_v61 = vpop.f32.mrf.mxu3  ;;  %v12729_v38 = vpack.c.bf16 %v5647_v35, %v5645_v45  ;;  %v5372_v4 = vadd.f32 %v5371_v16, %v14063_v29  ;;  %v6061_v17 = vadd.f32 %v6060_v55, %v5952_v43  ;;  %v8799_v43 = vld [vmem:[#allocation5 + $0x738] sm:$0xf0] }
 0xa58   : > { %v12731_v56 = vpop.f32.mrf.mxu0 }
 0xa59   : > { %6099 = vmatmul.bf16.gmra.mxu1 %v12729_v38  ;;  %v5481_v7 = vadd.f32 %v5480_v61, %v5372_v4  ;;  %v6368_v21 = vmax.f32 %v6061_v17, 0.0  ;;  %v14067_v61 = vld [vmem:[#allocation86_spill] sm:$0xff] }
 0xa5a   : > { %v9235_v4 = vld [vmem:[#allocation5 + $0x734] sm:$0xf] }
 0xa5b   : > { %v5569_v45 = vadd.f32 %v12350_v63, %v5481_v7 }
 0xa5d   : > { %v5649_v20 = vmax.f32 %v5569_v45, 0.0  ;;  %v8863_v45 = vld [vmem:[#allocation5 + $0x7b8] sm:$0xf0] }
 0xa5e   : > { %v5373_v53 = vpop.f32.mrf.mxu2  ;;  %v6062_v13 = vpop.f32.mrf.mxu1 }
 0xa5f   : > { %v5374_v37 = vadd.f32 %v5373_v53, %v14064_v36  ;;  %v5482_v14 = vpop.f32.mrf.mxu3  ;;  %v6063_v18 = vadd.f32 %v6062_v13, %v5954_v62  ;;  %v8802_v62 = vor.u32 %v9235_v4, %v8799_v43  ;;  %v14068_v36 = vld [vmem:[#allocation40_spill] sm:$0xff] }
 0xa60   : > { %v12740_v0 = vpop.f32.mrf.mxu0 }
 0xa61   : > { %v5483_v35 = vadd.f32 %v5482_v14, %v5374_v37  ;;  %v6370_v16 = vmax.f32 %v6063_v18, 0.0  ;;  %6870 = vmatpush.bf16.msrb.mxu2 %v8802_v62  ;;  %v12754_v37 = vperm.slane %v14068_v36, 1  ;;  %v5957_v14 = vadd.f32 %v12560_v19, %v12527_v10  ;;  %v9251_v18 = vld [vmem:[#allocation5 + $0x7b4] sm:$0xf] }
 0xa63   : > { %v5571_v29 = vadd.f32 %v12350_v63, %v5483_v35  ;;  %6158 = vmatmul.bf16.gmra.mxu2 %v14065_v30  ;;  %6696 = vmatmul.bf16.gmra.mxu0 %v12706_v12  ;;  %v12746_v55 = vpack.c.bf16 %v6370_v16, %v6368_v21  ;;  %v8866_v21 = vor.u32 %v9251_v18, %v8863_v45  ;;  %v14069_v45 = vld [vmem:[#allocation28_spill] sm:$0xff] }
 0xa64   : > { %6267 = vmatmul.bf16.gmra.mxu3 %v14067_v61  ;;  %v5959_v35 = vadd.f32 %v12571_v44, %v12527_v10 }
 0xa65   : > { %14066 = vst [vmem:[#allocation89_spill] sm:$0xff] %v12746_v55  ;;  %v5651_v1 = vmax.f32 %v5571_v29, 0.0  ;;  %6979 = vmatpush.bf16.msrb.mxu3 %v8866_v21 }
 0xa66   : > { %v6065_v53 = vpop.f32.mrf.mxu1  ;;  %v6119_v7 = vpop.f32.mrf.mxu2 }
 0xa67   : > { %v6228_v17 = vpop.f32.mrf.mxu3  ;;  %v12749_v13 = vpack.c.bf16 %v5651_v1, %v5649_v20  ;;  %v6066_v16 = vadd.f32 %v6065_v53, %v5957_v14  ;;  %v6120_v29 = vadd.f32 %v6119_v7, %v12754_v37 }
 0xa68   : > { %v12751_v63 = vpop.f32.mrf.mxu0 }
 0xa69   : > { %6104 = vmatmul.bf16.gmra.mxu1 %v12749_v13  ;;  %v6372_v62 = vmax.f32 %v6066_v16, 0.0  ;;  %v6229_v19 = vadd.f32 %v6228_v17, %v6120_v29  ;;  %v5964_v17 = vadd.f32 %v12591_v27, %v12527_v10  ;;  %v9267_v27 = vld [vmem:[#allocation8 + $0x30] sm:$0xff] }
 0xa6a   : > { %7337 = vmatpush.bf16.msrb.mxu0 %v9267_v27 }
 0xa6b   : > { %v6329_v53 = vmax.f32 %v6229_v19, 0.0 }
 0xa6e   : > { %v6067_v30 = vpop.f32.mrf.mxu1  ;;  %v6121_v61 = vpop.f32.mrf.mxu2 }
 0xa6f   : > { %v6068_v4 = vadd.f32 %v6067_v30, %v5959_v35  ;;  %v6122_v43 = vadd.f32 %v6121_v61, %v12754_v37  ;;  %v6230_v20 = vpop.f32.mrf.mxu3 }
 0xa70   : > { %v12763_v1 = vpop.f32.mrf.mxu0 }
 0xa71   : > { %v6374_v36 = vmax.f32 %v6068_v4, 0.0  ;;  %v6231_v12 = vadd.f32 %v6230_v20, %v6122_v43 }
 0xa73   : > { %v6331_v18 = vmax.f32 %v6231_v12, 0.0  ;;  %6163 = vmatmul.bf16.gmra.mxu2 %v14069_v45  ;;  %6701 = vmatmul.bf16.gmra.mxu0 %v12726_v28  ;;  %v12767_v44 = vpack.c.bf16 %v6374_v36, %v6372_v62  ;;  %v5962_v12 = vadd.f32 %v12580_v34, %v12527_v10  ;;  %v14071_v34 = vld [vmem:[#allocation58_spill] sm:$0xff] }
 0xa74   : > { %6272 = vmatmul.bf16.gmra.mxu3 %v12549_v9 }
 0xa75   : > { %14070 = vst [vmem:[#allocation90_spill] sm:$0xff] %v12767_v44  ;;  %v12770_v21 = vpack.c.bf16 %v6331_v18, %v6329_v53 }
 0xa76   : > { %v6070_v7 = vpop.f32.mrf.mxu1  ;;  %v6124_v14 = vpop.f32.mrf.mxu2 }
 0xa77   : > { %v6233_v35 = vpop.f32.mrf.mxu3  ;;  %v6071_v16 = vadd.f32 %v6070_v7, %v5962_v12  ;;  %v6125_v29 = vadd.f32 %v6124_v14, %v12754_v37  ;;  %v9275_v7 = vld [vmem:[#allocation8 + $0x70] sm:$0xff] }
 0xa78   : > { %v12772_v30 = vpop.f32.mrf.mxu0  ;;  %7446 = vmatpush.bf16.msrb.mxu1 %v9275_v7 }
 0xa79   : > { %6765 = vmatmul.bf16.vlgmr.msra.gmra.mxu1 %v12770_v21  ;;  %v6376_v19 = vmax.f32 %v6071_v16, 0.0  ;;  %v6234_v36 = vadd.f32 %v6233_v35, %v6125_v29 }
 0xa7b   : > { %v6333_v12 = vmax.f32 %v6234_v36, 0.0 }
 0xa7e   : > { %v6072_v9 = vpop.f32.mrf.mxu1  ;;  %v6126_v61 = vpop.f32.mrf.mxu2 }
 0xa7f   : > { %v6073_v4 = vadd.f32 %v6072_v9, %v5964_v17  ;;  %v6127_v43 = vadd.f32 %v6126_v61, %v12754_v37  ;;  %v6235_v20 = vpop.f32.mrf.mxu3  ;;  %v5967_v61 = vadd.f32 %v12600_v40, %v12527_v10 }
 0xa80   : > { %v12781_v62 = vpop.f32.mrf.mxu0 }
 0xa81   : > { %v6378_v18 = vmax.f32 %v6073_v4, 0.0  ;;  %v6236_v45 = vadd.f32 %v6235_v20, %v6127_v43  ;;  %v9233_v4 = vld [vmem:[#allocation5 + $0x724] sm:$0xf]  ;;  %v8791_v43 = vld [vmem:[#allocation5 + $0x728] sm:$0xf0] }
 0xa82   : > { %v8794_v20 = vor.u32 %v9233_v4, %v8791_v43  ;;  %v14073_v43 = vld [vmem:[#allocation32_spill] sm:$0xff] }
 0xa83   : > { %v6335_v53 = vmax.f32 %v6236_v45, 0.0  ;;  %6168 = vmatmul.bf16.gmra.mxu2 %v14071_v34  ;;  %6706 = vmatmul.bf16.gmra.mxu0 %v12746_v55  ;;  %v12785_v14 = vpack.c.bf16 %v6378_v18, %v6376_v19 }
 0xa84   : > { %6277 = vmatmul.bf16.gmra.mxu3 %v12569_v46  ;;  %v5969_v46 = vadd.f32 %v12611_v22, %v12527_v10  ;;  %6871 = vmatpush.bf16.msrb.mxu2 %v8794_v20  ;;  %v9249_v22 = vld [vmem:[#allocation5 + $0x7a4] sm:$0xf] }
 0xa85   : > { %14072 = vst [vmem:[#allocation26_spill] sm:$0xff] %v12785_v14  ;;  %v12788_v35 = vpack.c.bf16 %v6335_v53, %v6333_v12 }
 0xa86   : > { %v6075_v17 = vpop.f32.mrf.mxu1  ;;  %v6129_v9 = vpop.f32.mrf.mxu2 }
 0xa87   : > { %v6238_v16 = vpop.f32.mrf.mxu3  ;;  %v6076_v19 = vadd.f32 %v6075_v17, %v5967_v61  ;;  %v6130_v36 = vadd.f32 %v6129_v9, %v12754_v37  ;;  %v8855_v17 = vld [vmem:[#allocation5 + $0x7a8] sm:$0xf0] }
 0xa88   : > { %v12790_v29 = vpop.f32.mrf.mxu0  ;;  %v8858_v61 = vor.u32 %v9249_v22, %v8855_v17 }
 0xa89   : > { %6770 = vmatmul.bf16.gmra.mxu1 %v12788_v35  ;;  %v6380_v12 = vmax.f32 %v6076_v19, 0.0  ;;  %v6239_v40 = vadd.f32 %v6238_v16, %v6130_v36 }
 0xa8a   : > { %6980 = vmatpush.bf16.msrb.mxu3 %v8858_v61 }
 0xa8b   : > { %v6337_v20 = vmax.f32 %v6239_v40, 0.0 }
 0xa8e   : > { %v6077_v18 = vpop.f32.mrf.mxu1  ;;  %v6131_v45 = vpop.f32.mrf.mxu2 }
 0xa8f   : > { %v6078_v53 = vadd.f32 %v6077_v18, %v5969_v46  ;;  %v6132_v34 = vadd.f32 %v6131_v45, %v12754_v37  ;;  %v6240_v27 = vpop.f32.mrf.mxu3 }
 0xa90   : > { %v12799_v7 = vpop.f32.mrf.mxu0 }
 0xa91   : > { %v6382_v55 = vmax.f32 %v6078_v53, 0.0  ;;  %v6241_v28 = vadd.f32 %v6240_v27, %v6132_v34 }
 0xa93   : > { %v6339_v4 = vmax.f32 %v6241_v28, 0.0  ;;  %6173 = vmatmul.bf16.gmra.mxu2 %v14073_v43  ;;  %6711 = vmatmul.bf16.gmra.mxu0 %v12767_v44  ;;  %v12803_v9 = vpack.c.bf16 %v6382_v55, %v6380_v12  ;;  %v5972_v28 = vadd.f32 %v12620_v51, %v12527_v10  ;;  %v5974_v55 = vadd.f32 %v12631_v23, %v12527_v10  ;;  %v14075_v51 = vld [vmem:[#allocation82_spill] sm:$0xff] }
 0xa94   : > { %6282 = vmatmul.bf16.gmra.mxu3 %v12589_v57 }
 0xa95   : > { %14074 = vst [vmem:[#allocation48_spill] sm:$0xff] %v12803_v9  ;;  %v12806_v16 = vpack.c.bf16 %v6339_v4, %v6337_v20 }
 0xa96   : > { %v6080_v46 = vpop.f32.mrf.mxu1  ;;  %v6134_v18 = vpop.f32.mrf.mxu2 }
 0xa97   : > { %v6243_v19 = vpop.f32.mrf.mxu3  ;;  %v6081_v45 = vadd.f32 %v6080_v46, %v5972_v28  ;;  %v6135_v57 = vadd.f32 %v6134_v18, %v12754_v37 }
 0xa98   : > { %v12808_v36 = vpop.f32.mrf.mxu0 }
 0xa99   : > { %6775 = vmatmul.bf16.gmra.mxu1 %v12806_v16  ;;  %v6384_v43 = vmax.f32 %v6081_v45, 0.0  ;;  %v6244_v22 = vadd.f32 %v6243_v19, %v6135_v57  ;;  %v5977_v19 = vadd.f32 %v12640_v24, %v12527_v10  ;;  %v9266_v45 = vld [vmem:[#allocation8 + $0x28] sm:$0xff] }
 0xa9a   : > { %v9274_v57 = vld [vmem:[#allocation8 + $0x68] sm:$0xff]  ;;  %7338 = vmatpush.bf16.msrb.mxu0 %v9266_v45 }
 0xa9b   : > { %v6341_v46 = vmax.f32 %v6244_v22, 0.0  ;;  %7447 = vmatpush.bf16.msrb.mxu1 %v9274_v57 }
 0xa9e   : > { %v6082_v53 = vpop.f32.mrf.mxu1  ;;  %v6136_v34 = vpop.f32.mrf.mxu2 }
 0xa9f   : > { %v6083_v27 = vadd.f32 %v6082_v53, %v5974_v55  ;;  %v6137_v12 = vadd.f32 %v6136_v34, %v12754_v37  ;;  %v6245_v40 = vpop.f32.mrf.mxu3 }
 0xaa0   : > { %v12817_v4 = vpop.f32.mrf.mxu0 }
 0xaa1   : > { %v6386_v17 = vmax.f32 %v6083_v27, 0.0  ;;  %v6246_v61 = vadd.f32 %v6245_v40, %v6137_v12  ;;  %v5979_v27 = vadd.f32 %v12651_v48, %v12527_v10 }
 0xaa3   : > { %v6343_v20 = vmax.f32 %v6246_v61, 0.0  ;;  %6178 = vmatmul.bf16.gmra.mxu2 %v14075_v51  ;;  %6716 = vmatmul.bf16.gmra.mxu0 %v12785_v14  ;;  %v12821_v23 = vpack.c.bf16 %v6386_v17, %v6384_v43 }
 0xaa4   : > { %6287 = vmatmul.bf16.gmra.mxu3 %v12609_v47 }
 0xaa5   : > { %14076 = vst [vmem:[#allocation91_spill] sm:$0xff] %v12821_v23  ;;  %v12824_v53 = vpack.c.bf16 %v6343_v20, %v6341_v46 }
 0xaa6   : > { %v6085_v18 = vpop.f32.mrf.mxu1  ;;  %v6139_v28 = vpop.f32.mrf.mxu2 }
 0xaa7   : > { %v6248_v55 = vpop.f32.mrf.mxu3  ;;  %v6086_v12 = vadd.f32 %v6085_v18, %v5977_v19  ;;  %v6140_v47 = vadd.f32 %v6139_v28, %v12754_v37  ;;  %v9231_v18 = vld [vmem:[#allocation5 + $0x714] sm:$0xf]  ;;  %v8783_v28 = vld [vmem:[#allocation5 + $0x718] sm:$0xf0] }
 0xaa8   : > { %v12826_v34 = vpop.f32.mrf.mxu0  ;;  %v8786_v45 = vor.u32 %v9231_v18, %v8783_v28 }
 0xaa9   : > { %6780 = vmatmul.bf16.gmra.mxu1 %v12824_v53  ;;  %v6388_v51 = vmax.f32 %v6086_v12, 0.0  ;;  %v6249_v24 = vadd.f32 %v6248_v55, %v6140_v47  ;;  %v8847_v47 = vld [vmem:[#allocation5 + $0x798] sm:$0xf0] }
 0xaaa   : > { %6872 = vmatpush.bf16.msrb.mxu2 %v8786_v45 }
 0xaab   : > { %v6345_v19 = vmax.f32 %v6249_v24, 0.0 }
 0xaae   : > { %v6087_v40 = vpop.f32.mrf.mxu1  ;;  %v6141_v43 = vpop.f32.mrf.mxu2 }
 0xaaf   : > { %v6088_v22 = vadd.f32 %v6087_v40, %v5979_v27  ;;  %v6142_v17 = vadd.f32 %v6141_v43, %v12754_v37  ;;  %v6250_v61 = vpop.f32.mrf.mxu3  ;;  %v5984_v43 = vadd.f32 %v12671_v42, %v12527_v10 }
 0xab0   : > { %v12835_v20 = vpop.f32.mrf.mxu0 }
 0xab1   : > { %v6390_v46 = vmax.f32 %v6088_v22, 0.0  ;;  %v6251_v14 = vadd.f32 %v6250_v61, %v6142_v17 }
 0xab3   : > { %v6347_v44 = vmax.f32 %v6251_v14, 0.0  ;;  %6183 = vmatmul.bf16.gmra.mxu2 %v14077_v3  ;;  %6721 = vmatmul.bf16.gmra.mxu0 %v12803_v9  ;;  %v12839_v48 = vpack.c.bf16 %v6390_v46, %v6388_v51  ;;  %v5982_v3 = vadd.f32 %v12660_v5, %v12527_v10  ;;  %v9247_v14 = vld [vmem:[#allocation5 + $0x794] sm:$0xf] }
 0xab4   : > { %6292 = vmatmul.bf16.gmra.mxu3 %v12629_v49  ;;  %v8850_v49 = vor.u32 %v9247_v14, %v8847_v47  ;;  %v14079_v47 = vld [vmem:[#allocation59_spill] sm:$0xff] }
 0xab5   : > { %14078 = vst [vmem:[#allocation45_spill] sm:$0xff] %v12839_v48  ;;  %v12842_v12 = vpack.c.bf16 %v6347_v44, %v6345_v19 }
 0xab6   : > { %v6090_v57 = vpop.f32.mrf.mxu1  ;;  %v6144_v27 = vpop.f32.mrf.mxu2  ;;  %6981 = vmatpush.bf16.msrb.mxu3 %v8850_v49 }
 0xab7   : > { %v6253_v40 = vpop.f32.mrf.mxu3  ;;  %v6091_v22 = vadd.f32 %v6090_v57, %v5982_v3  ;;  %v6145_v17 = vadd.f32 %v6144_v27, %v12754_v37 }
 0xab8   : > { %v12844_v55 = vpop.f32.mrf.mxu0 }
 0xab9   : > { %6785 = vmatmul.bf16.gmra.mxu1 %v12842_v12  ;;  %v6392_v28 = vmax.f32 %v6091_v22, 0.0  ;;  %v6254_v5 = vadd.f32 %v6253_v40, %v6145_v17  ;;  %v5987_v40 = vadd.f32 %v12680_v52, %v12527_v10  ;;  %v5989_v22 = vadd.f32 %v12691_v54, %v12527_v10  ;;  %v14081_v52 = vld [vmem:[#allocation36_spill] sm:$0xff]  ;;  %v9265_v54 = vld [vmem:[#allocation8 + $0x20] sm:$0xff] }
 0xaba   : > { %7339 = vmatpush.bf16.msrb.mxu0 %v9265_v54 }
 0xabb   : > { %v6349_v57 = vmax.f32 %v6254_v5, 0.0 }
 0xabe   : > { %v6092_v61 = vpop.f32.mrf.mxu1  ;;  %v6146_v44 = vpop.f32.mrf.mxu2 }
 0xabf   : > { %v6093_v51 = vadd.f32 %v6092_v61, %v5984_v43  ;;  %v6147_v24 = vadd.f32 %v6146_v44, %v12754_v37  ;;  %v6255_v46 = vpop.f32.mrf.mxu3 }
 0xac0   : > { %v12853_v18 = vpop.f32.mrf.mxu0 }
 0xac1   : > { %v6394_v19 = vmax.f32 %v6093_v51, 0.0  ;;  %v6256_v45 = vadd.f32 %v6255_v46, %v6147_v24 }
 0xac3   : > { %v6351_v14 = vmax.f32 %v6256_v45, 0.0  ;;  %6188 = vmatmul.bf16.gmra.mxu2 %v14079_v47  ;;  %6726 = vmatmul.bf16.gmra.mxu0 %v12821_v23  ;;  %v12857_v42 = vpack.c.bf16 %v6394_v19, %v6392_v28 }
 0xac4   : > { %6297 = vmatmul.bf16.gmra.mxu3 %v12649_v31 }
 0xac5   : > { %14080 = vst [vmem:[#allocation93_spill] sm:$0xff] %v12857_v42  ;;  %v12860_v43 = vpack.c.bf16 %v6351_v14, %v6349_v57 }
 0xac6   : > { %v6095_v27 = vpop.f32.mrf.mxu1  ;;  %v6149_v3 = vpop.f32.mrf.mxu2 }
 0xac7   : > { %v6258_v49 = vpop.f32.mrf.mxu3  ;;  %v6096_v17 = vadd.f32 %v6095_v27, %v5987_v40  ;;  %v6150_v44 = vadd.f32 %v6149_v3, %v12754_v37  ;;  %v9273_v27 = vld [vmem:[#allocation8 + $0x60] sm:$0xff] }
 0xac8   : > { %v12862_v61 = vpop.f32.mrf.mxu0  ;;  %7448 = vmatpush.bf16.msrb.mxu1 %v9273_v27 }
 0xac9   : > { %6790 = vmatmul.bf16.gmra.mxu1 %v12860_v43  ;;  %v6396_v19 = vmax.f32 %v6096_v17, 0.0  ;;  %v6259_v45 = vadd.f32 %v6258_v49, %v6150_v44 }
 0xacb   : > { %v6353_v40 = vmax.f32 %v6259_v45, 0.0 }
 0xace   : > { %v6097_v31 = vpop.f32.mrf.mxu1  ;;  %v6151_v51 = vpop.f32.mrf.mxu2 }
 0xacf   : > { %v6098_v24 = vadd.f32 %v6097_v31, %v5989_v22  ;;  %v6152_v46 = vadd.f32 %v6151_v51, %v12754_v37  ;;  %v6260_v28 = vpop.f32.mrf.mxu3  ;;  %v5992_v51 = vadd.f32 %v12700_v32, %v12527_v10 }
 0xad0   : > { %v12871_v5 = vpop.f32.mrf.mxu0 }
 0xad1   : > { %v6398_v14 = vmax.f32 %v6098_v24, 0.0  ;;  %v6261_v47 = vadd.f32 %v6260_v28, %v6152_v46  ;;  %v9229_v24 = vld [vmem:[#allocation5 + $0x704] sm:$0xf]  ;;  %v8775_v46 = vld [vmem:[#allocation5 + $0x708] sm:$0xf0] }
 0xad2   : > { %v8778_v28 = vor.u32 %v9229_v24, %v8775_v46  ;;  %v14083_v46 = vld [vmem:[#allocation84_spill] sm:$0xff] }
 0xad3   : > { %v6355_v57 = vmax.f32 %v6261_v47, 0.0  ;;  %6193 = vmatmul.bf16.gmra.mxu2 %v14081_v52  ;;  %6731 = vmatmul.bf16.gmra.mxu0 %v12839_v48  ;;  %v12875_v3 = vpack.c.bf16 %v6398_v14, %v6396_v19 }
 0xad4   : > { %6302 = vmatmul.bf16.gmra.mxu3 %v12669_v6  ;;  %v5994_v6 = vadd.f32 %v12711_v8, %v12527_v10  ;;  %6873 = vmatpush.bf16.msrb.mxu2 %v8778_v28  ;;  %v9245_v8 = vld [vmem:[#allocation5 + $0x784] sm:$0xf] }
 0xad5   : > { %14082 = vst [vmem:[#allocation37_spill] sm:$0xff] %v12875_v3  ;;  %v12878_v49 = vpack.c.bf16 %v6355_v57, %v6353_v40 }
 0xad6   : > { %v6100_v22 = vpop.f32.mrf.mxu1  ;;  %v6154_v31 = vpop.f32.mrf.mxu2 }
 0xad7   : > { %v6263_v17 = vpop.f32.mrf.mxu3  ;;  %v6101_v19 = vadd.f32 %v6100_v22, %v5992_v51  ;;  %v6155_v45 = vadd.f32 %v6154_v31, %v12754_v37  ;;  %v8839_v22 = vld [vmem:[#allocation5 + $0x788] sm:$0xf0] }
 0xad8   : > { %v12880_v44 = vpop.f32.mrf.mxu0  ;;  %v8842_v51 = vor.u32 %v9245_v8, %v8839_v22 }
 0xad9   : > { %6795 = vmatmul.bf16.gmra.mxu1 %v12878_v49  ;;  %v6400_v40 = vmax.f32 %v6101_v19, 0.0  ;;  %v6264_v32 = vadd.f32 %v6263_v17, %v6155_v45 }
 0xada   : > { %6982 = vmatpush.bf16.msrb.mxu3 %v8842_v51 }
 0xadb   : > { %v6357_v28 = vmax.f32 %v6264_v32, 0.0 }
 0xade   : > { %v6102_v14 = vpop.f32.mrf.mxu1  ;;  %v6156_v47 = vpop.f32.mrf.mxu2 }
 0xadf   : > { %v6103_v57 = vadd.f32 %v6102_v14, %v5994_v6  ;;  %v6157_v52 = vadd.f32 %v6156_v47, %v12754_v37  ;;  %v6265_v54 = vpop.f32.mrf.mxu3 }
 0xae0   : > { %v12889_v27 = vpop.f32.mrf.mxu0 }
 0xae1   : > { %v6402_v48 = vmax.f32 %v6103_v57, 0.0  ;;  %v6266_v23 = vadd.f32 %v6265_v54, %v6157_v52 }
 0xae3   : > { %v6359_v24 = vmax.f32 %v6266_v23, 0.0  ;;  %6198 = vmatmul.bf16.gmra.mxu2 %v14083_v46  ;;  %6736 = vmatmul.bf16.gmra.mxu0 %v12857_v42  ;;  %v12893_v31 = vpack.c.bf16 %v6402_v48, %v6400_v40  ;;  %v5997_v23 = vadd.f32 %v12720_v11, %v12527_v10  ;;  %v5999_v48 = vadd.f32 %v12731_v56, %v12527_v10  ;;  %v14084_v11 = vld [vmem:[#allocation85_spill] sm:$0xff] }
 0xae4   : > { %6307 = vmatmul.bf16.gmra.mxu3 %v12689_v60  ;;  %v9264_v56 = vld [vmem:[#allocation8 + $0x18] sm:$0xff] }
 0xae5   : > { %v12896_v17 = vpack.c.bf16 %v6359_v24, %v6357_v28  ;;  %7340 = vmatpush.bf16.msrb.mxu0 %v9264_v56 }
 0xae6   : > { %v6105_v6 = vpop.f32.mrf.mxu1  ;;  %v6159_v14 = vpop.f32.mrf.mxu2 }
 0xae7   : > { %v6268_v19 = vpop.f32.mrf.mxu3  ;;  %v6106_v47 = vadd.f32 %v6105_v6, %v5997_v23  ;;  %v6160_v60 = vadd.f32 %v6159_v14, %v12754_v37  ;;  %v12913_v6 = vld [vmem:[#allocation7 + $0xe] sm:$0x3] }
 0xae8   : > { %v12898_v45 = vpop.f32.mrf.mxu0  ;;  %14085 = vst [vmem:[#allocation30_spill] sm:$0xff] %v12913_v6 }
 0xae9   : > { %6800 = vmatmul.bf16.gmra.mxu1 %v12896_v17  ;;  %v6404_v46 = vmax.f32 %v6106_v47, 0.0  ;;  %v6269_v8 = vadd.f32 %v6268_v19, %v6160_v60  ;;  %v12917_v19 = vperm.slane %v12913_v6, 0 }
 0xaeb   : > { %v6361_v14 = vmax.f32 %v6269_v8, 0.0 }
 0xaee   : > { %v6107_v57 = vpop.f32.mrf.mxu1  ;;  %v6161_v52 = vpop.f32.mrf.mxu2 }
 0xaef   : > { %v6108_v54 = vadd.f32 %v6107_v57, %v5999_v48  ;;  %v6162_v40 = vadd.f32 %v6161_v52, %v12754_v37  ;;  %v6270_v32 = vpop.f32.mrf.mxu3  ;;  %v9263_v57 = vld [vmem:[#allocation8 + $0x10] sm:$0xff] }
 0xaf0   : > { %v12907_v24 = vpop.f32.mrf.mxu0  ;;  %7341 = vmatpush.bf16.msrb.mxu0 %v9263_v57 }
 0xaf1   : > { %v6406_v22 = vmax.f32 %v6108_v54, 0.0  ;;  %v6271_v51 = vadd.f32 %v6270_v32, %v6162_v40  ;;  %v6658_v54 = vadd.f32 %v12740_v0, %v12917_v19  ;;  %v9262_v40 = vld [vmem:[#allocation8 + $0x8] sm:$0xff]  ;;  %v6660_v32 = vadd.f32 %v12751_v63, %v12917_v19 }
 0xaf3   : > { %v6363_v28 = vmax.f32 %v6271_v51, 0.0  ;;  %6203 = vmatmul.bf16.gmra.mxu2 %v14084_v11  ;;  %6741 = vmatmul.bf16.gmra.mxu0 %v12875_v3  ;;  %v12911_v10 = vpack.c.bf16 %v6406_v22, %v6404_v46 }
 0xaf4   : > { %6312 = vmatmul.bf16.gmra.mxu3 %v12709_v26  ;;  %v9272_v26 = vld [vmem:[#allocation8 + $0x58] sm:$0xff]  ;;  %7342 = vmatpush.bf16.msrb.mxu0 %v9262_v40 }
 0xaf5   : > { %v12919_v60 = vpack.c.bf16 %v6363_v28, %v6361_v14  ;;  %7449 = vmatpush.bf16.msrb.mxu1 %v9272_v26  ;;  %v9261_v14 = vld [vmem:[#allocation8] sm:$0xff] }
 0xaf6   : > { %v6164_v23 = vpop.f32.mrf.mxu2  ;;  %v6766_v48 = vpop.f32.mrf.mxu1 }
 0xaf7   : > { %v6273_v47 = vpop.f32.mrf.mxu3  ;;  %v6165_v46 = vadd.f32 %v6164_v23, %v12754_v37  ;;  %v6767_v8 = vadd.f32 %v6766_v48, %v6658_v54 }
 0xaf8   : > { %v12921_v52 = vpop.f32.mrf.mxu0  ;;  %7343 = vmatpush.bf16.msrb.mxu0 %v9261_v14 }
 0xaf9   : > { %6805 = vmatmul.bf16.gmra.mxu1 %v12919_v60  ;;  %v6274_v0 = vadd.f32 %v6273_v47, %v6165_v46  ;;  %v7084_v3 = vmax.f32 %v6767_v8, 0.0 }
 0xafb   : > { %v6365_v23 = vmax.f32 %v6274_v0, 0.0 }
 0xafe   : > { %v6166_v22 = vpop.f32.mrf.mxu2  ;;  %v6768_v51 = vpop.f32.mrf.mxu1 }
 0xaff   : > { %v6167_v28 = vadd.f32 %v6166_v22, %v12754_v37  ;;  %v6275_v11 = vpop.f32.mrf.mxu3  ;;  %v6769_v56 = vadd.f32 %v6768_v51, %v6660_v32 }
 0xb00   : > { %v12930_v57 = vpop.f32.mrf.mxu0 }
 0xb01   : > { %v6276_v42 = vadd.f32 %v6275_v11, %v6167_v28  ;;  %v7086_v9 = vmax.f32 %v6769_v56, 0.0 }
 0xb03   : > { %v6367_v63 = vmax.f32 %v6276_v42, 0.0  ;;  %v7164_v6 = vpack.c.bf16 %v7086_v9, %v7084_v3  ;;  %6208 = vmatmul.bf16.gmra.mxu2 %v12501_v41  ;;  %6746 = vmatmul.bf16.gmra.mxu0 %v12893_v31  ;;  %v6663_v42 = vadd.f32 %v12763_v1, %v12917_v19  ;;  %v6665_v41 = vadd.f32 %v12772_v30, %v12917_v19 }
 0xb04   : > { %6317 = vmatmul.bf16.gmra.mxu3 %v12729_v38 }
 0xb05   : > { %v12935_v40 = vpack.c.bf16 %v6367_v63, %v6365_v23 }
 0xb06   : > { %v6169_v48 = vpop.f32.mrf.mxu2  ;;  %v6771_v54 = vpop.f32.mrf.mxu1 }
 0xb07   : > { %v6278_v26 = vpop.f32.mrf.mxu3  ;;  %v6170_v9 = vadd.f32 %v6169_v48, %v12754_v37  ;;  %v6772_v3 = vadd.f32 %v6771_v54, %v6663_v42 }
 0xb08   : > { %v12937_v32 = vpop.f32.mrf.mxu0 }
 0xb09   : > { %6810 = vmatmul.bf16.gmra.mxu1 %v12935_v40  ;;  %v6279_v28 = vadd.f32 %v6278_v26, %v6170_v9  ;;  %v7088_v11 = vmax.f32 %v6772_v3, 0.0  ;;  %v6668_v26 = vadd.f32 %v12781_v62, %v12917_v19  ;;  %v9271_v62 = vld [vmem:[#allocation8 + $0x50] sm:$0xff] }
 0xb0a   : > { %7450 = vmatpush.bf16.msrb.mxu1 %v9271_v62 }
 0xb0b   : > { %v6369_v30 = vmax.f32 %v6279_v28, 0.0 }
 0xb0e   : > { %v6171_v38 = vpop.f32.mrf.mxu2  ;;  %v6773_v47 = vpop.f32.mrf.mxu1 }
 0xb0f   : > { %v6172_v46 = vadd.f32 %v6171_v38, %v12754_v37  ;;  %v6280_v8 = vpop.f32.mrf.mxu3  ;;  %v6774_v22 = vadd.f32 %v6773_v47, %v6665_v41 }
 0xb10   : > { %v12946_v51 = vpop.f32.mrf.mxu0 }
 0xb11   : > { %v6281_v56 = vadd.f32 %v6280_v8, %v6172_v46  ;;  %v7090_v14 = vmax.f32 %v6774_v22, 0.0 }
 0xb13   : > { %v6371_v0 = vmax.f32 %v6281_v56, 0.0  ;;  %6213 = vmatmul.bf16.gmra.mxu2 %v12521_v39  ;;  %6751 = vmatmul.bf16.gmra.mxu0 %v12911_v10  ;;  %v7166_v1 = vpack.c.bf16 %v7090_v14, %v7088_v11  ;;  %v6670_v39 = vadd.f32 %v12790_v29, %v12917_v19 }
 0xb14   : > { %6322 = vmatmul.bf16.gmra.mxu3 %v12749_v13 }
 0xb15   : > { %v12951_v54 = vpack.c.bf16 %v6371_v0, %v6369_v30 }
 0xb16   : > { %v6174_v63 = vpop.f32.mrf.mxu2  ;;  %v6776_v23 = vpop.f32.mrf.mxu1 }
 0xb17   : > { %v6283_v48 = vpop.f32.mrf.mxu3  ;;  %v6175_v41 = vadd.f32 %v6174_v63, %v12754_v37  ;;  %v6777_v9 = vadd.f32 %v6776_v23, %v6668_v26 }
 0xb18   : > { %v12953_v42 = vpop.f32.mrf.mxu0 }
 0xb19   : > { %6815 = vmatmul.bf16.gmra.mxu1 %v12951_v54  ;;  %v6284_v22 = vadd.f32 %v6283_v48, %v6175_v41  ;;  %v7092_v28 = vmax.f32 %v6777_v9, 0.0  ;;  %v6673_v48 = vadd.f32 %v12799_v7, %v12917_v19 }
 0xb1b   : > { %v6373_v0 = vmax.f32 %v6284_v22, 0.0 }
 0xb1e   : > { %v6176_v13 = vpop.f32.mrf.mxu2  ;;  %v6778_v3 = vpop.f32.mrf.mxu1 }
 0xb1f   : > { %v6177_v38 = vadd.f32 %v6176_v13, %v12754_v37  ;;  %v6285_v47 = vpop.f32.mrf.mxu3  ;;  %v6779_v46 = vadd.f32 %v6778_v3, %v6670_v39 }
 0xb20   : > { %v12962_v8 = vpop.f32.mrf.mxu0 }
 0xb21   : > { %v6286_v11 = vadd.f32 %v6285_v47, %v6177_v38  ;;  %v7094_v56 = vmax.f32 %v6779_v46, 0.0 }
 0xb23   : > { %v6375_v14 = vmax.f32 %v6286_v11, 0.0  ;;  %6874 = vmatmul.bf16.vlgmr.msrb.gmra.mxu2 %v12544_v50  ;;  %7344 = vmatmul.bf16.vlgmr.msrb.gmra.mxu0 %v7164_v6  ;;  %v7168_v29 = vpack.c.bf16 %v7094_v56, %v7092_v28  ;;  %v6675_v50 = vadd.f32 %v12808_v36, %v12917_v19 }
 0xb24   : > { %6983 = vmatmul.bf16.vlgmr.msrb.gmra.mxu3 %v12770_v21 }
 0xb25   : > { %v12966_v26 = vpack.c.bf16 %v6375_v14, %v6373_v0 }
 0xb26   : > { %v6179_v30 = vpop.f32.mrf.mxu2  ;;  %v6781_v63 = vpop.f32.mrf.mxu1 }
 0xb27   : > { %v6288_v23 = vpop.f32.mrf.mxu3  ;;  %v6180_v6 = vadd.f32 %v6179_v30, %v12754_v37  ;;  %v6782_v21 = vadd.f32 %v6781_v63, %v6673_v48  ;;  %v6678_v63 = vadd.f32 %v12817_v4, %v12917_v19 }
 0xb28   : > { %v12968_v39 = vpop.f32.mrf.mxu0 }
 0xb29   : > { %6820 = vmatmul.bf16.gmra.mxu1 %v12966_v26  ;;  %v6289_v47 = vadd.f32 %v6288_v23, %v6180_v6  ;;  %v7096_v46 = vmax.f32 %v6782_v21, 0.0 }
 0xb2b   : > { %v6377_v36 = vmax.f32 %v6289_v47, 0.0 }
 0xb2e   : > { %v6181_v41 = vpop.f32.mrf.mxu2  ;;  %v6783_v9 = vpop.f32.mrf.mxu1 }
 0xb2f   : > { %v6182_v13 = vadd.f32 %v6181_v41, %v12754_v37  ;;  %v6290_v3 = vpop.f32.mrf.mxu3  ;;  %v6784_v38 = vadd.f32 %v6783_v9, %v6675_v50 }
 0xb30   : > { %v12977_v11 = vpop.f32.mrf.mxu0 }
 0xb31   : > { %v6291_v22 = vadd.f32 %v6290_v3, %v6182_v13  ;;  %v7098_v28 = vmax.f32 %v6784_v38, 0.0 }
 0xb33   : > { %v6379_v56 = vmax.f32 %v6291_v22, 0.0  ;;  %6879 = vmatmul.bf16.gmra.mxu2 %v12566_v25  ;;  %7349 = vmatmul.bf16.gmra.mxu0 %v7166_v1  ;;  %v7170_v7 = vpack.c.bf16 %v7098_v28, %v7096_v46  ;;  %v6680_v25 = vadd.f32 %v12826_v34, %v12917_v19 }
 0xb34   : > { %6988 = vmatmul.bf16.gmra.mxu3 %v12788_v35 }
 0xb35   : > { %v12981_v30 = vpack.c.bf16 %v6379_v56, %v6377_v36 }
 0xb36   : > { %v6184_v14 = vpop.f32.mrf.mxu2  ;;  %v6786_v62 = vpop.f32.mrf.mxu1 }
 0xb37   : > { %v6293_v0 = vpop.f32.mrf.mxu3  ;;  %v6185_v1 = vadd.f32 %v6184_v14, %v12754_v37  ;;  %v6787_v48 = vadd.f32 %v6786_v62, %v6678_v63  ;;  %v6683_v14 = vadd.f32 %v12835_v20, %v12917_v19  ;;  %v9270_v62 = vld [vmem:[#allocation8 + $0x48] sm:$0xff] }
 0xb38   : > { %v12986_v23 = vpop.f32.mrf.mxu0  ;;  %7451 = vmatpush.bf16.msrb.mxu1 %v9270_v62 }
 0xb39   : > { %6825 = vmatmul.bf16.gmra.mxu1 %v12981_v30  ;;  %v6294_v9 = vadd.f32 %v6293_v0, %v6185_v1  ;;  %v7100_v13 = vmax.f32 %v6787_v48, 0.0 }
 0xb3b   : > { %v6381_v34 = vmax.f32 %v6294_v9, 0.0 }
 0xb3e   : > { %v6186_v35 = vpop.f32.mrf.mxu2  ;;  %v6788_v50 = vpop.f32.mrf.mxu1 }
 0xb3f   : > { %v6187_v6 = vadd.f32 %v6186_v35, %v12754_v37  ;;  %v6295_v21 = vpop.f32.mrf.mxu3  ;;  %v6789_v41 = vadd.f32 %v6788_v50, %v6680_v25 }
 0xb40   : > { %v12994_v46 = vpop.f32.mrf.mxu0 }
 0xb41   : > { %v6296_v3 = vadd.f32 %v6295_v21, %v6187_v6  ;;  %v7102_v38 = vmax.f32 %v6789_v41, 0.0 }
 0xb43   : > { %v6383_v47 = vmax.f32 %v6296_v3, 0.0  ;;  %6884 = vmatmul.bf16.gmra.mxu2 %v12586_v59  ;;  %7354 = vmatmul.bf16.gmra.mxu0 %v7168_v29  ;;  %v7172_v4 = vpack.c.bf16 %v7102_v38, %v7100_v13  ;;  %v6685_v59 = vadd.f32 %v12844_v55, %v12917_v19 }
 0xb44   : > { %6993 = vmatmul.bf16.gmra.mxu3 %v12806_v16 }
 0xb45   : > { %v12996_v36 = vpack.c.bf16 %v6383_v47, %v6381_v34 }
 0xb46   : > { %v6189_v22 = vpop.f32.mrf.mxu2  ;;  %v6791_v28 = vpop.f32.mrf.mxu1 }
 0xb47   : > { %v6298_v56 = vpop.f32.mrf.mxu3  ;;  %v6190_v29 = vadd.f32 %v6189_v22, %v12754_v37  ;;  %v6792_v16 = vadd.f32 %v6791_v28, %v6683_v14  ;;  %v6688_v22 = vadd.f32 %v12853_v18, %v12917_v19 }
 0xb48   : > { %v13004_v25 = vpop.f32.mrf.mxu0 }
 0xb49   : > { %6830 = vmatmul.bf16.gmra.mxu1 %v12996_v36  ;;  %v6299_v50 = vadd.f32 %v6298_v56, %v6190_v29  ;;  %v7104_v6 = vmax.f32 %v6792_v16, 0.0 }
 0xb4b   : > { %v6385_v9 = vmax.f32 %v6299_v50, 0.0 }
 0xb4e   : > { %v6191_v0 = vpop.f32.mrf.mxu2  ;;  %v6793_v63 = vpop.f32.mrf.mxu1 }
 0xb4f   : > { %v6192_v1 = vadd.f32 %v6191_v0, %v12754_v37  ;;  %v6300_v48 = vpop.f32.mrf.mxu3  ;;  %v6794_v35 = vadd.f32 %v6793_v63, %v6685_v59 }
 0xb50   : > { %v13011_v34 = vpop.f32.mrf.mxu0 }
 0xb51   : > { %v6301_v21 = vadd.f32 %v6300_v48, %v6192_v1  ;;  %v7106_v20 = vmax.f32 %v6794_v35, 0.0 }
 0xb53   : > { %v6387_v41 = vmax.f32 %v6301_v21, 0.0  ;;  %6889 = vmatmul.bf16.gmra.mxu2 %v12606_v58  ;;  %7359 = vmatmul.bf16.gmra.mxu0 %v7170_v7  ;;  %v7174_v55 = vpack.c.bf16 %v7106_v20, %v7104_v6  ;;  %v6690_v58 = vadd.f32 %v12862_v61, %v12917_v19  ;;  %v6693_v20 = vadd.f32 %v12871_v5, %v12917_v19  ;;  %v9269_v5 = vld [vmem:[#allocation8 + $0x40] sm:$0xff] }
 0xb54   : > { %6998 = vmatmul.bf16.gmra.mxu3 %v12824_v53  ;;  %7452 = vmatpush.bf16.msrb.mxu1 %v9269_v5 }
 0xb55   : > { %v13009_v47 = vpack.c.bf16 %v6387_v41, %v6385_v9  ;;  %v6695_v41 = vadd.f32 %v12880_v44, %v12917_v19 }
 0xb56   : > { %v6194_v13 = vpop.f32.mrf.mxu2  ;;  %v6796_v3 = vpop.f32.mrf.mxu1 }
 0xb57   : > { %v6303_v38 = vpop.f32.mrf.mxu3  ;;  %v6195_v7 = vadd.f32 %v6194_v13, %v12754_v37  ;;  %v6797_v28 = vadd.f32 %v6796_v3, %v6688_v22 }
 0xb58   : > { %v13020_v1 = vpop.f32.mrf.mxu0 }
 0xb59   : > { %6835 = vmatmul.bf16.gmra.mxu1 %v13009_v47  ;;  %v6304_v29 = vadd.f32 %v6303_v38, %v6195_v7  ;;  %v7108_v16 = vmax.f32 %v6797_v28, 0.0 }
 0xb5b   : > { %v6389_v61 = vmax.f32 %v6304_v29, 0.0 }
 0xb5e   : > { %v6196_v53 = vpop.f32.mrf.mxu2  ;;  %v6798_v56 = vpop.f32.mrf.mxu1 }
 0xb5f   : > { %v6197_v14 = vadd.f32 %v6196_v53, %v12754_v37  ;;  %v6305_v62 = vpop.f32.mrf.mxu3  ;;  %v6799_v59 = vadd.f32 %v6798_v56, %v6690_v58 }
 0xb60   : > { %v13031_v9 = vpop.f32.mrf.mxu0 }
 0xb61   : > { %v6306_v0 = vadd.f32 %v6305_v62, %v6197_v14  ;;  %v7110_v63 = vmax.f32 %v6799_v59, 0.0 }
 0xb63   : > { %v6391_v48 = vmax.f32 %v6306_v0, 0.0  ;;  %6894 = vmatmul.bf16.gmra.mxu2 %v12626_v2  ;;  %7364 = vmatmul.bf16.gmra.mxu0 %v7172_v4  ;;  %v7176_v18 = vpack.c.bf16 %v7110_v63, %v7108_v16  ;;  %v6698_v63 = vadd.f32 %v12889_v27, %v12917_v19 }
 0xb64   : > { %7003 = vmatmul.bf16.gmra.mxu3 %v12842_v12 }
 0xb65   : > { %v13024_v21 = vpack.c.bf16 %v6391_v48, %v6389_v61 }
 0xb66   : > { %v6199_v35 = vpop.f32.mrf.mxu2  ;;  %v6801_v50 = vpop.f32.mrf.mxu1 }
 0xb67   : > { %v6308_v6 = vpop.f32.mrf.mxu3  ;;  %v6200_v2 = vadd.f32 %v6199_v35, %v12754_v37  ;;  %v6802_v4 = vadd.f32 %v6801_v50, %v6693_v20 }
 0xb68   : > { %v13037_v29 = vpop.f32.mrf.mxu0 }
 0xb69   : > { %6840 = vmatmul.bf16.gmra.mxu1 %v13024_v21  ;;  %v6309_v58 = vadd.f32 %v6308_v6, %v6200_v2  ;;  %v7112_v7 = vmax.f32 %v6802_v4, 0.0 }
 0xb6b   : > { %v6393_v14 = vmax.f32 %v6309_v58, 0.0 }
 0xb6e   : > { %v6201_v12 = vpop.f32.mrf.mxu2  ;;  %v6803_v13 = vpop.f32.mrf.mxu1 }
 0xb6f   : > { %v6202_v3 = vadd.f32 %v6201_v12, %v12754_v37  ;;  %v6310_v38 = vpop.f32.mrf.mxu3  ;;  %v6804_v22 = vadd.f32 %v6803_v13, %v6695_v41 }
 0xb70   : > { %v13048_v20 = vpop.f32.mrf.mxu0 }
 0xb71   : > { %v6311_v28 = vadd.f32 %v6310_v38, %v6202_v3  ;;  %v7114_v53 = vmax.f32 %v6804_v22, 0.0 }
 0xb73   : > { %v6395_v56 = vmax.f32 %v6311_v28, 0.0  ;;  %6899 = vmatmul.bf16.gmra.mxu2 %v12646_v33  ;;  %7369 = vmatmul.bf16.gmra.mxu0 %v7174_v55  ;;  %v7178_v44 = vpack.c.bf16 %v7114_v53, %v7112_v7  ;;  %v6700_v33 = vadd.f32 %v12898_v45, %v12917_v19  ;;  %v6703_v7 = vadd.f32 %v12907_v24, %v12917_v19  ;;  %v14086_v24 = vld [vmem:[#allocation87_spill] sm:$0xff] }
 0xb74   : > { %7008 = vmatmul.bf16.gmra.mxu3 %v12860_v43 }
 0xb75   : > { %v13039_v0 = vpack.c.bf16 %v6395_v56, %v6393_v14 }
 0xb76   : > { %v6204_v62 = vpop.f32.mrf.mxu2  ;;  %v6806_v59 = vpop.f32.mrf.mxu1 }
 0xb77   : > { %v6313_v16 = vpop.f32.mrf.mxu3  ;;  %v6205_v55 = vadd.f32 %v6204_v62, %v12754_v37  ;;  %v6807_v43 = vadd.f32 %v6806_v59, %v6698_v63 }
 0xb78   : > { %v13057_v28 = vpop.f32.mrf.mxu0 }
 0xb79   : > { %6845 = vmatmul.bf16.gmra.mxu1 %v13039_v0  ;;  %v6314_v41 = vadd.f32 %v6313_v16, %v6205_v55  ;;  %v7116_v2 = vmax.f32 %v6807_v43, 0.0 }
 0xb7b   : > { %v6397_v45 = vmax.f32 %v6314_v41, 0.0  ;;  %v6708_v41 = vadd.f32 %v12930_v57, %v12917_v19  ;;  %v14087_v57 = vld [vmem:[#allocation22_spill] sm:$0xff] }
 0xb7e   : > { %v6206_v48 = vpop.f32.mrf.mxu2  ;;  %v6808_v61 = vpop.f32.mrf.mxu1 }
 0xb7f   : > { %v6207_v35 = vadd.f32 %v6206_v48, %v12754_v37  ;;  %v6315_v50 = vpop.f32.mrf.mxu3  ;;  %v6809_v6 = vadd.f32 %v6808_v61, %v6700_v33 }
 0xb81   : > { %v6316_v4 = vadd.f32 %v6315_v50, %v6207_v35  ;;  %v7118_v12 = vmax.f32 %v6809_v6, 0.0 }
 0xb83   : > { %v6399_v13 = vmax.f32 %v6316_v4, 0.0  ;;  %6904 = vmatmul.bf16.gmra.mxu2 %v12666_v15  ;;  %7374 = vmatmul.bf16.gmra.mxu0 %v7176_v18  ;;  %v7180_v27 = vpack.c.bf16 %v7118_v12, %v7116_v2  ;;  %v6705_v15 = vadd.f32 %v12921_v52, %v12917_v19  ;;  %v13065_v52 = vpop.f32.mrf.mxu0  ;;  %v6710_v2 = vadd.f32 %v12937_v32, %v12917_v19 }
 0xb84   : > { %7013 = vmatmul.bf16.gmra.mxu3 %v12878_v49 }
 0xb85   : > { %v13052_v58 = vpack.c.bf16 %v6399_v13, %v6397_v45 }
 0xb86   : > { %v6209_v3 = vpop.f32.mrf.mxu2  ;;  %v6811_v38 = vpop.f32.mrf.mxu1 }
 0xb87   : > { %v6318_v22 = vpop.f32.mrf.mxu3  ;;  %v6210_v18 = vadd.f32 %v6209_v3, %v12754_v37  ;;  %v6812_v53 = vadd.f32 %v6811_v38, %v6703_v7 }
 0xb89   : > { %6850 = vmatmul.bf16.gmra.mxu1 %v13052_v58  ;;  %v6319_v59 = vadd.f32 %v6318_v22, %v6210_v18  ;;  %v7120_v16 = vmax.f32 %v6812_v53, 0.0 }
 0xb8b   : > { %v6401_v48 = vmax.f32 %v6319_v59, 0.0  ;;  %v13075_v13 = vpop.f32.mrf.mxu0  ;;  %v14088_v59 = vld [vmem:[#allocation30_spill] sm:$0xff] }
 0xb8e   : > { %v6211_v49 = vpop.f32.mrf.mxu2  ;;  %v6813_v56 = vpop.f32.mrf.mxu1 }
 0xb8f   : > { %v6212_v5 = vadd.f32 %v6211_v49, %v12754_v37  ;;  %v6320_v14 = vpop.f32.mrf.mxu3  ;;  %v6814_v62 = vadd.f32 %v6813_v56, %v6705_v15 }
 0xb91   : > { %v6321_v63 = vadd.f32 %v6320_v14, %v6212_v5  ;;  %v7122_v33 = vmax.f32 %v6814_v62, 0.0 }
 0xb93   : > { %v6403_v55 = vmax.f32 %v6321_v63, 0.0  ;;  %6909 = vmatmul.bf16.gmra.mxu2 %v14086_v24  ;;  %7379 = vmatmul.bf16.gmra.mxu0 %v7178_v44  ;;  %v7182_v43 = vpack.c.bf16 %v7122_v33, %v7120_v16  ;;  %v13085_v16 = vperm.slane %v14088_v59, 1  ;;  %v6713_v63 = vadd.f32 %v12946_v51, %v12917_v19  ;;  %v14089_v51 = vld [vmem:[#allocation44_spill] sm:$0xff] }
 0xb94   : > { %7018 = vmatmul.bf16.gmra.mxu3 %v12896_v17 }
 0xb95   : > { %v13067_v6 = vpack.c.bf16 %v6403_v55, %v6401_v48 }
 0xb96   : > { %v6214_v61 = vpop.f32.mrf.mxu2  ;;  %v6816_v35 = vpop.f32.mrf.mxu1 }
 0xb97   : > { %v6323_v50 = vpop.f32.mrf.mxu3  ;;  %v6215_v44 = vadd.f32 %v6214_v61, %v12754_v37  ;;  %v6817_v4 = vadd.f32 %v6816_v35, %v6708_v41 }
 0xb99   : > { %6855 = vmatmul.bf16.gmra.mxu1 %v13067_v6  ;;  %v6324_v22 = vadd.f32 %v6323_v50, %v6215_v44  ;;  %v7124_v7 = vmax.f32 %v6817_v4, 0.0 }
 0xb9b   : > { %v6405_v49 = vmax.f32 %v6324_v22, 0.0 }
 0xb9e   : > { %v6216_v17 = vpop.f32.mrf.mxu2  ;;  %v6818_v12 = vpop.f32.mrf.mxu1 }
 0xb9f   : > { %v6217_v45 = vadd.f32 %v6216_v17, %v12754_v37  ;;  %v6325_v3 = vpop.f32.mrf.mxu3  ;;  %v6819_v38 = vadd.f32 %v6818_v12, %v6710_v2  ;;  %v13082_v37 = vpop.f32.mrf.mxu0 }
 0xba1   : > { %v6326_v15 = vadd.f32 %v6325_v3, %v6217_v45  ;;  %v7126_v18 = vmax.f32 %v6819_v38, 0.0 }
 0xba3   : > { %v6407_v53 = vmax.f32 %v6326_v15, 0.0  ;;  %6914 = vmatmul.bf16.gmra.mxu2 %v14087_v57  ;;  %7384 = vmatmul.bf16.gmra.mxu0 %v7180_v27  ;;  %v7184_v32 = vpack.c.bf16 %v7126_v18, %v7124_v7  ;;  %v6715_v27 = vadd.f32 %v12953_v42, %v12917_v19  ;;  %v6718_v7 = vadd.f32 %v12962_v8, %v12917_v19  ;;  %v14090_v8 = vld [vmem:[#allocation89_spill] sm:$0xff] }
 0xba4   : > { %7023 = vmatmul.bf16.gmra.mxu3 %v12919_v60  ;;  %v6720_v15 = vadd.f32 %v12968_v39, %v12917_v19 }
 0xba5   : > { %v13080_v62 = vpack.c.bf16 %v6407_v53, %v6405_v49 }
 0xba6   : > { %v6821_v56 = vpop.f32.mrf.mxu1  ;;  %v6875_v5 = vpop.f32.mrf.mxu2 }
 0xba7   : > { %v6984_v14 = vpop.f32.mrf.mxu3  ;;  %v6822_v60 = vadd.f32 %v6821_v56, %v6713_v63  ;;  %v6876_v33 = vadd.f32 %v6875_v5, %v13085_v16  ;;  %v13094_v4 = vpop.f32.mrf.mxu0 }
 0xba9   : > { %6860 = vmatmul.bf16.gmra.mxu1 %v13080_v62  ;;  %v7128_v50 = vmax.f32 %v6822_v60, 0.0  ;;  %v6985_v41 = vadd.f32 %v6984_v14, %v6876_v33 }
 0xbab   : > { %v7085_v12 = vmax.f32 %v6985_v41, 0.0  ;;  %v6725_v41 = vadd.f32 %v12986_v23, %v12917_v19 }
 0xbae   : > { %v6823_v55 = vpop.f32.mrf.mxu1  ;;  %v6877_v24 = vpop.f32.mrf.mxu2 }
 0xbaf   : > { %v6824_v48 = vadd.f32 %v6823_v55, %v6715_v27  ;;  %v6878_v61 = vadd.f32 %v6877_v24, %v13085_v16  ;;  %v6986_v35 = vpop.f32.mrf.mxu3  ;;  %v13102_v18 = vpop.f32.mrf.mxu0 }
 0xbb1   : > { %v7130_v2 = vmax.f32 %v6824_v48, 0.0  ;;  %v6987_v44 = vadd.f32 %v6986_v35, %v6878_v61 }
 0xbb3   : > { %v7087_v17 = vmax.f32 %v6987_v44, 0.0  ;;  %6919 = vmatmul.bf16.gmra.mxu2 %v14089_v51  ;;  %7389 = vmatmul.bf16.gmra.mxu0 %v7182_v43  ;;  %v7186_v42 = vpack.c.bf16 %v7130_v2, %v7128_v50  ;;  %v6723_v50 = vadd.f32 %v12977_v11, %v12917_v19  ;;  %v14091_v11 = vld [vmem:[#allocation90_spill] sm:$0xff] }
 0xbb4   : > { %7028 = vmatmul.bf16.gmra.mxu3 %v12935_v40 }
 0xbb5   : > { %v7165_v38 = vpack.c.bf16 %v7087_v17, %v7085_v12 }
 0xbb6   : > { %v6826_v45 = vpop.f32.mrf.mxu1  ;;  %v6880_v3 = vpop.f32.mrf.mxu2 }
 0xbb7   : > { %v6989_v22 = vpop.f32.mrf.mxu3  ;;  %v6827_v53 = vadd.f32 %v6826_v45, %v6718_v7  ;;  %v6881_v43 = vadd.f32 %v6880_v3, %v13085_v16  ;;  %v13108_v48 = vpop.f32.mrf.mxu0 }
 0xbb9   : > { %7453 = vmatmul.bf16.vlgmr.msrb.gmra.mxu1 %v7165_v38  ;;  %v7132_v14 = vmax.f32 %v6827_v53, 0.0  ;;  %v6990_v59 = vadd.f32 %v6989_v22, %v6881_v43 }
 0xbbb   : > { %v7089_v33 = vmax.f32 %v6990_v59, 0.0 }
 0xbbe   : > { %v6828_v57 = vpop.f32.mrf.mxu1  ;;  %v6882_v49 = vpop.f32.mrf.mxu2 }
 0xbbf   : > { %v6829_v40 = vadd.f32 %v6828_v57, %v6720_v15  ;;  %v6883_v56 = vadd.f32 %v6882_v49, %v13085_v16  ;;  %v6991_v5 = vpop.f32.mrf.mxu3  ;;  %v13116_v45 = vpop.f32.mrf.mxu0 }
 0xbc1   : > { %v7134_v63 = vmax.f32 %v6829_v40, 0.0  ;;  %v6992_v27 = vadd.f32 %v6991_v5, %v6883_v56  ;;  %v6728_v56 = vadd.f32 %v12994_v46, %v12917_v19  ;;  %v14092_v46 = vld [vmem:[#allocation26_spill] sm:$0xff] }
 0xbc3   : > { %v7091_v60 = vmax.f32 %v6992_v27, 0.0  ;;  %6924 = vmatmul.bf16.gmra.mxu2 %v14090_v8  ;;  %7394 = vmatmul.bf16.gmra.mxu0 %v7184_v32  ;;  %v7188_v39 = vpack.c.bf16 %v7134_v63, %v7132_v14  ;;  %v6730_v14 = vadd.f32 %v13004_v25, %v12917_v19 }
 0xbc4   : > { %7033 = vmatmul.bf16.gmra.mxu3 %v12951_v54 }
 0xbc5   : > { %v7167_v35 = vpack.c.bf16 %v7091_v60, %v7089_v33 }
 0xbc6   : > { %v6831_v55 = vpop.f32.mrf.mxu1  ;;  %v6885_v24 = vpop.f32.mrf.mxu2 }
 0xbc7   : > { %v6994_v61 = vpop.f32.mrf.mxu3  ;;  %v6832_v2 = vadd.f32 %v6831_v55, %v6723_v50  ;;  %v6886_v32 = vadd.f32 %v6885_v24, %v13085_v16  ;;  %v13122_v5 = vpop.f32.mrf.mxu0 }
 0xbc9   : > { %7458 = vmatmul.bf16.gmra.mxu1 %v7167_v35  ;;  %v7136_v3 = vmax.f32 %v6832_v2, 0.0  ;;  %v6995_v38 = vadd.f32 %v6994_v61, %v6886_v32 }
 0xbcb   : > { %v7093_v53 = vmax.f32 %v6995_v38, 0.0 }
 0xbce   : > { %v6833_v44 = vpop.f32.mrf.mxu1  ;;  %v6887_v17 = vpop.f32.mrf.mxu2 }
 0xbcf   : > { %v6834_v54 = vadd.f32 %v6833_v44, %v6725_v41  ;;  %v6888_v51 = vadd.f32 %v6887_v17, %v13085_v16  ;;  %v6996_v12 = vpop.f32.mrf.mxu3  ;;  %v13130_v25 = vpop.f32.mrf.mxu0 }
 0xbd1   : > { %v7138_v22 = vmax.f32 %v6834_v54, 0.0  ;;  %v6997_v7 = vadd.f32 %v6996_v12, %v6888_v51  ;;  %v6733_v54 = vadd.f32 %v13011_v34, %v12917_v19  ;;  %v6735_v51 = vadd.f32 %v13020_v1, %v12917_v19  ;;  %v14093_v34 = vld [vmem:[#allocation48_spill] sm:$0xff] }
 0xbd3   : > { %v7095_v15 = vmax.f32 %v6997_v7, 0.0  ;;  %6929 = vmatmul.bf16.gmra.mxu2 %v14091_v11  ;;  %7399 = vmatmul.bf16.gmra.mxu0 %v7186_v42  ;;  %v7190_v23 = vpack.c.bf16 %v7138_v22, %v7136_v3 }
 0xbd4   : > { %7038 = vmatmul.bf16.gmra.mxu3 %v12966_v26 }
 0xbd5   : > { %v7169_v40 = vpack.c.bf16 %v7095_v15, %v7093_v53 }
 0xbd6   : > { %v6836_v43 = vpop.f32.mrf.mxu1  ;;  %v6890_v57 = vpop.f32.mrf.mxu2 }
 0xbd7   : > { %v6999_v49 = vpop.f32.mrf.mxu3  ;;  %v6837_v59 = vadd.f32 %v6836_v43, %v6728_v56  ;;  %v6891_v42 = vadd.f32 %v6890_v57, %v13085_v16 }
 0xbd9   : > { %7463 = vmatmul.bf16.gmra.mxu1 %v7169_v40  ;;  %v7140_v33 = vmax.f32 %v6837_v59, 0.0  ;;  %v7000_v55 = vadd.f32 %v6999_v49, %v6891_v42 }
 0xbdb   : > { %v7097_v41 = vmax.f32 %v7000_v55, 0.0 }
 0xbde   : > { %v6838_v63 = vpop.f32.mrf.mxu1  ;;  %v6892_v27 = vpop.f32.mrf.mxu2 }
 0xbdf   : > { %v6839_v26 = vadd.f32 %v6838_v63, %v6730_v14  ;;  %v6893_v60 = vadd.f32 %v6892_v27, %v13085_v16  ;;  %v7001_v8 = vpop.f32.mrf.mxu3  ;;  %v6738_v27 = vadd.f32 %v13031_v9, %v12917_v19  ;;  %v14094_v9 = vld [vmem:[#allocation91_spill] sm:$0xff] }
 0xbe1   : > { %v7142_v24 = vmax.f32 %v6839_v26, 0.0  ;;  %v7002_v61 = vadd.f32 %v7001_v8, %v6893_v60  ;;  %v6740_v26 = vadd.f32 %v13037_v29, %v12917_v19 }
 0xbe3   : > { %v7099_v35 = vmax.f32 %v7002_v61, 0.0  ;;  %6934 = vmatmul.bf16.gmra.mxu2 %v14092_v46  ;;  %7404 = vmatmul.bf16.gmra.mxu0 %v7188_v39  ;;  %v7192_v50 = vpack.c.bf16 %v7142_v24, %v7140_v33 }
 0xbe4   : > { %7043 = vmatmul.bf16.gmra.mxu3 %v12981_v30  ;;  %v13137_v30 = vpop.f32.mrf.mxu0 }
 0xbe5   : > { %v7171_v17 = vpack.c.bf16 %v7099_v35, %v7097_v41 }
 0xbe6   : > { %v6841_v2 = vpop.f32.mrf.mxu1  ;;  %v6895_v32 = vpop.f32.mrf.mxu2 }
 0xbe7   : > { %v7004_v44 = vpop.f32.mrf.mxu3  ;;  %v6842_v12 = vadd.f32 %v6841_v2, %v6733_v54  ;;  %v6896_v39 = vadd.f32 %v6895_v32, %v13085_v16 }
 0xbe9   : > { %7468 = vmatmul.bf16.gmra.mxu1 %v7171_v17  ;;  %v7144_v11 = vmax.f32 %v6842_v12, 0.0  ;;  %v7005_v53 = vadd.f32 %v7004_v44, %v6896_v39  ;;  %v6743_v39 = vadd.f32 %v13048_v20, %v12917_v19  ;;  %v14095_v20 = vld [vmem:[#allocation45_spill] sm:$0xff] }
 0xbeb   : > { %v7101_v40 = vmax.f32 %v7005_v53, 0.0 }
 0xbec   : > { %v13142_v63 = vpop.f32.mrf.mxu0 }
 0xbee   : > { %v6843_v3 = vpop.f32.mrf.mxu1  ;;  %v6897_v38 = vpop.f32.mrf.mxu2 }
 0xbef   : > { %v6844_v22 = vadd.f32 %v6843_v3, %v6735_v51  ;;  %v6898_v7 = vadd.f32 %v6897_v38, %v13085_v16  ;;  %v7006_v15 = vpop.f32.mrf.mxu3  ;;  %v6745_v3 = vadd.f32 %v13057_v28, %v12917_v19 }
 0xbf1   : > { %v7146_v43 = vmax.f32 %v6844_v22, 0.0  ;;  %v7007_v57 = vadd.f32 %v7006_v15, %v6898_v7 }
 0xbf3   : > { %v7103_v49 = vmax.f32 %v7007_v57, 0.0  ;;  %6939 = vmatmul.bf16.gmra.mxu2 %v14093_v34  ;;  %7409 = vmatmul.bf16.gmra.mxu0 %v7190_v23  ;;  %v7194_v1 = vpack.c.bf16 %v7146_v43, %v7144_v11 }
 0xbf4   : > { %7048 = vmatmul.bf16.gmra.mxu3 %v12996_v36  ;;  %v13150_v2 = vpop.f32.mrf.mxu0 }
 0xbf5   : > { %v7173_v42 = vpack.c.bf16 %v7103_v49, %v7101_v40 }
 0xbf6   : > { %v6846_v56 = vpop.f32.mrf.mxu1  ;;  %v6900_v14 = vpop.f32.mrf.mxu2 }
 0xbf7   : > { %v7009_v59 = vpop.f32.mrf.mxu3  ;;  %v6847_v60 = vadd.f32 %v6846_v56, %v6738_v27  ;;  %v6901_v23 = vadd.f32 %v6900_v14, %v13085_v16 }
 0xbf9   : > { %7473 = vmatmul.bf16.gmra.mxu1 %v7173_v42  ;;  %v7148_v61 = vmax.f32 %v6847_v60, 0.0  ;;  %v7010_v35 = vadd.f32 %v7009_v59, %v6901_v23  ;;  %v6748_v60 = vadd.f32 %v13065_v52, %v12917_v19  ;;  %v6750_v23 = vadd.f32 %v13075_v13, %v12917_v19  ;;  %v14096_v52 = vld [vmem:[#allocation93_spill] sm:$0xff] }
 0xbfb   : > { %v7105_v44 = vmax.f32 %v7010_v35, 0.0 }
 0xbfc   : > { %v13158_v38 = vpop.f32.mrf.mxu0 }
 0xbfe   : > { %v6848_v8 = vpop.f32.mrf.mxu1  ;;  %v6902_v33 = vpop.f32.mrf.mxu2 }
 0xbff   : > { %v6849_v36 = vadd.f32 %v6848_v8, %v6740_v26  ;;  %v6903_v55 = vadd.f32 %v6902_v33, %v13085_v16  ;;  %v7011_v24 = vpop.f32.mrf.mxu3 }
 0xc01   : > { %v7150_v46 = vmax.f32 %v6849_v36, 0.0  ;;  %v7012_v41 = vadd.f32 %v7011_v24, %v6903_v55 }
 0xc03   : > { %v7107_v32 = vmax.f32 %v7012_v41, 0.0  ;;  %6944 = vmatmul.bf16.gmra.mxu2 %v14094_v9  ;;  %7414 = vmatmul.bf16.gmra.mxu0 %v7192_v50  ;;  %v7196_v29 = vpack.c.bf16 %v7150_v46, %v7148_v61 }
 0xc04   : > { %7053 = vmatmul.bf16.gmra.mxu3 %v13009_v47  ;;  %v13164_v42 = vpop.f32.mrf.mxu0 }
 0xc05   : > { %v7175_v12 = vpack.c.bf16 %v7107_v32, %v7105_v44 }
 0xc06   : > { %v6851_v17 = vpop.f32.mrf.mxu1  ;;  %v6905_v54 = vpop.f32.mrf.mxu2 }
 0xc07   : > { %v7014_v51 = vpop.f32.mrf.mxu3  ;;  %v6852_v22 = vadd.f32 %v6851_v17, %v6743_v39  ;;  %v6906_v50 = vadd.f32 %v6905_v54, %v13085_v16  ;;  %v6753_v39 = vadd.f32 %v13082_v37, %v12917_v19 }
 0xc09   : > { %7478 = vmatmul.bf16.gmra.mxu1 %v7175_v12  ;;  %v7152_v43 = vmax.f32 %v6852_v22, 0.0  ;;  %v7015_v57 = vadd.f32 %v7014_v51, %v6906_v50  ;;  %v6755_v22 = vadd.f32 %v13094_v4, %v12917_v19 }
 0xc0b   : > { %v7109_v56 = vmax.f32 %v7015_v57, 0.0 }
 0xc0c   : > { %v13172_v61 = vpop.f32.mrf.mxu0 }
 0xc0e   : > { %v6853_v7 = vpop.f32.mrf.mxu1  ;;  %v6907_v15 = vpop.f32.mrf.mxu2 }
 0xc0f   : > { %v6854_v47 = vadd.f32 %v6853_v7, %v6745_v3  ;;  %v6908_v11 = vadd.f32 %v6907_v15, %v13085_v16  ;;  %v7016_v53 = vpop.f32.mrf.mxu3 }
 0xc11   : > { %v7154_v49 = vmax.f32 %v6854_v47, 0.0  ;;  %v7017_v34 = vadd.f32 %v7016_v53, %v6908_v11  ;;  %v13184_v53 = vld [vmem:[#allocation10] ss:$0 sm:$0xff] }
 0xc12   : > { %v7346_v4 = vadd.f32 %v13184_v53, %v13102_v18 }
 0xc13   : > { %v7111_v40 = vmax.f32 %v7017_v34, 0.0  ;;  %6949 = vmatmul.bf16.gmra.mxu2 %v14095_v20  ;;  %7419 = vmatmul.bf16.gmra.mxu0 %v7194_v1  ;;  %v7198_v28 = vpack.c.bf16 %v7154_v49, %v7152_v43 }
 0xc14   : > { %7058 = vmatmul.bf16.gmra.mxu3 %v13024_v21  ;;  %v13178_v3 = vpop.f32.mrf.mxu0 }
 0xc15   : > { %v7177_v26 = vpack.c.bf16 %v7111_v40, %v7109_v56  ;;  %v14097_v40 = vld [vmem:[#allocation37_spill] sm:$0xff] }
 0xc16   : > { %v6856_v14 = vpop.f32.mrf.mxu1  ;;  %v6910_v59 = vpop.f32.mrf.mxu2 }
 0xc17   : > { %v7019_v27 = vpop.f32.mrf.mxu3  ;;  %v6857_v8 = vadd.f32 %v6856_v14, %v6748_v60  ;;  %v6911_v1 = vadd.f32 %v6910_v59, %v13085_v16 }
 0xc19   : > { %7483 = vmatmul.bf16.gmra.mxu1 %v7177_v26  ;;  %v7156_v35 = vmax.f32 %v6857_v8, 0.0  ;;  %v7020_v46 = vadd.f32 %v7019_v27, %v6911_v1 }
 0xc1b   : > { %v7113_v44 = vmax.f32 %v7020_v46, 0.0 }
 0xc1c   : > { %v13191_v20 = vpop.f32.mrf.mxu0 }
 0xc1e   : > { %v6858_v33 = vpop.f32.mrf.mxu1  ;;  %v6912_v36 = vpop.f32.mrf.mxu2 }
 0xc1f   : > { %v6859_v21 = vadd.f32 %v6858_v33, %v6750_v23  ;;  %v6913_v55 = vadd.f32 %v6912_v36, %v13085_v16  ;;  %v7021_v24 = vpop.f32.mrf.mxu3 }
 0xc21   : > { %v7158_v41 = vmax.f32 %v6859_v21, 0.0  ;;  %v7022_v32 = vadd.f32 %v7021_v24, %v6913_v55 }
 0xc23   : > { %v7115_v9 = vmax.f32 %v7022_v32, 0.0  ;;  %6954 = vmatmul.bf16.gmra.mxu2 %v14096_v52  ;;  %7424 = vmatmul.bf16.gmra.mxu0 %v7196_v29  ;;  %v7200_v13 = vpack.c.bf16 %v7158_v41, %v7156_v35 }
 0xc24   : > { %7063 = vmatmul.bf16.gmra.mxu3 %v13039_v0  ;;  %v13199_v8 = vpop.f32.mrf.mxu0 }
 0xc25   : > { %v7179_v12 = vpack.c.bf16 %v7115_v9, %v7113_v44 }
 0xc26   : > { %v6861_v17 = vpop.f32.mrf.mxu1  ;;  %v6915_v54 = vpop.f32.mrf.mxu2 }
 0xc27   : > { %v7024_v51 = vpop.f32.mrf.mxu3  ;;  %v6862_v50 = vadd.f32 %v6861_v17, %v6753_v39  ;;  %v6916_v29 = vadd.f32 %v6915_v54, %v13085_v16 }
 0xc29   : > { %7488 = vmatmul.bf16.gmra.mxu1 %v7179_v12  ;;  %v7160_v43 = vmax.f32 %v6862_v50, 0.0  ;;  %v7025_v57 = vadd.f32 %v7024_v51, %v6916_v29 }
 0xc2b   : > { %v7117_v56 = vmax.f32 %v7025_v57, 0.0 }
 0xc2c   : > { %v13207_v44 = vpop.f32.mrf.mxu0 }
 0xc2e   : > { %v6863_v7 = vpop.f32.mrf.mxu1  ;;  %v6917_v0 = vpop.f32.mrf.mxu2 }
 0xc2f   : > { %v6864_v15 = vadd.f32 %v6863_v7, %v6755_v22  ;;  %v6918_v47 = vadd.f32 %v6917_v0, %v13085_v16  ;;  %v7026_v11 = vpop.f32.mrf.mxu3 }
 0xc31   : > { %v7162_v49 = vmax.f32 %v6864_v15, 0.0  ;;  %v7027_v37 = vadd.f32 %v7026_v11, %v6918_v47 }
 0xc33   : > { %v7119_v34 = vmax.f32 %v7027_v37, 0.0  ;;  %6959 = vmatmul.bf16.gmra.mxu2 %v14097_v40  ;;  %7429 = vmatmul.bf16.gmra.mxu0 %v7198_v28  ;;  %v7202_v19 = vpack.c.bf16 %v7162_v49, %v7160_v43  ;;  %v7358_v43 = vadd.f32 %v13184_v53, %v13137_v30 }
 0xc34   : > { %7068 = vmatmul.bf16.gmra.mxu3 %v13052_v58  ;;  %v7348_v58 = vadd.f32 %v13184_v53, %v13108_v48  ;;  %v7351_v48 = vadd.f32 %v13184_v53, %v13116_v45  ;;  %v13215_v22 = vpop.f32.mrf.mxu0 }
 0xc35   : > { %v7181_v27 = vpack.c.bf16 %v7119_v34, %v7117_v56 }
 0xc36   : > { %v6920_v14 = vpop.f32.mrf.mxu2  ;;  %v7454_v59 = vpop.f32.mrf.mxu1 }
 0xc37   : > { %v7029_v26 = vpop.f32.mrf.mxu3  ;;  %v7455_v60 = vadd.f32 %v7454_v59, %v7346_v4  ;;  %v6921_v28 = vadd.f32 %v6920_v14, %v13085_v16  ;;  %v7361_v4 = vadd.f32 %v13184_v53, %v13142_v63 }
 0xc39   : > { %7554 = vst [vmem:[%s13193_s7] sm:$0xff] %v7455_v60  ;;  %7493 = vmatmul.bf16.gmra.mxu1 %v7181_v27  ;;  %v7030_v21 = vadd.f32 %v7029_v26, %v6921_v28  ;;  %v7363_v60 = vadd.f32 %v13184_v53, %v13150_v2 }
 0xc3b   : > { %v7121_v35 = vmax.f32 %v7030_v21, 0.0 }
 0xc3e   : > { %v6922_v18 = vpop.f32.mrf.mxu2  ;;  %v7456_v23 = vpop.f32.mrf.mxu1 }
 0xc3f   : > { %v6923_v1 = vadd.f32 %v6922_v18, %v13085_v16  ;;  %v7031_v33 = vpop.f32.mrf.mxu3  ;;  %v7457_v36 = vadd.f32 %v7456_v23, %v7348_v58 }
 0xc41   : > { %v7032_v55 = vadd.f32 %v7031_v33, %v6923_v1  ;;  %7555 = vst [vmem:[%s13193_s7 + $0x8] sm:$0xff] %v7457_v36 }
 0xc43   : > { %v7123_v24 = vmax.f32 %v7032_v55, 0.0  ;;  %6964 = vmatmul.bf16.gmra.mxu2 %v12893_v31  ;;  %7434 = vmatmul.bf16.gmra.mxu0 %v7200_v13  ;;  %v7353_v31 = vadd.f32 %v13184_v53, %v13122_v5  ;;  %v7356_v5 = vadd.f32 %v13184_v53, %v13130_v25  ;;  %v7366_v55 = vadd.f32 %v13184_v53, %v13158_v38 }
 0xc44   : > { %7073 = vmatmul.bf16.gmra.mxu3 %v13067_v6 }
 0xc45   : > { %v7183_v32 = vpack.c.bf16 %v7123_v24, %v7121_v35 }
 0xc46   : > { %v6925_v46 = vpop.f32.mrf.mxu2  ;;  %v7459_v41 = vpop.f32.mrf.mxu1 }
 0xc47   : > { %v7034_v9 = vpop.f32.mrf.mxu3  ;;  %v7460_v52 = vadd.f32 %v7459_v41, %v7351_v48  ;;  %v6926_v13 = vadd.f32 %v6925_v46, %v13085_v16 }
 0xc49   : > { %7556 = vst [vmem:[%s13193_s7 + $0x10] sm:$0xff] %v7460_v52  ;;  %7498 = vmatmul.bf16.gmra.mxu1 %v7183_v32  ;;  %v7035_v12 = vadd.f32 %v7034_v9, %v6926_v13  ;;  %v7368_v32 = vadd.f32 %v13184_v53, %v13164_v42 }
 0xc4b   : > { %v7125_v29 = vmax.f32 %v7035_v12, 0.0  ;;  %v7371_v12 = vadd.f32 %v13184_v53, %v13172_v61 }
 0xc4e   : > { %v6927_v6 = vpop.f32.mrf.mxu2  ;;  %v7461_v17 = vpop.f32.mrf.mxu1 }
 0xc4f   : > { %v6928_v45 = vadd.f32 %v6927_v6, %v13085_v16  ;;  %v7036_v54 = vpop.f32.mrf.mxu3  ;;  %v7462_v51 = vadd.f32 %v7461_v17, %v7353_v31 }
 0xc51   : > { %v7037_v39 = vadd.f32 %v7036_v54, %v6928_v45  ;;  %7557 = vst [vmem:[%s13193_s7 + $0x18] sm:$0xff] %v7462_v51  ;;  %v13243_v54 = vpop.f32.mrf.mxu0 }
 0xc53   : > { %v7127_v50 = vmax.f32 %v7037_v39, 0.0  ;;  %6969 = vmatmul.bf16.gmra.mxu2 %v12911_v10  ;;  %7439 = vmatmul.bf16.gmra.mxu0 %v7202_v19 }
 0xc54   : > { %7078 = vmatmul.bf16.gmra.mxu3 %v13080_v62 }
 0xc55   : > { %v7185_v15 = vpack.c.bf16 %v7127_v50, %v7125_v29 }
 0xc56   : > { %v6930_v7 = vpop.f32.mrf.mxu2  ;;  %v7464_v0 = vpop.f32.mrf.mxu1 }
 0xc57   : > { %v7039_v47 = vpop.f32.mrf.mxu3  ;;  %v7465_v11 = vadd.f32 %v7464_v0, %v7356_v5  ;;  %v6931_v10 = vadd.f32 %v6930_v7, %v13085_v16  ;;  %v7373_v0 = vadd.f32 %v13184_v53, %v13178_v3 }
 0xc59   : > { %7558 = vst [vmem:[%s13193_s7 + $0x20] sm:$0xff] %v7465_v11  ;;  %7503 = vmatmul.bf16.gmra.mxu1 %v7185_v15  ;;  %v7040_v34 = vadd.f32 %v7039_v47, %v6931_v10  ;;  %v13250_v15 = vpop.f32.mrf.mxu0 }
 0xc5b   : > { %v7129_v56 = vmax.f32 %v7040_v34, 0.0 }
 0xc5e   : > { %v6932_v57 = vpop.f32.mrf.mxu2  ;;  %v7466_v62 = vpop.f32.mrf.mxu1 }
 0xc5f   : > { %v6933_v49 = vadd.f32 %v6932_v57, %v13085_v16  ;;  %v7041_v25 = vpop.f32.mrf.mxu3  ;;  %v7467_v37 = vadd.f32 %v7466_v62, %v7358_v43 }
 0xc61   : > { %v7042_v40 = vadd.f32 %v7041_v25, %v6933_v49  ;;  %7559 = vst [vmem:[%s13193_s7 + $0x28] sm:$0xff] %v7467_v37  ;;  %v7376_v37 = vadd.f32 %v13184_v53, %v13191_v20 }
 0xc63   : > { %v7131_v19 = vmax.f32 %v7042_v40, 0.0 }
 0xc65   : > { %v7187_v59 = vpack.c.bf16 %v7131_v19, %v7129_v56  ;;  %v7390_v19 = vpop.f32.mrf.mxu0 }
 0xc66   : > { %v6935_v14 = vpop.f32.mrf.mxu2  ;;  %v7469_v30 = vpop.f32.mrf.mxu1 }
 0xc67   : > { %v7044_v27 = vpop.f32.mrf.mxu3  ;;  %v7470_v26 = vadd.f32 %v7469_v30, %v7361_v4  ;;  %v6936_v58 = vadd.f32 %v6935_v14, %v13085_v16  ;;  %v7378_v30 = vadd.f32 %v13184_v53, %v13199_v8 }
 0xc69   : > { %7560 = vst [vmem:[%s13193_s7 + $0x30] sm:$0xff] %v7470_v26  ;;  %7508 = vmatmul.bf16.gmra.mxu1 %v7187_v59  ;;  %v7045_v33 = vadd.f32 %v7044_v27, %v6936_v58 }
 0xc6b   : > { %v7133_v24 = vmax.f32 %v7045_v33, 0.0 }
 0xc6e   : > { %v6937_v28 = vpop.f32.mrf.mxu2  ;;  %v7471_v18 = vpop.f32.mrf.mxu1 }
 0xc6f   : > { %v6938_v23 = vadd.f32 %v6937_v28, %v13085_v16  ;;  %v7046_v63 = vpop.f32.mrf.mxu3  ;;  %v7472_v1 = vadd.f32 %v7471_v18, %v7363_v60  ;;  %v7392_v28 = vpop.f32.mrf.mxu0 }
 0xc71   : > { %v7047_v36 = vadd.f32 %v7046_v63, %v6938_v23  ;;  %7561 = vst [vmem:[%s13193_s7 + $0x38] sm:$0xff] %v7472_v1  ;;  %v7381_v1 = vadd.f32 %v13184_v53, %v13207_v44 }
 0xc73   : > { %v7135_v21 = vmax.f32 %v7047_v36, 0.0 }
 0xc75   : > { %v7189_v35 = vpack.c.bf16 %v7135_v21, %v7133_v24 }
 0xc76   : > { %v6940_v48 = vpop.f32.mrf.mxu2  ;;  %v7474_v2 = vpop.f32.mrf.mxu1 }
 0xc77   : > { %v7049_v46 = vpop.f32.mrf.mxu3  ;;  %v7475_v41 = vadd.f32 %v7474_v2, %v7366_v55  ;;  %v6941_v9 = vadd.f32 %v6940_v48, %v13085_v16  ;;  %v7395_v48 = vpop.f32.mrf.mxu0  ;;  %v7383_v2 = vadd.f32 %v13184_v53, %v13215_v22 }
 0xc79   : > { %7562 = vst [vmem:[%s13193_s7 + $0x40] sm:$0xff] %v7475_v41  ;;  %7513 = vmatmul.bf16.gmra.mxu1 %v7189_v35  ;;  %v7050_v17 = vadd.f32 %v7049_v46, %v6941_v9 }
 0xc7b   : > { %v7137_v39 = vmax.f32 %v7050_v17, 0.0 }
 0xc7e   : > { %v6942_v52 = vpop.f32.mrf.mxu2  ;;  %v7476_v31 = vpop.f32.mrf.mxu1 }
 0xc7f   : > { %v6943_v13 = vadd.f32 %v6942_v52, %v13085_v16  ;;  %v7051_v38 = vpop.f32.mrf.mxu3  ;;  %v7477_v6 = vadd.f32 %v7476_v31, %v7368_v32 }
 0xc81   : > { %v7052_v45 = vadd.f32 %v7051_v38, %v6943_v13  ;;  %7563 = vst [vmem:[%s13193_s7 + $0x48] sm:$0xff] %v7477_v6  ;;  %v7386_v38 = vadd.f32 %v13184_v53, %v13243_v54  ;;  %v7397_v6 = vpop.f32.mrf.mxu0 }
 0xc83   : > { %v7139_v51 = vmax.f32 %v7052_v45, 0.0 }
 0xc85   : > { %v7191_v5 = vpack.c.bf16 %v7139_v51, %v7137_v39 }
 0xc86   : > { %v6945_v42 = vpop.f32.mrf.mxu2  ;;  %v7479_v50 = vpop.f32.mrf.mxu1 }
 0xc87   : > { %v7054_v29 = vpop.f32.mrf.mxu3  ;;  %v7480_v7 = vadd.f32 %v7479_v50, %v7371_v12  ;;  %v6946_v47 = vadd.f32 %v6945_v42, %v13085_v16  ;;  %v7388_v42 = vadd.f32 %v13184_v53, %v13250_v15 }
 0xc89   : > { %7564 = vst [vmem:[%s13193_s7 + $0x50] sm:$0xff] %v7480_v7  ;;  %7518 = vmatmul.bf16.gmra.mxu1 %v7191_v5  ;;  %v7055_v62 = vadd.f32 %v7054_v29, %v6946_v47  ;;  %v7400_v7 = vpop.f32.mrf.mxu0 }
 0xc8b   : > { %v7141_v34 = vmax.f32 %v7055_v62, 0.0 }
 0xc8e   : > { %v6947_v11 = vpop.f32.mrf.mxu2  ;;  %v7481_v43 = vpop.f32.mrf.mxu1 }
 0xc8f   : > { %v6948_v61 = vadd.f32 %v6947_v11, %v13085_v16  ;;  %v7056_v10 = vpop.f32.mrf.mxu3  ;;  %v7482_v57 = vadd.f32 %v7481_v43, %v7373_v0 }
 0xc91   : > { %v7057_v49 = vadd.f32 %v7056_v10, %v6948_v61  ;;  %7565 = vst [vmem:[%s13193_s7 + $0x58] sm:$0xff] %v7482_v57  ;;  %v7391_v10 = vadd.f32 %v13184_v53, %v7390_v19 }
 0xc93   : > { %v7143_v25 = vmax.f32 %v7057_v49, 0.0 }
 0xc95   : > { %v7193_v4 = vpack.c.bf16 %v7143_v25, %v7141_v34  ;;  %v7402_v34 = vpop.f32.mrf.mxu0 }
 0xc96   : > { %v6950_v3 = vpop.f32.mrf.mxu2  ;;  %v7484_v40 = vpop.f32.mrf.mxu1 }
 0xc97   : > { %v7059_v56 = vpop.f32.mrf.mxu3  ;;  %v7485_v14 = vadd.f32 %v7484_v40, %v7376_v37  ;;  %v6951_v59 = vadd.f32 %v6950_v3, %v13085_v16  ;;  %v7393_v3 = vadd.f32 %v13184_v53, %v7392_v28 }
 0xc99   : > { %7566 = vst [vmem:[%s13193_s7 + $0x60] sm:$0xff] %v7485_v14  ;;  %7523 = vmatmul.bf16.gmra.mxu1 %v7193_v4  ;;  %v7060_v18 = vadd.f32 %v7059_v56, %v6951_v59 }
 0xc9b   : > { %v7145_v33 = vmax.f32 %v7060_v18, 0.0 }
 0xc9e   : > { %v6952_v27 = vpop.f32.mrf.mxu2  ;;  %v7486_v26 = vpop.f32.mrf.mxu1 }
 0xc9f   : > { %v6953_v20 = vadd.f32 %v6952_v27, %v13085_v16  ;;  %v7061_v60 = vpop.f32.mrf.mxu3  ;;  %v7487_v58 = vadd.f32 %v7486_v26, %v7378_v30  ;;  %v7405_v26 = vpop.f32.mrf.mxu0 }
 0xca1   : > { %v7062_v23 = vadd.f32 %v7061_v60, %v6953_v20  ;;  %7567 = vst [vmem:[%s13193_s7 + $0x68] sm:$0xff] %v7487_v58  ;;  %v7396_v60 = vadd.f32 %v13184_v53, %v7395_v48 }
 0xca3   : > { %v7147_v63 = vmax.f32 %v7062_v23, 0.0 }
 0xca5   : > { %v7195_v21 = vpack.c.bf16 %v7147_v63, %v7145_v33  ;;  %v7398_v33 = vadd.f32 %v13184_v53, %v7397_v6 }
 0xca6   : > { %v6955_v36 = vpop.f32.mrf.mxu2  ;;  %v7489_v8 = vpop.f32.mrf.mxu1 }
 0xca7   : > { %v7064_v55 = vpop.f32.mrf.mxu3  ;;  %v7490_v24 = vadd.f32 %v7489_v8, %v7381_v1  ;;  %v6956_v35 = vadd.f32 %v6955_v36, %v13085_v16  ;;  %v7407_v36 = vpop.f32.mrf.mxu0 }
 0xca9   : > { %7568 = vst [vmem:[%s13193_s7 + $0x70] sm:$0xff] %v7490_v24  ;;  %7528 = vmatmul.bf16.gmra.mxu1 %v7195_v21  ;;  %v7065_v52 = vadd.f32 %v7064_v55, %v6956_v35 }
 0xcab   : > { %v7149_v17 = vmax.f32 %v7065_v52, 0.0 }
 0xcae   : > { %v6957_v46 = vpop.f32.mrf.mxu2  ;;  %v7491_v41 = vpop.f32.mrf.mxu1 }
 0xcaf   : > { %v6958_v44 = vadd.f32 %v6957_v46, %v13085_v16  ;;  %v7066_v32 = vpop.f32.mrf.mxu3  ;;  %v7492_v9 = vadd.f32 %v7491_v41, %v7383_v2 }
 0xcb1   : > { %v7067_v31 = vadd.f32 %v7066_v32, %v6958_v44  ;;  %7569 = vst [vmem:[%s13193_s7 + $0x78] sm:$0xff] %v7492_v9  ;;  %v7401_v44 = vadd.f32 %v13184_v53, %v7400_v7 }
 0xcb3   : > { %v7151_v13 = vmax.f32 %v7067_v31, 0.0 }
 0xcb5   : > { %v7197_v51 = vpack.c.bf16 %v7151_v13, %v7149_v17  ;;  %v7410_v13 = vpop.f32.mrf.mxu0 }
 0xcb6   : > { %v6960_v45 = vpop.f32.mrf.mxu2  ;;  %v7494_v22 = vpop.f32.mrf.mxu1 }
 0xcb7   : > { %v7069_v12 = vpop.f32.mrf.mxu3  ;;  %v7495_v39 = vadd.f32 %v7494_v22, %v7386_v38  ;;  %v6961_v50 = vadd.f32 %v6960_v45, %v13085_v16  ;;  %v7406_v45 = vadd.f32 %v13184_v53, %v7405_v26 }
 0xcb9   : > { %7570 = vst [vmem:[%s13193_s7 + $0x80] sm:$0xff] %v7495_v39  ;;  %7533 = vmatmul.bf16.gmra.mxu1 %v7197_v51  ;;  %v7070_v11 = vadd.f32 %v7069_v12, %v6961_v50  ;;  %v7408_v39 = vadd.f32 %v13184_v53, %v7407_v36 }
 0xcbb   : > { %v7153_v57 = vmax.f32 %v7070_v11, 0.0 }
 0xcbd   : > { %v7412_v17 = vpop.f32.mrf.mxu0 }
 0xcbe   : > { %v6962_v5 = vpop.f32.mrf.mxu2  ;;  %v7496_v29 = vpop.f32.mrf.mxu1 }
 0xcbf   : > { %v6963_v54 = vadd.f32 %v6962_v5, %v13085_v16  ;;  %v7071_v0 = vpop.f32.mrf.mxu3  ;;  %v7497_v47 = vadd.f32 %v7496_v29, %v7388_v42  ;;  %v7411_v5 = vadd.f32 %v13184_v53, %v7410_v13 }
 0xcc1   : > { %v7072_v43 = vadd.f32 %v7071_v0, %v6963_v54  ;;  %7571 = vst [vmem:[%s13193_s7 + $0x88] sm:$0xff] %v7497_v47  ;;  %v7413_v0 = vadd.f32 %v13184_v53, %v7412_v17 }
 0xcc3   : > { %v7155_v61 = vmax.f32 %v7072_v43, 0.0 }
 0xcc5   : > { %v7199_v15 = vpack.c.bf16 %v7155_v61, %v7153_v57  ;;  %v7415_v12 = vpop.f32.mrf.mxu0 }
 0xcc6   : > { %v6965_v62 = vpop.f32.mrf.mxu2  ;;  %v7499_v49 = vpop.f32.mrf.mxu1  ;;  %v7416_v61 = vadd.f32 %v13184_v53, %v7415_v12 }
 0xcc7   : > { %v7074_v25 = vpop.f32.mrf.mxu3  ;;  %v7500_v37 = vadd.f32 %v7499_v49, %v7391_v10  ;;  %v6966_v40 = vadd.f32 %v6965_v62, %v13085_v16 }
 0xcc9   : > { %7572 = vst [vmem:[%s13193_s7 + $0x90] sm:$0xff] %v7500_v37  ;;  %7538 = vmatmul.bf16.gmra.mxu1 %v7199_v15  ;;  %v7075_v59 = vadd.f32 %v7074_v25, %v6966_v40 }
 0xccb   : > { %v7157_v58 = vmax.f32 %v7075_v59, 0.0 }
 0xccd   : > { %v7417_v29 = vpop.f32.mrf.mxu0 }
 0xcce   : > { %v6967_v4 = vpop.f32.mrf.mxu2  ;;  %v7501_v56 = vpop.f32.mrf.mxu1  ;;  %v7418_v49 = vadd.f32 %v13184_v53, %v7417_v29 }
 0xccf   : > { %v6968_v14 = vadd.f32 %v6967_v4, %v13085_v16  ;;  %v7076_v19 = vpop.f32.mrf.mxu3  ;;  %v7502_v30 = vadd.f32 %v7501_v56, %v7393_v3 }
 0xcd1   : > { %v7077_v27 = vadd.f32 %v7076_v19, %v6968_v14  ;;  %7573 = vst [vmem:[%s13193_s7 + $0x98] sm:$0xff] %v7502_v30 }
 0xcd3   : > { %v7159_v20 = vmax.f32 %v7077_v27, 0.0 }
 0xcd5   : > { %v7201_v28 = vpack.c.bf16 %v7159_v20, %v7157_v58  ;;  %v7420_v43 = vpop.f32.mrf.mxu0 }
 0xcd6   : > { %v6970_v18 = vpop.f32.mrf.mxu2  ;;  %v7504_v23 = vpop.f32.mrf.mxu1 }
 0xcd7   : > { %v7079_v63 = vpop.f32.mrf.mxu3  ;;  %v7505_v1 = vadd.f32 %v7504_v23, %v7396_v60  ;;  %v6971_v8 = vadd.f32 %v6970_v18, %v13085_v16 }
 0xcd9   : > { %7574 = vst [vmem:[%s13193_s7 + $0xa0] sm:$0xff] %v7505_v1  ;;  %7543 = vmatmul.bf16.gmra.mxu1 %v7201_v28  ;;  %v7080_v35 = vadd.f32 %v7079_v63, %v6971_v8 }
 0xcdb   : > { %v7161_v32 = vmax.f32 %v7080_v35, 0.0 }
 0xcdd   : > { %v7422_v62 = vpop.f32.mrf.mxu0 }
 0xcde   : > { %v6972_v21 = vpop.f32.mrf.mxu2  ;;  %v7506_v55 = vpop.f32.mrf.mxu1  ;;  %v7423_v4 = vadd.f32 %v13184_v53, %v7422_v62 }
 0xcdf   : > { %v6973_v24 = vadd.f32 %v6972_v21, %v13085_v16  ;;  %v7507_v48 = vadd.f32 %v7506_v55, %v7398_v33  ;;  %v7081_v2 = vpop.f32.mrf.mxu3  ;;  %v7403_v16 = vadd.f32 %v13184_v53, %v7402_v34  ;;  %v7421_v34 = vadd.f32 %v13184_v53, %v7420_v43 }
 0xce1   : > { %v7082_v46 = vadd.f32 %v7081_v2, %v6973_v24  ;;  %7575 = vst [vmem:[%s13193_s7 + $0xa8] sm:$0xff] %v7507_v48 }
 0xce3   : > { %v7163_v41 = vmax.f32 %v7082_v46, 0.0 }
 0xce5   : > { %v7203_v52 = vpack.c.bf16 %v7163_v41, %v7161_v32  ;;  %v7425_v37 = vpop.f32.mrf.mxu0 }
 0xce6   : > { %v7509_v9 = vpop.f32.mrf.mxu1  ;;  %v7426_v30 = vadd.f32 %v13184_v53, %v7425_v37 }
 0xce7   : > { %v7510_v31 = vadd.f32 %v7509_v9, %v7401_v44 }
 0xce9   : > { %7576 = vst [vmem:[%s13193_s7 + $0xb0] sm:$0xff] %v7510_v31  ;;  %7548 = vmatmul.bf16.gmra.mxu1 %v7203_v52 }
 0xced   : > { %v7427_v56 = vpop.f32.mrf.mxu0 }
 0xcee   : > { %v7511_v38 = vpop.f32.mrf.mxu1  ;;  %v7428_v20 = vadd.f32 %v13184_v53, %v7427_v56 }
 0xcef   : > { %v7512_v6 = vadd.f32 %v7511_v38, %v7403_v16 }
 0xcf1   : > { %7577 = vst [vmem:[%s13193_s7 + $0xb8] sm:$0xff] %v7512_v6 }
 0xcf5   : > { %v7430_v26 = vpop.f32.mrf.mxu0 }
 0xcf6   : > { %v7514_v22 = vpop.f32.mrf.mxu1  ;;  %v7431_v23 = vadd.f32 %v13184_v53, %v7430_v26 }
 0xcf7   : > { %v7515_v51 = vadd.f32 %v7514_v22, %v7406_v45 }
 0xcf9   : > { %7578 = vst [vmem:[%s13193_s7 + $0xc0] sm:$0xff] %v7515_v51 }
 0xcfd   : > { %v7432_v18 = vpop.f32.mrf.mxu0 }
 0xcfe   : > { %v7516_v42 = vpop.f32.mrf.mxu1  ;;  %v7433_v33 = vadd.f32 %v13184_v53, %v7432_v18 }
 0xcff   : > { %v7517_v50 = vadd.f32 %v7516_v42, %v7408_v39 }
 0xd01   : > { %7579 = vst [vmem:[%s13193_s7 + $0xc8] sm:$0xff] %v7517_v50 }
 0xd05   : > { %v7435_v1 = vpop.f32.mrf.mxu0 }
 0xd06   : > { %v7519_v7 = vpop.f32.mrf.mxu1  ;;  %v7436_v21 = vadd.f32 %v13184_v53, %v7435_v1 }
 0xd07   : > { %v7520_v54 = vadd.f32 %v7519_v7, %v7411_v5 }
 0xd09   : > { %7580 = vst [vmem:[%s13193_s7 + $0xd0] sm:$0xff] %v7520_v54 }
 0xd0d   : > { %v7437_v55 = vpop.f32.mrf.mxu0 }
 0xd0e   : > { %v7521_v47 = vpop.f32.mrf.mxu1  ;;  %v7438_v2 = vadd.f32 %v13184_v53, %v7437_v55 }
 0xd0f   : > { %v7522_v11 = vadd.f32 %v7521_v47, %v7413_v0 }
 0xd11   : > { %7581 = vst [vmem:[%s13193_s7 + $0xd8] sm:$0xff] %v7522_v11 }
 0xd15   : > { %v7440_v41 = vpop.f32.mrf.mxu0 }
 0xd16   : > { %v7524_v10 = vpop.f32.mrf.mxu1  ;;  %v7441_v44 = vadd.f32 %v13184_v53, %v7440_v41 }
 0xd17   : > { %v7525_v57 = vadd.f32 %v7524_v10, %v7416_v61 }
 0xd19   : > { %7582 = vst [vmem:[%s13193_s7 + $0xe0] sm:$0xff] %v7525_v57 }
 0xd1d   : > { %v7442_v52 = vpop.f32.mrf.mxu0 }
 0xd1e   : > { %v7526_v15 = vpop.f32.mrf.mxu1  ;;  %v7443_v31 = vadd.f32 %v13184_v53, %v7442_v52 }
 0xd1f   : > { %v7527_v25 = vadd.f32 %v7526_v15, %v7418_v49 }
 0xd21   : > { %7583 = vst [vmem:[%s13193_s7 + $0xe8] sm:$0xff] %v7527_v25 }
 0xd26   : > { %v7529_v3 = vpop.f32.mrf.mxu1 }
 0xd27   : > { %v7530_v40 = vadd.f32 %v7529_v3, %v7421_v34 }
 0xd29   : > { %7584 = vst [vmem:[%s13193_s7 + $0xf0] sm:$0xff] %v7530_v40 }
 0xd2e   : > { %v7531_v14 = vpop.f32.mrf.mxu1 }
 0xd2f   : > { %v7532_v19 = vadd.f32 %v7531_v14, %v7423_v4 }
 0xd31   : > { %7585 = vst [vmem:[%s13193_s7 + $0xf8] sm:$0xff] %v7532_v19 }
 0xd36   : > { %v7534_v59 = vpop.f32.mrf.mxu1 }
 0xd37   : > { %v7535_v27 = vadd.f32 %v7534_v59, %v7426_v30 }
 0xd39   : > { %7586 = vst [vmem:[%s13193_s7 + $0x100] sm:$0xff] %v7535_v27 }
 0xd3e   : > { %v7536_v60 = vpop.f32.mrf.mxu1 }
 0xd3f   : > { %v7537_v58 = vadd.f32 %v7536_v60, %v7428_v20 }
 0xd41   : > { %7587 = vst [vmem:[%s13193_s7 + $0x108] sm:$0xff] %v7537_v58 }
 0xd46   : > { %v7539_v28 = vpop.f32.mrf.mxu1 }
 0xd47   : > { %v7540_v63 = vadd.f32 %v7539_v28, %v7431_v23 }
 0xd49   : > { %7588 = vst [vmem:[%s13193_s7 + $0x110] sm:$0xff] %v7540_v63 }
 0xd4e   : > { %v7541_v36 = vpop.f32.mrf.mxu1 }
 0xd4f   : > { %v7542_v8 = vadd.f32 %v7541_v36, %v7433_v33 }
 0xd51   : > { %7589 = vst [vmem:[%s13193_s7 + $0x118] sm:$0xff] %v7542_v8 }
 0xd56   : > { %v7544_v24 = vpop.f32.mrf.mxu1 }
 0xd57   : > { %v7545_v48 = vadd.f32 %v7544_v24, %v7436_v21 }
 0xd59   : > { %7590 = vst [vmem:[%s13193_s7 + $0x120] sm:$0xff] %v7545_v48 }
 0xd5e   : > { %v7546_v35 = vpop.f32.mrf.mxu1 }
 0xd5f   : > { %v7547_v46 = vadd.f32 %v7546_v35, %v7438_v2 }
 0xd61   : > { %7591 = vst [vmem:[%s13193_s7 + $0x128] sm:$0xff] %v7547_v46 }
 0xd66   : > { %v7549_v32 = vpop.f32.mrf.mxu1 }
 0xd67   : > { %v7550_v9 = vadd.f32 %v7549_v32, %v7441_v44 }
 0xd69   : > { %7592 = vst [vmem:[%s13193_s7 + $0x130] sm:$0xff] %v7550_v9 }
 0xd6d   : > { %7601 = sbr.rel (!%p9733_p11) target bundleno = 3473 (0xd91), region = 64 }
 0xd6e   : > { %v7551_v13 = vpop.f32.mrf.mxu1 }
 0xd6f   : > { %v7552_v16 = vadd.f32 %v7551_v13, %v7443_v31 }
 0xd71   : > { %7593 = vst [vmem:[%s13193_s7 + $0x138] sm:$0xff] %v7552_v16 }
 0xd72   : > { %s14109_s28 = smov (!%p7604_p6, %s7603_s28), 40 }
 0xd73   : > { %s8963_s14 = sshll.u32 %s14109_s28, 3 }
 0xd74   : > { %s7607_s15 = ssub.s32 320, %s8963_s14 }
 0xd75   : > { %s7608_s23 = sshll.u32 %s7607_s15, 4 }
 0xd76   : > { %7609 = vsyncadd %s7595_s27, %s7608_s23  ;;  %p13336_p5 = scmp.ne.s32.totalorder %s8963_s14, 0  ;;  %s9277_s26 = smul.u32 320, %s9702_s22 }
 0xd77   : > { %s7614_s9 = sshll.u32 %s13193_s7, 4  ;;  %s8967_s11 = sshll.u32 %s14109_s28, 7  ;;  %s13346_s9 = int_to_ptr.vmem [resolvable:$true] %s7614_s9 }
 0xd78   : > { %s7612_s17 = scalar_lea.hbm %s13395_s5, %s9277_s26  ;;  %s9548_s3 = sshra.s32 %s13346_s9, 4  ;;  %s9549_s3 = int_to_ptr.vmem [resolvable:$true] %s9548_s3 }
 0xd79   : > { %s7616_s25 = sshll.u32 %s7612_s17, 4  ;;  %s9550_s24 = sshrl.u32 %s8967_s11, 4  ;;  %s13348_s25 = int_to_ptr.hbm [resolvable:$true] %s7616_s25 }
 0xd7a   : > { %s9555_s13 = scalar_lea.vmem %s9549_s3, %s9550_s24  ;;  %s9648_s22 = smov [#allocation11]  }
 0xd7b   : > { %p9556_p11 = scmp.ne.s32.totalorder %s9549_s3, %s9555_s13  ;;  %s9559_s16 = scalar_lea.vmem %s9648_s22, 640 }
 0xd7c   : > { %p9561_p1 = scmp.lt.s32.totalorder %s9559_s16, %s9555_s13 }
 0xd7d   : > { %p9557_p9 = pnand %p9556_p11, %p13336_p5 }
 0xd7f   : > { %p9558_p10 = pneg %p9557_p9 }
 0xd81   : > { %p9563_p0 = pnand %p9561_p1, %p9558_p10 }
 0xd83   : > { %9566 = shalt.err (!%p9563_p0)
}
 0xd84   : > { %s9567_s29 = sshra.s32 %s13348_s25, 4  ;;  %s9578_s15 = scalar_lea.hbm %s13395_s5, 632  ;;  %s9568_s29 = int_to_ptr.hbm [resolvable:$true] %s9567_s29 }
 0xd85   : > { %s9574_s7 = scalar_lea.hbm %s9568_s29, %s9550_s24  ;;  %p9579_p4 = scmp.lt.s32.totalorder %s9568_s29, %s13395_s5 }
 0xd86   : > { %p9575_p3 = scmp.ne.s32.totalorder %s9568_s29, %s9574_s7  ;;  %p9580_p12 = scmp.lt.s32.totalorder %s9578_s15, %s9574_s7 }
 0xd88   : > { %p9576_p7 = pnand %p9575_p3, %p13336_p5  ;;  %p9581_p13 = por %p9580_p12, %p9579_p4 }
 0xd8a   : > { %p9577_p8 = pneg %p9576_p7 }
 0xd8c   : > { %p9582_p2 = pnand %p9581_p13, %p9577_p8 }
 0xd8e   : > { %9585 = shalt.err (!%p9582_p2)
}
 0xd8f   : > { %s9649_s10 = smov 128   ;;  %s9650_s12 = smov 8  }
 0xd90   : > { %7622 = dma.vmem_to_hbm [thread:$0]  (%p13336_p5), %s13346_s9, %s8967_s11, %s13348_s25, %s7595_s27, %s9649_s10, %s9649_s10, %s9650_s12  }
 0xd91 PF: > { %s7631_s17 = sand.u32 1, %s9621_s18   ;;  %p14099_p6 = scmp.ne.s32.totalorder %s13605_s6, 0 }
 0xd92   : > { %p14100_p11 = scmp.ge.s32.totalorder %s9633_s21, 2  ;;  %s7632_s3 = scalar_lea.sflag [#allocation4], %s7631_s17 }
 0xd94   : > { %p9330_p9 = pnand %p14100_p11, %p14099_p6 }
 0xd96   : > { %p9331_p10 = pneg %p9330_p9 }
 0xd98   : > { %9616 = dma.done.wait (%p9331_p10), %s7632_s3, 5120  }
 0xd99   : > { %9618 = vsyncadd (%p9331_p10), %s7632_s3, 4294962176  ;;  %s14101_s21 = sld [smem:[#allocation16_spill]]  ;;  %s14103_s18 = smov %s9625_s19 }
 0xd9a   : > { %s14102_s30 = sld [smem:[#allocation17_spill]]  ;;  %s14104_s19 = smov %s9629_s20 }
 0xd9f   : > { %p20_p1 = scmp.ge.s32.totalorder %s14101_s21, 4  }
 0xda0   : > { %s14105_s20 = smov %s14102_s30 }
 0xda1   :  { %22 = sbr.rel (!%p20_p1) target bundleno = 10 (0xa), region = 116 }
 0xda6   :  { %7638 = vsyncpa [#allocation3], 1 }
 0xda7   :  { %7640 = vsyncpa [#allocation3 + $0x1], 1 }
 0xda8   :  { %7641 = vsyncpa [#allocation6], 1 }
 0xda9   :  { %7642 = vsyncpa [#allocation9], 1 }
 0xdaa   :  { %7643 = vsyncpa [#allocation4], 1 }
 0xdab   :  { %7645 = vsyncpa [#allocation4 + $0x1], 1 }

</bundles_post_ra>
